<compile_context>
chip_gen: v7x
topology: tpu7x:2x2x1
jax: 0.10.0
libtpu: 0.0.40
codegen_flags: <defaults>
</compile_context>

<pallas_src>
import jax
import jax.numpy as jnp
from jax.experimental import pallas as pl
from jax.experimental.pallas import tpu as pltpu

EPS = 1e-5                              # PyTorch BatchNorm default eps
VMEM_LIMIT_BYTES = 48 * 1024 * 1024     # <= v7x's 64 MiB physical VMEM
ROW_TILE_TARGET = 256                   # point-tile size target


def _row_tile(n, target=ROW_TILE_TARGET):
    """Largest multiple-of-8 divisor of n that is <= target (or n itself)."""
    if n <= target:
        return n
    t = target - (target % 8)
    while t >= 8:
        if n % t == 0:
            return t
        t -= 8
    return n


# ---------------------------------------------------------------------------
# Kernel 1: encoder (pfcn1..pfcn5 + global max-pool), one pass over points
# ---------------------------------------------------------------------------
def _encoder_kernel(x_ref,
                    w1, s1, b1, w2, s2, b2, w3, s3, b3, w4, s4, b4, w5, s5, b5,
                    o1_ref, o2_ref, o3_ref, o4_ref, o5_ref, omax_ref):
    j = pl.program_id(1)
    x = x_ref[0]                                  # (tn, Cin) bf16

    def pfcn(h_bf16, w_ref, s_ref, b_ref):
        acc = jnp.dot(h_bf16, w_ref[...], preferred_element_type=jnp.float32)
        return jnp.maximum(acc * s_ref[...] + b_ref[...], 0.0)

    h1 = pfcn(x, w1, s1, b1)                      # (tn, 128)  (64 real + pad)
    h2 = pfcn(h1.astype(jnp.bfloat16), w2, s2, b2)  # (tn, 128)
    h3 = pfcn(h2.astype(jnp.bfloat16), w3, s3, b3)  # (tn, 128)
    h4 = pfcn(x, w4, s4, b4)                      # (tn, 512)  raw input -> pfcn4
    h5 = pfcn(h4.astype(jnp.bfloat16), w5, s5, b5)  # (tn, 2048)

    o1_ref[0] = h1.astype(o1_ref.dtype)
    o2_ref[0] = h2.astype(o2_ref.dtype)
    o3_ref[0] = h3.astype(o3_ref.dtype)
    o4_ref[0] = h4.astype(o4_ref.dtype)
    o5_ref[0] = h5.astype(o5_ref.dtype)

    tile_max = jnp.max(h5, axis=0, keepdims=True)  # (1, 2048) running max-pool

    @pl.when(j == 0)
    def _():
        omax_ref[0] = tile_max

    @pl.when(j > 0)
    def _():
        omax_ref[0] = jnp.maximum(omax_ref[0], tile_max)


def encoder_forward(p, x_bnc, *, vmem_limit=VMEM_LIMIT_BYTES):
    B, N, Cin = x_bnc.shape
    tn = _row_tile(N)
    grid = (B, N // tn)

    def act(C):
        return pl.BlockSpec((1, tn, C), lambda b, j: (b, j, 0))

    def const(a):
        return pl.BlockSpec(a.shape, lambda b, j: (0, 0))

    in_specs = [act(Cin)]
    args = [x_bnc]
    for name in ("pfcn1", "pfcn2", "pfcn3", "pfcn4", "pfcn5"):
        lyr = p[name]
        in_specs += [const(lyr["w"]), const(lyr["scale"]), const(lyr["bias"])]
        args += [lyr["w"], lyr["scale"], lyr["bias"]]

    out_shape = (
        jax.ShapeDtypeStruct((B, N, 128), jnp.bfloat16),
        jax.ShapeDtypeStruct((B, N, 128), jnp.bfloat16),
        jax.ShapeDtypeStruct((B, N, 128), jnp.bfloat16),
        jax.ShapeDtypeStruct((B, N, 512), jnp.bfloat16),
        jax.ShapeDtypeStruct((B, N, 2048), jnp.bfloat16),
        jax.ShapeDtypeStruct((B, 1, 2048), jnp.float32),
    )
    out_specs = [act(128), act(128), act(128), act(512), act(2048),
                 pl.BlockSpec((1, 1, 2048), lambda b, j: (b, 0, 0))]

    return pl.pallas_call(
        _encoder_kernel,
        out_shape=out_shape,
        grid_spec=pltpu.PrefetchScalarGridSpec(
            num_scalar_prefetch=0, grid=grid,
            in_specs=in_specs, out_specs=out_specs),
        compiler_params=pltpu.CompilerParams(
            dimension_semantics=("parallel", "arbitrary"),
            vmem_limit_bytes=vmem_limit),
    )(*args)


# ---------------------------------------------------------------------------
# Kernel 2: classification head (fcn1..fcn3) + pooled pfcn6 contribution
# ---------------------------------------------------------------------------
def _cls_head_kernel(xmax_ref, oh_ref,
                     w1, s1, b1, w2, s2, b2, w3, b3, wg_pool, wg_oh,
                     cls_ref, g_ref):
    f32 = jnp.float32
    xm = xmax_ref[...].astype(jnp.bfloat16)                 # (B, 2048)
    h = jnp.maximum(jnp.dot(xm, w1[...], preferred_element_type=f32)
                    * s1[...] + b1[...], 0.0)
    # TODO(synk): FCN dropout is identity in inference mode.
    h = jnp.maximum(jnp.dot(h.astype(jnp.bfloat16), w2[...],
                            preferred_element_type=f32) * s2[...] + b2[...], 0.0)
    cls_ref[...] = jnp.dot(h.astype(jnp.bfloat16), w3[...],
                           preferred_element_type=f32) + b3[...]
    # Per-batch pfcn6 partial matmul: [out_max ; one_hot] @ W6[:2064]
    g_ref[...] = (jnp.dot(xm, wg_pool[...], preferred_element_type=f32)
                  + jnp.dot(oh_ref[...], wg_oh[...], preferred_element_type=f32))


def cls_head_forward(p, out_max, one_hot_pad):
    B = out_max.shape[0]
    p6 = p["pfcn6"]
    return pl.pallas_call(
        _cls_head_kernel,
        out_shape=(jax.ShapeDtypeStruct((B, 128), jnp.float32),   # padded cls
                   jax.ShapeDtypeStruct((B, 256), jnp.float32)),  # pooled g
    )(out_max, one_hot_pad,
      p["fcn1"]["w"], p["fcn1"]["scale"], p["fcn1"]["bias"],
      p["fcn2"]["w"], p["fcn2"]["scale"], p["fcn2"]["bias"],
      p["fcn3"]["w"], p["fcn3"]["bias"],
      p6["w_pool"], p6["w_oh"])


# ---------------------------------------------------------------------------
# Kernel 3: segmentation head (pfcn6..pfcn9), segment-accumulated, fused
# ---------------------------------------------------------------------------
def _seg_head_kernel(o1_ref, o2_ref, o3_ref, o4_ref, o5_ref, g_ref,
                     w61, w62, w63, w64, w65, s6, b6,
                     w7, s7, b7, w8, s8, b8, w9, b9,
                     seg_ref):
    f32 = jnp.float32
    acc = jnp.dot(o1_ref[0], w61[...], preferred_element_type=f32)
    acc = acc + jnp.dot(o2_ref[0], w62[...], preferred_element_type=f32)
    acc = acc + jnp.dot(o3_ref[0], w63[...], preferred_element_type=f32)
    acc = acc + jnp.dot(o4_ref[0], w64[...], preferred_element_type=f32)
    acc = acc + jnp.dot(o5_ref[0], w65[...], preferred_element_type=f32)
    acc = acc + g_ref[0]                       # (1,256) pooled/one-hot term
    h6 = jnp.maximum(acc * s6[...] + b6[...], 0.0)
    h7 = jnp.maximum(jnp.dot(h6.astype(jnp.bfloat16), w7[...],
                             preferred_element_type=f32) * s7[...] + b7[...], 0.0)
    h8 = jnp.maximum(jnp.dot(h7.astype(jnp.bfloat16), w8[...],
                             preferred_element_type=f32) * s8[...] + b8[...], 0.0)
    seg = jnp.dot(h8.astype(jnp.bfloat16), w9[...],
                  preferred_element_type=f32) + b9[...]
    seg_ref[0] = seg.astype(seg_ref.dtype)


def seg_head_forward(p, out1, out2, out3, out4, out5, g3,
                     *, vmem_limit=VMEM_LIMIT_BYTES):
    B, N, _ = out1.shape
    tn = _row_tile(N)
    grid = (B, N // tn)

    def act(C):
        return pl.BlockSpec((1, tn, C), lambda b, j: (b, j, 0))

    def const(a):
        return pl.BlockSpec(a.shape, lambda b, j: (0,) * a.ndim)

    p6 = p["pfcn6"]
    in_specs = [act(128), act(128), act(128), act(512), act(2048),
                pl.BlockSpec((1, 1, 256), lambda b, j: (b, 0, 0))]
    args = [out1, out2, out3, out4, out5, g3]
    for a in (p6["w1"], p6["w2"], p6["w3"], p6["w4"], p6["w5"],
              p6["scale"], p6["bias"],
              p["pfcn7"]["w"], p["pfcn7"]["scale"], p["pfcn7"]["bias"],
              p["pfcn8"]["w"], p["pfcn8"]["scale"], p["pfcn8"]["bias"],
              p["pfcn9"]["w"], p["pfcn9"]["bias"]):
        in_specs.append(const(a))
        args.append(a)

    return pl.pallas_call(
        _seg_head_kernel,
        out_shape=jax.ShapeDtypeStruct((B, N, 128), jnp.float32),  # padded seg
        grid_spec=pltpu.PrefetchScalarGridSpec(
            num_scalar_prefetch=0, grid=grid,
            in_specs=in_specs, out_specs=act(128)),
        compiler_params=pltpu.CompilerParams(
            dimension_semantics=("parallel", "parallel"),
            vmem_limit_bytes=vmem_limit),
    )(*args)


# ---------------------------------------------------------------------------
# Parameter construction (deterministic, synthetic, BN folded, bf16 weights)
# ---------------------------------------------------------------------------
def _dense_params(key, cin, cout, *, bn=True):
    k = jax.random.split(key, 6)
    w = jax.random.normal(k[0], (cin, cout), jnp.float32) / jnp.sqrt(jnp.float32(cin))
    b = 0.02 * jax.random.normal(k[1], (cout,), jnp.float32)
    if bn:
        gamma = 1.0 + 0.05 * jax.random.normal(k[2], (cout,), jnp.float32)
        beta = 0.05 * jax.random.normal(k[3], (cout,), jnp.float32)
        r_mean = 0.05 * jax.random.normal(k[4], (cout,), jnp.float32)
        r_var = 0.5 + jax.random.uniform(k[5], (cout,), jnp.float32)
        s = gamma * jax.lax.rsqrt(r_var + EPS)
        scale = s
        bias = (b - r_mean) * s + beta
    else:
        scale = jnp.ones((cout,), jnp.float32)
        bias = b
    return w, scale, bias


def _pad_cols(w, scale, bias, cout_pad):
    cout = w.shape[1]
    if cout == cout_pad:
        return w, scale, bias
    d = cout_pad - cout
    return (jnp.pad(w, ((0, 0), (0, d))),
            jnp.pad(scale, (0, d), constant_values=1.0),
            jnp.pad(bias, (0, d)))


def _pad_rows(w, cin_pad):
    cin = w.shape[0]
    if cin == cin_pad:
        return w
    return jnp.pad(w, ((0, cin_pad - cin), (0, 0)))


def init_params(key, in_channels, cat_num, part_num):
    ks = jax.random.split(key, 12)
    bf16 = jnp.bfloat16

    def pack(w, scale, bias):
        return {"w": w.astype(bf16),
                "scale": scale.reshape(1, -1).astype(jnp.float32),
                "bias": bias.reshape(1, -1).astype(jnp.float32)}

    p = {}
    # pfcn1: in -> 64, output channels lane-padded to 128 (zero cols).
    w, s, b = _dense_params(ks[0], in_channels, 64)
    p["pfcn1"] = pack(*_pad_cols(w, s, b, 128))
    # pfcn2: 64 -> 128, input rows padded to 128 to match padded out1.
    w, s, b = _dense_params(ks[1], 64, 128)
    p["pfcn2"] = pack(_pad_rows(w, 128), s, b)
    w, s, b = _dense_params(ks[2], 128, 128); p["pfcn3"] = pack(w, s, b)
    w, s, b = _dense_params(ks[3], 128, 512); p["pfcn4"] = pack(w, s, b)
    w, s, b = _dense_params(ks[4], 512, 2048); p["pfcn5"] = pack(w, s, b)
    w, s, b = _dense_params(ks[5], 2048, 256); p["fcn1"] = pack(w, s, b)
    w, s, b = _dense_params(ks[6], 256, 256); p["fcn2"] = pack(w, s, b)
    w, s, b = _dense_params(ks[7], 256, cat_num, bn=False)
    p["fcn3"] = pack(*_pad_cols(w, s, b, 128))              # lane-dense cls

    # pfcn6: single (2064+64+128+128+512+2048, 256) conv, split into segments
    # in the reference concat order [out_max, one_hot, out1, out2, out3, out4, out5].
    k_total = 2048 + cat_num + 64 + 128 + 128 + 512 + 2048
    w6, s6, b6 = _dense_params(ks[8], k_total, 256)
    off = [0]

    def take(n):
        seg = w6[off[0]:off[0] + n]
        off[0] += n
        return seg

    p["pfcn6"] = {
        "w_pool": take(2048).astype(bf16),
        "w_oh":   _pad_rows(take(cat_num), 128).astype(bf16),
        "w1":     _pad_rows(take(64), 128).astype(bf16),
        "w2":     take(128).astype(bf16),
        "w3":     take(128).astype(bf16),
        "w4":     take(512).astype(bf16),
        "w5":     take(2048).astype(bf16),
        "scale":  s6.reshape(1, -1).astype(jnp.float32),
        "bias":   b6.reshape(1, -1).astype(jnp.float32),
    }
    w, s, b = _dense_params(ks[9], 256, 256); p["pfcn7"] = pack(w, s, b)
    w, s, b = _dense_params(ks[10], 256, 128); p["pfcn8"] = pack(w, s, b)
    w, s, b = _dense_params(ks[11], 128, part_num, bn=False)
    p["pfcn9"] = pack(*_pad_cols(w, s, b, 128))             # lane-dense seg
    return p


# ---------------------------------------------------------------------------
# Forward pass
# ---------------------------------------------------------------------------
def pointnet_partseg_forward(params, x_bcn, labels, cat_num, part_num):
    B, Cin, N = x_bcn.shape
    x = jnp.transpose(x_bcn, (0, 2, 1)).astype(jnp.bfloat16)        # (B, N, Cin)

    out1, out2, out3, out4, out5, out_max3 = encoder_forward(params, x)
    out_max = out_max3[:, 0, :]                                     # (B, 2048)

    one_hot = jax.nn.one_hot(labels.reshape(-1), cat_num, dtype=jnp.float32)
    one_hot_pad = jnp.pad(one_hot, ((0, 0), (0, 128 - cat_num))).astype(jnp.bfloat16)

    cls_pad, g = cls_head_forward(params, out_max, one_hot_pad)
    cls = cls_pad[:, :cat_num]                                      # (B, cat_num)

    seg_pad = seg_head_forward(params, out1, out2, out3, out4, out5,
                               g.reshape(B, 1, 256))
    seg = jnp.transpose(seg_pad[:, :, :part_num], (0, 2, 1))        # (B, part, N)
    return cls, seg


if __name__ == "__main__":
    B, IN_CH, N_POINTS = 2, 128, 64
    CAT_NUM, PART_NUM = 16, 3

    key = jax.random.PRNGKey(0)
    kx, kl, kp = jax.random.split(key, 3)
    x = jax.random.normal(kx, (B, IN_CH, N_POINTS), jnp.float32)      # B x C x N
    labels = jax.random.randint(kl, (B, 1), 0, CAT_NUM, dtype=jnp.int32)
    params = init_params(kp, IN_CH, CAT_NUM, PART_NUM)

    cls_out, seg_out = pointnet_partseg_forward(params, x, labels, CAT_NUM, PART_NUM)
    jax.block_until_ready((cls_out, seg_out))

    assert cls_out.shape == (B, CAT_NUM)
    assert seg_out.shape == (B, PART_NUM, N_POINTS)
    assert jnp.all(jnp.isfinite(cls_out)) and jnp.all(jnp.isfinite(seg_out))
    print("KERNEL_OK")
</pallas_src>

<mosaic_0001>
module attributes {stable_mosaic.version = 11 : i64} {
  func.func @_encoder_kernel(%arg0: i32, %arg1: i32, %arg2: memref<1x64x128xbf16, #tpu.memory_space<vmem>>, %arg3: memref<128x128xbf16, #tpu.memory_space<vmem>>, %arg4: memref<1x128xf32, #tpu.memory_space<vmem>>, %arg5: memref<1x128xf32, #tpu.memory_space<vmem>>, %arg6: memref<128x128xbf16, #tpu.memory_space<vmem>>, %arg7: memref<1x128xf32, #tpu.memory_space<vmem>>, %arg8: memref<1x128xf32, #tpu.memory_space<vmem>>, %arg9: memref<128x128xbf16, #tpu.memory_space<vmem>>, %arg10: memref<1x128xf32, #tpu.memory_space<vmem>>, %arg11: memref<1x128xf32, #tpu.memory_space<vmem>>, %arg12: memref<128x512xbf16, #tpu.memory_space<vmem>>, %arg13: memref<1x512xf32, #tpu.memory_space<vmem>>, %arg14: memref<1x512xf32, #tpu.memory_space<vmem>>, %arg15: memref<512x2048xbf16, #tpu.memory_space<vmem>>, %arg16: memref<1x2048xf32, #tpu.memory_space<vmem>>, %arg17: memref<1x2048xf32, #tpu.memory_space<vmem>>, %arg18: memref<1x64x128xbf16, #tpu.memory_space<vmem>>, %arg19: memref<1x64x128xbf16, #tpu.memory_space<vmem>>, %arg20: memref<1x64x128xbf16, #tpu.memory_space<vmem>>, %arg21: memref<1x64x512xbf16, #tpu.memory_space<vmem>>, %arg22: memref<1x64x2048xbf16, #tpu.memory_space<vmem>>, %arg23: memref<1x1x2048xf32, #tpu.memory_space<vmem>>) attributes {dimension_semantics = [#tpu.dimension_semantics<parallel>, #tpu.dimension_semantics<arbitrary>], iteration_bounds = array<i64: 2, 1>, scalar_prefetch = 0 : i64, scratch_operands = 0 : i64, tpu.core_type = #tpu.core_type<tc>, window_params = [{transform_indices = @transform_0, window_bounds = array<i64: 1, 64, 128>}, {pipeline_mode = #tpu.pipeline_mode<synchronous>, transform_indices = @transform_1, window_bounds = array<i64: 128, 128>}, {pipeline_mode = #tpu.pipeline_mode<synchronous>, transform_indices = @transform_2, window_bounds = array<i64: 1, 128>}, {pipeline_mode = #tpu.pipeline_mode<synchronous>, transform_indices = @transform_3, window_bounds = array<i64: 1, 128>}, {pipeline_mode = #tpu.pipeline_mode<synchronous>, transform_indices = @transform_4, window_bounds = array<i64: 128, 128>}, {pipeline_mode = #tpu.pipeline_mode<synchronous>, transform_indices = @transform_5, window_bounds = array<i64: 1, 128>}, {pipeline_mode = #tpu.pipeline_mode<synchronous>, transform_indices = @transform_6, window_bounds = array<i64: 1, 128>}, {pipeline_mode = #tpu.pipeline_mode<synchronous>, transform_indices = @transform_7, window_bounds = array<i64: 128, 128>}, {pipeline_mode = #tpu.pipeline_mode<synchronous>, transform_indices = @transform_8, window_bounds = array<i64: 1, 128>}, {pipeline_mode = #tpu.pipeline_mode<synchronous>, transform_indices = @transform_9, window_bounds = array<i64: 1, 128>}, {pipeline_mode = #tpu.pipeline_mode<synchronous>, transform_indices = @transform_10, window_bounds = array<i64: 128, 512>}, {pipeline_mode = #tpu.pipeline_mode<synchronous>, transform_indices = @transform_11, window_bounds = array<i64: 1, 512>}, {pipeline_mode = #tpu.pipeline_mode<synchronous>, transform_indices = @transform_12, window_bounds = array<i64: 1, 512>}, {pipeline_mode = #tpu.pipeline_mode<synchronous>, transform_indices = @transform_13, window_bounds = array<i64: 512, 2048>}, {pipeline_mode = #tpu.pipeline_mode<synchronous>, transform_indices = @transform_14, window_bounds = array<i64: 1, 2048>}, {pipeline_mode = #tpu.pipeline_mode<synchronous>, transform_indices = @transform_15, window_bounds = array<i64: 1, 2048>}, {transform_indices = @transform_16, window_bounds = array<i64: 1, 64, 128>}, {transform_indices = @transform_17, window_bounds = array<i64: 1, 64, 128>}, {transform_indices = @transform_18, window_bounds = array<i64: 1, 64, 128>}, {transform_indices = @transform_19, window_bounds = array<i64: 1, 64, 512>}, {transform_indices = @transform_20, window_bounds = array<i64: 1, 64, 2048>}, {transform_indices = @transform_21, window_bounds = array<i64: 1, 1, 2048>}]} {
    %c0 = arith.constant 0 : index
    %c0_0 = arith.constant 0 : index
    %c0_1 = arith.constant 0 : index
    %0 = vector.load %arg2[%c0, %c0_0, %c0_1] : memref<1x64x128xbf16, #tpu.memory_space<vmem>>, vector<1x64x128xbf16>
    %1 = vector.shape_cast %0 : vector<1x64x128xbf16> to vector<64x128xbf16>
    %c0_2 = arith.constant 0 : index
    %c0_3 = arith.constant 0 : index
    %2 = vector.load %arg3[%c0_2, %c0_3] : memref<128x128xbf16, #tpu.memory_space<vmem>>, vector<128x128xbf16>
    %cst = arith.constant dense<0.000000e+00> : vector<64x128xf32>
    %3 = tpu.matmul %1, %2, %cst {dimension_numbers = #tpu.dot_dimension_numbers<[1], [0], [0], [1], [0, 0, 1, 1], [], []>} : vector<64x128xbf16>, vector<128x128xbf16>, vector<64x128xf32> -> vector<64x128xf32>
    %c0_4 = arith.constant 0 : index
    %c0_5 = arith.constant 0 : index
    %4 = vector.load %arg4[%c0_4, %c0_5] : memref<1x128xf32, #tpu.memory_space<vmem>>, vector<1x128xf32>
    %5 = vector.broadcast %4 : vector<1x128xf32> to vector<64x128xf32>
    %6 = arith.mulf %3, %5 : vector<64x128xf32>
    %c0_6 = arith.constant 0 : index
    %c0_7 = arith.constant 0 : index
    %7 = vector.load %arg5[%c0_6, %c0_7] : memref<1x128xf32, #tpu.memory_space<vmem>>, vector<1x128xf32>
    %8 = vector.broadcast %7 : vector<1x128xf32> to vector<64x128xf32>
    %9 = arith.addf %6, %8 : vector<64x128xf32>
    %cst_8 = arith.constant 0.000000e+00 : f32
    %10 = vector.broadcast %cst_8 : f32 to vector<64x128xf32>
    %11 = arith.maximumf %9, %10 : vector<64x128xf32>
    %12 = arith.truncf %11 : vector<64x128xf32> to vector<64x128xbf16>
    %c0_9 = arith.constant 0 : index
    %c0_10 = arith.constant 0 : index
    %13 = vector.load %arg6[%c0_9, %c0_10] : memref<128x128xbf16, #tpu.memory_space<vmem>>, vector<128x128xbf16>
    %cst_11 = arith.constant dense<0.000000e+00> : vector<64x128xf32>
    %14 = tpu.matmul %12, %13, %cst_11 {dimension_numbers = #tpu.dot_dimension_numbers<[1], [0], [0], [1], [0, 0, 1, 1], [], []>} : vector<64x128xbf16>, vector<128x128xbf16>, vector<64x128xf32> -> vector<64x128xf32>
    %c0_12 = arith.constant 0 : index
    %c0_13 = arith.constant 0 : index
    %15 = vector.load %arg7[%c0_12, %c0_13] : memref<1x128xf32, #tpu.memory_space<vmem>>, vector<1x128xf32>
    %16 = vector.broadcast %15 : vector<1x128xf32> to vector<64x128xf32>
    %17 = arith.mulf %14, %16 : vector<64x128xf32>
    %c0_14 = arith.constant 0 : index
    %c0_15 = arith.constant 0 : index
    %18 = vector.load %arg8[%c0_14, %c0_15] : memref<1x128xf32, #tpu.memory_space<vmem>>, vector<1x128xf32>
    %19 = vector.broadcast %18 : vector<1x128xf32> to vector<64x128xf32>
    %20 = arith.addf %17, %19 : vector<64x128xf32>
    %cst_16 = arith.constant 0.000000e+00 : f32
    %21 = vector.broadcast %cst_16 : f32 to vector<64x128xf32>
    %22 = arith.maximumf %20, %21 : vector<64x128xf32>
    %23 = arith.truncf %22 : vector<64x128xf32> to vector<64x128xbf16>
    %c0_17 = arith.constant 0 : index
    %c0_18 = arith.constant 0 : index
    %24 = vector.load %arg9[%c0_17, %c0_18] : memref<128x128xbf16, #tpu.memory_space<vmem>>, vector<128x128xbf16>
    %cst_19 = arith.constant dense<0.000000e+00> : vector<64x128xf32>
    %25 = tpu.matmul %23, %24, %cst_19 {dimension_numbers = #tpu.dot_dimension_numbers<[1], [0], [0], [1], [0, 0, 1, 1], [], []>} : vector<64x128xbf16>, vector<128x128xbf16>, vector<64x128xf32> -> vector<64x128xf32>
    %c0_20 = arith.constant 0 : index
    %c0_21 = arith.constant 0 : index
    %26 = vector.load %arg10[%c0_20, %c0_21] : memref<1x128xf32, #tpu.memory_space<vmem>>, vector<1x128xf32>
    %27 = vector.broadcast %26 : vector<1x128xf32> to vector<64x128xf32>
    %28 = arith.mulf %25, %27 : vector<64x128xf32>
    %c0_22 = arith.constant 0 : index
    %c0_23 = arith.constant 0 : index
    %29 = vector.load %arg11[%c0_22, %c0_23] : memref<1x128xf32, #tpu.memory_space<vmem>>, vector<1x128xf32>
    %30 = vector.broadcast %29 : vector<1x128xf32> to vector<64x128xf32>
    %31 = arith.addf %28, %30 : vector<64x128xf32>
    %cst_24 = arith.constant 0.000000e+00 : f32
    %32 = vector.broadcast %cst_24 : f32 to vector<64x128xf32>
    %33 = arith.maximumf %31, %32 : vector<64x128xf32>
    %c0_25 = arith.constant 0 : index
    %c0_26 = arith.constant 0 : index
    %34 = vector.load %arg12[%c0_25, %c0_26] : memref<128x512xbf16, #tpu.memory_space<vmem>>, vector<128x512xbf16>
    %cst_27 = arith.constant dense<0.000000e+00> : vector<64x512xf32>
    %35 = tpu.matmul %1, %34, %cst_27 {dimension_numbers = #tpu.dot_dimension_numbers<[1], [0], [0], [1], [0, 0, 1, 1], [], []>} : vector<64x128xbf16>, vector<128x512xbf16>, vector<64x512xf32> -> vector<64x512xf32>
    %c0_28 = arith.constant 0 : index
    %c0_29 = arith.constant 0 : index
    %36 = vector.load %arg13[%c0_28, %c0_29] : memref<1x512xf32, #tpu.memory_space<vmem>>, vector<1x512xf32>
    %37 = vector.broadcast %36 : vector<1x512xf32> to vector<64x512xf32>
    %38 = arith.mulf %35, %37 : vector<64x512xf32>
    %c0_30 = arith.constant 0 : index
    %c0_31 = arith.constant 0 : index
    %39 = vector.load %arg14[%c0_30, %c0_31] : memref<1x512xf32, #tpu.memory_space<vmem>>, vector<1x512xf32>
    %40 = vector.broadcast %39 : vector<1x512xf32> to vector<64x512xf32>
    %41 = arith.addf %38, %40 : vector<64x512xf32>
    %cst_32 = arith.constant 0.000000e+00 : f32
    %42 = vector.broadcast %cst_32 : f32 to vector<64x512xf32>
    %43 = arith.maximumf %41, %42 : vector<64x512xf32>
    %44 = arith.truncf %43 : vector<64x512xf32> to vector<64x512xbf16>
    %c0_33 = arith.constant 0 : index
    %c0_34 = arith.constant 0 : index
    %45 = vector.load %arg15[%c0_33, %c0_34] : memref<512x2048xbf16, #tpu.memory_space<vmem>>, vector<512x2048xbf16>
    %cst_35 = arith.constant dense<0.000000e+00> : vector<64x2048xf32>
    %46 = tpu.matmul %44, %45, %cst_35 {dimension_numbers = #tpu.dot_dimension_numbers<[1], [0], [0], [1], [0, 0, 1, 1], [], []>} : vector<64x512xbf16>, vector<512x2048xbf16>, vector<64x2048xf32> -> vector<64x2048xf32>
    %c0_36 = arith.constant 0 : index
    %c0_37 = arith.constant 0 : index
    %47 = vector.load %arg16[%c0_36, %c0_37] : memref<1x2048xf32, #tpu.memory_space<vmem>>, vector<1x2048xf32>
    %48 = vector.broadcast %47 : vector<1x2048xf32> to vector<64x2048xf32>
    %49 = arith.mulf %46, %48 : vector<64x2048xf32>
    %c0_38 = arith.constant 0 : index
    %c0_39 = arith.constant 0 : index
    %50 = vector.load %arg17[%c0_38, %c0_39] : memref<1x2048xf32, #tpu.memory_space<vmem>>, vector<1x2048xf32>
    %51 = vector.broadcast %50 : vector<1x2048xf32> to vector<64x2048xf32>
    %52 = arith.addf %49, %51 : vector<64x2048xf32>
    %cst_40 = arith.constant 0.000000e+00 : f32
    %53 = vector.broadcast %cst_40 : f32 to vector<64x2048xf32>
    %54 = arith.maximumf %52, %53 : vector<64x2048xf32>
    %55 = arith.truncf %11 : vector<64x128xf32> to vector<64x128xbf16>
    %c0_41 = arith.constant 0 : index
    %c0_42 = arith.constant 0 : index
    %c0_43 = arith.constant 0 : index
    %56 = vector.load %arg18[%c0_41, %c0_42, %c0_43] : memref<1x64x128xbf16, #tpu.memory_space<vmem>>, vector<1x64x128xbf16>
    %57 = vector.shape_cast %56 : vector<1x64x128xbf16> to vector<64x128xbf16>
    %58 = vector.shape_cast %55 : vector<64x128xbf16> to vector<1x64x128xbf16>
    tpu.vector_store %arg18[%c0_41, %c0_42, %c0_43], %58 {strides = array<i32>} : memref<1x64x128xbf16, #tpu.memory_space<vmem>>, vector<1x64x128xbf16>,
    %59 = arith.truncf %22 : vector<64x128xf32> to vector<64x128xbf16>
    %c0_44 = arith.constant 0 : index
    %c0_45 = arith.constant 0 : index
    %c0_46 = arith.constant 0 : index
    %60 = vector.load %arg19[%c0_44, %c0_45, %c0_46] : memref<1x64x128xbf16, #tpu.memory_space<vmem>>, vector<1x64x128xbf16>
    %61 = vector.shape_cast %60 : vector<1x64x128xbf16> to vector<64x128xbf16>
    %62 = vector.shape_cast %59 : vector<64x128xbf16> to vector<1x64x128xbf16>
    tpu.vector_store %arg19[%c0_44, %c0_45, %c0_46], %62 {strides = array<i32>} : memref<1x64x128xbf16, #tpu.memory_space<vmem>>, vector<1x64x128xbf16>,
    %63 = arith.truncf %33 : vector<64x128xf32> to vector<64x128xbf16>
    %c0_47 = arith.constant 0 : index
    %c0_48 = arith.constant 0 : index
    %c0_49 = arith.constant 0 : index
    %64 = vector.load %arg20[%c0_47, %c0_48, %c0_49] : memref<1x64x128xbf16, #tpu.memory_space<vmem>>, vector<1x64x128xbf16>
    %65 = vector.shape_cast %64 : vector<1x64x128xbf16> to vector<64x128xbf16>
    %66 = vector.shape_cast %63 : vector<64x128xbf16> to vector<1x64x128xbf16>
    tpu.vector_store %arg20[%c0_47, %c0_48, %c0_49], %66 {strides = array<i32>} : memref<1x64x128xbf16, #tpu.memory_space<vmem>>, vector<1x64x128xbf16>,
    %67 = arith.truncf %43 : vector<64x512xf32> to vector<64x512xbf16>
    %c0_50 = arith.constant 0 : index
    %c0_51 = arith.constant 0 : index
    %c0_52 = arith.constant 0 : index
    %68 = vector.load %arg21[%c0_50, %c0_51, %c0_52] : memref<1x64x512xbf16, #tpu.memory_space<vmem>>, vector<1x64x512xbf16>
    %69 = vector.shape_cast %68 : vector<1x64x512xbf16> to vector<64x512xbf16>
    %70 = vector.shape_cast %67 : vector<64x512xbf16> to vector<1x64x512xbf16>
    tpu.vector_store %arg21[%c0_50, %c0_51, %c0_52], %70 {strides = array<i32>} : memref<1x64x512xbf16, #tpu.memory_space<vmem>>, vector<1x64x512xbf16>,
    %71 = arith.truncf %54 : vector<64x2048xf32> to vector<64x2048xbf16>
    %c0_53 = arith.constant 0 : index
    %c0_54 = arith.constant 0 : index
    %c0_55 = arith.constant 0 : index
    %72 = vector.load %arg22[%c0_53, %c0_54, %c0_55] : memref<1x64x2048xbf16, #tpu.memory_space<vmem>>, vector<1x64x2048xbf16>
    %73 = vector.shape_cast %72 : vector<1x64x2048xbf16> to vector<64x2048xbf16>
    %74 = vector.shape_cast %71 : vector<64x2048xbf16> to vector<1x64x2048xbf16>
    tpu.vector_store %arg22[%c0_53, %c0_54, %c0_55], %74 {strides = array<i32>} : memref<1x64x2048xbf16, #tpu.memory_space<vmem>>, vector<1x64x2048xbf16>,
    %cst_56 = arith.constant dense<0xFF800000> : vector<2048xf32>
    %75 = vector.multi_reduction <maximumf>, %54, %cst_56 [0] : vector<64x2048xf32> to vector<2048xf32>
    %76 = vector.shape_cast %75 : vector<2048xf32> to vector<1x2048xf32>
    %c0_i32 = arith.constant 0 : i32
    %77 = arith.cmpi eq, %arg1, %c0_i32 : i32
    %78 = arith.extui %77 : i1 to i32
    %c0_i32_57 = arith.constant 0 : i32
    %79 = arith.cmpi ne, %78, %c0_i32_57 : i32
    scf.if %79 {
      %c0_60 = arith.constant 0 : index
      %c0_61 = arith.constant 0 : index
      %c0_62 = arith.constant 0 : index
      %83 = vector.load %arg23[%c0_60, %c0_61, %c0_62] : memref<1x1x2048xf32, #tpu.memory_space<vmem>>, vector<1x1x2048xf32>
      %84 = vector.shape_cast %83 : vector<1x1x2048xf32> to vector<1x2048xf32>
      %85 = vector.shape_cast %76 : vector<1x2048xf32> to vector<1x1x2048xf32>
      tpu.vector_store %arg23[%c0_60, %c0_61, %c0_62], %85 {strides = array<i32>} : memref<1x1x2048xf32, #tpu.memory_space<vmem>>, vector<1x1x2048xf32>,
    } else {
    }
    %c0_i32_58 = arith.constant 0 : i32
    %80 = arith.cmpi sgt, %arg1, %c0_i32_58 : i32
    %81 = arith.extui %80 : i1 to i32
    %c0_i32_59 = arith.constant 0 : i32
    %82 = arith.cmpi ne, %81, %c0_i32_59 : i32
    scf.if %82 {
      %c0_60 = arith.constant 0 : index
      %c0_61 = arith.constant 0 : index
      %c0_62 = arith.constant 0 : index
      %83 = vector.load %arg23[%c0_60, %c0_61, %c0_62] : memref<1x1x2048xf32, #tpu.memory_space<vmem>>, vector<1x1x2048xf32>
      %84 = vector.shape_cast %83 : vector<1x1x2048xf32> to vector<1x2048xf32>
      %85 = arith.maximumf %84, %76 : vector<1x2048xf32>
      %c0_63 = arith.constant 0 : index
      %c0_64 = arith.constant 0 : index
      %c0_65 = arith.constant 0 : index
      %86 = vector.load %arg23[%c0_63, %c0_64, %c0_65] : memref<1x1x2048xf32, #tpu.memory_space<vmem>>, vector<1x1x2048xf32>
      %87 = vector.shape_cast %86 : vector<1x1x2048xf32> to vector<1x2048xf32>
      %88 = vector.shape_cast %85 : vector<1x2048xf32> to vector<1x1x2048xf32>
      tpu.vector_store %arg23[%c0_63, %c0_64, %c0_65], %88 {strides = array<i32>} : memref<1x1x2048xf32, #tpu.memory_space<vmem>>, vector<1x1x2048xf32>,
    } else {
    }
    return
  }
  func.func @transform_0(%arg0: i32, %arg1: i32) -> (i32, i32, i32) {
    %c0_i32 = arith.constant 0 : i32
    %c0_i32_0 = arith.constant 0 : i32
    return %arg0, %arg1, %c0_i32 : i32, i32, i32
  }
  func.func @transform_1(%arg0: i32, %arg1: i32) -> (i32, i32) {
    %c0_i32 = arith.constant 0 : i32
    %c0_i32_0 = arith.constant 0 : i32
    %c0_i32_1 = arith.constant 0 : i32
    return %c0_i32, %c0_i32_0 : i32, i32
  }
  func.func @transform_2(%arg0: i32, %arg1: i32) -> (i32, i32) {
    %c0_i32 = arith.constant 0 : i32
    %c0_i32_0 = arith.constant 0 : i32
    %c0_i32_1 = arith.constant 0 : i32
    return %c0_i32, %c0_i32_0 : i32, i32
  }
  func.func @transform_3(%arg0: i32, %arg1: i32) -> (i32, i32) {
    %c0_i32 = arith.constant 0 : i32
    %c0_i32_0 = arith.constant 0 : i32
    %c0_i32_1 = arith.constant 0 : i32
    return %c0_i32, %c0_i32_0 : i32, i32
  }
  func.func @transform_4(%arg0: i32, %arg1: i32) -> (i32, i32) {
    %c0_i32 = arith.constant 0 : i32
    %c0_i32_0 = arith.constant 0 : i32
    %c0_i32_1 = arith.constant 0 : i32
    return %c0_i32, %c0_i32_0 : i32, i32
  }
  func.func @transform_5(%arg0: i32, %arg1: i32) -> (i32, i32) {
    %c0_i32 = arith.constant 0 : i32
    %c0_i32_0 = arith.constant 0 : i32
    %c0_i32_1 = arith.constant 0 : i32
    return %c0_i32, %c0_i32_0 : i32, i32
  }
  func.func @transform_6(%arg0: i32, %arg1: i32) -> (i32, i32) {
    %c0_i32 = arith.constant 0 : i32
    %c0_i32_0 = arith.constant 0 : i32
    %c0_i32_1 = arith.constant 0 : i32
    return %c0_i32, %c0_i32_0 : i32, i32
  }
  func.func @transform_7(%arg0: i32, %arg1: i32) -> (i32, i32) {
    %c0_i32 = arith.constant 0 : i32
    %c0_i32_0 = arith.constant 0 : i32
    %c0_i32_1 = arith.constant 0 : i32
    return %c0_i32, %c0_i32_0 : i32, i32
  }
  func.func @transform_8(%arg0: i32, %arg1: i32) -> (i32, i32) {
    %c0_i32 = arith.constant 0 : i32
    %c0_i32_0 = arith.constant 0 : i32
    %c0_i32_1 = arith.constant 0 : i32
    return %c0_i32, %c0_i32_0 : i32, i32
  }
  func.func @transform_9(%arg0: i32, %arg1: i32) -> (i32, i32) {
    %c0_i32 = arith.constant 0 : i32
    %c0_i32_0 = arith.constant 0 : i32
    %c0_i32_1 = arith.constant 0 : i32
    return %c0_i32, %c0_i32_0 : i32, i32
  }
  func.func @transform_10(%arg0: i32, %arg1: i32) -> (i32, i32) {
    %c0_i32 = arith.constant 0 : i32
    %c0_i32_0 = arith.constant 0 : i32
    %c0_i32_1 = arith.constant 0 : i32
    return %c0_i32, %c0_i32_0 : i32, i32
  }
  func.func @transform_11(%arg0: i32, %arg1: i32) -> (i32, i32) {
    %c0_i32 = arith.constant 0 : i32
    %c0_i32_0 = arith.constant 0 : i32
    %c0_i32_1 = arith.constant 0 : i32
    return %c0_i32, %c0_i32_0 : i32, i32
  }
  func.func @transform_12(%arg0: i32, %arg1: i32) -> (i32, i32) {
    %c0_i32 = arith.constant 0 : i32
    %c0_i32_0 = arith.constant 0 : i32
    %c0_i32_1 = arith.constant 0 : i32
    return %c0_i32, %c0_i32_0 : i32, i32
  }
  func.func @transform_13(%arg0: i32, %arg1: i32) -> (i32, i32) {
    %c0_i32 = arith.constant 0 : i32
    %c0_i32_0 = arith.constant 0 : i32
    %c0_i32_1 = arith.constant 0 : i32
    return %c0_i32, %c0_i32_0 : i32, i32
  }
  func.func @transform_14(%arg0: i32, %arg1: i32) -> (i32, i32) {
    %c0_i32 = arith.constant 0 : i32
    %c0_i32_0 = arith.constant 0 : i32
    %c0_i32_1 = arith.constant 0 : i32
    return %c0_i32, %c0_i32_0 : i32, i32
  }
  func.func @transform_15(%arg0: i32, %arg1: i32) -> (i32, i32) {
    %c0_i32 = arith.constant 0 : i32
    %c0_i32_0 = arith.constant 0 : i32
    %c0_i32_1 = arith.constant 0 : i32
    return %c0_i32, %c0_i32_0 : i32, i32
  }
  func.func @transform_16(%arg0: i32, %arg1: i32) -> (i32, i32, i32) {
    %c0_i32 = arith.constant 0 : i32
    %c0_i32_0 = arith.constant 0 : i32
    return %arg0, %arg1, %c0_i32 : i32, i32, i32
  }
  func.func @transform_17(%arg0: i32, %arg1: i32) -> (i32, i32, i32) {
    %c0_i32 = arith.constant 0 : i32
    %c0_i32_0 = arith.constant 0 : i32
    return %arg0, %arg1, %c0_i32 : i32, i32, i32
  }
  func.func @transform_18(%arg0: i32, %arg1: i32) -> (i32, i32, i32) {
    %c0_i32 = arith.constant 0 : i32
    %c0_i32_0 = arith.constant 0 : i32
    return %arg0, %arg1, %c0_i32 : i32, i32, i32
  }
  func.func @transform_19(%arg0: i32, %arg1: i32) -> (i32, i32, i32) {
    %c0_i32 = arith.constant 0 : i32
    %c0_i32_0 = arith.constant 0 : i32
    return %arg0, %arg1, %c0_i32 : i32, i32, i32
  }
  func.func @transform_20(%arg0: i32, %arg1: i32) -> (i32, i32, i32) {
    %c0_i32 = arith.constant 0 : i32
    %c0_i32_0 = arith.constant 0 : i32
    return %arg0, %arg1, %c0_i32 : i32, i32, i32
  }
  func.func @transform_21(%arg0: i32, %arg1: i32) -> (i32, i32, i32) {
    %c0_i32 = arith.constant 0 : i32
    %c0_i32_0 = arith.constant 0 : i32
    %c0_i32_1 = arith.constant 0 : i32
    return %arg0, %c0_i32, %c0_i32_0 : i32, i32, i32
  }
}

</mosaic_0001>

<bundles_post_ra>
// kernel: tpu_custom_call.1
= control target key start
LH: loop header
LB: loop body
LE: loop exit
PB: predicated region body
PF: predicated region fallthrough
CT: control target
= control target key end

     0   :  { %s13128_s0 = inlined_call_operand.hbm [shape: bf16[2,64,128], index: 0, kind: input, shape index: {}]   ;;  %s13129_s1 = inlined_call_operand.hbm [shape: bf16[128,128], index: 1, kind: input, shape index: {}]   ;;  %s13130_s2 = inlined_call_operand.hbm [shape: f32[1,128], index: 2, kind: input, shape index: {}]   ;;  %s13131_s3 = inlined_call_operand.hbm [shape: f32[1,128], index: 3, kind: input, shape index: {}]   ;;  %s13132_s4 = inlined_call_operand.hbm [shape: bf16[128,128], index: 4, kind: input, shape index: {}]   ;;  %s13133_s5 = inlined_call_operand.hbm [shape: f32[1,128], index: 5, kind: input, shape index: {}]   ;;  %s13134_s6 = inlined_call_operand.hbm [shape: f32[1,128], index: 6, kind: input, shape index: {}]   ;;  %s13135_s7 = inlined_call_operand.hbm [shape: bf16[128,128], index: 7, kind: input, shape index: {}]   ;;  %s13136_s8 = inlined_call_operand.hbm [shape: f32[1,128], index: 8, kind: input, shape index: {}]   ;;  %s13137_s9 = inlined_call_operand.hbm [shape: f32[1,128], index: 9, kind: input, shape index: {}]   ;;  %s13138_s10 = inlined_call_operand.hbm [shape: bf16[128,512], index: 10, kind: input, shape index: {}]   ;;  %s13139_s11 = inlined_call_operand.hbm [shape: f32[1,512], index: 11, kind: input, shape index: {}]   ;;  %s13140_s12 = inlined_call_operand.hbm [shape: f32[1,512], index: 12, kind: input, shape index: {}]   ;;  %s13141_s13 = inlined_call_operand.hbm [shape: bf16[512,2048], index: 13, kind: input, shape index: {}]   ;;  %s13142_s14 = inlined_call_operand.hbm [shape: f32[1,2048], index: 14, kind: input, shape index: {}]   ;;  %s13143_s15 = inlined_call_operand.hbm [shape: f32[1,2048], index: 15, kind: input, shape index: {}]   ;;  %s13144_s16 = inlined_call_operand.hbm [shape: bf16[2,64,128], index: 16, kind: output, shape index: {0}]   ;;  %s13145_s17 = inlined_call_operand.hbm [shape: bf16[2,64,128], index: 17, kind: output, shape index: {1}]   ;;  %s13146_s18 = inlined_call_operand.hbm [shape: bf16[2,64,128], index: 18, kind: output, shape index: {2}]   ;;  %s13147_s19 = inlined_call_operand.hbm [shape: bf16[2,64,512], index: 19, kind: output, shape index: {3}]   ;;  %s13148_s20 = inlined_call_operand.hbm [shape: bf16[2,64,2048], index: 20, kind: output, shape index: {4}]   ;;  %s13149_s21 = inlined_call_operand.hbm [shape: f32[2,1,2048], index: 21, kind: output, shape index: {5}]  }
   0x1   :  { %13256 = sst [smem:[#allocation79_spill]] %s13128_s0 }
   0x2   :  { %13257 = sst [smem:[#allocation80_spill]] %s13129_s1 }
   0x3   :  { %13258 = sst [smem:[#allocation81_spill]] %s13130_s2 }
   0x4   :  { %13259 = sst [smem:[#allocation82_spill]] %s13131_s3 }
   0x5   :  { %13260 = sst [smem:[#allocation83_spill]] %s13132_s4 }
   0x6   :  { %13261 = sst [smem:[#allocation84_spill]] %s13133_s5 }
   0x7   :  { %13262 = sst [smem:[#allocation85_spill]] %s13134_s6 }
   0x8   :  { %13263 = sst [smem:[#allocation86_spill]] %s13135_s7 }
   0x9   :  { %13264 = sst [smem:[#allocation87_spill]] %s13136_s8 }
   0xa   :  { %13265 = sst [smem:[#allocation88_spill]] %s13137_s9 }
   0xb   :  { %13266 = sst [smem:[#allocation89_spill]] %s13138_s10 }
   0xc   :  { %13267 = sst [smem:[#allocation90_spill]] %s13139_s11 }
   0xd   :  { %13268 = sst [smem:[#allocation91_spill]] %s13140_s12 }
   0xe   :  { %13269 = sst [smem:[#allocation92_spill]] %s13141_s13 }
   0xf   :  { %13270 = sst [smem:[#allocation93_spill]] %s13142_s14 }
  0x10   :  { %13271 = sst [smem:[#allocation94_spill]] %s13143_s15 }
  0x11   :  { %13272 = sst [smem:[#allocation95_spill]] %s13144_s16 }
  0x12   :  { %13273 = sst [smem:[#allocation96_spill]] %s13145_s17 }
  0x13   :  { %13274 = sst [smem:[#allocation97_spill]] %s13146_s18 }
  0x14   :  { %13275 = sst [smem:[#allocation98_spill]] %s13147_s19 }
  0x15   :  { %13276 = sst [smem:[#allocation99_spill]] %s13148_s20 }
  0x16   :  { %13277 = sst [smem:[#allocation100_spill]] %s13149_s21 }
  0x17   :  { %27 = vsyncpa [#allocation3], 0 }
  0x18   :  { %29 = vsyncpa [#allocation3 + $0x1], 0 }
  0x19   :  { %30 = vsyncpa [#allocation6], 0 }
  0x1a   :  { %31 = vsyncpa [#allocation9], 0 }
  0x1b   :  { %32 = vsyncpa [#allocation12], 0 }
  0x1c   :  { %33 = vsyncpa [#allocation15], 0 }
  0x1d   :  { %34 = vsyncpa [#allocation18], 0 }
  0x1e   :  { %35 = vsyncpa [#allocation21], 0 }
  0x1f   :  { %36 = vsyncpa [#allocation24], 0 }
  0x20   :  { %37 = vsyncpa [#allocation27], 0 }
  0x21   :  { %38 = vsyncpa [#allocation4], 0 }
  0x22   :  { %40 = vsyncpa [#allocation4 + $0x1], 0 }
  0x23   :  { %41 = vsyncpa [#allocation30], 0 }
  0x24   :  { %43 = vsyncpa [#allocation30 + $0x1], 0 }
  0x25   :  { %44 = vsyncpa [#allocation33], 0 }
  0x26   :  { %46 = vsyncpa [#allocation33 + $0x1], 0 }
  0x27   :  { %47 = vsyncpa [#allocation36], 0 }
  0x28   :  { %49 = vsyncpa [#allocation36 + $0x1], 0  ;;  %s10768_s2 = smov 0   ;;  %s10770_s25 = smov 0  }
  0x29   :  { %s10772_s26 = smov 0   ;;  %s10774_s27 = smov 0  }
  0x2a   :  { %s10776_s3 = smov 0   ;;  %s10778_s28 = smov 0  }
  0x2b LB: > { %13278 = sst [smem:[#allocation50_spill]] %s10602_s2  ;;  %s10799_s29 = sadd.s32 4294967295, %s10622_s28   ;;  %s10622_s28 = sphi %s10778_s28, %s55_s28   ;;  %s10618_s3 = sphi %s10776_s3, %s13520_s3   ;;  %s10614_s27 = sphi %s10774_s27, %s13519_s27   ;;  %s10610_s26 = sphi %s10772_s26, %s13518_s26   ;;  %s10606_s25 = sphi %s10770_s25, %s13517_s25   ;;  %s10602_s2 = sphi %s10768_s2, %s13516_s2  }
  0x2c   : > { %13279 = sst [smem:[#allocation51_spill]] %s10606_s25  ;;  %p8417_p0 = scmp.ge.s32.totalorder %s10622_s28, 1 }
  0x2d   : > { %13280 = sst [smem:[#allocation52_spill]] %s10610_s26  ;;  %p13169_p1 = scmp.eq.s32.totalorder %s10799_s29, 0 }
  0x2e   : > { %13281 = sst [smem:[#allocation53_spill]] %s10614_s27  ;;  %p581_p2 = scmp.lt.s32.totalorder %s10622_s28, 3 }
  0x2f   : > { %13282 = sst [smem:[#allocation54_spill]] %s10799_s29  ;;  %s10624_s4 = smov [#allocation5]  }
  0x30   : > { %p10804_p3 = pnand %p8417_p0, %p581_p2  ;;  %s593_s30 = sshll.u32 %s10624_s4, 4  ;;  %s10808_s30 = int_to_ptr.vmem [resolvable:$true] %s593_s30 }
  0x31   : > { %s10625_s22 = smov [#allocation8]   ;;  %s10626_s1 = smov [#allocation11]  }
  0x32   : > { %s13283_s0 = scalar_select %p10804_p3, 1, 0 }
  0x33   : > { %p9652_p4 = pneg %p10804_p3  ;;  %s618_s23 = sshll.u32 %s10625_s22, 4  ;;  %s10819_s23 = int_to_ptr.vmem [resolvable:$true] %s618_s23 }
  0x34   : > { %13284 = sst [smem:[#allocation55_spill]] %s13283_s0  ;;  %s10821_s24 = sshll.u32 %s10626_s1, 4  ;;  %s643_s24 = int_to_ptr.vmem [resolvable:$true] %s10821_s24 }
  0x35   : > { %p10815_p6 = pnand %p9652_p4, %p13169_p1  ;;  %s13286_s20 = sld [smem:[#allocation80_spill]] }
  0x37   : > { %p10831_p8 = pneg %p10815_p6 }
  0x3b   : > { %s9906_s16 = scalar_lea.hbm %s13286_s20, 1024 }
  0x3c   : > { %p9907_p7 = scmp.ne.s32.totalorder %s13286_s20, %s9906_s16  ;;  %p9913_p11 = scmp.lt.u32.totalorder %s9906_s16, %s13286_s20 }
  0x3e   : > { %p9909_p9 = pnand %p10831_p8, %p9907_p7 }
  0x40   : > { %p9910_p10 = pneg %p9909_p9 }
  0x42   : > { %p9915_p12 = pnand %p9913_p11, %p9910_p10 }
  0x44   : > { %9918 = shalt.err (!%p9915_p12)
}
  0x45   : > { %s9919_s18 = scalar_lea.vmem %s10808_s30, 1024  ;;  %p9927_p4 = scmp.lt.s32.totalorder %s10808_s30, %s10808_s30 }
  0x46   : > { %p9920_p13 = scmp.ne.s32.totalorder %s10808_s30, %s9919_s18  ;;  %p9928_p5 = scmp.lt.s32.totalorder %s9919_s18, %s9919_s18 }
  0x48   : > { %p9922_p0 = pnand %p9920_p13, %p10831_p8  ;;  %p9929_p7 = por %p9928_p5, %p9927_p4 }
  0x4a   : > { %p9923_p2 = pneg %p9922_p0 }
  0x4c   : > { %p9930_p9 = pnand %p9929_p7, %p9923_p2 }
  0x4e   : > { %9933 = shalt.err (!%p9930_p9)
}
  0x4f   : > { %s13171_s19 = smov 64   ;;  %s13173_s16 = smov 4  }
  0x50   : > { %9655 = dma.hbm_to_vmem [thread:$0]  (!%p10815_p6), %s13286_s20, 1024, %s10808_s30, [#allocation6], %s13171_s19, %s13171_s19, %s13173_s16  }
  0x51   : > { %s13288_s27 = sld [smem:[#allocation82_spill]] }
  0x57   : > { %s13289_s0 = smov %s13288_s27  ;;  %s9934_s18 = scalar_lea.hbm %s13288_s27, 16 }
  0x58   : > { %p9935_p5 = scmp.ne.s32.totalorder %s13289_s0, %s9934_s18  ;;  %p9941_p12 = scmp.lt.u32.totalorder %s9934_s18, %s13289_s0 }
  0x5a   : > { %p9937_p10 = pnand %p9935_p5, %p10831_p8 }
  0x5c   : > { %p9938_p11 = pneg %p9937_p10 }
  0x5e   : > { %p9943_p13 = pnand %p9941_p12, %p9938_p11 }
  0x60   : > { %9946 = shalt.err (!%p9943_p13)
}
  0x61   : > { %s9947_s30 = scalar_lea.vmem %s10819_s23, 16  ;;  %s9954_s2 = scalar_lea.vmem %s10819_s23, 32 }
  0x62   : > { %p9948_p0 = scmp.ne.s32.totalorder %s10819_s23, %s9947_s30  ;;  %p9955_p7 = scmp.lt.s32.totalorder %s10819_s23, %s10819_s23 }
  0x63   : > { %p9956_p9 = scmp.lt.s32.totalorder %s9954_s2, %s9947_s30 }
  0x64   : > { %p9950_p2 = pnand %p9948_p0, %p10831_p8 }
  0x65   : > { %p9957_p5 = por %p9956_p9, %p9955_p7 }
  0x66   : > { %p9951_p4 = pneg %p9950_p2 }
  0x68   : > { %p9958_p10 = pnand %p9957_p5, %p9951_p4 }
  0x6a   : > { %9961 = shalt.err (!%p9958_p10)
}
  0x6b   : > { %9661 = dma.hbm_to_vmem [thread:$0]  (!%p10815_p6), %s13289_s0, 16, %s10819_s23, [#allocation9]  }
  0x6c   : > { %s13290_s21 = sld [smem:[#allocation84_spill]] }
  0x72   : > { %s9962_s4 = scalar_lea.hbm %s13290_s21, 16 }
  0x73   : > { %p9963_p11 = scmp.ne.s32.totalorder %s13290_s21, %s9962_s4  ;;  %p9969_p0 = scmp.lt.u32.totalorder %s9962_s4, %s13290_s21 }
  0x75   : > { %p9965_p12 = pnand %p9963_p11, %p10831_p8 }
  0x77   : > { %p9966_p13 = pneg %p9965_p12 }
  0x79   : > { %p9971_p2 = pnand %p9969_p0, %p9966_p13 }
  0x7b   : > { %9974 = shalt.err (!%p9971_p2)
}
  0x7c   : > { %s9975_s2 = scalar_lea.vmem %s643_s24, 16  ;;  %s9982_s23 = scalar_lea.vmem %s643_s24, 32 }
  0x7d   : > { %p9976_p4 = scmp.ne.s32.totalorder %s643_s24, %s9975_s2  ;;  %p9983_p5 = scmp.lt.s32.totalorder %s643_s24, %s643_s24 }
  0x7e   : > { %p9984_p10 = scmp.lt.s32.totalorder %s9982_s23, %s9975_s2 }
  0x7f   : > { %p9978_p7 = pnand %p9976_p4, %p10831_p8 }
  0x80   : > { %p9985_p1 = por %p9984_p10, %p9983_p5 }
  0x81   : > { %p9979_p9 = pneg %p9978_p7 }
  0x83   : > { %p9986_p3 = pnand %p9985_p1, %p9979_p9 }
  0x85   : > { %9989 = shalt.err (!%p9986_p3)
}
  0x86   : > { %9667 = dma.hbm_to_vmem [thread:$0]  (!%p10815_p6), %s13290_s21, 16, %s643_s24, [#allocation12]  }
  0x87   : > { %s10629_s27 = smov [#allocation14]   ;;  %s10630_s4 = smov [#allocation17]  }
  0x88   : > { %s663_s29 = sshll.u32 %s10629_s27, 4  ;;  %s688_s22 = sshll.u32 %s10630_s4, 4  ;;  %s664_s29 = int_to_ptr.vmem [resolvable:$true] %s663_s29  ;;  %s689_s22 = int_to_ptr.vmem [resolvable:$true] %s688_s22 }
  0x89   : > { %s13291_s7 = sld [smem:[#allocation86_spill]] }
  0x8f   : > { %s9990_s30 = scalar_lea.hbm %s13291_s7, 1024 }
  0x90   : > { %p9991_p1 = scmp.ne.s32.totalorder %s13291_s7, %s9990_s30  ;;  %p9997_p12 = scmp.lt.u32.totalorder %s9990_s30, %s13291_s7 }
  0x92   : > { %p9993_p3 = pnand %p9991_p1, %p10831_p8 }
  0x94   : > { %p9994_p11 = pneg %p9993_p3 }
  0x96   : > { %p9999_p13 = pnand %p9997_p12, %p9994_p11 }
  0x98   : > { %10002 = shalt.err (!%p9999_p13)
}
  0x99   : > { %s10003_s24 = scalar_lea.vmem %s664_s29, 1024  ;;  %p10011_p7 = scmp.lt.s32.totalorder %s664_s29, %s664_s29 }
  0x9a   : > { %p10004_p0 = scmp.ne.s32.totalorder %s664_s29, %s10003_s24  ;;  %p10012_p9 = scmp.lt.s32.totalorder %s10003_s24, %s10003_s24 }
  0x9c   : > { %p10006_p2 = pnand %p10004_p0, %p10831_p8  ;;  %p10013_p5 = por %p10012_p9, %p10011_p7 }
  0x9e   : > { %p10007_p4 = pneg %p10006_p2 }
  0xa0   : > { %p10014_p10 = pnand %p10013_p5, %p10007_p4 }
  0xa2   : > { %10017 = shalt.err (!%p10014_p10)
}
  0xa3   : > { %s13292_s26 = smov 64   ;;  %s13293_s9 = sld [smem:[#allocation88_spill]] }
  0xa4   : > { %9673 = dma.hbm_to_vmem [thread:$0]  (!%p10815_p6), %s13291_s7, 1024, %s664_s29, [#allocation15], %s13292_s26, %s13292_s26, %s13173_s16  }
  0xa9   : > { %s10018_s18 = scalar_lea.hbm %s13293_s9, 16 }
  0xaa   : > { %p10019_p1 = scmp.ne.s32.totalorder %s13293_s9, %s10018_s18  ;;  %p10025_p12 = scmp.lt.u32.totalorder %s10018_s18, %s13293_s9 }
  0xac   : > { %p10021_p3 = pnand %p10019_p1, %p10831_p8 }
  0xae   : > { %p10022_p11 = pneg %p10021_p3 }
  0xb0   : > { %p10027_p13 = pnand %p10025_p12, %p10022_p11 }
  0xb2   : > { %10030 = shalt.err (!%p10027_p13)
}
  0xb3   : > { %s10031_s24 = scalar_lea.vmem %s689_s22, 16  ;;  %s10038_s29 = scalar_lea.vmem %s689_s22, 32 }
  0xb4   : > { %p10032_p0 = scmp.ne.s32.totalorder %s689_s22, %s10031_s24  ;;  %p10039_p7 = scmp.lt.s32.totalorder %s689_s22, %s689_s22 }
  0xb5   : > { %p10040_p9 = scmp.lt.s32.totalorder %s10038_s29, %s10031_s24 }
  0xb6   : > { %p10034_p2 = pnand %p10032_p0, %p10831_p8 }
  0xb7   : > { %p10041_p5 = por %p10040_p9, %p10039_p7 }
  0xb8   : > { %p10035_p4 = pneg %p10034_p2 }
  0xba   : > { %p10042_p10 = pnand %p10041_p5, %p10035_p4 }
  0xbc   : > { %10045 = shalt.err (!%p10042_p10)
}
  0xbd   : > { %9679 = dma.hbm_to_vmem [thread:$0]  (!%p10815_p6), %s13293_s9, 16, %s689_s22, [#allocation18]  }
  0xbe   : > { %s10631_s4 = smov [#allocation20]   ;;  %s10632_s18 = smov [#allocation23]  }
  0xbf   : > { %s712_s1 = sshll.u32 %s10631_s4, 4  ;;  %s733_s30 = sshll.u32 %s10632_s18, 4  ;;  %s713_s1 = int_to_ptr.vmem [resolvable:$true] %s712_s1  ;;  %s734_s30 = int_to_ptr.vmem [resolvable:$true] %s733_s30 }
  0xc0   : > { %s13294_s11 = sld [smem:[#allocation90_spill]] }
  0xc6   : > { %s10046_s25 = scalar_lea.hbm %s13294_s11, 64 }
  0xc7   : > { %p10047_p1 = scmp.ne.s32.totalorder %s13294_s11, %s10046_s25  ;;  %p10053_p12 = scmp.lt.u32.totalorder %s10046_s25, %s13294_s11 }
  0xc9   : > { %p10049_p3 = pnand %p10047_p1, %p10831_p8 }
  0xcb   : > { %p10050_p11 = pneg %p10049_p3 }
  0xcd   : > { %p10055_p13 = pnand %p10053_p12, %p10050_p11 }
  0xcf   : > { %10058 = shalt.err (!%p10055_p13)
}
  0xd0   : > { %s10059_s22 = scalar_lea.vmem %s713_s1, 64  ;;  %p10067_p7 = scmp.lt.s32.totalorder %s713_s1, %s713_s1 }
  0xd1   : > { %p10060_p0 = scmp.ne.s32.totalorder %s713_s1, %s10059_s22  ;;  %p10068_p9 = scmp.lt.s32.totalorder %s10059_s22, %s10059_s22 }
  0xd3   : > { %p10062_p2 = pnand %p10060_p0, %p10831_p8  ;;  %p10069_p5 = por %p10068_p9, %p10067_p7 }
  0xd5   : > { %p10063_p4 = pneg %p10062_p2 }
  0xd7   : > { %p10070_p10 = pnand %p10069_p5, %p10063_p4 }
  0xd9   : > { %10073 = shalt.err (!%p10070_p10)
}
  0xda   : > { %9685 = dma.hbm_to_vmem [thread:$0]  (!%p10815_p6), %s13294_s11, 64, %s713_s1, [#allocation21]  }
  0xdb   : > { %s13295_s13 = sld [smem:[#allocation92_spill]] }
  0xe1   : > { %s10074_s2 = scalar_lea.hbm %s13295_s13, 65536 }
  0xe2   : > { %p10075_p1 = scmp.ne.s32.totalorder %s13295_s13, %s10074_s2  ;;  %p10081_p12 = scmp.lt.u32.totalorder %s10074_s2, %s13295_s13 }
  0xe4   : > { %p10077_p3 = pnand %p10075_p1, %p10831_p8 }
  0xe6   : > { %p10078_p11 = pneg %p10077_p3 }
  0xe8   : > { %p10083_p13 = pnand %p10081_p12, %p10078_p11 }
  0xea   : > { %10086 = shalt.err (!%p10083_p13)
}
  0xeb   : > { %s10087_s19 = scalar_lea.vmem %s734_s30, 65536  ;;  %p10095_p7 = scmp.lt.s32.totalorder %s734_s30, %s734_s30 }
  0xec   : > { %p10088_p0 = scmp.ne.s32.totalorder %s734_s30, %s10087_s19  ;;  %p10096_p9 = scmp.lt.s32.totalorder %s10087_s19, %s10087_s19 }
  0xee   : > { %p10090_p2 = pnand %p10088_p0, %p10831_p8  ;;  %p10097_p5 = por %p10096_p9, %p10095_p7 }
  0xf0   : > { %p10091_p4 = pneg %p10090_p2 }
  0xf2   : > { %p10098_p10 = pnand %p10097_p5, %p10091_p4 }
  0xf4   : > { %10101 = shalt.err (!%p10098_p10)
}
  0xf5   : > { %s10633_s1 = smov 1024   ;;  %s10634_s4 = smov [#allocation7]  }
  0xf6   : > { %9691 = dma.hbm_to_vmem [thread:$0]  (!%p10815_p6), %s13295_s13, 65536, %s734_s30, [#allocation24], %s10633_s1, %s10633_s1, %s13292_s26  }
  0xf7   : > { %s607_s16 = sshll.u32 %s10634_s4, 4  ;;  %s10635_s18 = smov [#allocation10]   ;;  %s608_s16 = int_to_ptr.vmem [resolvable:$true] %s607_s16 }
  0xf8   : > { %s628_s2 = sshll.u32 %s10635_s18, 4  ;;  %s13296_s24 = sld [smem:[#allocation81_spill]]  ;;  %s10974_s2 = int_to_ptr.vmem [resolvable:$true] %s628_s2 }
  0xfe   : > { %s10102_s29 = scalar_lea.hbm %s13296_s24, 16 }
  0xff   : > { %p10103_p1 = scmp.ne.s32.totalorder %s13296_s24, %s10102_s29  ;;  %p10109_p12 = scmp.lt.u32.totalorder %s10102_s29, %s13296_s24 }
 0x101   : > { %p10105_p3 = pnand %p10103_p1, %p10831_p8 }
 0x103   : > { %p10106_p11 = pneg %p10105_p3 }
 0x105   : > { %p10111_p13 = pnand %p10109_p12, %p10106_p11 }
 0x107   : > { %10114 = shalt.err (!%p10111_p13)
}
 0x108   : > { %s10115_s1 = scalar_lea.vmem %s608_s16, 16  ;;  %s10122_s27 = scalar_lea.vmem %s608_s16, 32 }
 0x109   : > { %p10116_p0 = scmp.ne.s32.totalorder %s608_s16, %s10115_s1  ;;  %p10123_p7 = scmp.lt.s32.totalorder %s608_s16, %s608_s16 }
 0x10a   : > { %p10124_p9 = scmp.lt.s32.totalorder %s10122_s27, %s10115_s1 }
 0x10b   : > { %p10118_p2 = pnand %p10116_p0, %p10831_p8 }
 0x10c   : > { %p10125_p5 = por %p10124_p9, %p10123_p7 }
 0x10d   : > { %p10119_p4 = pneg %p10118_p2 }
 0x10f   : > { %p10126_p10 = pnand %p10125_p5, %p10119_p4 }
 0x111   : > { %10129 = shalt.err (!%p10126_p10)
}
 0x112   : > { %9658 = dma.hbm_to_vmem [thread:$0]  (!%p10815_p6), %s13296_s24, 16, %s608_s16, [#allocation6]  }
 0x113   : > { %s13297_s25 = sld [smem:[#allocation83_spill]] }
 0x119   : > { %s13298_s29 = smov %s13297_s25  ;;  %s10130_s19 = scalar_lea.hbm %s13297_s25, 1024 }
 0x11a   : > { %p10131_p1 = scmp.ne.s32.totalorder %s13298_s29, %s10130_s19  ;;  %p10137_p12 = scmp.lt.u32.totalorder %s10130_s19, %s13298_s29 }
 0x11c   : > { %p10133_p3 = pnand %p10131_p1, %p10831_p8 }
 0x11e   : > { %p10134_p11 = pneg %p10133_p3 }
 0x120   : > { %p10139_p13 = pnand %p10137_p12, %p10134_p11 }
 0x122   : > { %10142 = shalt.err (!%p10139_p13)
}
 0x123   : > { %s10143_s16 = scalar_lea.vmem %s10974_s2, 1024  ;;  %p10151_p7 = scmp.lt.s32.totalorder %s10974_s2, %s10974_s2 }
 0x124   : > { %p10144_p0 = scmp.ne.s32.totalorder %s10974_s2, %s10143_s16  ;;  %p10152_p9 = scmp.lt.s32.totalorder %s10143_s16, %s10143_s16 }
 0x126   : > { %p10146_p2 = pnand %p10144_p0, %p10831_p8  ;;  %p10153_p5 = por %p10152_p9, %p10151_p7 }
 0x128   : > { %p10147_p4 = pneg %p10146_p2 }
 0x12a   : > { %p10154_p10 = pnand %p10153_p5, %p10147_p4 }
 0x12c   : > { %10157 = shalt.err (!%p10154_p10)
}
 0x12d   : > { %s13299_s0 = smov 4   ;;  %s10636_s23 = smov [#allocation13]  }
 0x12e   : > { %9664 = dma.hbm_to_vmem [thread:$0]  (!%p10815_p6), %s13298_s29, 1024, %s10974_s2, [#allocation9], %s13292_s26, %s13292_s26, %s13299_s0  }
 0x12f   : > { %s653_s25 = sshll.u32 %s10636_s23, 4  ;;  %s10637_s19 = smov [#allocation16]   ;;  %s654_s25 = int_to_ptr.vmem [resolvable:$true] %s653_s25 }
 0x130   : > { %s677_s22 = sshll.u32 %s10637_s19, 4  ;;  %s13300_s6 = sld [smem:[#allocation85_spill]]  ;;  %s11020_s22 = int_to_ptr.vmem [resolvable:$true] %s677_s22 }
 0x136   : > { %s10158_s27 = scalar_lea.hbm %s13300_s6, 16 }
 0x137   : > { %p10159_p1 = scmp.ne.s32.totalorder %s13300_s6, %s10158_s27  ;;  %p10165_p12 = scmp.lt.u32.totalorder %s10158_s27, %s13300_s6 }
 0x139   : > { %p10161_p3 = pnand %p10159_p1, %p10831_p8 }
 0x13b   : > { %p10162_p11 = pneg %p10161_p3 }
 0x13d   : > { %p10167_p13 = pnand %p10165_p12, %p10162_p11 }
 0x13f   : > { %10170 = shalt.err (!%p10167_p13)
}
 0x140   : > { %s10171_s18 = scalar_lea.vmem %s654_s25, 16  ;;  %s10178_s23 = scalar_lea.vmem %s654_s25, 32 }
 0x141   : > { %p10172_p0 = scmp.ne.s32.totalorder %s654_s25, %s10171_s18  ;;  %p10179_p7 = scmp.lt.s32.totalorder %s654_s25, %s654_s25 }
 0x142   : > { %p10180_p9 = scmp.lt.s32.totalorder %s10178_s23, %s10171_s18 }
 0x143   : > { %p10174_p2 = pnand %p10172_p0, %p10831_p8 }
 0x144   : > { %p10181_p5 = por %p10180_p9, %p10179_p7 }
 0x145   : > { %p10175_p4 = pneg %p10174_p2 }
 0x147   : > { %p10182_p10 = pnand %p10181_p5, %p10175_p4 }
 0x149   : > { %10185 = shalt.err (!%p10182_p10)
}
 0x14a   : > { %9670 = dma.hbm_to_vmem [thread:$0]  (!%p10815_p6), %s13300_s6, 16, %s654_s25, [#allocation12]  }
 0x14b   : > { %s13301_s8 = sld [smem:[#allocation87_spill]] }
 0x151   : > { %s10186_s27 = scalar_lea.hbm %s13301_s8, 16 }
 0x152   : > { %p10187_p1 = scmp.ne.s32.totalorder %s13301_s8, %s10186_s27  ;;  %p10193_p12 = scmp.lt.u32.totalorder %s10186_s27, %s13301_s8 }
 0x154   : > { %p10189_p3 = pnand %p10187_p1, %p10831_p8 }
 0x156   : > { %p10190_p11 = pneg %p10189_p3 }
 0x158   : > { %p10195_p13 = pnand %p10193_p12, %p10190_p11 }
 0x15a   : > { %10198 = shalt.err (!%p10195_p13)
}
 0x15b   : > { %s10199_s25 = scalar_lea.vmem %s11020_s22, 16  ;;  %s10206_s23 = scalar_lea.vmem %s11020_s22, 32 }
 0x15c   : > { %p10200_p0 = scmp.ne.s32.totalorder %s11020_s22, %s10199_s25  ;;  %p10207_p7 = scmp.lt.s32.totalorder %s11020_s22, %s11020_s22 }
 0x15d   : > { %p10208_p9 = scmp.lt.s32.totalorder %s10206_s23, %s10199_s25 }
 0x15e   : > { %p10202_p2 = pnand %p10200_p0, %p10831_p8 }
 0x15f   : > { %p10209_p5 = por %p10208_p9, %p10207_p7 }
 0x160   : > { %p10203_p4 = pneg %p10202_p2 }
 0x162   : > { %p10210_p10 = pnand %p10209_p5, %p10203_p4 }
 0x164   : > { %10213 = shalt.err (!%p10210_p10)
}
 0x165   : > { %9676 = dma.hbm_to_vmem [thread:$0]  (!%p10815_p6), %s13301_s8, 16, %s11020_s22, [#allocation15]  }
 0x166   : > { %s10638_s30 = smov [#allocation19]   ;;  %s13302_s10 = sld [smem:[#allocation89_spill]] }
 0x167   : > { %s698_s1 = sshll.u32 %s10638_s30, 4  ;;  %s699_s1 = int_to_ptr.vmem [resolvable:$true] %s698_s1 }
 0x16c   : > { %s10214_s4 = scalar_lea.hbm %s13302_s10, 4096 }
 0x16d   : > { %p10215_p1 = scmp.ne.s32.totalorder %s13302_s10, %s10214_s4  ;;  %p10221_p12 = scmp.lt.u32.totalorder %s10214_s4, %s13302_s10 }
 0x16f   : > { %p10217_p3 = pnand %p10215_p1, %p10831_p8 }
 0x171   : > { %p10218_p11 = pneg %p10217_p3 }
 0x173   : > { %p10223_p13 = pnand %p10221_p12, %p10218_p11 }
 0x175   : > { %10226 = shalt.err (!%p10223_p13)
}
 0x176   : > { %s10227_s22 = scalar_lea.vmem %s699_s1, 4096  ;;  %p10235_p7 = scmp.lt.s32.totalorder %s699_s1, %s699_s1 }
 0x177   : > { %p10228_p0 = scmp.ne.s32.totalorder %s699_s1, %s10227_s22  ;;  %p10236_p9 = scmp.lt.s32.totalorder %s10227_s22, %s10227_s22 }
 0x179   : > { %p10230_p2 = pnand %p10228_p0, %p10831_p8  ;;  %p10237_p5 = por %p10236_p9, %p10235_p7 }
 0x17b   : > { %p10231_p4 = pneg %p10230_p2 }
 0x17d   : > { %p10238_p10 = pnand %p10237_p5, %p10231_p4 }
 0x17f   : > { %10241 = shalt.err (!%p10238_p10)
}
 0x180   : > { %s10639_s7 = smov 256   ;;  %s10640_s19 = smov 16  }
 0x181   : > { %9682 = dma.hbm_to_vmem [thread:$0]  (!%p10815_p6), %s13302_s10, 4096, %s699_s1, [#allocation18], %s10639_s7, %s10639_s7, %s10640_s19  }
 0x182   : > { %s10641_s16 = smov [#allocation22]   ;;  %s10642_s2 = smov [#allocation25]  }
 0x183   : > { %s723_s4 = sshll.u32 %s10641_s16, 4  ;;  %s747_s18 = sshll.u32 %s10642_s2, 4  ;;  %s724_s4 = int_to_ptr.vmem [resolvable:$true] %s723_s4  ;;  %s748_s18 = int_to_ptr.vmem [resolvable:$true] %s747_s18 }
 0x184   : > { %s13303_s12 = sld [smem:[#allocation91_spill]] }
 0x18a   : > { %s10242_s22 = scalar_lea.hbm %s13303_s12, 64 }
 0x18b   : > { %p10243_p1 = scmp.ne.s32.totalorder %s13303_s12, %s10242_s22  ;;  %p10249_p12 = scmp.lt.u32.totalorder %s10242_s22, %s13303_s12 }
 0x18d   : > { %p10245_p3 = pnand %p10243_p1, %p10831_p8 }
 0x18f   : > { %p10246_p11 = pneg %p10245_p3 }
 0x191   : > { %p10251_p13 = pnand %p10249_p12, %p10246_p11 }
 0x193   : > { %10254 = shalt.err (!%p10251_p13)
}
 0x194   : > { %s10255_s1 = scalar_lea.vmem %s724_s4, 64  ;;  %p10263_p7 = scmp.lt.s32.totalorder %s724_s4, %s724_s4 }
 0x195   : > { %p10256_p0 = scmp.ne.s32.totalorder %s724_s4, %s10255_s1  ;;  %p10264_p9 = scmp.lt.s32.totalorder %s10255_s1, %s10255_s1 }
 0x197   : > { %p10258_p2 = pnand %p10256_p0, %p10831_p8  ;;  %p10265_p5 = por %p10264_p9, %p10263_p7 }
 0x199   : > { %p10259_p4 = pneg %p10258_p2 }
 0x19b   : > { %p10266_p10 = pnand %p10265_p5, %p10259_p4 }
 0x19d   : > { %10269 = shalt.err (!%p10266_p10)
}
 0x19e   : > { %9688 = dma.hbm_to_vmem [thread:$0]  (!%p10815_p6), %s13303_s12, 64, %s724_s4, [#allocation21]  }
 0x19f   : > { %s13304_s14 = sld [smem:[#allocation93_spill]] }
 0x1a5   : > { %s10270_s7 = scalar_lea.hbm %s13304_s14, 256 }
 0x1a6   : > { %p10271_p1 = scmp.ne.s32.totalorder %s13304_s14, %s10270_s7  ;;  %p10277_p12 = scmp.lt.u32.totalorder %s10270_s7, %s13304_s14 }
 0x1a8   : > { %p10273_p3 = pnand %p10271_p1, %p10831_p8 }
 0x1aa   : > { %p10274_p11 = pneg %p10273_p3 }
 0x1ac   : > { %p10279_p13 = pnand %p10277_p12, %p10274_p11 }
 0x1ae   : > { %10282 = shalt.err (!%p10279_p13)
}
 0x1af   : > { %s10283_s2 = scalar_lea.vmem %s748_s18, 256  ;;  %p10291_p7 = scmp.lt.s32.totalorder %s748_s18, %s748_s18 }
 0x1b0   : > { %p10284_p0 = scmp.ne.s32.totalorder %s748_s18, %s10283_s2  ;;  %p10292_p9 = scmp.lt.s32.totalorder %s10283_s2, %s10283_s2 }
 0x1b2   : > { %p10286_p2 = pnand %p10284_p0, %p10831_p8  ;;  %p10293_p5 = por %p10292_p9, %p10291_p7 }
 0x1b4   : > { %p10287_p4 = pneg %p10286_p2 }
 0x1b6   : > { %p10294_p10 = pnand %p10293_p5, %p10287_p4 }
 0x1b8   : > { %10297 = shalt.err (!%p10294_p10)
}
 0x1b9   : > { %9694 = dma.hbm_to_vmem [thread:$0]  (!%p10815_p6), %s13304_s14, 256, %s748_s18, [#allocation24]  }
 0x1ba   : > { %s10643_s23 = smov [#allocation26]   ;;  %s13305_s15 = sld [smem:[#allocation94_spill]] }
 0x1bb   : > { %s758_s22 = sshll.u32 %s10643_s23, 4  ;;  %s759_s22 = int_to_ptr.vmem [resolvable:$true] %s758_s22 }
 0x1c0   : > { %s10298_s8 = scalar_lea.hbm %s13305_s15, 256 }
 0x1c1   : > { %p10299_p1 = scmp.ne.s32.totalorder %s13305_s15, %s10298_s8  ;;  %p10305_p12 = scmp.lt.u32.totalorder %s10298_s8, %s13305_s15 }
 0x1c3   : > { %p10301_p3 = pnand %p10299_p1, %p10831_p8 }
 0x1c5   : > { %p10302_p11 = pneg %p10301_p3 }
 0x1c7   : > { %p10307_p13 = pnand %p10305_p12, %p10302_p11 }
 0x1c9   : > { %10310 = shalt.err (!%p10307_p13)
}
 0x1ca   : > { %s10311_s18 = scalar_lea.vmem %s759_s22, 256  ;;  %p10319_p7 = scmp.lt.s32.totalorder %s759_s22, %s759_s22 }
 0x1cb   : > { %p10312_p0 = scmp.ne.s32.totalorder %s759_s22, %s10311_s18  ;;  %p10320_p9 = scmp.lt.s32.totalorder %s10311_s18, %s10311_s18 }
 0x1cd   : > { %p10314_p2 = pnand %p10312_p0, %p10831_p8  ;;  %p10321_p5 = por %p10320_p9, %p10319_p7 }
 0x1cf   : > { %p10315_p4 = pneg %p10314_p2 }
 0x1d1   : > { %p10322_p10 = pnand %p10321_p5, %p10315_p4 }
 0x1d3   : > { %10325 = shalt.err (!%p10322_p10)
}
 0x1d4   : > { %s13306_s16 = sld [smem:[#allocation52_spill]]  ;;  %s13307_s2 = sld [smem:[#allocation51_spill]] }
 0x1d5   : > { %s13308_s4 = sld [smem:[#allocation50_spill]]  ;;  %s13309_s17 = sld [smem:[#allocation54_spill]] }
 0x1d6   : > { %9697 = dma.hbm_to_vmem [thread:$0]  (!%p10815_p6), %s13305_s15, 256, %s759_s22, [#allocation27]  }
 0x1d7   : > { %s13176_s25 = sadd.s32 4294967294, %s10622_s28   ;;  %s67_s23 = sadd.s32 1, %s10618_s3 }
 0x1d8   : > { %p69_p8 = scmp.ge.s32.totalorder %s67_s23, 2  ;;  %p84_p3 = scmp.eq.s32.totalorder %s10622_s28, 0 }
 0x1d9   : > { %p436_p7 = scmp.eq.s32.totalorder %s13176_s25, 1  ;;  %p9736_p5 = scmp.lt.s32.totalorder %s10622_s28, 2 }
 0x1da   : > { %s76_s5 = sadd.s32 1, %s13306_s16  ;;  %p83_p1 = scmp.ne.s32.totalorder %s13306_s16, %s13307_s2 }
 0x1db   : > { %s13522_s23 = smov (%p69_p8, %s67_s23), 0  ;;  %p89_p12 = scmp.ne.s32.totalorder %s13307_s2, %s13308_s4 }
 0x1dc   : > { %p11144_p11 = por %p84_p3, %p83_p1  ;;  %s71_s22 = ssub.s32 %s10618_s3, %s13522_s23 }
 0x1dd   : > { %p430_p6 = scmp.eq.s32.totalorder %s13309_s17, 1  ;;  %p74_p13 = scmp.eq.s32.totalorder %s71_s22, 0 }
 0x1de   : > { %p13311_p0 = scmp.eq.s32.totalorder %s13309_s17, 0  ;;  %p11168_p9 = por %p436_p7, %p89_p12 }
 0x1df   : > { %p11159_p4 = por %p430_p6, %p83_p1  ;;  %s769_s7 = sand.u32 1, %s13306_s16  }
 0x1e0   : > { %p11155_p2 = por %p13311_p0, %p89_p12  ;;  %s9162_s19 = sshll.u32 %s10618_s3, 9 }
 0x1e1   : > { %s13313_s8 = scalar_select %p11159_p4, 1, 0 }
 0x1e2   : > { %s11166_s9 = scalar_select %p74_p13, %s13306_s16, %s76_s5  }
 0x1e3   : > { %s13314_s11 = scalar_select %p11168_p9, 1, 0 }
 0x1e4   : > { %s8434_s18 = sshll.u32 %s769_s7, 5  ;;  %s13315_s2 = sld [smem:[#allocation79_spill]] }
 0x1e5   : > { %s773_s22 = scalar_lea.vmem [#allocation2], %s8434_s18  ;;  %p11182_p10 = pnand %p9736_p5, %p11144_p11 }
 0x1e6   : > { %s782_s5 = sshll.u32 %s773_s22, 4  ;;  %s11188_s16 = scalar_lea.sflag [#allocation3], %s769_s7  ;;  %s11186_s5 = int_to_ptr.vmem [resolvable:$true] %s782_s5 }
 0x1e7   : > { %p10328_p1 = pneg %p11182_p10 }
 0x1ea   : > { %s13316_s4 = smov %s13315_s2  ;;  %s11178_s17 = scalar_lea.hbm %s13315_s2, %s9162_s19 }
 0x1eb   : > { %s10326_s30 = scalar_lea.hbm %s11178_s17, 512  ;;  %s10331_s18 = scalar_lea.hbm %s13316_s4, 1024 }
 0x1ec   : > { %p10327_p8 = scmp.ne.s32.totalorder %s11178_s17, %s10326_s30  ;;  %p10332_p11 = scmp.lt.u32.totalorder %s11178_s17, %s13316_s4 }
 0x1ed   : > { %p10333_p6 = scmp.lt.u32.totalorder %s10331_s18, %s10326_s30  ;;  %p10335_p0 = scmp.lt.u32.totalorder %s10326_s30, %s11178_s17 }
 0x1ee   : > { %p10329_p3 = pnand %p10328_p1, %p10327_p8 }
 0x1ef   : > { %p10334_p13 = por %p10333_p6, %p10332_p11 }
 0x1f0   : > { %p10330_p12 = pneg %p10329_p3 }
 0x1f1   : > { %p10336_p7 = por %p10335_p0, %p10334_p13 }
 0x1f3   : > { %p10337_p5 = pnand %p10336_p7, %p10330_p12 }
 0x1f5   : > { %10340 = shalt.err (!%p10337_p5)
}
 0x1f6   : > { %s10341_s7 = scalar_lea.vmem %s11186_s5, 512  ;;  %s10644_s22 = smov [#allocation2]  }
 0x1f7   : > { %p10342_p8 = scmp.ne.s32.totalorder %s11186_s5, %s10341_s7  ;;  %s10346_s19 = sshll.u32 %s10644_s22, 4  ;;  %s10347_s19 = int_to_ptr.vmem [resolvable:$false] %s10346_s19 }
 0x1f8   : > { %s10348_s1 = scalar_lea.vmem %s10347_s19, 1024  ;;  %p10349_p4 = scmp.lt.s32.totalorder %s11186_s5, %s10347_s19 }
 0x1f9   : > { %p10344_p3 = pnand %p10342_p8, %p10328_p1  ;;  %p10350_p11 = scmp.lt.s32.totalorder %s10348_s1, %s10341_s7 }
 0x1fb   : > { %p10345_p9 = pneg %p10344_p3  ;;  %p10351_p6 = por %p10350_p11, %p10349_p4 }
 0x1fd   : > { %p10352_p13 = pnand %p10351_p6, %p10345_p9 }
 0x1ff   : > { %10355 = shalt.err (!%p10352_p13)
}
 0x200   : > { %9701 = dma.hbm_to_vmem [thread:$0]  (!%p11182_p10), %s11178_s17, 512, %s11186_s5, %s11188_s16, %s13292_s26, %s13292_s26, %s13299_s0  }
 0x201   : > { %s13318_s30 = sld [smem:[#allocation55_spill]] }
 0x207   : > { %p13319_p1 = scmp.ne.s32.totalorder %s13318_s30, 0 }
 0x209   : > { %794 = sbr.rel (%p13319_p1) target bundleno = 2019 (0x7e3), region = 84 }
 0x210   : > { %s13320_s18 = sld [smem:[#allocation51_spill]] }
 0x216   : > { %s11222_s27 = sand.u32 1, %s13320_s18  }
 0x217   : > { %s11225_s2 = sshll.u32 %s11222_s27, 5  ;;  %s797_s25 = scalar_lea.sflag [#allocation3], %s11222_s27 }
 0x218   : > { %s11229_s7 = scalar_lea.vmem [#allocation2], %s11225_s2 }
 0x219   : > { %10549 = dma.done.wait (%p11155_p2), %s797_s25, 512  }
 0x21a   : > { %10551 = vsyncadd (%p11155_p2), %s797_s25, 4294966784  ;;  %s13321_s26 = sld [smem:[#allocation54_spill]] }
 0x220   : > { %p13322_p4 = scmp.eq.s32.totalorder %s13321_s26, 0 }
 0x222   : > { %10553 = dma.done.wait (%p13322_p4), [#allocation6], 1040   ;;  %p13323_p9 = pmov %p13322_p4 }
 0x223   : > { %p13324_p10 = pmov %p13322_p4 }
 0x224   : > { %10555 = vsyncadd (%p13323_p9), [#allocation6], 4294966256 }
 0x225   : > { %10557 = dma.done.wait (%p13324_p10), [#allocation9], 1040   ;;  %p13325_p12 = pmov %p13322_p4 }
 0x226   : > { %p13326_p0 = pmov %p13322_p4 }
 0x227   : > { %10559 = vsyncadd (%p13325_p12), [#allocation9], 4294966256 }
 0x228   : > { %10561 = dma.done.wait (%p13326_p0), [#allocation12], 32   ;;  %p13327_p7 = pmov %p13326_p0 }
 0x229   : > { %p13328_p2 = pmov %p13326_p0 }
 0x22a   : > { %10563 = vsyncadd (%p13327_p7), [#allocation12], 4294967264 }
 0x22b   : > { %10565 = dma.done.wait (%p13328_p2), [#allocation15], 1040   ;;  %p13329_p5 = pmov %p13326_p0 }
 0x22c   : > { %p13330_p8 = pmov %p13326_p0 }
 0x22d   : > { %10567 = vsyncadd (%p13329_p5), [#allocation15], 4294966256 }
 0x22e   : > { %10569 = dma.done.wait (%p13330_p8), [#allocation18], 4112   ;;  %p13331_p3 = pmov %p13326_p0 }
 0x22f   : > { %p13332_p11 = pmov %p13326_p0 }
 0x230   : > { %10571 = vsyncadd (%p13331_p3), [#allocation18], 4294963184 }
 0x231   : > { %10573 = dma.done.wait (%p13332_p11), [#allocation21], 128   ;;  %p13333_p6 = pmov %p13326_p0 }
 0x232   : > { %p13334_p13 = pmov %p13326_p0 }
 0x233   : > { %10575 = vsyncadd (%p13333_p6), [#allocation21], 4294967168 }
 0x234   : > { %10577 = dma.done.wait (%p13334_p13), [#allocation24], 65792   ;;  %p13335_p1 = pmov %p13326_p0 }
 0x235   : > { %p13336_p4 = pmov %p13326_p0 }
 0x236   : > { %10579 = vsyncadd (%p13335_p1), [#allocation24], 4294901504 }
 0x237   : > { %10581 = dma.done.wait (%p13336_p4), [#allocation27], 256   ;;  %p13337_p9 = pmov %p13326_p0 }
 0x238   : > { %v9828_v0 = vld [vmem:[#allocation5] sm:$0xff]   ;;  %v9829_v1 = vld [vmem:[#allocation5 + $0x8] sm:$0xff]   ;;  %v9830_v2 = vld [vmem:[#allocation5 + $0x10] sm:$0xff]   ;;  %s11284_s0 = scalar_lea.vmem [#allocation28], %s11225_s2  ;;  %s11305_s6 = scalar_lea.vmem [#allocation29], %s11225_s2 }
 0x239   : > { %10583 = vsyncadd (%p13337_p9), [#allocation27], 4294967040  ;;  %9378 = vmatprep.subr.bf16.mxu0 %v9828_v0  ;;  %v9831_v3 = vld [vmem:[#allocation5 + $0x18] sm:$0xff]   ;;  %v11268_v4 = vld [vmem:[%s11229_s7] sm:$0xff]   ;;  %s8457_s17 = sshll.u32 %s11222_s27, 7  ;;  %s11465_s16 = scalar_lea.vmem [#allocation31], %s11225_s2 }
 0x23a   : > { %9379 = vmatpush3.bf16.msra.mxu0 %v9828_v0  ;;  %9394 = vmatprep.mubr.bf16.mxu0 %v11268_v4  ;;  %v9832_v5 = vld [vmem:[#allocation5 + $0x20] sm:$0xff]   ;;  %v9841_v7 = vld [vmem:[#allocation10 + $0x8] sm:$0xff]   ;;  %v9842_v9 = vld [vmem:[#allocation10 + $0x10] sm:$0xff]   ;;  %s11351_s5 = scalar_lea.vmem [#allocation32], %s8457_s17  ;;  %s8458_s22 = sshll.u32 %s11222_s27, 9 }
 0x23b   : > { %9380 = vmatprep.subr.bf16.mxu0 %v9829_v1  ;;  %v9840_v6 = vld [vmem:[#allocation10] sm:$0xff]   ;;  %v9834_v10 = vld [vmem:[#allocation5 + $0x30] sm:$0xff]   ;;  %v9843_v11 = vld [vmem:[#allocation10 + $0x18] sm:$0xff]   ;;  %s11940_s19 = scalar_lea.vmem [#allocation34], %s8458_s22  ;;  %s8459_s1 = sshll.u32 %s11222_s27, 4 }
 0x23c   : > { %9402 = vmatprep.subr.bf16.mxu1 %v9840_v6  ;;  %v9833_v8 = vld [vmem:[#allocation5 + $0x28] sm:$0xff]   ;;  %v9835_v12 = vld [vmem:[#allocation5 + $0x38] sm:$0xff]   ;;  %v11275_v15 = vld [vmem:[%s11229_s7 + $0x10] sm:$0xff]   ;;  %s12640_s30 = scalar_lea.vmem [#allocation35], %s8459_s1  ;;  %s13497_s18 = sld [smem:[#allocation53_spill]] }
 0x23d   : > { %9403 = vmatpush3.bf16.msra.mxu1 %v9840_v6  ;;  %v9844_v13 = vld [vmem:[#allocation10 + $0x20] sm:$0xff]   ;;  %v11280_v16 = vld [vmem:[%s11229_s7 + $0x18] sm:$0xff]   ;;  %v9845_v17 = vld [vmem:[#allocation10 + $0x28] sm:$0xff]   ;;  %s7931_s2 = sshll.u32 %s11284_s0, 4  ;;  %s7949_s25 = sshll.u32 %s11305_s6, 4  ;;  %s12771_s2 = int_to_ptr.vmem [resolvable:$true] %s7931_s2  ;;  %s12776_s25 = int_to_ptr.vmem [resolvable:$true] %s7949_s25 }
 0x23e   : > { %9381 = vmatpush3.bf16.msra.mxu0 %v9829_v1  ;;  %9404 = vmatprep.subr.bf16.mxu1 %v9841_v7  ;;  %v11272_v14 = vld [vmem:[%s11229_s7 + $0x8] sm:$0xff]   ;;  %v9846_v18 = vld [vmem:[#allocation10 + $0x30] sm:$0xff]   ;;  %v9847_v19 = vld [vmem:[#allocation10 + $0x38] sm:$0xff]   ;;  %s7967_s7 = sshll.u32 %s11465_s16, 4  ;;  %s13498_s22 = sld [smem:[#allocation96_spill]]  ;;  %s12778_s7 = int_to_ptr.vmem [resolvable:$true] %s7967_s7 }
 0x23f   : > { %9382 = vmatprep.subr.bf16.mxu0 %v9830_v2  ;;  %v9850_v20 = vld [vmem:[#allocation19 + $0x4] ss:$16 sps:$4 sm:$0xff]   ;;  %v9872_v21 = vld [vmem:[#allocation14] sm:$0xff]   ;;  %v9874_v23 = vld [vmem:[#allocation14 + $0x10] sm:$0xff]   ;;  %s13499_s12 = sld [smem:[#allocation97_spill]]  ;;  %s10356_s15 = scalar_lea.vmem %s12776_s25, 512 }
 0x240   : > { %v9873_v22 = vld [vmem:[#allocation14 + $0x8] sm:$0xff]   ;;  %v9875_v24 = vld [vmem:[#allocation14 + $0x18] sm:$0xff]   ;;  %v9876_v25 = vld [vmem:[#allocation14 + $0x20] sm:$0xff]   ;;  %p10357_p10 = scmp.ne.s32.totalorder %s12776_s25, %s10356_s15  ;;  %p13500_p12 = scmp.ne.s32.totalorder %s13313_s8, 0 }
 0x241   : > { %9405 = vmatpush3.bf16.msra.mxu1 %v9841_v7  ;;  %v8472_v26 = vld [vmem:[#allocation7] ss:$0 sm:$0xff]  ;;  %v8473_v28 = vld [vmem:[#allocation8] ss:$0 sm:$0xff]  ;;  %v9848_v51 = vld [vmem:[#allocation19] ss:$16 sps:$4 sm:$0xff]  }
 0x242   : > { %9383 = vmatpush3.bf16.msra.mxu0 %v9830_v2  ;;  %9406 = vmatprep.subr.bf16.mxu1 %v9842_v9  ;;  %v9853_v55 = vld [vmem:[#allocation19 + $0x24] ss:$16 sps:$4 sm:$0xff]   ;;  %v9851_v62 = vld [vmem:[#allocation19 + $0x20] ss:$16 sps:$4 sm:$0xff]   ;;  %p10358_p0 = pnand %p10357_p10, %p13500_p12  ;;  %s10647_s20 = smov [#allocation29]  }
 0x243   : > { %9384 = vmatprep.subr.bf16.mxu0 %v9831_v3  ;;  %v9856_v0 = vld [vmem:[#allocation19 + $0x44] ss:$16 sps:$4 sm:$0xff]   ;;  %v9857_v7 = vld [vmem:[#allocation19 + $0x60] ss:$16 sps:$4 sm:$0xff]   ;;  %s10360_s21 = sshll.u32 %s10647_s20, 4  ;;  %s10361_s21 = int_to_ptr.vmem [resolvable:$false] %s10360_s21 }
 0x244   : > { %v9859_v6 = vld [vmem:[#allocation19 + $0x64] ss:$16 sps:$4 sm:$0xff]   ;;  %p10359_p7 = pneg %p10358_p0  ;;  %s10362_s24 = scalar_lea.vmem %s10361_s21, 1024 }
 0x245   : > { %9407 = vmatpush3.bf16.msra.mxu1 %v9842_v9  ;;  %v9862_v9 = vld [vmem:[#allocation19 + $0x84] ss:$16 sps:$4 sm:$0xff]   ;;  %p10363_p2 = scmp.lt.s32.totalorder %s12776_s25, %s10361_s21  ;;  %p10364_p5 = scmp.lt.s32.totalorder %s10362_s24, %s10356_s15 }
 0x246   : > { %9385 = vmatpush3.bf16.msra.mxu0 %v9831_v3  ;;  %9408 = vmatprep.subr.bf16.mxu1 %v9843_v11 }
 0x247   : > { %9386 = vmatprep.subr.bf16.mxu0 %v9832_v5  ;;  %p10365_p8 = por %p10364_p5, %p10363_p2 }
 0x249   : > { %9409 = vmatpush3.bf16.msra.mxu1 %v9843_v11  ;;  %v9865_v11 = vld [vmem:[#allocation19 + $0xa4] ss:$16 sps:$4 sm:$0xff]   ;;  %p10366_p3 = pnand %p10365_p8, %p10359_p7 }
 0x24a   : > { %9387 = vmatpush3.bf16.msra.mxu0 %v9832_v5  ;;  %9410 = vmatprep.subr.bf16.mxu1 %v9844_v13  ;;  %v9854_v5 = vld [vmem:[#allocation19 + $0x40] ss:$16 sps:$4 sm:$0xff]  }
 0x24b   : > { %9388 = vmatprep.subr.bf16.mxu0 %v9833_v8 }
 0x24d   : > { %9411 = vmatpush3.bf16.msra.mxu1 %v9844_v13  ;;  %v9868_v13 = vld [vmem:[#allocation19 + $0xc4] ss:$16 sps:$4 sm:$0xff]  }
 0x24e   : > { %9389 = vmatpush3.bf16.msra.mxu0 %v9833_v8  ;;  %9412 = vmatprep.subr.bf16.mxu1 %v9845_v17  ;;  %v10645_v8 = vmov 0  }
 0x24f   : > { %9390 = vmatprep.subr.bf16.mxu0 %v9834_v10 }
 0x251   : > { %9413 = vmatpush3.bf16.msra.mxu1 %v9845_v17  ;;  %v9866_v17 = vld [vmem:[#allocation19 + $0xc0] ss:$16 sps:$4 sm:$0xff]  }
 0x252   : > { %9391 = vmatpush3.bf16.msra.mxu0 %v9834_v10  ;;  %9414 = vmatprep.subr.bf16.mxu1 %v9846_v18  ;;  %v9860_v10 = vld [vmem:[#allocation19 + $0x80] ss:$16 sps:$4 sm:$0xff]  }
 0x253   : > { %9392 = vmatprep.subr.bf16.mxu0 %v9835_v12 }
 0x255   : > { %9415 = vmatpush3.bf16.msra.mxu1 %v9846_v18  ;;  %v9871_v18 = vld [vmem:[#allocation19 + $0xe4] ss:$16 sps:$4 sm:$0xff]  }
 0x256   : > { %9393 = vmatpush3.bf16.msra.mxu0 %v9835_v12  ;;  %9416 = vmatprep.subr.bf16.mxu1 %v9847_v19  ;;  %v9863_v12 = vld [vmem:[#allocation19 + $0xa0] ss:$16 sps:$4 sm:$0xff]  }
 0x257   : > { %9426 = vmatprep.subr.bf16.mxu0 %v9872_v21 }
 0x259   : > { %9395 = vmatmul.mubr.bf16.vlgmr.msra.gmra.mrb[0].mxu0 %v11272_v14  ;;  %9417 = vmatpush3.bf16.msra.mxu1 %v9847_v19  ;;  %v9869_v19 = vld [vmem:[#allocation19 + $0xe0] ss:$16 sps:$4 sm:$0xff]  }
 0x25a   : > { %9398 = vmatprep.mubr.bf16.mxu0 %v11275_v15  ;;  %1684 = vmatprep.subr.bf16.mxu1 %v9850_v20  ;;  %v9877_v20 = vld [vmem:[#allocation14 + $0x28] sm:$0xff]  }
 0x25b   : > { %9427 = vmatpush3.bf16.msra.mxu0 %v9872_v21  ;;  %v9878_v21 = vld [vmem:[#allocation14 + $0x30] sm:$0xff]  }
 0x25c   : > { %9428 = vmatprep.subr.bf16.mxu0 %v9873_v22 }
 0x25f   : > { %9429 = vmatpush3.bf16.msra.mxu0 %v9873_v22  ;;  %v9879_v22 = vld [vmem:[#allocation14 + $0x38] sm:$0xff]  }
 0x260   : > { %9430 = vmatprep.subr.bf16.mxu0 %v9874_v23 }
 0x261   : > { %9399 = vmatmul.mubr.bf16.gmra.mrb[4].mxu0 %v11280_v16 }
 0x263   : > { %9431 = vmatpush3.bf16.msra.mxu0 %v9874_v23  ;;  %v9882_v23 = vld [vmem:[#allocation19 + $0xc] ss:$16 sps:$4 sm:$0xff]  }
 0x264   : > { %9432 = vmatprep.subr.bf16.mxu0 %v9875_v24 }
 0x267   : > { %9433 = vmatpush3.bf16.msra.mxu0 %v9875_v24  ;;  %v1986_v24 = vld [vmem:[#allocation23] sm:$0xff] }
 0x268   : > { %9434 = vmatprep.subr.bf16.mxu0 %v9876_v25 }
 0x26b   : > { %9435 = vmatpush3.bf16.msra.mxu0 %v9876_v25  ;;  %v1994_v25 = vld [vmem:[#allocation23 + $0x40] sm:$0xff] }
 0x26c   : > { %9436 = vmatprep.subr.bf16.mxu0 %v9877_v20 }
 0x26f   : > { %9437 = vmatpush3.bf16.msra.mxu0 %v9877_v20  ;;  %v2210_v20 = vld [vmem:[#allocation23 + $0x700] sm:$0xff] }
 0x270   : > { %9438 = vmatprep.subr.bf16.mxu0 %v9878_v21 }
 0x273   : > { %9439 = vmatpush3.bf16.msra.mxu0 %v9878_v21  ;;  %v2218_v21 = vld [vmem:[#allocation23 + $0x740] sm:$0xff] }
 0x274   : > { %9440 = vmatprep.subr.bf16.mxu0 %v9879_v22 }
 0x277   : > { %9441 = vmatpush3.bf16.msra.mxu0 %v9879_v22 }
 0x278   : > { %1757 = vmatprep.subr.bf16.mxu0 %v9882_v23  ;;  %v8751_v23 = vcombine.high %v2210_v20, %v2218_v21 }
 0x32c   : > { %v9396_v27 = vpop.f32.mrb[0].mxu0 }
 0x32d   : > { %v1121_v29 = vmul.f32 %v9396_v27, %v8472_v26  ;;  %v1081_v30 = vpop.f32.mrb[1].mxu0  ;;  %v8527_v27 = vcombine.high %v1986_v24, %v1994_v25 }
 0x32e   : > { %v1119_v31 = vmul.f32 %v8472_v26, %v1081_v30  ;;  %v9397_v32 = vpop.f32.mrb[2].mxu0 }
 0x32f   : > { %v1136_v33 = vadd.f32 %v8473_v28, %v1121_v29  ;;  %v1122_v34 = vmul.f32 %v9397_v32, %v8472_v26  ;;  %v1084_v35 = vpop.f32.mrb[3].mxu0  ;;  %v2010_v29 = vld [vmem:[#allocation23 + $0xc0] sm:$0xff] }
 0x330   : > { %v1134_v36 = vadd.f32 %v8473_v28, %v1119_v31  ;;  %v1120_v37 = vmul.f32 %v8472_v26, %v1084_v35  ;;  %v2018_v31 = vld [vmem:[#allocation23 + $0x100] sm:$0xff] }
 0x331   : > { %v1137_v38 = vadd.f32 %v8473_v28, %v1122_v34  ;;  %v1144_v40 = vmax.f32 %v1136_v33, 0.0  ;;  %v2026_v32 = vld [vmem:[#allocation23 + $0x140] sm:$0xff] }
 0x332   : > { %v1135_v39 = vadd.f32 %v8473_v28, %v1120_v37  ;;  %v1142_v42 = vmax.f32 %v1134_v36, 0.0  ;;  %v8559_v34 = vcombine.high %v2018_v31, %v2026_v32  ;;  %v2034_v35 = vld [vmem:[#allocation23 + $0x180] sm:$0xff]  ;;  %v8558_v37 = vcombine.low %v2018_v31, %v2026_v32  ;;  %v8483_v32 = vld [vmem:[#allocation13] ss:$0 sm:$0xff] }
 0x333   : > { %v1145_v41 = vmax.f32 %v1137_v38, 0.0  ;;  %v2042_v36 = vld [vmem:[#allocation23 + $0x1c0] sm:$0xff] }
 0x334   : > { %v1143_v43 = vmax.f32 %v1135_v39, 0.0  ;;  %v9400_v44 = vpop.f32.mrb[4].mxu0  ;;  %v8575_v38 = vcombine.high %v2034_v35, %v2042_v36  ;;  %v2050_v39 = vld [vmem:[#allocation23 + $0x200] sm:$0xff] }
 0x335   : > { %v1125_v45 = vmul.f32 %v9400_v44, %v8472_v26  ;;  %v1097_v46 = vpop.f32.mrb[5].mxu0  ;;  %v1151_v47 = vpack.c.bf16 %v1145_v41, %v1144_v40  ;;  %v2058_v40 = vld [vmem:[#allocation23 + $0x240] sm:$0xff]  ;;  %v8574_v41 = vcombine.low %v2034_v35, %v2042_v36 }
 0x336   : > { %v1150_v48 = vpack.c.bf16 %v1143_v43, %v1142_v42  ;;  %v1123_v49 = vmul.f32 %v8472_v26, %v1097_v46  ;;  %v9401_v50 = vpop.f32.mrb[6].mxu0  ;;  %v8591_v42 = vcombine.high %v2050_v39, %v2058_v40  ;;  %v2066_v43 = vld [vmem:[#allocation23 + $0x280] sm:$0xff] }
 0x337   : > { %v1140_v52 = vadd.f32 %v8473_v28, %v1125_v45  ;;  %9333 = vst [vmem:[%s11284_s0 + $0x8] sm:$0xff] %v1151_v47   ;;  %v1126_v53 = vmul.f32 %v9401_v50, %v8472_v26  ;;  %v1100_v54 = vpop.f32.mrb[7].mxu0  ;;  %v2074_v44 = vld [vmem:[#allocation23 + $0x2c0] sm:$0xff]  ;;  %v8590_v45 = vcombine.low %v2050_v39, %v2058_v40 }
 0x338   : > { %9418 = vmatprep.mubr.bf16.mxu1 %v1150_v48  ;;  %9277 = vst [vmem:[%s11284_s0] sm:$0xff] %v1150_v48   ;;  %v1138_v56 = vadd.f32 %v8473_v28, %v1123_v49  ;;  %v1124_v57 = vmul.f32 %v8472_v26, %v1100_v54  ;;  %v8526_v26 = vcombine.low %v1986_v24, %v1994_v25  ;;  %v2090_v48 = vld [vmem:[#allocation23 + $0x340] sm:$0xff] }
 0x339   : > { %v1148_v58 = vmax.f32 %v1140_v52, 0.0  ;;  %9419 = vmatmul.mubr.bf16.vlgmr.msra.gmra.mrb[0].mxu1 %v1151_v47  ;;  %v1141_v59 = vadd.f32 %v8473_v28, %v1126_v53  ;;  %v8607_v46 = vcombine.high %v2066_v43, %v2074_v44  ;;  %v2082_v47 = vld [vmem:[#allocation23 + $0x300] sm:$0xff]  ;;  %v8606_v49 = vcombine.low %v2066_v43, %v2074_v44 }
 0x33a   : > { %v1146_v60 = vmax.f32 %v1138_v56, 0.0  ;;  %v1139_v61 = vadd.f32 %v8473_v28, %v1124_v57  ;;  %1685 = vmatpush1.bf16.msra.mxu1 %v9848_v51  ;;  %v2002_v28 = vld [vmem:[#allocation23 + $0x80] sm:$0xff]  ;;  %v8623_v50 = vcombine.high %v2082_v47, %v2090_v48  ;;  %v8622_v53 = vcombine.low %v2082_v47, %v2090_v48 }
 0x33b   : > { %v1149_v63 = vmax.f32 %v1141_v59, 0.0  ;;  %1686 = vmatprep.subr.bf16.mxu1 %v9853_v55  ;;  %v8543_v30 = vcombine.high %v2002_v28, %v2010_v29  ;;  %v8542_v33 = vcombine.low %v2002_v28, %v2010_v29  ;;  %v2098_v51 = vld [vmem:[#allocation23 + $0x380] sm:$0xff] }
 0x33c   : > { %v1147_v1 = vmax.f32 %v1139_v61, 0.0  ;;  %v2106_v52 = vld [vmem:[#allocation23 + $0x3c0] sm:$0xff] }
 0x33d   : > { %v1153_v2 = vpack.c.bf16 %v1149_v63, %v1148_v58  ;;  %v8639_v54 = vcombine.high %v2098_v51, %v2106_v52  ;;  %v2114_v55 = vld [vmem:[#allocation23 + $0x400] sm:$0xff]  ;;  %v8638_v57 = vcombine.low %v2098_v51, %v2106_v52 }
 0x33e   : > { %v1152_v3 = vpack.c.bf16 %v1147_v1, %v1146_v60  ;;  %1687 = vmatpush1.bf16.msra.mxu1 %v9851_v62  ;;  %v2122_v56 = vld [vmem:[#allocation23 + $0x440] sm:$0xff] }
 0x33f   : > { %9335 = vst [vmem:[%s11284_s0 + $0x18] sm:$0xff] %v1153_v2   ;;  %1688 = vmatprep.subr.bf16.mxu1 %v9856_v0  ;;  %v8655_v58 = vcombine.high %v2114_v55, %v2122_v56  ;;  %v2130_v59 = vld [vmem:[#allocation23 + $0x480] sm:$0xff]  ;;  %v8654_v61 = vcombine.low %v2114_v55, %v2122_v56 }
 0x340   : > { %9422 = vmatprep.mubr.bf16.mxu1 %v1152_v3  ;;  %9334 = vst [vmem:[%s11284_s0 + $0x10] sm:$0xff] %v1152_v3   ;;  %v2138_v60 = vld [vmem:[#allocation23 + $0x4c0] sm:$0xff]  ;;  %s7895_s0 = sand.u32 1, %s13321_s26  }
 0x341   : > { %9423 = vmatmul.mubr.bf16.gmra.mrb[4].mxu1 %v1153_v2  ;;  %v8671_v62 = vcombine.high %v2130_v59, %v2138_v60  ;;  %v2146_v63 = vld [vmem:[#allocation23 + $0x500] sm:$0xff]  ;;  %v8670_v1 = vcombine.low %v2130_v59, %v2138_v60  ;;  %s12800_s14 = scalar_lea.sflag [#allocation30], %s7895_s0 }
 0x342   : > { %1689 = vmatpush1.bf16.msra.mxu1 %v9854_v5  ;;  %1716 = vmatprep.mubr.bf16.mxu1 %v10645_v8  ;;  %v2154_v0 = vld [vmem:[#allocation23 + $0x540] sm:$0xff] }
 0x343   : > { %1690 = vmatprep.subr.bf16.mxu1 %v9859_v6  ;;  %v8687_v2 = vcombine.high %v2146_v63, %v2154_v0  ;;  %v2162_v3 = vld [vmem:[#allocation23 + $0x580] sm:$0xff]  ;;  %v8686_v6 = vcombine.low %v2146_v63, %v2154_v0 }
 0x344   : > { %v2170_v5 = vld [vmem:[#allocation23 + $0x5c0] sm:$0xff] }
 0x345   : > { %v2226_v24 = vld [vmem:[#allocation23 + $0x780] sm:$0xff] }
 0x346   : > { %1691 = vmatpush1.bf16.msra.mxu1 %v9857_v7  ;;  %v8703_v7 = vcombine.high %v2162_v3, %v2170_v5  ;;  %v2234_v25 = vld [vmem:[#allocation23 + $0x7c0] sm:$0xff] }
 0x347   : > { %1692 = vmatprep.subr.bf16.mxu1 %v9862_v9  ;;  %v2178_v9 = vld [vmem:[#allocation23 + $0x600] sm:$0xff]  ;;  %v8767_v28 = vcombine.high %v2226_v24, %v2234_v25  ;;  %v8766_v35 = vcombine.low %v2226_v24, %v2234_v25 }
 0x348   : > { %v11298_v29 = vld [vmem:[#allocation23 + $0x800] sm:$0xff] }
 0x349   : > { %v9880_v55 = vld [vmem:[#allocation19 + $0x8] ss:$16 sps:$4 sm:$0xff]   ;;  %v9897_v25 = vld [vmem:[#allocation19 + $0xac] ss:$16 sps:$4 sm:$0xff]  }
 0x34a   : > { %1693 = vmatpush1.bf16.msra.mxu1 %v9860_v10  ;;  %v2186_v10 = vld [vmem:[#allocation23 + $0x640] sm:$0xff] }
 0x34b   : > { %1694 = vmatprep.subr.bf16.mxu1 %v9865_v11  ;;  %v8702_v11 = vcombine.low %v2162_v3, %v2170_v5  ;;  %v9883_v5 = vld [vmem:[#allocation19 + $0x28] ss:$16 sps:$4 sm:$0xff]  }
 0x34e   : > { %1695 = vmatpush1.bf16.msra.mxu1 %v9863_v12  ;;  %v8719_v12 = vcombine.high %v2178_v9, %v2186_v10 }
 0x34f   : > { %1696 = vmatprep.subr.bf16.mxu1 %v9868_v13  ;;  %v2194_v13 = vld [vmem:[#allocation23 + $0x680] sm:$0xff] }
 0x352   : > { %1697 = vmatpush1.bf16.msra.mxu1 %v9866_v17  ;;  %v2202_v17 = vld [vmem:[#allocation23 + $0x6c0] sm:$0xff] }
 0x353   : > { %1698 = vmatprep.subr.bf16.mxu1 %v9871_v18  ;;  %v8718_v18 = vcombine.low %v2178_v9, %v2186_v10  ;;  %v8734_v22 = vcombine.low %v2194_v13, %v2202_v17 }
 0x356   : > { %1699 = vmatpush1.bf16.msra.mxu1 %v9869_v19  ;;  %v8735_v19 = vcombine.high %v2194_v13, %v2202_v17  ;;  %v9891_v17 = vld [vmem:[#allocation19 + $0x6c] ss:$16 sps:$4 sm:$0xff]  }
 0x357   : > { %5058 = vmatprep.subr.bf16.mxu1 %v8527_v27  ;;  %v8482_v27 = vld [vmem:[#allocation11] ss:$0 sm:$0xff] }
 0x359   : > { %1717 = vmatmul.mubr.bf16.vlgmr.msra.gmra.mrb[8].mxu1 %v11268_v4 }
 0x35a   : > { %1726 = vmatprep.mubr.bf16.mxu1 %v10645_v8  ;;  %5059 = vmatpush1.bf16.msra.mxu1 %v8526_v26  ;;  %v8750_v26 = vcombine.low %v2210_v20, %v2218_v21  ;;  %v9894_v20 = vld [vmem:[#allocation19 + $0x8c] ss:$16 sps:$4 sm:$0xff]  }
 0x35b   : > { %5060 = vmatprep.subr.bf16.mxu1 %v8543_v30  ;;  %v11300_v30 = vld [vmem:[#allocation23 + $0x840] sm:$0xff] }
 0x35e   : > { %5061 = vmatpush1.bf16.msra.mxu1 %v8542_v33 }
 0x35f   : > { %5062 = vmatprep.subr.bf16.mxu1 %v8559_v34 }
 0x361   : > { %1727 = vmatmul.mubr.bf16.gmra.mrb[12].mxu1 %v11272_v14 }
 0x362   : > { %1736 = vmatprep.mubr.bf16.mxu1 %v10645_v8  ;;  %5063 = vmatpush1.bf16.msra.mxu1 %v8558_v37 }
 0x363   : > { %5064 = vmatprep.subr.bf16.mxu1 %v8575_v38  ;;  %v8783_v38 = vcombine.high %v11298_v29, %v11300_v30 }
 0x366   : > { %5065 = vmatpush1.bf16.msra.mxu1 %v8574_v41 }
 0x367   : > { %5066 = vmatprep.subr.bf16.mxu1 %v8591_v42 }
 0x369   : > { %1737 = vmatmul.mubr.bf16.gmra.mrb[16].mxu1 %v11275_v15 }
 0x36a   : > { %1746 = vmatprep.mubr.bf16.mxu1 %v10645_v8  ;;  %5067 = vmatpush1.bf16.msra.mxu1 %v8590_v45 }
 0x36b   : > { %5068 = vmatprep.subr.bf16.mxu1 %v8607_v46 }
 0x36e   : > { %5069 = vmatpush1.bf16.msra.mxu1 %v8606_v49 }
 0x36f   : > { %5070 = vmatprep.subr.bf16.mxu1 %v8623_v50 }
 0x371   : > { %1747 = vmatmul.mubr.bf16.gmra.mrb[20].mxu1 %v11280_v16 }
 0x372   : > { %5071 = vmatpush1.bf16.msra.mxu1 %v8622_v53 }
 0x373   : > { %5072 = vmatprep.subr.bf16.mxu1 %v8639_v54 }
 0x376   : > { %5073 = vmatpush1.bf16.msra.mxu1 %v8638_v57 }
 0x377   : > { %5074 = vmatprep.subr.bf16.mxu1 %v8655_v58 }
 0x37a   : > { %5075 = vmatpush1.bf16.msra.mxu1 %v8654_v61  ;;  %v9885_v61 = vld [vmem:[#allocation19 + $0x2c] ss:$16 sps:$4 sm:$0xff]  }
 0x37b   : > { %5076 = vmatprep.subr.bf16.mxu1 %v8671_v62 }
 0x37e   : > { %5077 = vmatpush1.bf16.msra.mxu1 %v8670_v1 }
 0x37f   : > { %5078 = vmatprep.subr.bf16.mxu1 %v8687_v2 }
 0x382   : > { %5079 = vmatpush1.bf16.msra.mxu1 %v8686_v6 }
 0x383   : > { %5080 = vmatprep.subr.bf16.mxu1 %v8703_v7  ;;  %v9888_v7 = vld [vmem:[#allocation19 + $0x4c] ss:$16 sps:$4 sm:$0xff]  }
 0x386   : > { %5081 = vmatpush1.bf16.msra.mxu1 %v8702_v11  ;;  %v1832_v11 = vlaneseq }
 0x387   : > { %5082 = vmatprep.subr.bf16.mxu1 %v8719_v12  ;;  %v9886_v12 = vld [vmem:[#allocation19 + $0x48] ss:$16 sps:$4 sm:$0xff]  }
 0x38a   : > { %5083 = vmatpush1.bf16.msra.mxu1 %v8718_v18  ;;  %v11311_v18 = vshrl.u32 %v1832_v11, 7 }
 0x38b   : > { %5084 = vmatprep.subr.bf16.mxu1 %v8735_v19  ;;  %v9889_v19 = vld [vmem:[#allocation19 + $0x68] ss:$16 sps:$4 sm:$0xff]  }
 0x38c   : > { %13338 = vst [vmem:[#allocation56_spill] sm:$0xff] %v11311_v18  ;;  %v11315_v21 = vsub.s32 0, %v11311_v18  ;;  %v11320_v24 = vsub.s32 1, %v11311_v18 }
 0x38e   : > { %5085 = vmatpush1.bf16.msra.mxu1 %v8734_v22  ;;  %13339 = vst [vmem:[#allocation57_spill] sm:$0xff] %v11315_v21  ;;  %v9892_v22 = vld [vmem:[#allocation19 + $0x88] ss:$16 sps:$4 sm:$0xff]   ;;  %13340 = vst [vmem:[#allocation58_spill] sm:$0xff] %v11320_v24 }
 0x38f   : > { %5086 = vmatprep.subr.bf16.mxu1 %v8751_v23  ;;  %v11317_v23 = vld [vmem:[#allocation20] sm:$0xf] }
 0x392   : > { %5087 = vmatpush1.bf16.msra.mxu1 %v8750_v26  ;;  %v11322_v26 = vld [vmem:[#allocation22] sm:$0xf] }
 0x393   : > { %5088 = vmatprep.subr.bf16.mxu1 %v8767_v28  ;;  %v9895_v28 = vld [vmem:[#allocation19 + $0xa8] ss:$16 sps:$4 sm:$0xff]  }
 0x396   : > { %5089 = vmatpush1.bf16.msra.mxu1 %v8766_v35  ;;  %v11338_v35 = vrot.slane %v11322_v26, %v11320_v24 }
 0x397   : > { %5131 = vmatprep.subr.bf16.mxu1 %v8783_v38  ;;  %v9898_v38 = vld [vmem:[#allocation19 + $0xc8] ss:$16 sps:$4 sm:$0xff]  }
 0x40c   : > { %v9420_v31 = vpop.f32.mrb[0].mxu1 }
 0x40d   : > { %v1292_v33 = vmul.f32 %v9420_v31, %v8482_v27  ;;  %v1252_v34 = vpop.f32.mrb[1].mxu1  ;;  %v11330_v31 = vrot.slane %v11317_v23, %v11320_v24 }
 0x40e   : > { %v1290_v36 = vmul.f32 %v8482_v27, %v1252_v34  ;;  %v9421_v37 = vpop.f32.mrb[2].mxu1 }
 0x40f   : > { %v1307_v39 = vadd.f32 %v8483_v32, %v1292_v33  ;;  %v1293_v40 = vmul.f32 %v9421_v37, %v8482_v27  ;;  %v1255_v41 = vpop.f32.mrb[3].mxu1  ;;  %v11334_v33 = vrot.slane %v11322_v26, %v11315_v21 }
 0x410   : > { %v1305_v42 = vadd.f32 %v8483_v32, %v1290_v36  ;;  %v1291_v43 = vmul.f32 %v8482_v27, %v1255_v41  ;;  %v9903_v41 = vld [vmem:[#allocation19 + $0xec] ss:$16 sps:$4 sm:$0xff]  }
 0x411   : > { %v1308_v44 = vadd.f32 %v8483_v32, %v1293_v40  ;;  %v1315_v46 = vmax.f32 %v1307_v39, 0.0 }
 0x412   : > { %v1306_v45 = vadd.f32 %v8483_v32, %v1291_v43  ;;  %v1313_v48 = vmax.f32 %v1305_v42, 0.0 }
 0x413   : > { %v1316_v47 = vmax.f32 %v1308_v44, 0.0 }
 0x414   : > { %v1314_v49 = vmax.f32 %v1306_v45, 0.0  ;;  %v9424_v50 = vpop.f32.mrb[4].mxu1  ;;  %v1987_v45 = vld [vmem:[#allocation23 + $0x8] sm:$0xff] }
 0x415   : > { %v1322_v51 = vpack.c.bf16 %v1316_v47, %v1315_v46  ;;  %v1296_v52 = vmul.f32 %v9424_v50, %v8482_v27  ;;  %v1268_v53 = vpop.f32.mrb[5].mxu1  ;;  %v1995_v46 = vld [vmem:[#allocation23 + $0x48] sm:$0xff] }
 0x416   : > { %v1321_v54 = vpack.c.bf16 %v1314_v49, %v1313_v48  ;;  %v1294_v56 = vmul.f32 %v8482_v27, %v1268_v53  ;;  %v9425_v57 = vpop.f32.mrb[6].mxu1 }
 0x417   : > { %9336 = vst [vmem:[%s11305_s6 + $0x8] sm:$0xff] %v1322_v51   ;;  %v1311_v58 = vadd.f32 %v8483_v32, %v1296_v52  ;;  %v1297_v59 = vmul.f32 %v9425_v57, %v8482_v27  ;;  %v1271_v60 = vpop.f32.mrb[7].mxu1  ;;  %v2011_v57 = vld [vmem:[#allocation23 + $0xc8] sm:$0xff] }
 0x418   : > { %9442 = vmatprep.mubr.bf16.mxu0 %v1321_v54  ;;  %9297 = vst [vmem:[%s11305_s6] sm:$0xff] %v1321_v54   ;;  %v1309_v62 = vadd.f32 %v8483_v32, %v1294_v56  ;;  %v1295_v63 = vmul.f32 %v8482_v27, %v1271_v60  ;;  %v11326_v27 = vrot.slane %v11317_v23, %v11315_v21  ;;  %v2003_v56 = vld [vmem:[#allocation23 + $0x88] sm:$0xff] }
 0x419   : > { %v1319_v0 = vmax.f32 %v1311_v58, 0.0  ;;  %9443 = vmatmul.mubr.bf16.vlgmr.msra.gmra.mrb[8].mxu0 %v1322_v51  ;;  %v1312_v1 = vadd.f32 %v8483_v32, %v1297_v59  ;;  %v9901_v51 = vld [vmem:[#allocation19 + $0xe8] ss:$16 sps:$4 sm:$0xff]   ;;  %v8529_v54 = vcombine.high %v1987_v45, %v1995_v46  ;;  %v8544_v11 = vcombine.low %v2003_v56, %v2011_v57 }
 0x41a   : > { %v1317_v2 = vmax.f32 %v1309_v62, 0.0  ;;  %1758 = vmatpush1.bf16.msra.mxu0 %v9880_v55  ;;  %v1310_v3 = vadd.f32 %v8483_v32, %v1295_v63  ;;  %v9900_v32 = vld [vmem:[#allocation19 + $0xcc] ss:$16 sps:$4 sm:$0xff]   ;;  %v8528_v63 = vcombine.low %v1987_v45, %v1995_v46 }
 0x41b   : > { %v1320_v6 = vmax.f32 %v1312_v1, 0.0  ;;  %1759 = vmatprep.subr.bf16.mxu0 %v9885_v61  ;;  %v2258_v61 = vld [vmem:[#allocation23 + $0x880] sm:$0xff] }
 0x41c   : > { %v1318_v9 = vmax.f32 %v1310_v3, 0.0  ;;  %v2266_v62 = vld [vmem:[#allocation23 + $0x8c0] sm:$0xff]  ;;  %v8782_v3 = vcombine.low %v11298_v29, %v11300_v30  ;;  %v2035_v30 = vld [vmem:[#allocation23 + $0x188] sm:$0xff] }
 0x41d   : > { %v1324_v10 = vpack.c.bf16 %v1320_v6, %v1319_v0  ;;  %v2027_v6 = vld [vmem:[#allocation23 + $0x148] sm:$0xff]  ;;  %v8798_v29 = vcombine.low %v2258_v61, %v2266_v62  ;;  %v2330_v45 = vld [vmem:[#allocation23 + $0xac0] sm:$0xff] }
 0x41e   : > { %1760 = vmatpush1.bf16.msra.mxu0 %v9883_v5  ;;  %v1323_v13 = vpack.c.bf16 %v1318_v9, %v1317_v2  ;;  %v8545_v2 = vcombine.high %v2003_v56, %v2011_v57  ;;  %v2019_v5 = vld [vmem:[#allocation23 + $0x108] sm:$0xff]  ;;  %v2274_v9 = vld [vmem:[#allocation23 + $0x900] sm:$0xff] }
 0x41f   : > { %1761 = vmatprep.subr.bf16.mxu0 %v9888_v7  ;;  %9338 = vst [vmem:[%s11305_s6 + $0x18] sm:$0xff] %v1324_v10   ;;  %v8799_v7 = vcombine.high %v2258_v61, %v2266_v62  ;;  %v2131_v61 = vld [vmem:[#allocation23 + $0x488] sm:$0xff] }
 0x420   : > { %9446 = vmatprep.mubr.bf16.mxu0 %v1323_v13  ;;  %9337 = vst [vmem:[%s11305_s6 + $0x10] sm:$0xff] %v1323_v13   ;;  %v2043_v13 = vld [vmem:[#allocation23 + $0x1c8] sm:$0xff]  ;;  %s12782_s6 = sshll.u32 %s13497_s18, 9 }
 0x421   : > { %9447 = vmatmul.mubr.bf16.gmra.mrb[12].mxu0 %v1324_v10  ;;  %v2282_v10 = vld [vmem:[#allocation23 + $0x940] sm:$0xff]  ;;  %v2139_v62 = vld [vmem:[#allocation23 + $0x4c8] sm:$0xff]  ;;  %s12790_s1 = scalar_lea.hbm %s13498_s22, %s12782_s6  ;;  %s12796_s13 = scalar_lea.hbm %s13499_s12, %s12782_s6 }
 0x422   : > { %1762 = vmatpush1.bf16.msra.mxu0 %v9886_v12  ;;  %1789 = vmatprep.mubr.bf16.mxu0 %v10645_v8  ;;  %v8561_v12 = vcombine.high %v2019_v5, %v2027_v6 }
 0x423   : > { %1763 = vmatprep.subr.bf16.mxu0 %v9891_v17  ;;  %v8815_v17 = vcombine.high %v2274_v9, %v2282_v10 }
 0x426   : > { %1764 = vmatpush1.bf16.msra.mxu0 %v9889_v19  ;;  %v2290_v19 = vld [vmem:[#allocation23 + $0x980] sm:$0xff] }
 0x427   : > { %1765 = vmatprep.subr.bf16.mxu0 %v9894_v20  ;;  %v2298_v20 = vld [vmem:[#allocation23 + $0x9c0] sm:$0xff] }
 0x42a   : > { %1766 = vmatpush1.bf16.msra.mxu0 %v9892_v22  ;;  %v8577_v22 = vcombine.high %v2035_v30, %v2043_v13 }
 0x42b   : > { %1767 = vmatprep.subr.bf16.mxu0 %v9897_v25  ;;  %v8814_v25 = vcombine.low %v2274_v9, %v2282_v10 }
 0x42c   : > { %v1718_v34 = vpop.f32.mrb[8].mxu1 }
 0x42d   : > { %v1852_v36 = vmul.f32 %v11326_v27, %v1718_v34  ;;  %v1720_v37 = vpop.f32.mrb[9].mxu1  ;;  %v8831_v34 = vcombine.high %v2290_v19, %v2298_v20 }
 0x42e   : > { %1768 = vmatpush1.bf16.msra.mxu0 %v9895_v28  ;;  %v1853_v39 = vmul.f32 %v11330_v31, %v1720_v37  ;;  %v1722_v40 = vpop.f32.mrb[10].mxu1  ;;  %v2051_v28 = vld [vmem:[#allocation23 + $0x208] sm:$0xff]  ;;  %v2314_v37 = vld [vmem:[#allocation23 + $0xa40] sm:$0xff] }
 0x42f   : > { %1769 = vmatprep.subr.bf16.mxu0 %v9900_v32  ;;  %v1906_v42 = vadd.f32 %v11334_v33, %v1852_v36  ;;  %v1856_v43 = vmul.f32 %v11326_v27, %v1722_v40  ;;  %v1724_v44 = vpop.f32.mrb[11].mxu1  ;;  %v2059_v32 = vld [vmem:[#allocation23 + $0x248] sm:$0xff]  ;;  %v2306_v36 = vld [vmem:[#allocation23 + $0xa00] sm:$0xff]  ;;  %v8830_v40 = vcombine.low %v2290_v19, %v2298_v20 }
 0x430   : > { %v1907_v47 = vadd.f32 %v11338_v35, %v1853_v39  ;;  %v1857_v48 = vmul.f32 %v11330_v31, %v1724_v44  ;;  %v8593_v39 = vcombine.high %v2051_v28, %v2059_v32  ;;  %v2322_v44 = vld [vmem:[#allocation23 + $0xa80] sm:$0xff]  ;;  %v8592_v46 = vcombine.low %v2051_v28, %v2059_v32  ;;  %v2227_v32 = vld [vmem:[#allocation23 + $0x788] sm:$0xff] }
 0x431   : > { %v1938_v49 = vmax.f32 %v1906_v42, 0.0  ;;  %v1910_v50 = vadd.f32 %v11334_v33, %v1856_v43  ;;  %v2075_v42 = vld [vmem:[#allocation23 + $0x2c8] sm:$0xff]  ;;  %v8847_v43 = vcombine.high %v2306_v36, %v2314_v37 }
 0x432   : > { %1770 = vmatpush1.bf16.msra.mxu0 %v9898_v38  ;;  %v1939_v52 = vmax.f32 %v1907_v47, 0.0  ;;  %v1911_v53 = vadd.f32 %v11338_v35, %v1857_v48  ;;  %v8576_v38 = vcombine.low %v2035_v30, %v2043_v13  ;;  %v8846_v47 = vcombine.low %v2306_v36, %v2314_v37  ;;  %v2083_v48 = vld [vmem:[#allocation23 + $0x308] sm:$0xff]  ;;  %v2338_v36 = vld [vmem:[#allocation23 + $0xb00] sm:$0xff] }
 0x433   : > { %1771 = vmatprep.subr.bf16.mxu0 %v9903_v41  ;;  %v1942_v55 = vmax.f32 %v1910_v50, 0.0  ;;  %v2067_v41 = vld [vmem:[#allocation23 + $0x288] sm:$0xff]  ;;  %v8863_v50 = vcombine.high %v2322_v44, %v2330_v45  ;;  %v2346_v37 = vld [vmem:[#allocation23 + $0xb40] sm:$0xff] }
 0x434   : > { %v9187_v58 = vpack.c.bf16 %v1939_v52, %v1938_v49  ;;  %v1943_v59 = vmax.f32 %v1911_v53, 0.0  ;;  %v8862_v53 = vcombine.low %v2322_v44, %v2330_v45  ;;  %v2195_v13 = vld [vmem:[#allocation23 + $0x688] sm:$0xff]  ;;  %v1728_v44 = vpop.f32.mrb[12].mxu1 }
 0x435   : > { %v11349_v60 = vpack.c.bf16 %v1942_v55, %v1938_v49  ;;  %v2091_v49 = vld [vmem:[#allocation23 + $0x348] sm:$0xff]  ;;  %v1730_v45 = vpop.f32.mrb[13].mxu1 }
 0x436   : > { %1772 = vmatpush1.bf16.msra.mxu0 %v9901_v51  ;;  %6970 = vst [vmem:[%s11351_s5] sm:$0xff] %v9187_v58  ;;  %v11354_v0 = vpack.c.bf16 %v1943_v59, %v1939_v52  ;;  %v9189_v1 = vpack.c.bf16 %v1943_v59, %v1942_v55  ;;  %v8608_v51 = vcombine.low %v2067_v41, %v2075_v42  ;;  %v2107_v55 = vld [vmem:[#allocation23 + $0x3c8] sm:$0xff] }
 0x437   : > { %13341 = vst [vmem:[#allocation59_spill] sm:$0xff] %v11349_v60  ;;  %5204 = vmatprep.subr.bf16.mxu0 %v8529_v54  ;;  %v8625_v52 = vcombine.high %v2083_v48, %v2091_v49  ;;  %v2099_v54 = vld [vmem:[#allocation23 + $0x388] sm:$0xff]  ;;  %v8624_v56 = vcombine.low %v2083_v48, %v2091_v49  ;;  %v1732_v48 = vpop.f32.mrb[14].mxu1 }
 0x438   : > { %13342 = vst [vmem:[#allocation60_spill] sm:$0xff] %v11354_v0  ;;  %6972 = vst [vmem:[%s11351_s5 + $0x10] sm:$0xff] %v9189_v1  ;;  %5090 = vmatprep.mubr.bf16.mxu1 %v11354_v0  ;;  %v8641_v57 = vcombine.high %v2099_v54, %v2107_v55  ;;  %v2115_v58 = vld [vmem:[#allocation23 + $0x408] sm:$0xff]  ;;  %v8673_v1 = vcombine.high %v2131_v61, %v2139_v62 }
 0x439   : > { %1790 = vmatmul.mubr.bf16.vlgmr.msra.gmra.mrb[16].mxu0 %v11268_v4  ;;  %5091 = vmatmul.mubr.bf16.vlgmr.msra.gmra.mrb[24].mxu1 %v11349_v60  ;;  %v8560_v4 = vcombine.low %v2019_v5, %v2027_v6  ;;  %v2123_v59 = vld [vmem:[#allocation23 + $0x448] sm:$0xff]  ;;  %v8672_v5 = vcombine.low %v2131_v61, %v2139_v62 }
 0x43a   : > { %1799 = vmatprep.mubr.bf16.mxu0 %v10645_v8  ;;  %5205 = vmatpush1.bf16.msra.mxu0 %v8528_v63  ;;  %v8656_v63 = vcombine.low %v2115_v58, %v2123_v59 }
 0x43b   : > { %5206 = vmatprep.subr.bf16.mxu0 %v8545_v2  ;;  %5132 = vmatpush1.bf16.msra.mxu1 %v8782_v3  ;;  %v2147_v2 = vld [vmem:[#allocation23 + $0x508] sm:$0xff] }
 0x43c   : > { %5133 = vmatprep.subr.bf16.mxu1 %v8799_v7  ;;  %v2155_v3 = vld [vmem:[#allocation23 + $0x548] sm:$0xff] }
 0x43d   : > { %v8689_v6 = vcombine.high %v2147_v2, %v2155_v3  ;;  %v2163_v7 = vld [vmem:[#allocation23 + $0x588] sm:$0xff]  ;;  %v8688_v9 = vcombine.low %v2147_v2, %v2155_v3 }
 0x43e   : > { %5207 = vmatpush1.bf16.msra.mxu0 %v8544_v11  ;;  %v2179_v11 = vld [vmem:[#allocation23 + $0x608] sm:$0xff] }
 0x43f   : > { %5208 = vmatprep.subr.bf16.mxu0 %v8561_v12  ;;  %5134 = vmatpush1.bf16.msra.mxu1 %v8798_v29  ;;  %v2187_v12 = vld [vmem:[#allocation23 + $0x648] sm:$0xff] }
 0x440   : > { %5135 = vmatprep.subr.bf16.mxu1 %v8815_v17  ;;  %v8721_v30 = vcombine.high %v2179_v11, %v2187_v12  ;;  %v2203_v17 = vld [vmem:[#allocation23 + $0x6c8] sm:$0xff]  ;;  %v8720_v19 = vcombine.low %v2179_v11, %v2187_v12 }
 0x441   : > { %1800 = vmatmul.mubr.bf16.gmra.mrb[20].mxu0 %v11272_v14  ;;  %v8609_v14 = vcombine.high %v2067_v41, %v2075_v42  ;;  %v8737_v20 = vcombine.high %v2195_v13, %v2203_v17  ;;  %v8878_v41 = vcombine.low %v2338_v36, %v2346_v37  ;;  %v2243_v42 = vld [vmem:[#allocation23 + $0x808] sm:$0xff] }
 0x442   : > { %1809 = vmatprep.mubr.bf16.mxu0 %v10645_v8  ;;  %5209 = vmatpush1.bf16.msra.mxu0 %v8560_v4  ;;  %v2211_v4 = vld [vmem:[#allocation23 + $0x708] sm:$0xff] }
 0x443   : > { %5210 = vmatprep.subr.bf16.mxu0 %v8577_v22  ;;  %5136 = vmatpush1.bf16.msra.mxu1 %v8814_v25  ;;  %v2219_v22 = vld [vmem:[#allocation23 + $0x748] sm:$0xff]  ;;  %v8736_v25 = vcombine.low %v2195_v13, %v2203_v17  ;;  %v2386_v17 = vld [vmem:[#allocation23 + $0xc80] sm:$0xff] }
 0x444   : > { %5137 = vmatprep.subr.bf16.mxu1 %v8831_v34  ;;  %v8753_v28 = vcombine.high %v2211_v4, %v2219_v22  ;;  %v2235_v34 = vld [vmem:[#allocation23 + $0x7c8] sm:$0xff] }
 0x445   : > { %v11375_v2 = vld [vmem:[#allocation23 + $0x908] sm:$0xff] }
 0x446   : > { %5211 = vmatpush1.bf16.msra.mxu0 %v8576_v38  ;;  %v8752_v38 = vcombine.low %v2211_v4, %v2219_v22  ;;  %v11377_v3 = vld [vmem:[#allocation23 + $0x948] sm:$0xff] }
 0x447   : > { %5212 = vmatprep.subr.bf16.mxu0 %v8593_v39  ;;  %5138 = vmatpush1.bf16.msra.mxu1 %v8830_v40  ;;  %v8879_v39 = vcombine.high %v2338_v36, %v2346_v37  ;;  %v8769_v40 = vcombine.high %v2227_v32, %v2235_v34 }
 0x448   : > { %5139 = vmatprep.subr.bf16.mxu1 %v8847_v43  ;;  %v2251_v43 = vld [vmem:[#allocation23 + $0x848] sm:$0xff] }
 0x449   : > { %1810 = vmatmul.mubr.bf16.gmra.mrb[24].mxu0 %v11275_v15  ;;  %v8640_v15 = vcombine.low %v2099_v54, %v2107_v55  ;;  %v2267_v54 = vld [vmem:[#allocation23 + $0x8c8] sm:$0xff]  ;;  %v1861_v55 = vmul.f32 %v11330_v31, %v1730_v45  ;;  %v8816_v45 = vcombine.low %v11375_v2, %v11377_v3 }
 0x44a   : > { %1819 = vmatprep.mubr.bf16.mxu0 %v10645_v8  ;;  %5213 = vmatpush1.bf16.msra.mxu0 %v8592_v46  ;;  %v8657_v8 = vcombine.high %v2115_v58, %v2123_v59  ;;  %v2354_v46 = vld [vmem:[#allocation23 + $0xb80] sm:$0xff]  ;;  %v1864_v58 = vmul.f32 %v11326_v27, %v1732_v48  ;;  %v11404_v48 = vld [vmem:[#allocation23 + $0xa08] sm:$0xff] }
 0x44b   : > { %5214 = vmatprep.subr.bf16.mxu0 %v8609_v14  ;;  %5140 = vmatpush1.bf16.msra.mxu1 %v8846_v47  ;;  %v2362_v14 = vld [vmem:[#allocation23 + $0xbc0] sm:$0xff]  ;;  %v8768_v47 = vcombine.low %v2227_v32, %v2235_v34  ;;  %v1915_v61 = vadd.f32 %v11338_v35, %v1861_v55 }
 0x44c   : > { %5141 = vmatprep.subr.bf16.mxu1 %v8863_v50  ;;  %v8895_v49 = vcombine.high %v2354_v46, %v2362_v14  ;;  %v8785_v50 = vcombine.high %v2243_v42, %v2251_v43  ;;  %v2370_v59 = vld [vmem:[#allocation23 + $0xc00] sm:$0xff] }
 0x44e   : > { %5215 = vmatpush1.bf16.msra.mxu0 %v8608_v51  ;;  %v1734_v51 = vpop.f32.mrb[15].mxu1 }
 0x44f   : > { %5216 = vmatprep.subr.bf16.mxu0 %v8625_v52  ;;  %5142 = vmatpush1.bf16.msra.mxu1 %v8862_v53  ;;  %v8894_v52 = vcombine.low %v2354_v46, %v2362_v14  ;;  %v2259_v53 = vld [vmem:[#allocation23 + $0x888] sm:$0xff]  ;;  %v2402_v14 = vld [vmem:[#allocation23 + $0xd00] sm:$0xff] }
 0x450   : > { %5143 = vmatprep.subr.bf16.mxu1 %v8879_v39  ;;  %v8800_v11 = vcombine.low %v2259_v53, %v2267_v54  ;;  %v11391_v39 = vld [vmem:[#allocation23 + $0x988] sm:$0xff] }
 0x451   : > { %1820 = vmatmul.mubr.bf16.gmra.mrb[28].mxu0 %v11280_v16  ;;  %v2171_v16 = vld [vmem:[#allocation23 + $0x5c8] sm:$0xff] }
 0x452   : > { %5217 = vmatpush1.bf16.msra.mxu0 %v8624_v56  ;;  %5236 = vmatprep.mubr.bf16.mxu0 %v11354_v0  ;;  %v8705_v10 = vcombine.high %v2163_v7, %v2171_v16  ;;  %v8704_v29 = vcombine.low %v2163_v7, %v2171_v16  ;;  %v1865_v56 = vmul.f32 %v11330_v31, %v1734_v51  ;;  %v1947_v16 = vmax.f32 %v1915_v61, 0.0 }
 0x453   : > { %5218 = vmatprep.subr.bf16.mxu0 %v8641_v57  ;;  %5144 = vmatpush1.bf16.msra.mxu1 %v8878_v41  ;;  %v1860_v57 = vmul.f32 %v11326_v27, %v1728_v44 }
 0x454   : > { %5145 = vmatprep.subr.bf16.mxu1 %v8895_v49  ;;  %v1919_v62 = vadd.f32 %v11338_v35, %v1865_v56  ;;  %v11406_v49 = vld [vmem:[#allocation23 + $0xa48] sm:$0xff] }
 0x456   : > { %5219 = vmatpush1.bf16.msra.mxu0 %v8640_v15  ;;  %v2378_v15 = vld [vmem:[#allocation23 + $0xc40] sm:$0xff] }
 0x457   : > { %5220 = vmatprep.subr.bf16.mxu0 %v8657_v8  ;;  %5146 = vmatpush1.bf16.msra.mxu1 %v8894_v52  ;;  %v8784_v8 = vcombine.low %v2243_v42, %v2251_v43  ;;  %v8910_v7 = vcombine.low %v2370_v59, %v2378_v15 }
 0x45a   : > { %5221 = vmatpush1.bf16.msra.mxu0 %v8656_v63  ;;  %v8911_v63 = vcombine.high %v2370_v59, %v2378_v15  ;;  %v2418_v15 = vld [vmem:[#allocation23 + $0xd80] sm:$0xff] }
 0x45b   : > { %5222 = vmatprep.subr.bf16.mxu0 %v8673_v1  ;;  %v8801_v1 = vcombine.high %v2259_v53, %v2267_v54 }
 0x45c   : > { %5147 = vmatprep.subr.bf16.mxu1 %v8911_v63 }
 0x45d   : > { %5148 = vmatpush1.bf16.msra.mxu1 %v8910_v7 }
 0x45e   : > { %5223 = vmatpush1.bf16.msra.mxu0 %v8672_v5  ;;  %v1914_v5 = vadd.f32 %v11334_v33, %v1860_v57 }
 0x45f   : > { %5224 = vmatprep.subr.bf16.mxu0 %v8689_v6  ;;  %v1918_v6 = vadd.f32 %v11334_v33, %v1864_v58 }
 0x460   : > { %v1946_v12 = vmax.f32 %v1914_v5, 0.0 }
 0x462   : > { %5225 = vmatpush1.bf16.msra.mxu0 %v8688_v9  ;;  %v1951_v9 = vmax.f32 %v1919_v62, 0.0  ;;  %v9191_v32 = vpack.c.bf16 %v1947_v16, %v1946_v12  ;;  %v8849_v62 = vcombine.high %v11404_v48, %v11406_v49 }
 0x463   : > { %5226 = vmatprep.subr.bf16.mxu0 %v8705_v10  ;;  %v1738_v10 = vpop.f32.mrb[16].mxu1 }
 0x464   : > { %v1740_v13 = vpop.f32.mrb[17].mxu1  ;;  %v11385_v4 = vpack.c.bf16 %v1951_v9, %v1947_v16  ;;  %6974 = vst [vmem:[%s11351_s5 + $0x20] sm:$0xff] %v9191_v32 }
 0x465   : > { %v1869_v22 = vmul.f32 %v11330_v31, %v1740_v13  ;;  %v2323_v13 = vld [vmem:[#allocation23 + $0xa88] sm:$0xff] }
 0x466   : > { %5227 = vmatpush1.bf16.msra.mxu0 %v8704_v29  ;;  %v1950_v29 = vmax.f32 %v1918_v6, 0.0  ;;  %13343 = vst [vmem:[#allocation61_spill] sm:$0xff] %v11385_v4  ;;  %5100 = vmatprep.mubr.bf16.mxu1 %v11385_v4 }
 0x467   : > { %5228 = vmatprep.subr.bf16.mxu0 %v8721_v30  ;;  %v1868_v30 = vmul.f32 %v11326_v27, %v1738_v10  ;;  %v1923_v41 = vadd.f32 %v11338_v35, %v1869_v22  ;;  %v2442_v10 = vld [vmem:[#allocation23 + $0xe40] sm:$0xff] }
 0x468   : > { %v11388_v34 = vpack.c.bf16 %v1950_v29, %v1946_v12  ;;  %v9193_v36 = vpack.c.bf16 %v1951_v9, %v1950_v29  ;;  %v2434_v9 = vld [vmem:[#allocation23 + $0xe00] sm:$0xff] }
 0x469   : > { %v1922_v37 = vadd.f32 %v11334_v33, %v1868_v30 }
 0x46a   : > { %5229 = vmatpush1.bf16.msra.mxu0 %v8720_v19  ;;  %v2394_v19 = vld [vmem:[#allocation23 + $0xcc0] sm:$0xff]  ;;  %13344 = vst [vmem:[#allocation62_spill] sm:$0xff] %v11388_v34  ;;  %6976 = vst [vmem:[%s11351_s5 + $0x30] sm:$0xff] %v9193_v36  ;;  %5101 = vmatmul.mubr.bf16.gmra.mrb[28].mxu1 %v11388_v34 }
 0x46b   : > { %5230 = vmatprep.subr.bf16.mxu0 %v8737_v20  ;;  %v8817_v20 = vcombine.high %v11375_v2, %v11377_v3  ;;  %v8926_v44 = vcombine.low %v2386_v17, %v2394_v19  ;;  %v1954_v46 = vmax.f32 %v1922_v37, 0.0 }
 0x46e   : > { %5231 = vmatpush1.bf16.msra.mxu0 %v8736_v25  ;;  %v1742_v25 = vpop.f32.mrb[18].mxu1 }
 0x46f   : > { %5232 = vmatprep.subr.bf16.mxu0 %v8753_v28  ;;  %v8927_v28 = vcombine.high %v2386_v17, %v2394_v19  ;;  %v1872_v42 = vmul.f32 %v11326_v27, %v1742_v25  ;;  %v2331_v17 = vld [vmem:[#allocation23 + $0xac8] sm:$0xff] }
 0x471   : > { %5149 = vmatprep.subr.bf16.mxu1 %v8927_v28  ;;  %v1926_v51 = vadd.f32 %v11334_v33, %v1872_v42  ;;  %v8975_v28 = vcombine.high %v2434_v9, %v2442_v10 }
 0x472   : > { %5233 = vmatpush1.bf16.msra.mxu0 %v8752_v38  ;;  %v1744_v38 = vpop.f32.mrb[19].mxu1  ;;  %5150 = vmatpush1.bf16.msra.mxu1 %v8926_v44  ;;  %v8864_v44 = vcombine.low %v2323_v13, %v2331_v17 }
 0x473   : > { %5234 = vmatprep.subr.bf16.mxu0 %v8769_v40  ;;  %v11393_v40 = vld [vmem:[#allocation23 + $0x9c8] sm:$0xff]  ;;  %v1873_v43 = vmul.f32 %v11330_v31, %v1744_v38  ;;  %v1958_v57 = vmax.f32 %v1926_v51, 0.0  ;;  %v1748_v59 = vpop.f32.mrb[20].mxu1  ;;  %v8974_v38 = vcombine.low %v2434_v9, %v2442_v10  ;;  %v2466_v51 = vld [vmem:[#allocation23 + $0xf00] sm:$0xff] }
 0x474   : > { %v8833_v54 = vcombine.high %v11391_v39, %v11393_v40  ;;  %v8832_v61 = vcombine.low %v11391_v39, %v11393_v40  ;;  %v1876_v63 = vmul.f32 %v11326_v27, %v1748_v59  ;;  %v2339_v39 = vld [vmem:[#allocation23 + $0xb08] sm:$0xff]  ;;  %v2482_v59 = vld [vmem:[#allocation23 + $0xf80] sm:$0xff] }
 0x475   : > { %v1927_v52 = vadd.f32 %v11338_v35, %v1873_v43  ;;  %v11420_v3 = vpack.c.bf16 %v1958_v57, %v1954_v46  ;;  %v2450_v43 = vld [vmem:[#allocation23 + $0xe80] sm:$0xff] }
 0x476   : > { %5235 = vmatpush1.bf16.msra.mxu0 %v8768_v47  ;;  %v2410_v47 = vld [vmem:[#allocation23 + $0xd40] sm:$0xff] }
 0x477   : > { %5277 = vmatprep.subr.bf16.mxu0 %v8785_v50  ;;  %v1955_v50 = vmax.f32 %v1923_v41, 0.0  ;;  %v8943_v53 = vcombine.high %v2402_v14, %v2410_v47  ;;  %v8942_v55 = vcombine.low %v2402_v14, %v2410_v47  ;;  %v1959_v58 = vmax.f32 %v1927_v52, 0.0  ;;  %13345 = vst [vmem:[#allocation63_spill] sm:$0xff] %v11420_v3  ;;  %v2474_v52 = vld [vmem:[#allocation23 + $0xf40] sm:$0xff] }
 0x479   : > { %5237 = vmatmul.mubr.bf16.vlgmr.msra.gmra.mrb[32].mxu0 %v11349_v60  ;;  %v9195_v56 = vpack.c.bf16 %v1955_v50, %v1954_v46  ;;  %5151 = vmatprep.subr.bf16.mxu1 %v8943_v53  ;;  %v11422_v5 = vpack.c.bf16 %v1959_v58, %v1955_v50  ;;  %v9197_v6 = vpack.c.bf16 %v1959_v58, %v1958_v57  ;;  %v2363_v50 = vld [vmem:[#allocation23 + $0xbc8] sm:$0xff] }
 0x47a   : > { %5278 = vmatpush1.bf16.msra.mxu0 %v8784_v8  ;;  %5246 = vmatprep.mubr.bf16.mxu0 %v11385_v4  ;;  %v2426_v8 = vld [vmem:[#allocation23 + $0xdc0] sm:$0xff]  ;;  %v2371_v57 = vld [vmem:[#allocation23 + $0xc08] sm:$0xff] }
 0x47b   : > { %5279 = vmatprep.subr.bf16.mxu0 %v8801_v1  ;;  %v1750_v1 = vpop.f32.mrb[21].mxu1  ;;  %v8959_v2 = vcombine.high %v2418_v15, %v2426_v8  ;;  %6978 = vst [vmem:[%s11351_s5 + $0x40] sm:$0xff] %v9195_v56  ;;  %13346 = vst [vmem:[#allocation64_spill] sm:$0xff] %v11422_v5  ;;  %5152 = vmatpush1.bf16.msra.mxu1 %v8942_v55  ;;  %v8958_v30 = vcombine.low %v2418_v15, %v2426_v8  ;;  %v2379_v58 = vld [vmem:[#allocation23 + $0xc48] sm:$0xff]  ;;  %v2490_v15 = vld [vmem:[#allocation23 + $0xfc0] sm:$0xff] }
 0x47c   : > { %v1877_v7 = vmul.f32 %v11330_v31, %v1750_v1  ;;  %v1752_v16 = vpop.f32.mrb[22].mxu1  ;;  %6980 = vst [vmem:[%s11351_s5 + $0x50] sm:$0xff] %v9197_v6  ;;  %5110 = vmatprep.mubr.bf16.mxu1 %v11422_v5  ;;  %v9006_v56 = vcombine.low %v2466_v51, %v2474_v52  ;;  %v2387_v1 = vld [vmem:[#allocation23 + $0xc88] sm:$0xff]  ;;  %v11448_v6 = vld [vmem:[#allocation23 + $0x10] sm:$0xff]  ;;  %v8912_v9 = vcombine.low %v2371_v57, %v2379_v58 }
 0x47d   : > { %v1880_v12 = vmul.f32 %v11326_v27, %v1752_v16  ;;  %v1754_v29 = vpop.f32.mrb[23].mxu1  ;;  %5153 = vmatprep.subr.bf16.mxu1 %v8959_v2  ;;  %v8848_v27 = vcombine.low %v11404_v48, %v11406_v49  ;;  %5111 = vmatmul.mubr.bf16.gmra.mrb[32].mxu1 %v11420_v3  ;;  %v2355_v49 = vld [vmem:[#allocation23 + $0xb88] sm:$0xff]  ;;  %v11452_v16 = vld [vmem:[#allocation23 + $0x18] sm:$0xff] }
 0x47e   : > { %5280 = vmatpush1.bf16.msra.mxu0 %v8800_v11  ;;  %v1930_v11 = vadd.f32 %v11334_v33, %v1876_v63  ;;  %v1931_v19 = vadd.f32 %v11338_v35, %v1877_v7  ;;  %v8897_v55 = vcombine.high %v2355_v49, %v2363_v50  ;;  %v8896_v8 = vcombine.low %v2355_v49, %v2363_v50  ;;  %v2395_v2 = vld [vmem:[#allocation23 + $0xcc8] sm:$0xff]  ;;  %v11450_v7 = vld [vmem:[#allocation23 + $0x50] sm:$0xff] }
 0x47f   : > { %5281 = vmatprep.subr.bf16.mxu0 %v8817_v20  ;;  %v1881_v20 = vmul.f32 %v11330_v31, %v1754_v29  ;;  %v1934_v25 = vadd.f32 %v11334_v33, %v1880_v12  ;;  %v8865_v31 = vcombine.high %v2323_v13, %v2331_v17  ;;  %5154 = vmatpush1.bf16.msra.mxu1 %v8958_v30  ;;  %v2347_v33 = vld [vmem:[#allocation23 + $0xb48] sm:$0xff] }
 0x480   : > { %v1962_v22 = vmax.f32 %v1930_v11, 0.0  ;;  %v1963_v32 = vmax.f32 %v1931_v19, 0.0  ;;  %5155 = vmatprep.subr.bf16.mxu1 %v8975_v28  ;;  %v8881_v47 = vcombine.high %v2339_v39, %v2347_v33  ;;  %v8880_v53 = vcombine.low %v2339_v39, %v2347_v33  ;;  %v11456_v11 = vld [vmem:[#allocation23 + $0x58] sm:$0xff]  ;;  %v2403_v13 = vld [vmem:[#allocation23 + $0xd08] sm:$0xff] }
 0x481   : > { %5247 = vmatmul.mubr.bf16.gmra.mrb[36].mxu0 %v11388_v34  ;;  %v1935_v36 = vadd.f32 %v11338_v35, %v1881_v20  ;;  %v1966_v37 = vmax.f32 %v1934_v25, 0.0  ;;  %v2458_v35 = vld [vmem:[#allocation23 + $0xec0] sm:$0xff]  ;;  %v9022_v63 = vcombine.low %v2482_v59, %v2490_v15  ;;  %v8531_v10 = vcombine.high %v11448_v6, %v11450_v7  ;;  %v2411_v17 = vld [vmem:[#allocation23 + $0xd48] sm:$0xff] }
 0x482   : > { %5282 = vmatpush1.bf16.msra.mxu0 %v8816_v45  ;;  %5256 = vmatprep.mubr.bf16.mxu0 %v11422_v5  ;;  %v9199_v40 = vpack.c.bf16 %v1963_v32, %v1962_v22  ;;  %v8991_v14 = vcombine.high %v2450_v43, %v2458_v35  ;;  %v8990_v48 = vcombine.low %v2450_v43, %v2458_v35  ;;  %v2427_v25 = vld [vmem:[#allocation23 + $0xdc8] sm:$0xff] }
 0x483   : > { %5283 = vmatprep.subr.bf16.mxu0 %v8833_v54  ;;  %v1967_v41 = vmax.f32 %v1935_v36, 0.0  ;;  %v11437_v42 = vpack.c.bf16 %v1966_v37, %v1962_v22  ;;  %5156 = vmatpush1.bf16.msra.mxu1 %v8974_v38  ;;  %v9007_v54 = vcombine.high %v2466_v51, %v2474_v52  ;;  %v8929_v12 = vcombine.high %v2387_v1, %v2395_v2  ;;  %v2419_v22 = vld [vmem:[#allocation23 + $0xd88] sm:$0xff]  ;;  %v8492_v51 = vld [vmem:[#allocation16] ss:$0 sm:$0xff] }
 0x484   : > { %6982 = vst [vmem:[%s11351_s5 + $0x60] sm:$0xff] %v9199_v40  ;;  %5157 = vmatprep.subr.bf16.mxu1 %v8991_v14  ;;  %v8530_v29 = vcombine.low %v11448_v6, %v11450_v7  ;;  %v8532_v30 = vcombine.low %v11452_v16, %v11456_v11  ;;  %v8928_v19 = vcombine.low %v2387_v1, %v2395_v2  ;;  %v2443_v36 = vld [vmem:[#allocation23 + $0xe48] sm:$0xff] }
 0x485   : > { %v11441_v45 = vpack.c.bf16 %v1967_v41, %v1963_v32  ;;  %v9201_v46 = vpack.c.bf16 %v1967_v41, %v1966_v37  ;;  %v8945_v20 = vcombine.high %v2403_v13, %v2411_v17  ;;  %v8944_v28 = vcombine.low %v2403_v13, %v2411_v17  ;;  %v2435_v32 = vld [vmem:[#allocation23 + $0xe08] sm:$0xff] }
 0x486   : > { %5284 = vmatpush1.bf16.msra.mxu0 %v8832_v61  ;;  %v9023_v61 = vcombine.high %v2482_v59, %v2490_v15  ;;  %v8977_v37 = vcombine.high %v2435_v32, %v2443_v36  ;;  %v2451_v38 = vld [vmem:[#allocation23 + $0xe88] sm:$0xff]  ;;  %v8976_v33 = vcombine.low %v2435_v32, %v2443_v36  ;;  %v8533_v50 = vcombine.high %v11452_v16, %v11456_v11  ;;  %v2037_v16 = vld [vmem:[#allocation23 + $0x198] sm:$0xff] }
 0x487   : > { %5285 = vmatprep.subr.bf16.mxu0 %v8849_v62  ;;  %13347 = vst [vmem:[#allocation65_spill] sm:$0xff] %v11441_v45  ;;  %6984 = vst [vmem:[%s11351_s5 + $0x70] sm:$0xff] %v9201_v46  ;;  %5120 = vmatprep.mubr.bf16.mxu1 %v11441_v45  ;;  %v8913_v62 = vcombine.high %v2371_v57, %v2379_v58  ;;  %v2459_v39 = vld [vmem:[#allocation23 + $0xec8] sm:$0xff]  ;;  %v2045_v11 = vld [vmem:[#allocation23 + $0x1d8] sm:$0xff] }
 0x488   : > { %5121 = vmatmul.mubr.bf16.gmra.mrb[36].mxu1 %v11437_v42  ;;  %v8993_v40 = vcombine.high %v2451_v38, %v2459_v39  ;;  %v2467_v41 = vld [vmem:[#allocation23 + $0xf08] sm:$0xff]  ;;  %v8992_v35 = vcombine.low %v2451_v38, %v2459_v39 }
 0x489   : > { %5257 = vmatmul.mubr.bf16.gmra.mrb[40].mxu0 %v11420_v3  ;;  %5158 = vmatpush1.bf16.msra.mxu1 %v8990_v48  ;;  %v2475_v43 = vld [vmem:[#allocation23 + $0xf48] sm:$0xff] }
 0x48a   : > { %5286 = vmatpush1.bf16.msra.mxu0 %v8848_v27  ;;  %5266 = vmatprep.mubr.bf16.mxu0 %v11441_v45  ;;  %v8961_v27 = vcombine.high %v2419_v22, %v2427_v25  ;;  %v2483_v46 = vld [vmem:[#allocation23 + $0xf88] sm:$0xff] }
 0x48b   : > { %5287 = vmatprep.subr.bf16.mxu0 %v8865_v31  ;;  %5159 = vmatprep.subr.bf16.mxu1 %v9007_v54  ;;  %v8960_v31 = vcombine.low %v2419_v22, %v2427_v25  ;;  %v2491_v14 = vld [vmem:[#allocation23 + $0xfc8] sm:$0xff] }
 0x48c   : > { %v9025_v48 = vcombine.high %v2483_v46, %v2491_v14  ;;  %v9024_v49 = vcombine.low %v2483_v46, %v2491_v14  ;;  %v11475_v46 = vsub.s32 3, %v11311_v18 }
 0x48d   : > { %5160 = vmatpush1.bf16.msra.mxu1 %v9006_v56 }
 0x48e   : > { %5288 = vmatpush1.bf16.msra.mxu0 %v8864_v44  ;;  %5161 = vmatprep.subr.bf16.mxu1 %v9023_v61  ;;  %v9009_v44 = vcombine.high %v2467_v41, %v2475_v43  ;;  %13349 = vst [vmem:[#allocation67_spill] sm:$0xff] %v11475_v46 }
 0x48f   : > { %5289 = vmatprep.subr.bf16.mxu0 %v8881_v47  ;;  %v9008_v47 = vcombine.low %v2467_v41, %v2475_v43 }
 0x491   : > { %5267 = vmatmul.mubr.bf16.gmra.mrb[44].mxu0 %v11437_v42  ;;  %5162 = vmatpush1.bf16.msra.mxu1 %v9022_v63 }
 0x492   : > { %5290 = vmatpush1.bf16.msra.mxu0 %v8880_v53  ;;  %5350 = vmatprep.subr.bf16.mxu1 %v8531_v10  ;;  %v8493_v53 = vld [vmem:[#allocation17] ss:$0 sm:$0xff] }
 0x493   : > { %5291 = vmatprep.subr.bf16.mxu0 %v8897_v55 }
 0x496   : > { %5292 = vmatpush1.bf16.msra.mxu0 %v8896_v8 }
 0x497   : > { %5293 = vmatprep.subr.bf16.mxu0 %v8913_v62 }
 0x49a   : > { %5294 = vmatpush1.bf16.msra.mxu0 %v8912_v9 }
 0x49b   : > { %5295 = vmatprep.subr.bf16.mxu0 %v8929_v12 }
 0x49e   : > { %5296 = vmatpush1.bf16.msra.mxu0 %v8928_v19 }
 0x49f   : > { %5297 = vmatprep.subr.bf16.mxu0 %v8945_v20 }
 0x4a2   : > { %5298 = vmatpush1.bf16.msra.mxu0 %v8944_v28 }
 0x4a3   : > { %5299 = vmatprep.subr.bf16.mxu0 %v8961_v27 }
 0x4a6   : > { %5300 = vmatpush1.bf16.msra.mxu0 %v8960_v31 }
 0x4a7   : > { %5301 = vmatprep.subr.bf16.mxu0 %v8977_v37 }
 0x4aa   : > { %5302 = vmatpush1.bf16.msra.mxu0 %v8976_v33 }
 0x4ab   : > { %5303 = vmatprep.subr.bf16.mxu0 %v8993_v40 }
 0x4ae   : > { %5304 = vmatpush1.bf16.msra.mxu0 %v8992_v35 }
 0x4af   : > { %5305 = vmatprep.subr.bf16.mxu0 %v9009_v44  ;;  %v11472_v44 = vsub.s32 2, %v11311_v18 }
 0x4b1   : > { %13348 = vst [vmem:[#allocation66_spill] sm:$0xff] %v11472_v44  ;;  %v11479_v14 = vrot.slane %v11317_v23, %v11472_v44 }
 0x4b2   : > { %5306 = vmatpush1.bf16.msra.mxu0 %v9008_v47  ;;  %v11483_v47 = vrot.slane %v11317_v23, %v11475_v46 }
 0x4b3   : > { %5307 = vmatprep.subr.bf16.mxu0 %v9025_v48  ;;  %v11487_v48 = vrot.slane %v11322_v26, %v11472_v44 }
 0x4b6   : > { %5308 = vmatpush1.bf16.msra.mxu0 %v9024_v49 }
 0x4b7   : > { %5496 = vmatprep.subr.bf16.mxu0 %v8533_v50  ;;  %v11491_v50 = vrot.slane %v11322_v26, %v11475_v46 }
 0x4ec   : > { %v9444_v52 = vpop.f32.mrb[8].mxu0 }
 0x4ed   : > { %v1463_v54 = vmul.f32 %v9444_v52, %v8492_v51  ;;  %v1423_v55 = vpop.f32.mrb[9].mxu0 }
 0x4ee   : > { %v1461_v56 = vmul.f32 %v8492_v51, %v1423_v55  ;;  %v9445_v57 = vpop.f32.mrb[10].mxu0 }
 0x4ef   : > { %v1478_v58 = vadd.f32 %v8493_v53, %v1463_v54  ;;  %v1464_v59 = vmul.f32 %v9445_v57, %v8492_v51  ;;  %v1426_v15 = vpop.f32.mrb[11].mxu0 }
 0x4f0   : > { %v1476_v8 = vadd.f32 %v8493_v53, %v1461_v56  ;;  %v1462_v61 = vmul.f32 %v8492_v51, %v1426_v15 }
 0x4f1   : > { %v1479_v62 = vadd.f32 %v8493_v53, %v1464_v59  ;;  %v1486_v1 = vmax.f32 %v1478_v58, 0.0 }
 0x4f2   : > { %v1477_v63 = vadd.f32 %v8493_v53, %v1462_v61  ;;  %v1484_v9 = vmax.f32 %v1476_v8, 0.0 }
 0x4f3   : > { %v1487_v2 = vmax.f32 %v1479_v62, 0.0  ;;  %v2004_v62 = vld [vmem:[#allocation23 + $0x90] sm:$0xff] }
 0x4f4   : > { %v1485_v10 = vmax.f32 %v1477_v63, 0.0  ;;  %v9448_v12 = vpop.f32.mrb[12].mxu0 }
 0x4f5   : > { %v9321_v13 = vpack.c.bf16 %v1487_v2, %v1486_v1  ;;  %v1467_v17 = vmul.f32 %v9448_v12, %v8492_v51  ;;  %v1439_v19 = vpop.f32.mrb[13].mxu0  ;;  %v2013_v12 = vld [vmem:[#allocation23 + $0xd8] sm:$0xff] }
 0x4f6   : > { %v9316_v20 = vpack.c.bf16 %v1485_v10, %v1484_v9  ;;  %v1465_v22 = vmul.f32 %v8492_v51, %v1439_v19  ;;  %v9449_v25 = vpop.f32.mrb[14].mxu0  ;;  %v2012_v9 = vld [vmem:[#allocation23 + $0xd0] sm:$0xff]  ;;  %v2005_v10 = vld [vmem:[#allocation23 + $0x98] sm:$0xff] }
 0x4f7   : > { %9339 = vst [vmem:[%s11465_s16 + $0x8] sm:$0xff] %v9321_v13   ;;  %v1482_v28 = vadd.f32 %v8493_v53, %v1467_v17  ;;  %v1468_v27 = vmul.f32 %v9449_v25, %v8492_v51  ;;  %v1442_v32 = vpop.f32.mrb[15].mxu0 }
 0x4f8   : > { %9317 = vst [vmem:[%s11465_s16] sm:$0xff] %v9316_v20   ;;  %v1480_v36 = vadd.f32 %v8493_v53, %v1465_v22  ;;  %v1466_v31 = vmul.f32 %v8492_v51, %v1442_v32 }
 0x4f9   : > { %v1490_v37 = vmax.f32 %v1482_v28, 0.0  ;;  %v1483_v38 = vadd.f32 %v8493_v53, %v1468_v27 }
 0x4fa   : > { %v1488_v39 = vmax.f32 %v1480_v36, 0.0  ;;  %v1481_v33 = vadd.f32 %v8493_v53, %v1466_v31  ;;  %v8547_v31 = vcombine.high %v2004_v62, %v2012_v9 }
 0x4fb   : > { %v1491_v40 = vmax.f32 %v1483_v38, 0.0  ;;  %v11510_v38 = vld [vmem:[#allocation23 + $0x110] sm:$0xff] }
 0x4fc   : > { %v1489_v41 = vmax.f32 %v1481_v33, 0.0 }
 0x4fd   : > { %v9331_v43 = vpack.c.bf16 %v1491_v40, %v1490_v37  ;;  %v8549_v37 = vcombine.high %v2005_v10, %v2013_v12  ;;  %v2028_v40 = vld [vmem:[#allocation23 + $0x150] sm:$0xff] }
 0x4fe   : > { %v9326_v35 = vpack.c.bf16 %v1489_v41, %v1488_v39  ;;  %v2021_v41 = vld [vmem:[#allocation23 + $0x118] sm:$0xff] }
 0x4ff   : > { %9341 = vst [vmem:[%s11465_s16 + $0x18] sm:$0xff] %v9331_v43   ;;  %v2029_v43 = vld [vmem:[#allocation23 + $0x158] sm:$0xff] }
 0x500   : > { %9340 = vst [vmem:[%s11465_s16 + $0x10] sm:$0xff] %v9326_v35  }
 0x50c   : > { %v1791_v49 = vpop.f32.mrb[16].mxu0 }
 0x50d   : > { %v1854_v51 = vmul.f32 %v11479_v14, %v1791_v49  ;;  %v1793_v52 = vpop.f32.mrb[17].mxu0 }
 0x50e   : > { %v1855_v53 = vmul.f32 %v11483_v47, %v1793_v52  ;;  %v1795_v54 = vpop.f32.mrb[18].mxu0 }
 0x50f   : > { %v1908_v55 = vadd.f32 %v11487_v48, %v1854_v51  ;;  %v1858_v23 = vmul.f32 %v11479_v14, %v1795_v54  ;;  %v1797_v56 = vpop.f32.mrb[19].mxu0  ;;  %v8548_v54 = vcombine.low %v2005_v10, %v2013_v12 }
 0x510   : > { %v1909_v57 = vadd.f32 %v11491_v50, %v1855_v53  ;;  %v1859_v58 = vmul.f32 %v11483_v47, %v1797_v56  ;;  %v8546_v53 = vcombine.low %v2004_v62, %v2012_v9 }
 0x511   : > { %v1940_v59 = vmax.f32 %v1908_v55, 0.0  ;;  %v1912_v26 = vadd.f32 %v11487_v48, %v1858_v23  ;;  %v11527_v55 = vld [vmem:[#allocation23 + $0x190] sm:$0xff] }
 0x512   : > { %v1941_v15 = vmax.f32 %v1909_v57, 0.0  ;;  %v1913_v8 = vadd.f32 %v11491_v50, %v1859_v58  ;;  %v11529_v23 = vld [vmem:[#allocation23 + $0x1d0] sm:$0xff]  ;;  %v8563_v57 = vcombine.high %v11510_v38, %v2028_v40  ;;  %v8565_v58 = vcombine.high %v2021_v41, %v2029_v43 }
 0x513   : > { %v1944_v61 = vmax.f32 %v1912_v26, 0.0 }
 0x514   : > { %v9188_v63 = vpack.c.bf16 %v1941_v15, %v1940_v59  ;;  %v1945_v1 = vmax.f32 %v1913_v8, 0.0  ;;  %v1801_v2 = vpop.f32.mrb[20].mxu0  ;;  %v8564_v8 = vcombine.low %v2021_v41, %v2029_v43  ;;  %v11559_v41 = vld [vmem:[#allocation23 + $0x2d0] sm:$0xff] }
 0x515   : > { %v11501_v13 = vpack.c.bf16 %v1944_v61, %v1940_v59  ;;  %v1862_v17 = vmul.f32 %v11479_v14, %v1801_v2  ;;  %v1803_v19 = vpop.f32.mrb[21].mxu0 }
 0x516   : > { %6971 = vst [vmem:[%s11351_s5 + $0x8] sm:$0xff] %v9188_v63  ;;  %v11505_v20 = vpack.c.bf16 %v1945_v1, %v1941_v15  ;;  %v9190_v22 = vpack.c.bf16 %v1945_v1, %v1944_v61  ;;  %v1863_v25 = vmul.f32 %v11483_v47, %v1803_v19  ;;  %v1805_v28 = vpop.f32.mrb[22].mxu0  ;;  %v8579_v61 = vcombine.high %v11527_v55, %v11529_v23  ;;  %v11544_v19 = vld [vmem:[#allocation23 + $0x210] sm:$0xff] }
 0x517   : > { %13350 = vst [vmem:[#allocation68_spill] sm:$0xff] %v11501_v13  ;;  %v1916_v27 = vadd.f32 %v11487_v48, %v1862_v17  ;;  %v1866_v32 = vmul.f32 %v11479_v14, %v1805_v28  ;;  %v1807_v36 = vpop.f32.mrb[23].mxu0  ;;  %v8581_v17 = vcombine.high %v2037_v16, %v2045_v11  ;;  %v2060_v28 = vld [vmem:[#allocation23 + $0x250] sm:$0xff] }
 0x518   : > { %6973 = vst [vmem:[%s11351_s5 + $0x18] sm:$0xff] %v9190_v22  ;;  %v1917_v39 = vadd.f32 %v11491_v50, %v1863_v25  ;;  %v1867_v33 = vmul.f32 %v11483_v47, %v1807_v36  ;;  %5163 = vmatprep.mubr.bf16.mxu1 %v11505_v20  ;;  %5309 = vmatprep.mubr.bf16.mxu0 %v11505_v20 }
 0x519   : > { %v1948_v35 = vmax.f32 %v1916_v27, 0.0  ;;  %v1920_v49 = vadd.f32 %v11487_v48, %v1866_v32  ;;  %5164 = vmatmul.mubr.bf16.vlgmr.msra.gmra.mrb[24].mxu1 %v11501_v13  ;;  %5310 = vmatmul.mubr.bf16.vlgmr.msra.gmra.mrb[32].mxu0 %v11501_v13  ;;  %v2053_v27 = vld [vmem:[#allocation23 + $0x218] sm:$0xff] }
 0x51a   : > { %v1949_v51 = vmax.f32 %v1917_v39, 0.0  ;;  %v1921_v52 = vadd.f32 %v11491_v50, %v1867_v33  ;;  %5351 = vmatpush1.bf16.msra.mxu1 %v8530_v29  ;;  %5497 = vmatpush1.bf16.msra.mxu0 %v8532_v30  ;;  %v8562_v29 = vcombine.low %v11510_v38, %v2028_v40  ;;  %v2061_v32 = vld [vmem:[#allocation23 + $0x258] sm:$0xff]  ;;  %v8578_v39 = vcombine.low %v11527_v55, %v11529_v23  ;;  %v11557_v40 = vld [vmem:[#allocation23 + $0x290] sm:$0xff] }
 0x51b   : > { %v1952_v56 = vmax.f32 %v1920_v49, 0.0  ;;  %5352 = vmatprep.subr.bf16.mxu1 %v8547_v31  ;;  %5498 = vmatprep.subr.bf16.mxu0 %v8549_v37  ;;  %v8580_v33 = vcombine.low %v2037_v16, %v2045_v11  ;;  %v8597_v49 = vcombine.high %v2053_v27, %v2061_v32 }
 0x51c   : > { %v9192_v59 = vpack.c.bf16 %v1949_v51, %v1948_v35  ;;  %v1953_v6 = vmax.f32 %v1921_v52, 0.0  ;;  %v1811_v7 = vpop.f32.mrb[24].mxu0 }
 0x51d   : > { %v11533_v30 = vpack.c.bf16 %v1952_v56, %v1948_v35  ;;  %v1870_v26 = vmul.f32 %v11479_v14, %v1811_v7  ;;  %v1813_v15 = vpop.f32.mrb[25].mxu0  ;;  %v8595_v35 = vcombine.high %v11544_v19, %v2060_v28 }
 0x51e   : > { %6975 = vst [vmem:[%s11351_s5 + $0x28] sm:$0xff] %v9192_v59  ;;  %v11539_v62 = vpack.c.bf16 %v1953_v6, %v1949_v51  ;;  %v9194_v63 = vpack.c.bf16 %v1953_v6, %v1952_v56  ;;  %v1871_v1 = vmul.f32 %v11483_v47, %v1813_v15  ;;  %5353 = vmatpush1.bf16.msra.mxu1 %v8546_v53  ;;  %v1815_v2 = vpop.f32.mrb[26].mxu0  ;;  %v2069_v56 = vld [vmem:[#allocation23 + $0x298] sm:$0xff] }
 0x51f   : > { %13351 = vst [vmem:[#allocation69_spill] sm:$0xff] %v11533_v30  ;;  %5499 = vmatpush1.bf16.msra.mxu0 %v8548_v54  ;;  %v1924_v9 = vadd.f32 %v11487_v48, %v1870_v26  ;;  %v1874_v10 = vmul.f32 %v11479_v14, %v1815_v2  ;;  %v1817_v12 = vpop.f32.mrb[27].mxu0  ;;  %5354 = vmatprep.subr.bf16.mxu1 %v8563_v57  ;;  %v2077_v57 = vld [vmem:[#allocation23 + $0x2d8] sm:$0xff] }
 0x520   : > { %13352 = vst [vmem:[#allocation70_spill] sm:$0xff] %v11539_v62  ;;  %5500 = vmatprep.subr.bf16.mxu0 %v8565_v58  ;;  %6977 = vst [vmem:[%s11351_s5 + $0x38] sm:$0xff] %v9194_v63  ;;  %v1925_v22 = vadd.f32 %v11491_v50, %v1871_v1  ;;  %v1875_v25 = vmul.f32 %v11483_v47, %v1817_v12  ;;  %5173 = vmatprep.mubr.bf16.mxu1 %v11539_v62  ;;  %v2084_v63 = vld [vmem:[#allocation23 + $0x310] sm:$0xff]  ;;  %v2093_v12 = vld [vmem:[#allocation23 + $0x358] sm:$0xff] }
 0x521   : > { %5319 = vmatprep.mubr.bf16.mxu0 %v11539_v62  ;;  %v1956_v36 = vmax.f32 %v1924_v9, 0.0  ;;  %v1928_v31 = vadd.f32 %v11487_v48, %v1874_v10  ;;  %5174 = vmatmul.mubr.bf16.gmra.mrb[28].mxu1 %v11533_v30  ;;  %v8594_v54 = vcombine.low %v11544_v19, %v2060_v28  ;;  %v8596_v59 = vcombine.low %v2053_v27, %v2061_v32  ;;  %v2092_v9 = vld [vmem:[#allocation23 + $0x350] sm:$0xff]  ;;  %v2085_v10 = vld [vmem:[#allocation23 + $0x318] sm:$0xff] }
 0x522   : > { %5320 = vmatmul.mubr.bf16.gmra.mrb[36].mxu0 %v11533_v30  ;;  %v1957_v37 = vmax.f32 %v1925_v22, 0.0  ;;  %v1929_v38 = vadd.f32 %v11491_v50, %v1875_v25  ;;  %5355 = vmatpush1.bf16.msra.mxu1 %v8562_v29  ;;  %v8611_v6 = vcombine.high %v11557_v40, %v11559_v41  ;;  %v8612_v25 = vcombine.low %v2069_v56, %v2077_v57 }
 0x523   : > { %5501 = vmatpush1.bf16.msra.mxu0 %v8564_v8  ;;  %v1960_v43 = vmax.f32 %v1928_v31, 0.0  ;;  %5356 = vmatprep.subr.bf16.mxu1 %v8579_v61  ;;  %v8613_v61 = vcombine.high %v2069_v56, %v2077_v57  ;;  %v8627_v27 = vcombine.high %v2084_v63, %v2092_v9  ;;  %v8629_v32 = vcombine.high %v2085_v10, %v2093_v12  ;;  %v2100_v31 = vld [vmem:[#allocation23 + $0x390] sm:$0xff] }
 0x524   : > { %5502 = vmatprep.subr.bf16.mxu0 %v8581_v17  ;;  %v9196_v51 = vpack.c.bf16 %v1957_v37, %v1956_v36  ;;  %v1961_v52 = vmax.f32 %v1929_v38, 0.0  ;;  %v1821_v53 = vpop.f32.mrb[28].mxu0  ;;  %v8626_v38 = vcombine.low %v2084_v63, %v2092_v9  ;;  %v2156_v63 = vld [vmem:[#allocation23 + $0x550] sm:$0xff] }
 0x525   : > { %v11563_v55 = vpack.c.bf16 %v1960_v43, %v1956_v36  ;;  %v1878_v23 = vmul.f32 %v11479_v14, %v1821_v53  ;;  %v1823_v58 = vpop.f32.mrb[29].mxu0  ;;  %v2117_v53 = vld [vmem:[#allocation23 + $0x418] sm:$0xff] }
 0x526   : > { %6979 = vst [vmem:[%s11351_s5 + $0x48] sm:$0xff] %v9196_v51  ;;  %v11569_v7 = vpack.c.bf16 %v1961_v52, %v1957_v37  ;;  %v9198_v29 = vpack.c.bf16 %v1961_v52, %v1960_v43  ;;  %v1879_v16 = vmul.f32 %v11483_v47, %v1823_v58  ;;  %5357 = vmatpush1.bf16.msra.mxu1 %v8578_v39  ;;  %v1825_v11 = vpop.f32.mrb[30].mxu0  ;;  %v2101_v39 = vld [vmem:[#allocation23 + $0x398] sm:$0xff]  ;;  %v2124_v52 = vld [vmem:[#allocation23 + $0x450] sm:$0xff] }
 0x527   : > { %13353 = vst [vmem:[#allocation71_spill] sm:$0xff] %v11563_v55  ;;  %5503 = vmatpush1.bf16.msra.mxu0 %v8580_v33  ;;  %v1932_v26 = vadd.f32 %v11487_v48, %v1878_v23  ;;  %v1882_v15 = vmul.f32 %v11479_v14, %v1825_v11  ;;  %v1827_v8 = vpop.f32.mrb[31].mxu0  ;;  %5358 = vmatprep.subr.bf16.mxu1 %v8595_v35  ;;  %v2109_v33 = vld [vmem:[#allocation23 + $0x3d8] sm:$0xff]  ;;  %v2116_v35 = vld [vmem:[#allocation23 + $0x410] sm:$0xff] }
 0x528   : > { %13354 = vst [vmem:[#allocation72_spill] sm:$0xff] %v11569_v7  ;;  %5504 = vmatprep.subr.bf16.mxu0 %v8597_v49  ;;  %6981 = vst [vmem:[%s11351_s5 + $0x58] sm:$0xff] %v9198_v29  ;;  %v1933_v1 = vadd.f32 %v11491_v50, %v1879_v16  ;;  %v1883_v2 = vmul.f32 %v11483_v47, %v1827_v8  ;;  %5183 = vmatprep.mubr.bf16.mxu1 %v11569_v7  ;;  %v2133_v29 = vld [vmem:[#allocation23 + $0x498] sm:$0xff] }
 0x529   : > { %5329 = vmatprep.mubr.bf16.mxu0 %v11569_v7  ;;  %v1964_v17 = vmax.f32 %v1932_v26, 0.0  ;;  %v1936_v14 = vadd.f32 %v11487_v48, %v1882_v15  ;;  %5184 = vmatmul.mubr.bf16.gmra.mrb[32].mxu1 %v11563_v55  ;;  %v8610_v47 = vcombine.low %v11557_v40, %v11559_v41  ;;  %v8628_v41 = vcombine.low %v2085_v10, %v2093_v12  ;;  %v2141_v16 = vld [vmem:[#allocation23 + $0x4d8] sm:$0xff] }
 0x52a   : > { %5330 = vmatmul.mubr.bf16.gmra.mrb[40].mxu0 %v11563_v55  ;;  %v1965_v19 = vmax.f32 %v1933_v1, 0.0  ;;  %v1937_v22 = vadd.f32 %v11491_v50, %v1883_v2  ;;  %5359 = vmatpush1.bf16.msra.mxu1 %v8594_v54  ;;  %v2108_v50 = vld [vmem:[#allocation23 + $0x3d0] sm:$0xff]  ;;  %v8645_v51 = vcombine.high %v2101_v39, %v2109_v33  ;;  %v2125_v54 = vld [vmem:[#allocation23 + $0x458] sm:$0xff]  ;;  %v8644_v57 = vcombine.low %v2101_v39, %v2109_v33 }
 0x52b   : > { %5505 = vmatpush1.bf16.msra.mxu0 %v8596_v59  ;;  %v1968_v28 = vmax.f32 %v1936_v14, 0.0  ;;  %5360 = vmatprep.subr.bf16.mxu1 %v8611_v6  ;;  %v8643_v49 = vcombine.high %v2100_v31, %v2108_v50  ;;  %v8642_v56 = vcombine.low %v2100_v31, %v2108_v50  ;;  %v8659_v23 = vcombine.high %v2116_v35, %v2124_v52  ;;  %v2132_v59 = vld [vmem:[#allocation23 + $0x490] sm:$0xff]  ;;  %v2149_v1 = vld [vmem:[#allocation23 + $0x518] sm:$0xff] }
 0x52c   : > { %5506 = vmatprep.subr.bf16.mxu0 %v8613_v61  ;;  %v9200_v48 = vpack.c.bf16 %v1965_v19, %v1964_v17  ;;  %v1969_v36 = vmax.f32 %v1937_v22, 0.0  ;;  %v8661_v58 = vcombine.high %v2117_v53, %v2125_v54  ;;  %v2140_v6 = vld [vmem:[#allocation23 + $0x4d0] sm:$0xff]  ;;  %v8658_v11 = vcombine.low %v2116_v35, %v2124_v52  ;;  %v2157_v2 = vld [vmem:[#allocation23 + $0x558] sm:$0xff] }
 0x52d   : > { %v11585_v37 = vpack.c.bf16 %v1968_v28, %v1964_v17  ;;  %v8660_v26 = vcombine.low %v2117_v53, %v2125_v54  ;;  %v8675_v15 = vcombine.high %v2132_v59, %v2140_v6  ;;  %v8677_v8 = vcombine.high %v2133_v29, %v2141_v16  ;;  %v2148_v61 = vld [vmem:[#allocation23 + $0x510] sm:$0xff]  ;;  %v2165_v22 = vld [vmem:[#allocation23 + $0x598] sm:$0xff] }
 0x52e   : > { %6983 = vst [vmem:[%s11351_s5 + $0x68] sm:$0xff] %v9200_v48  ;;  %v11588_v43 = vpack.c.bf16 %v1969_v36, %v1965_v19  ;;  %v9202_v40 = vpack.c.bf16 %v1969_v36, %v1968_v28  ;;  %5361 = vmatpush1.bf16.msra.mxu1 %v8610_v47  ;;  %v8674_v9 = vcombine.low %v2132_v59, %v2140_v6  ;;  %v2164_v14 = vld [vmem:[#allocation23 + $0x590] sm:$0xff]  ;;  %v2173_v47 = vld [vmem:[#allocation23 + $0x5d8] sm:$0xff] }
 0x52f   : > { %13355 = vst [vmem:[#allocation73_spill] sm:$0xff] %v11585_v37  ;;  %5507 = vmatpush1.bf16.msra.mxu0 %v8612_v25  ;;  %5362 = vmatprep.subr.bf16.mxu1 %v8627_v27  ;;  %v8676_v10 = vcombine.low %v2133_v29, %v2141_v16  ;;  %v8691_v12 = vcombine.high %v2148_v61, %v2156_v63  ;;  %v2172_v19 = vld [vmem:[#allocation23 + $0x5d0] sm:$0xff]  ;;  %v2181_v31 = vld [vmem:[#allocation23 + $0x618] sm:$0xff] }
 0x530   : > { %13356 = vst [vmem:[#allocation74_spill] sm:$0xff] %v11588_v43  ;;  %5508 = vmatprep.subr.bf16.mxu0 %v8629_v32  ;;  %6985 = vst [vmem:[%s11351_s5 + $0x78] sm:$0xff] %v9202_v40  ;;  %5193 = vmatprep.mubr.bf16.mxu1 %v11588_v43  ;;  %v8693_v17 = vcombine.high %v2149_v1, %v2157_v2  ;;  %v8690_v25 = vcombine.low %v2148_v61, %v2156_v63  ;;  %v2180_v48 = vld [vmem:[#allocation23 + $0x610] sm:$0xff]  ;;  %v2221_v59 = vld [vmem:[#allocation23 + $0x758] sm:$0xff] }
 0x531   : > { %5339 = vmatprep.mubr.bf16.mxu0 %v11588_v43  ;;  %5194 = vmatmul.mubr.bf16.gmra.mrb[36].mxu1 %v11585_v37  ;;  %v8692_v28 = vcombine.low %v2149_v1, %v2157_v2  ;;  %v8707_v27 = vcombine.high %v2164_v14, %v2172_v19  ;;  %v8709_v32 = vcombine.high %v2165_v22, %v2173_v47  ;;  %v2188_v36 = vld [vmem:[#allocation23 + $0x650] sm:$0xff]  ;;  %v2237_v61 = vld [vmem:[#allocation23 + $0x7d8] sm:$0xff] }
 0x532   : > { %5340 = vmatmul.mubr.bf16.gmra.mrb[44].mxu0 %v11585_v37  ;;  %5363 = vmatpush1.bf16.msra.mxu1 %v8626_v38  ;;  %v2189_v38 = vld [vmem:[#allocation23 + $0x658] sm:$0xff]  ;;  %v8706_v50 = vcombine.low %v2164_v14, %v2172_v19  ;;  %v8708_v39 = vcombine.low %v2165_v22, %v2173_v47  ;;  %v8723_v33 = vcombine.high %v2180_v48, %v2188_v36  ;;  %v2204_v35 = vld [vmem:[#allocation23 + $0x6d0] sm:$0xff] }
 0x533   : > { %5509 = vmatpush1.bf16.msra.mxu0 %v8628_v41  ;;  %5382 = vmatprep.mubr.bf16.mxu1 %v11354_v0  ;;  %v8725_v40 = vcombine.high %v2181_v31, %v2189_v38  ;;  %v2196_v41 = vld [vmem:[#allocation23 + $0x690] sm:$0xff]  ;;  %v8722_v52 = vcombine.low %v2180_v48, %v2188_v36  ;;  %v8724_v53 = vcombine.low %v2181_v31, %v2189_v38  ;;  %v2253_v14 = vld [vmem:[#allocation23 + $0x858] sm:$0xff] }
 0x534   : > { %5528 = vmatprep.mubr.bf16.mxu0 %v11354_v0  ;;  %5364 = vmatprep.subr.bf16.mxu1 %v8643_v49  ;;  %v2197_v49 = vld [vmem:[#allocation23 + $0x698] sm:$0xff]  ;;  %v8739_v54 = vcombine.high %v2196_v41, %v2204_v35  ;;  %v8738_v6 = vcombine.low %v2196_v41, %v2204_v35 }
 0x535   : > { %5510 = vmatprep.subr.bf16.mxu0 %v8645_v51  ;;  %v2205_v51 = vld [vmem:[#allocation23 + $0x6d8] sm:$0xff] }
 0x536   : > { %5365 = vmatpush1.bf16.msra.mxu1 %v8642_v56  ;;  %v8741_v56 = vcombine.high %v2197_v49, %v2205_v51  ;;  %v8740_v29 = vcombine.low %v2197_v49, %v2205_v51  ;;  %v2269_v48 = vld [vmem:[#allocation23 + $0x8d8] sm:$0xff] }
 0x537   : > { %5511 = vmatpush1.bf16.msra.mxu0 %v8644_v57  ;;  %5366 = vmatprep.subr.bf16.mxu1 %v8659_v23  ;;  %v2212_v57 = vld [vmem:[#allocation23 + $0x710] sm:$0xff]  ;;  %v2285_v41 = vld [vmem:[#allocation23 + $0x958] sm:$0xff] }
 0x538   : > { %5512 = vmatprep.subr.bf16.mxu0 %v8661_v58  ;;  %v2220_v23 = vld [vmem:[#allocation23 + $0x750] sm:$0xff]  ;;  %v2213_v58 = vld [vmem:[#allocation23 + $0x718] sm:$0xff] }
 0x539   : > { %v8755_v16 = vcombine.high %v2212_v57, %v2220_v23  ;;  %v8754_v63 = vcombine.low %v2212_v57, %v2220_v23  ;;  %v8756_v1 = vcombine.low %v2213_v58, %v2221_v59  ;;  %v2301_v57 = vld [vmem:[#allocation23 + $0x9d8] sm:$0xff] }
 0x53a   : > { %5367 = vmatpush1.bf16.msra.mxu1 %v8658_v11  ;;  %v8757_v11 = vcombine.high %v2213_v58, %v2221_v59 }
 0x53b   : > { %5513 = vmatpush1.bf16.msra.mxu0 %v8660_v26  ;;  %5368 = vmatprep.subr.bf16.mxu1 %v8675_v15  ;;  %v2228_v26 = vld [vmem:[#allocation23 + $0x790] sm:$0xff] }
 0x53c   : > { %5514 = vmatprep.subr.bf16.mxu0 %v8677_v8  ;;  %v2236_v15 = vld [vmem:[#allocation23 + $0x7d0] sm:$0xff]  ;;  %v2229_v8 = vld [vmem:[#allocation23 + $0x798] sm:$0xff] }
 0x53d   : > { %v8771_v2 = vcombine.high %v2228_v26, %v2236_v15  ;;  %v8770_v19 = vcombine.low %v2228_v26, %v2236_v15  ;;  %v8772_v22 = vcombine.low %v2229_v8, %v2237_v61  ;;  %v2317_v26 = vld [vmem:[#allocation23 + $0xa58] sm:$0xff] }
 0x53e   : > { %5369 = vmatpush1.bf16.msra.mxu1 %v8674_v9  ;;  %v8773_v9 = vcombine.high %v2229_v8, %v2237_v61 }
 0x53f   : > { %5515 = vmatpush1.bf16.msra.mxu0 %v8676_v10  ;;  %5370 = vmatprep.subr.bf16.mxu1 %v8691_v12  ;;  %v2244_v10 = vld [vmem:[#allocation23 + $0x810] sm:$0xff] }
 0x540   : > { %5516 = vmatprep.subr.bf16.mxu0 %v8693_v17  ;;  %v2252_v12 = vld [vmem:[#allocation23 + $0x850] sm:$0xff]  ;;  %v2245_v17 = vld [vmem:[#allocation23 + $0x818] sm:$0xff] }
 0x541   : > { %v8787_v47 = vcombine.high %v2244_v10, %v2252_v12  ;;  %v8786_v36 = vcombine.low %v2244_v10, %v2252_v12  ;;  %v8788_v31 = vcombine.low %v2245_v17, %v2253_v14  ;;  %v2333_v10 = vld [vmem:[#allocation23 + $0xad8] sm:$0xff] }
 0x542   : > { %5371 = vmatpush1.bf16.msra.mxu1 %v8690_v25  ;;  %v8789_v25 = vcombine.high %v2245_v17, %v2253_v14 }
 0x543   : > { %5517 = vmatpush1.bf16.msra.mxu0 %v8692_v28  ;;  %5372 = vmatprep.subr.bf16.mxu1 %v8707_v27  ;;  %v2260_v28 = vld [vmem:[#allocation23 + $0x890] sm:$0xff] }
 0x544   : > { %5518 = vmatprep.subr.bf16.mxu0 %v8709_v32  ;;  %v2268_v27 = vld [vmem:[#allocation23 + $0x8d0] sm:$0xff]  ;;  %v2261_v32 = vld [vmem:[#allocation23 + $0x898] sm:$0xff] }
 0x545   : > { %v8803_v38 = vcombine.high %v2260_v28, %v2268_v27  ;;  %v8802_v35 = vcombine.low %v2260_v28, %v2268_v27  ;;  %v8804_v49 = vcombine.low %v2261_v32, %v2269_v48  ;;  %v2349_v28 = vld [vmem:[#allocation23 + $0xb58] sm:$0xff] }
 0x546   : > { %5373 = vmatpush1.bf16.msra.mxu1 %v8706_v50  ;;  %v8805_v50 = vcombine.high %v2261_v32, %v2269_v48 }
 0x547   : > { %5519 = vmatpush1.bf16.msra.mxu0 %v8708_v39  ;;  %5374 = vmatprep.subr.bf16.mxu1 %v8723_v33  ;;  %v2276_v39 = vld [vmem:[#allocation23 + $0x910] sm:$0xff] }
 0x548   : > { %5520 = vmatprep.subr.bf16.mxu0 %v8725_v40  ;;  %v2284_v33 = vld [vmem:[#allocation23 + $0x950] sm:$0xff]  ;;  %v2277_v40 = vld [vmem:[#allocation23 + $0x918] sm:$0xff] }
 0x549   : > { %v8819_v51 = vcombine.high %v2276_v39, %v2284_v33  ;;  %v8818_v23 = vcombine.low %v2276_v39, %v2284_v33  ;;  %v8820_v58 = vcombine.low %v2277_v40, %v2285_v41  ;;  %v2365_v39 = vld [vmem:[#allocation23 + $0xbd8] sm:$0xff] }
 0x54a   : > { %5375 = vmatpush1.bf16.msra.mxu1 %v8722_v52  ;;  %v8821_v52 = vcombine.high %v2277_v40, %v2285_v41 }
 0x54b   : > { %5521 = vmatpush1.bf16.msra.mxu0 %v8724_v53  ;;  %5376 = vmatprep.subr.bf16.mxu1 %v8739_v54  ;;  %v2292_v53 = vld [vmem:[#allocation23 + $0x990] sm:$0xff] }
 0x54c   : > { %5522 = vmatprep.subr.bf16.mxu0 %v8741_v56  ;;  %v2300_v54 = vld [vmem:[#allocation23 + $0x9d0] sm:$0xff]  ;;  %v2293_v56 = vld [vmem:[#allocation23 + $0x998] sm:$0xff] }
 0x54d   : > { %v8835_v59 = vcombine.high %v2292_v53, %v2300_v54  ;;  %v8834_v15 = vcombine.low %v2292_v53, %v2300_v54  ;;  %v8836_v8 = vcombine.low %v2293_v56, %v2301_v57  ;;  %v2381_v53 = vld [vmem:[#allocation23 + $0xc58] sm:$0xff] }
 0x54e   : > { %5377 = vmatpush1.bf16.msra.mxu1 %v8738_v6  ;;  %v8837_v6 = vcombine.high %v2293_v56, %v2301_v57 }
 0x54f   : > { %5523 = vmatpush1.bf16.msra.mxu0 %v8740_v29  ;;  %5378 = vmatprep.subr.bf16.mxu1 %v8755_v16  ;;  %v2308_v29 = vld [vmem:[#allocation23 + $0xa10] sm:$0xff] }
 0x550   : > { %5524 = vmatprep.subr.bf16.mxu0 %v8757_v11  ;;  %v2316_v16 = vld [vmem:[#allocation23 + $0xa50] sm:$0xff]  ;;  %v2309_v11 = vld [vmem:[#allocation23 + $0xa18] sm:$0xff] }
 0x551   : > { %v8851_v61 = vcombine.high %v2308_v29, %v2316_v16  ;;  %v8850_v12 = vcombine.low %v2308_v29, %v2316_v16  ;;  %v8852_v17 = vcombine.low %v2309_v11, %v2317_v26  ;;  %v2397_v29 = vld [vmem:[#allocation23 + $0xcd8] sm:$0xff] }
 0x552   : > { %5379 = vmatpush1.bf16.msra.mxu1 %v8754_v63  ;;  %v8853_v63 = vcombine.high %v2309_v11, %v2317_v26 }
 0x553   : > { %5525 = vmatpush1.bf16.msra.mxu0 %v8756_v1  ;;  %5380 = vmatprep.subr.bf16.mxu1 %v8771_v2  ;;  %v2324_v1 = vld [vmem:[#allocation23 + $0xa90] sm:$0xff] }
 0x554   : > { %5526 = vmatprep.subr.bf16.mxu0 %v8773_v9  ;;  %v2332_v2 = vld [vmem:[#allocation23 + $0xad0] sm:$0xff]  ;;  %v2325_v9 = vld [vmem:[#allocation23 + $0xa98] sm:$0xff] }
 0x555   : > { %v8867_v14 = vcombine.high %v2324_v1, %v2332_v2  ;;  %v8866_v27 = vcombine.low %v2324_v1, %v2332_v2  ;;  %v8868_v32 = vcombine.low %v2325_v9, %v2333_v10  ;;  %v2413_v1 = vld [vmem:[#allocation23 + $0xd58] sm:$0xff] }
 0x556   : > { %5381 = vmatpush1.bf16.msra.mxu1 %v8770_v19  ;;  %v8869_v19 = vcombine.high %v2325_v9, %v2333_v10 }
 0x557   : > { %5527 = vmatpush1.bf16.msra.mxu0 %v8772_v22  ;;  %5423 = vmatprep.subr.bf16.mxu1 %v8787_v47  ;;  %v2340_v22 = vld [vmem:[#allocation23 + $0xb10] sm:$0xff] }
 0x558   : > { %5569 = vmatprep.subr.bf16.mxu0 %v8789_v25  ;;  %v2348_v47 = vld [vmem:[#allocation23 + $0xb50] sm:$0xff]  ;;  %v2341_v25 = vld [vmem:[#allocation23 + $0xb18] sm:$0xff] }
 0x559   : > { %5383 = vmatmul.mubr.bf16.vlgmr.msra.gmra.mrb[40].mxu1 %v11349_v60  ;;  %v8883_v48 = vcombine.high %v2340_v22, %v2348_v47  ;;  %v8882_v33 = vcombine.low %v2340_v22, %v2348_v47  ;;  %v8884_v40 = vcombine.low %v2341_v25, %v2349_v28  ;;  %v2429_v22 = vld [vmem:[#allocation23 + $0xdd8] sm:$0xff] }
 0x55a   : > { %5529 = vmatmul.mubr.bf16.vlgmr.msra.gmra.mrb[48].mxu0 %v11349_v60  ;;  %5392 = vmatprep.mubr.bf16.mxu1 %v11385_v4 }
 0x55b   : > { %5424 = vmatpush1.bf16.msra.mxu1 %v8786_v36  ;;  %5538 = vmatprep.mubr.bf16.mxu0 %v11385_v4  ;;  %v8885_v36 = vcombine.high %v2341_v25, %v2349_v28 }
 0x55c   : > { %5570 = vmatpush1.bf16.msra.mxu0 %v8788_v31  ;;  %5425 = vmatprep.subr.bf16.mxu1 %v8803_v38  ;;  %v2356_v31 = vld [vmem:[#allocation23 + $0xb90] sm:$0xff] }
 0x55d   : > { %5571 = vmatprep.subr.bf16.mxu0 %v8805_v50  ;;  %v2364_v38 = vld [vmem:[#allocation23 + $0xbd0] sm:$0xff]  ;;  %v2357_v50 = vld [vmem:[#allocation23 + $0xb98] sm:$0xff] }
 0x55e   : > { %v8899_v41 = vcombine.high %v2356_v31, %v2364_v38  ;;  %v8898_v54 = vcombine.low %v2356_v31, %v2364_v38  ;;  %v8900_v56 = vcombine.low %v2357_v50, %v2365_v39  ;;  %v2445_v31 = vld [vmem:[#allocation23 + $0xe58] sm:$0xff] }
 0x55f   : > { %5426 = vmatpush1.bf16.msra.mxu1 %v8802_v35  ;;  %v8901_v35 = vcombine.high %v2357_v50, %v2365_v39 }
 0x560   : > { %5572 = vmatpush1.bf16.msra.mxu0 %v8804_v49  ;;  %5427 = vmatprep.subr.bf16.mxu1 %v8819_v51  ;;  %v2372_v49 = vld [vmem:[#allocation23 + $0xc10] sm:$0xff] }
 0x561   : > { %5573 = vmatprep.subr.bf16.mxu0 %v8821_v52  ;;  %5393 = vmatmul.mubr.bf16.gmra.mrb[44].mxu1 %v11388_v34  ;;  %v2380_v51 = vld [vmem:[#allocation23 + $0xc50] sm:$0xff]  ;;  %v2373_v52 = vld [vmem:[#allocation23 + $0xc18] sm:$0xff] }
 0x562   : > { %5539 = vmatmul.mubr.bf16.gmra.mrb[52].mxu0 %v11388_v34  ;;  %5402 = vmatprep.mubr.bf16.mxu1 %v11422_v5  ;;  %v8915_v57 = vcombine.high %v2372_v49, %v2380_v51  ;;  %v8914_v16 = vcombine.low %v2372_v49, %v2380_v51  ;;  %v8916_v11 = vcombine.low %v2373_v52, %v2381_v53  ;;  %v2461_v49 = vld [vmem:[#allocation23 + $0xed8] sm:$0xff] }
 0x563   : > { %5428 = vmatpush1.bf16.msra.mxu1 %v8818_v23  ;;  %5548 = vmatprep.mubr.bf16.mxu0 %v11422_v5  ;;  %v8917_v23 = vcombine.high %v2373_v52, %v2381_v53 }
 0x564   : > { %5574 = vmatpush1.bf16.msra.mxu0 %v8820_v58  ;;  %5429 = vmatprep.subr.bf16.mxu1 %v8835_v59  ;;  %v2388_v58 = vld [vmem:[#allocation23 + $0xc90] sm:$0xff] }
 0x565   : > { %5575 = vmatprep.subr.bf16.mxu0 %v8837_v6  ;;  %v2396_v59 = vld [vmem:[#allocation23 + $0xcd0] sm:$0xff]  ;;  %v2389_v6 = vld [vmem:[#allocation23 + $0xc98] sm:$0xff] }
 0x566   : > { %v8931_v26 = vcombine.high %v2388_v58, %v2396_v59  ;;  %v8930_v2 = vcombine.low %v2388_v58, %v2396_v59  ;;  %v8932_v9 = vcombine.low %v2389_v6, %v2397_v29  ;;  %v2477_v58 = vld [vmem:[#allocation23 + $0xf58] sm:$0xff] }
 0x567   : > { %5430 = vmatpush1.bf16.msra.mxu1 %v8834_v15  ;;  %v8933_v15 = vcombine.high %v2389_v6, %v2397_v29 }
 0x568   : > { %5576 = vmatpush1.bf16.msra.mxu0 %v8836_v8  ;;  %5431 = vmatprep.subr.bf16.mxu1 %v8851_v61  ;;  %v2404_v8 = vld [vmem:[#allocation23 + $0xd10] sm:$0xff] }
 0x569   : > { %5577 = vmatprep.subr.bf16.mxu0 %v8853_v63  ;;  %5403 = vmatmul.mubr.bf16.gmra.mrb[48].mxu1 %v11420_v3  ;;  %v2412_v61 = vld [vmem:[#allocation23 + $0xd50] sm:$0xff]  ;;  %v2405_v63 = vld [vmem:[#allocation23 + $0xd18] sm:$0xff] }
 0x56a   : > { %5549 = vmatmul.mubr.bf16.gmra.mrb[56].mxu0 %v11420_v3  ;;  %5412 = vmatprep.mubr.bf16.mxu1 %v11441_v45  ;;  %v8947_v10 = vcombine.high %v2404_v8, %v2412_v61  ;;  %v8946_v47 = vcombine.low %v2404_v8, %v2412_v61  ;;  %v8948_v25 = vcombine.low %v2405_v63, %v2413_v1  ;;  %v2493_v8 = vld [vmem:[#allocation23 + $0xfd8] sm:$0xff] }
 0x56b   : > { %5432 = vmatpush1.bf16.msra.mxu1 %v8850_v12  ;;  %5558 = vmatprep.mubr.bf16.mxu0 %v11441_v45  ;;  %v8949_v12 = vcombine.high %v2405_v63, %v2413_v1 }
 0x56c   : > { %5578 = vmatpush1.bf16.msra.mxu0 %v8852_v17  ;;  %5433 = vmatprep.subr.bf16.mxu1 %v8867_v14  ;;  %v2420_v17 = vld [vmem:[#allocation23 + $0xd90] sm:$0xff] }
 0x56d   : > { %5579 = vmatprep.subr.bf16.mxu0 %v8869_v19  ;;  %v2428_v14 = vld [vmem:[#allocation23 + $0xdd0] sm:$0xff]  ;;  %v2421_v19 = vld [vmem:[#allocation23 + $0xd98] sm:$0xff] }
 0x56e   : > { %v8963_v28 = vcombine.high %v2420_v17, %v2428_v14  ;;  %v8962_v38 = vcombine.low %v2420_v17, %v2428_v14  ;;  %v8964_v50 = vcombine.low %v2421_v19, %v2429_v22  ;;  %v1999_v17 = vld [vmem:[#allocation23 + $0x68] sm:$0xff] }
 0x56f   : > { %5434 = vmatpush1.bf16.msra.mxu1 %v8866_v27  ;;  %v8965_v27 = vcombine.high %v2421_v19, %v2429_v22 }
 0x570   : > { %5580 = vmatpush1.bf16.msra.mxu0 %v8868_v32  ;;  %5435 = vmatprep.subr.bf16.mxu1 %v8883_v48  ;;  %v2436_v32 = vld [vmem:[#allocation23 + $0xe10] sm:$0xff] }
 0x571   : > { %5581 = vmatprep.subr.bf16.mxu0 %v8885_v36  ;;  %5413 = vmatmul.mubr.bf16.gmra.mrb[52].mxu1 %v11437_v42  ;;  %v2444_v48 = vld [vmem:[#allocation23 + $0xe50] sm:$0xff]  ;;  %v2437_v36 = vld [vmem:[#allocation23 + $0xe18] sm:$0xff] }
 0x572   : > { %5559 = vmatmul.mubr.bf16.gmra.mrb[60].mxu0 %v11437_v42  ;;  %5455 = vmatprep.mubr.bf16.mxu1 %v11505_v20  ;;  %v8979_v39 = vcombine.high %v2436_v32, %v2444_v48  ;;  %v8978_v51 = vcombine.low %v2436_v32, %v2444_v48  ;;  %v8980_v52 = vcombine.low %v2437_v36, %v2445_v31  ;;  %v2015_v32 = vld [vmem:[#allocation23 + $0xe8] sm:$0xff] }
 0x573   : > { %5436 = vmatpush1.bf16.msra.mxu1 %v8882_v33  ;;  %5601 = vmatprep.mubr.bf16.mxu0 %v11505_v20  ;;  %v8981_v33 = vcombine.high %v2437_v36, %v2445_v31 }
 0x574   : > { %5582 = vmatpush1.bf16.msra.mxu0 %v8884_v40  ;;  %5437 = vmatprep.subr.bf16.mxu1 %v8899_v41  ;;  %v2452_v40 = vld [vmem:[#allocation23 + $0xe90] sm:$0xff] }
 0x575   : > { %5583 = vmatprep.subr.bf16.mxu0 %v8901_v35  ;;  %v2460_v41 = vld [vmem:[#allocation23 + $0xed0] sm:$0xff]  ;;  %v2453_v35 = vld [vmem:[#allocation23 + $0xe98] sm:$0xff] }
 0x576   : > { %v8995_v53 = vcombine.high %v2452_v40, %v2460_v41  ;;  %v8994_v59 = vcombine.low %v2452_v40, %v2460_v41  ;;  %v8996_v6 = vcombine.low %v2453_v35, %v2461_v49  ;;  %v2031_v40 = vld [vmem:[#allocation23 + $0x168] sm:$0xff] }
 0x577   : > { %5438 = vmatpush1.bf16.msra.mxu1 %v8898_v54  ;;  %v8997_v54 = vcombine.high %v2453_v35, %v2461_v49 }
 0x578   : > { %5584 = vmatpush1.bf16.msra.mxu0 %v8900_v56  ;;  %5439 = vmatprep.subr.bf16.mxu1 %v8915_v57  ;;  %v2468_v56 = vld [vmem:[#allocation23 + $0xf10] sm:$0xff] }
 0x579   : > { %5585 = vmatprep.subr.bf16.mxu0 %v8917_v23  ;;  %v2476_v57 = vld [vmem:[#allocation23 + $0xf50] sm:$0xff]  ;;  %v2469_v23 = vld [vmem:[#allocation23 + $0xf18] sm:$0xff] }
 0x57a   : > { %v9011_v29 = vcombine.high %v2468_v56, %v2476_v57  ;;  %v9010_v61 = vcombine.low %v2468_v56, %v2476_v57  ;;  %v9012_v63 = vcombine.low %v2469_v23, %v2477_v58  ;;  %v2047_v56 = vld [vmem:[#allocation23 + $0x1e8] sm:$0xff] }
 0x57b   : > { %5440 = vmatpush1.bf16.msra.mxu1 %v8914_v16  ;;  %v9013_v16 = vcombine.high %v2469_v23, %v2477_v58 }
 0x57c   : > { %5586 = vmatpush1.bf16.msra.mxu0 %v8916_v11  ;;  %5441 = vmatprep.subr.bf16.mxu1 %v8931_v26  ;;  %v2484_v11 = vld [vmem:[#allocation23 + $0xf90] sm:$0xff] }
 0x57d   : > { %5587 = vmatprep.subr.bf16.mxu0 %v8933_v15  ;;  %v2492_v26 = vld [vmem:[#allocation23 + $0xfd0] sm:$0xff]  ;;  %v2485_v15 = vld [vmem:[#allocation23 + $0xf98] sm:$0xff] }
 0x57e   : > { %v9027_v1 = vcombine.high %v2484_v11, %v2492_v26  ;;  %v9026_v14 = vcombine.low %v2484_v11, %v2492_v26  ;;  %v9028_v19 = vcombine.low %v2485_v15, %v2493_v8  ;;  %v2063_v11 = vld [vmem:[#allocation23 + $0x268] sm:$0xff] }
 0x57f   : > { %5442 = vmatpush1.bf16.msra.mxu1 %v8930_v2  ;;  %v9029_v2 = vcombine.high %v2485_v15, %v2493_v8 }
 0x580   : > { %5588 = vmatpush1.bf16.msra.mxu0 %v8932_v9  ;;  %5443 = vmatprep.subr.bf16.mxu1 %v8947_v10  ;;  %v1990_v9 = vld [vmem:[#allocation23 + $0x20] sm:$0xff] }
 0x581   : > { %5589 = vmatprep.subr.bf16.mxu0 %v8949_v12  ;;  %v1998_v10 = vld [vmem:[#allocation23 + $0x60] sm:$0xff]  ;;  %v1991_v12 = vld [vmem:[#allocation23 + $0x28] sm:$0xff] }
 0x582   : > { %v8535_v22 = vcombine.high %v1990_v9, %v1998_v10  ;;  %v8534_v48 = vcombine.low %v1990_v9, %v1998_v10  ;;  %v8536_v36 = vcombine.low %v1991_v12, %v1999_v17  ;;  %v2079_v9 = vld [vmem:[#allocation23 + $0x2e8] sm:$0xff] }
 0x583   : > { %5444 = vmatpush1.bf16.msra.mxu1 %v8946_v47  ;;  %v8537_v47 = vcombine.high %v1991_v12, %v1999_v17 }
 0x584   : > { %5590 = vmatpush1.bf16.msra.mxu0 %v8948_v25  ;;  %5445 = vmatprep.subr.bf16.mxu1 %v8963_v28  ;;  %v2006_v25 = vld [vmem:[#allocation23 + $0xa0] sm:$0xff] }
 0x585   : > { %5591 = vmatprep.subr.bf16.mxu0 %v8965_v27  ;;  %v2014_v28 = vld [vmem:[#allocation23 + $0xe0] sm:$0xff]  ;;  %v2007_v27 = vld [vmem:[#allocation23 + $0xa8] sm:$0xff] }
 0x586   : > { %v8551_v31 = vcombine.high %v2006_v25, %v2014_v28  ;;  %v8550_v41 = vcombine.low %v2006_v25, %v2014_v28  ;;  %v8552_v35 = vcombine.low %v2007_v27, %v2015_v32  ;;  %v2095_v25 = vld [vmem:[#allocation23 + $0x368] sm:$0xff] }
 0x587   : > { %5446 = vmatpush1.bf16.msra.mxu1 %v8962_v38  ;;  %v8553_v38 = vcombine.high %v2007_v27, %v2015_v32 }
 0x588   : > { %5592 = vmatpush1.bf16.msra.mxu0 %v8964_v50  ;;  %5447 = vmatprep.subr.bf16.mxu1 %v8979_v39  ;;  %v2022_v50 = vld [vmem:[#allocation23 + $0x120] sm:$0xff] }
 0x589   : > { %5593 = vmatprep.subr.bf16.mxu0 %v8981_v33  ;;  %v2030_v39 = vld [vmem:[#allocation23 + $0x160] sm:$0xff]  ;;  %v2023_v33 = vld [vmem:[#allocation23 + $0x128] sm:$0xff] }
 0x58a   : > { %v8567_v49 = vcombine.high %v2022_v50, %v2030_v39  ;;  %v8566_v57 = vcombine.low %v2022_v50, %v2030_v39  ;;  %v8568_v23 = vcombine.low %v2023_v33, %v2031_v40  ;;  %v2111_v50 = vld [vmem:[#allocation23 + $0x3e8] sm:$0xff] }
 0x58b   : > { %5448 = vmatpush1.bf16.msra.mxu1 %v8978_v51  ;;  %v8569_v51 = vcombine.high %v2023_v33, %v2031_v40 }
 0x58c   : > { %5594 = vmatpush1.bf16.msra.mxu0 %v8980_v52  ;;  %5449 = vmatprep.subr.bf16.mxu1 %v8995_v53  ;;  %v2038_v52 = vld [vmem:[#allocation23 + $0x1a0] sm:$0xff] }
 0x58d   : > { %5595 = vmatprep.subr.bf16.mxu0 %v8997_v54  ;;  %v2046_v53 = vld [vmem:[#allocation23 + $0x1e0] sm:$0xff]  ;;  %v2039_v54 = vld [vmem:[#allocation23 + $0x1a8] sm:$0xff] }
 0x58e   : > { %v8583_v58 = vcombine.high %v2038_v52, %v2046_v53  ;;  %v8582_v26 = vcombine.low %v2038_v52, %v2046_v53  ;;  %v8584_v15 = vcombine.low %v2039_v54, %v2047_v56  ;;  %v2127_v52 = vld [vmem:[#allocation23 + $0x468] sm:$0xff] }
 0x58f   : > { %5450 = vmatpush1.bf16.msra.mxu1 %v8994_v59  ;;  %v8585_v59 = vcombine.high %v2039_v54, %v2047_v56 }
 0x590   : > { %5596 = vmatpush1.bf16.msra.mxu0 %v8996_v6  ;;  %5451 = vmatprep.subr.bf16.mxu1 %v9011_v29  ;;  %v2054_v6 = vld [vmem:[#allocation23 + $0x220] sm:$0xff] }
 0x591   : > { %5597 = vmatprep.subr.bf16.mxu0 %v9013_v16  ;;  %v2062_v29 = vld [vmem:[#allocation23 + $0x260] sm:$0xff]  ;;  %v2055_v16 = vld [vmem:[#allocation23 + $0x228] sm:$0xff] }
 0x592   : > { %v8599_v8 = vcombine.high %v2054_v6, %v2062_v29  ;;  %v8598_v10 = vcombine.low %v2054_v6, %v2062_v29  ;;  %v8600_v12 = vcombine.low %v2055_v16, %v2063_v11  ;;  %v2143_v6 = vld [vmem:[#allocation23 + $0x4e8] sm:$0xff] }
 0x593   : > { %5452 = vmatpush1.bf16.msra.mxu1 %v9010_v61  ;;  %v8601_v61 = vcombine.high %v2055_v16, %v2063_v11 }
 0x594   : > { %5598 = vmatpush1.bf16.msra.mxu0 %v9012_v63  ;;  %5453 = vmatprep.subr.bf16.mxu1 %v9027_v1  ;;  %v2070_v63 = vld [vmem:[#allocation23 + $0x2a0] sm:$0xff] }
 0x595   : > { %5599 = vmatprep.subr.bf16.mxu0 %v9029_v2  ;;  %v2078_v1 = vld [vmem:[#allocation23 + $0x2e0] sm:$0xff]  ;;  %v2071_v2 = vld [vmem:[#allocation23 + $0x2a8] sm:$0xff] }
 0x596   : > { %v8615_v17 = vcombine.high %v2070_v63, %v2078_v1  ;;  %v8614_v28 = vcombine.low %v2070_v63, %v2078_v1  ;;  %v8616_v27 = vcombine.low %v2071_v2, %v2079_v9  ;;  %v2159_v63 = vld [vmem:[#allocation23 + $0x568] sm:$0xff] }
 0x597   : > { %5454 = vmatpush1.bf16.msra.mxu1 %v9026_v14  ;;  %v8617_v14 = vcombine.high %v2071_v2, %v2079_v9 }
 0x598   : > { %5600 = vmatpush1.bf16.msra.mxu0 %v9028_v19  ;;  %5642 = vmatprep.subr.bf16.mxu1 %v8535_v22  ;;  %v2086_v19 = vld [vmem:[#allocation23 + $0x320] sm:$0xff] }
 0x599   : > { %5788 = vmatprep.subr.bf16.mxu0 %v8537_v47  ;;  %v2094_v22 = vld [vmem:[#allocation23 + $0x360] sm:$0xff]  ;;  %v2087_v47 = vld [vmem:[#allocation23 + $0x328] sm:$0xff] }
 0x59a   : > { %5456 = vmatmul.mubr.bf16.vlgmr.msra.gmra.mrb[40].mxu1 %v11501_v13  ;;  %v8631_v32 = vcombine.high %v2086_v19, %v2094_v22  ;;  %v8630_v39 = vcombine.low %v2086_v19, %v2094_v22  ;;  %v8632_v33 = vcombine.low %v2087_v47, %v2095_v25  ;;  %v2175_v19 = vld [vmem:[#allocation23 + $0x5e8] sm:$0xff] }
 0x59b   : > { %5602 = vmatmul.mubr.bf16.vlgmr.msra.gmra.mrb[48].mxu0 %v11501_v13  ;;  %5465 = vmatprep.mubr.bf16.mxu1 %v11539_v62 }
 0x59c   : > { %5611 = vmatprep.mubr.bf16.mxu0 %v11539_v62  ;;  %5643 = vmatpush1.bf16.msra.mxu1 %v8534_v48  ;;  %v8633_v48 = vcombine.high %v2087_v47, %v2095_v25 }
 0x59d   : > { %5789 = vmatpush1.bf16.msra.mxu0 %v8536_v36  ;;  %5644 = vmatprep.subr.bf16.mxu1 %v8551_v31  ;;  %v2102_v36 = vld [vmem:[#allocation23 + $0x3a0] sm:$0xff] }
 0x59e   : > { %5790 = vmatprep.subr.bf16.mxu0 %v8553_v38  ;;  %v2110_v31 = vld [vmem:[#allocation23 + $0x3e0] sm:$0xff]  ;;  %v2103_v38 = vld [vmem:[#allocation23 + $0x3a8] sm:$0xff] }
 0x59f   : > { %v8647_v40 = vcombine.high %v2102_v36, %v2110_v31  ;;  %v8646_v53 = vcombine.low %v2102_v36, %v2110_v31  ;;  %v8648_v54 = vcombine.low %v2103_v38, %v2111_v50  ;;  %v2191_v36 = vld [vmem:[#allocation23 + $0x668] sm:$0xff] }
 0x5a0   : > { %5645 = vmatpush1.bf16.msra.mxu1 %v8550_v41  ;;  %v8649_v41 = vcombine.high %v2103_v38, %v2111_v50 }
 0x5a1   : > { %5791 = vmatpush1.bf16.msra.mxu0 %v8552_v35  ;;  %5646 = vmatprep.subr.bf16.mxu1 %v8567_v49  ;;  %v2118_v35 = vld [vmem:[#allocation23 + $0x420] sm:$0xff] }
 0x5a2   : > { %5466 = vmatmul.mubr.bf16.gmra.mrb[44].mxu1 %v11533_v30  ;;  %5792 = vmatprep.subr.bf16.mxu0 %v8569_v51  ;;  %v2126_v49 = vld [vmem:[#allocation23 + $0x460] sm:$0xff]  ;;  %v2119_v51 = vld [vmem:[#allocation23 + $0x428] sm:$0xff] }
 0x5a3   : > { %5612 = vmatmul.mubr.bf16.gmra.mrb[52].mxu0 %v11533_v30  ;;  %5475 = vmatprep.mubr.bf16.mxu1 %v11569_v7  ;;  %v8663_v56 = vcombine.high %v2118_v35, %v2126_v49  ;;  %v8662_v29 = vcombine.low %v2118_v35, %v2126_v49  ;;  %v8664_v16 = vcombine.low %v2119_v51, %v2127_v52  ;;  %v2207_v35 = vld [vmem:[#allocation23 + $0x6e8] sm:$0xff] }
 0x5a4   : > { %5621 = vmatprep.mubr.bf16.mxu0 %v11569_v7  ;;  %5647 = vmatpush1.bf16.msra.mxu1 %v8566_v57  ;;  %v8665_v57 = vcombine.high %v2119_v51, %v2127_v52 }
 0x5a5   : > { %5793 = vmatpush1.bf16.msra.mxu0 %v8568_v23  ;;  %5648 = vmatprep.subr.bf16.mxu1 %v8583_v58  ;;  %v2134_v23 = vld [vmem:[#allocation23 + $0x4a0] sm:$0xff] }
 0x5a6   : > { %5794 = vmatprep.subr.bf16.mxu0 %v8585_v59  ;;  %v2142_v58 = vld [vmem:[#allocation23 + $0x4e0] sm:$0xff]  ;;  %v2135_v59 = vld [vmem:[#allocation23 + $0x4a8] sm:$0xff] }
 0x5a7   : > { %v8679_v11 = vcombine.high %v2134_v23, %v2142_v58  ;;  %v8678_v1 = vcombine.low %v2134_v23, %v2142_v58  ;;  %v8680_v2 = vcombine.low %v2135_v59, %v2143_v6  ;;  %v2223_v23 = vld [vmem:[#allocation23 + $0x768] sm:$0xff] }
 0x5a8   : > { %5649 = vmatpush1.bf16.msra.mxu1 %v8582_v26  ;;  %v8681_v26 = vcombine.high %v2135_v59, %v2143_v6 }
 0x5a9   : > { %5795 = vmatpush1.bf16.msra.mxu0 %v8584_v15  ;;  %5650 = vmatprep.subr.bf16.mxu1 %v8599_v8  ;;  %v2150_v15 = vld [vmem:[#allocation23 + $0x520] sm:$0xff] }
 0x5aa   : > { %5476 = vmatmul.mubr.bf16.gmra.mrb[48].mxu1 %v11563_v55  ;;  %5796 = vmatprep.subr.bf16.mxu0 %v8601_v61  ;;  %v2158_v8 = vld [vmem:[#allocation23 + $0x560] sm:$0xff]  ;;  %v2151_v61 = vld [vmem:[#allocation23 + $0x528] sm:$0xff] }
 0x5ab   : > { %5622 = vmatmul.mubr.bf16.gmra.mrb[56].mxu0 %v11563_v55  ;;  %5485 = vmatprep.mubr.bf16.mxu1 %v11588_v43  ;;  %v8695_v9 = vcombine.high %v2150_v15, %v2158_v8  ;;  %v8694_v22 = vcombine.low %v2150_v15, %v2158_v8  ;;  %v8696_v47 = vcombine.low %v2151_v61, %v2159_v63  ;;  %v2239_v15 = vld [vmem:[#allocation23 + $0x7e8] sm:$0xff] }
 0x5ac   : > { %5631 = vmatprep.mubr.bf16.mxu0 %v11588_v43  ;;  %5651 = vmatpush1.bf16.msra.mxu1 %v8598_v10  ;;  %v8697_v10 = vcombine.high %v2151_v61, %v2159_v63  ;;  %v11822_v43 = vld [vmem:[#allocation23 + $0xea0] sm:$0xff]  ;;  %v11840_v55 = vld [vmem:[#allocation23 + $0xee8] sm:$0xff] }
 0x5ad   : > { %5797 = vmatpush1.bf16.msra.mxu0 %v8600_v12  ;;  %5652 = vmatprep.subr.bf16.mxu1 %v8615_v17  ;;  %v2166_v12 = vld [vmem:[#allocation23 + $0x5a0] sm:$0xff] }
 0x5ae   : > { %5798 = vmatprep.subr.bf16.mxu0 %v8617_v14  ;;  %v2174_v17 = vld [vmem:[#allocation23 + $0x5e0] sm:$0xff]  ;;  %v2167_v14 = vld [vmem:[#allocation23 + $0x5a8] sm:$0xff] }
 0x5af   : > { %v8711_v25 = vcombine.high %v2166_v12, %v2174_v17  ;;  %v8710_v31 = vcombine.low %v2166_v12, %v2174_v17  ;;  %v8712_v38 = vcombine.low %v2167_v14, %v2175_v19  ;;  %v2255_v12 = vld [vmem:[#allocation23 + $0x868] sm:$0xff] }
 0x5b0   : > { %5653 = vmatpush1.bf16.msra.mxu1 %v8614_v28  ;;  %v8713_v28 = vcombine.high %v2167_v14, %v2175_v19 }
 0x5b1   : > { %5799 = vmatpush1.bf16.msra.mxu0 %v8616_v27  ;;  %5654 = vmatprep.subr.bf16.mxu1 %v8631_v32  ;;  %v2182_v27 = vld [vmem:[#allocation23 + $0x620] sm:$0xff] }
 0x5b2   : > { %5486 = vmatmul.mubr.bf16.gmra.mrb[52].mxu1 %v11585_v37  ;;  %5800 = vmatprep.subr.bf16.mxu0 %v8633_v48  ;;  %v2190_v32 = vld [vmem:[#allocation23 + $0x660] sm:$0xff]  ;;  %v2183_v48 = vld [vmem:[#allocation23 + $0x628] sm:$0xff] }
 0x5b3   : > { %5632 = vmatmul.mubr.bf16.gmra.mrb[60].mxu0 %v11585_v37  ;;  %5674 = vmatprep.mubr.bf16.mxu1 %v11354_v0  ;;  %v8727_v50 = vcombine.high %v2182_v27, %v2190_v32  ;;  %v8726_v49 = vcombine.low %v2182_v27, %v2190_v32  ;;  %v8728_v51 = vcombine.low %v2183_v48, %v2191_v36  ;;  %v2271_v27 = vld [vmem:[#allocation23 + $0x8e8] sm:$0xff] }
 0x5b4   : > { %5655 = vmatpush1.bf16.msra.mxu1 %v8630_v39  ;;  %5820 = vmatprep.mubr.bf16.mxu0 %v11354_v0  ;;  %v8729_v39 = vcombine.high %v2183_v48, %v2191_v36  ;;  %v11629_v48 = vld [vmem:[#allocation23 + $0x920] sm:$0xff]  ;;  %v11818_v0 = vld [vmem:[#allocation23 + $0xe28] sm:$0xff] }
 0x5b5   : > { %5801 = vmatpush1.bf16.msra.mxu0 %v8632_v33  ;;  %5656 = vmatprep.subr.bf16.mxu1 %v8647_v40  ;;  %v2198_v33 = vld [vmem:[#allocation23 + $0x6a0] sm:$0xff]  ;;  %v11820_v37 = vld [vmem:[#allocation23 + $0xe68] sm:$0xff] }
 0x5b6   : > { %5802 = vmatprep.subr.bf16.mxu0 %v8649_v41  ;;  %v2206_v40 = vld [vmem:[#allocation23 + $0x6e0] sm:$0xff]  ;;  %v2199_v41 = vld [vmem:[#allocation23 + $0x6a8] sm:$0xff] }
 0x5b7   : > { %v8743_v52 = vcombine.high %v2198_v33, %v2206_v40  ;;  %v8742_v58 = vcombine.low %v2198_v33, %v2206_v40  ;;  %v8744_v59 = vcombine.low %v2199_v41, %v2207_v35  ;;  %v11638_v40 = vld [vmem:[#allocation23 + $0x9a0] sm:$0xff] }
 0x5b8   : > { %5657 = vmatpush1.bf16.msra.mxu1 %v8646_v53  ;;  %v8745_v53 = vcombine.high %v2199_v41, %v2207_v35  ;;  %v11640_v41 = vld [vmem:[#allocation23 + $0x9e0] sm:$0xff]  ;;  %v11642_v35 = vld [vmem:[#allocation23 + $0x9a8] sm:$0xff] }
 0x5b9   : > { %5803 = vmatpush1.bf16.msra.mxu0 %v8648_v54  ;;  %5658 = vmatprep.subr.bf16.mxu1 %v8663_v56  ;;  %v2214_v54 = vld [vmem:[#allocation23 + $0x720] sm:$0xff] }
 0x5ba   : > { %5804 = vmatprep.subr.bf16.mxu0 %v8665_v57  ;;  %v2222_v56 = vld [vmem:[#allocation23 + $0x760] sm:$0xff]  ;;  %v2215_v57 = vld [vmem:[#allocation23 + $0x728] sm:$0xff] }
 0x5bb   : > { %v8759_v6 = vcombine.high %v2214_v54, %v2222_v56  ;;  %v8758_v8 = vcombine.low %v2214_v54, %v2222_v56  ;;  %v8760_v61 = vcombine.low %v2215_v57, %v2223_v23 }
 0x5bc   : > { %5659 = vmatpush1.bf16.msra.mxu1 %v8662_v29  ;;  %v8761_v29 = vcombine.high %v2215_v57, %v2223_v23  ;;  %v11655_v57 = vld [vmem:[#allocation23 + $0xa28] sm:$0xff] }
 0x5bd   : > { %5805 = vmatpush1.bf16.msra.mxu0 %v8664_v16  ;;  %5660 = vmatprep.subr.bf16.mxu1 %v8679_v11  ;;  %v2230_v16 = vld [vmem:[#allocation23 + $0x7a0] sm:$0xff]  ;;  %v11657_v23 = vld [vmem:[#allocation23 + $0xa68] sm:$0xff] }
 0x5be   : > { %5806 = vmatprep.subr.bf16.mxu0 %v8681_v26  ;;  %v2238_v11 = vld [vmem:[#allocation23 + $0x7e0] sm:$0xff]  ;;  %v2231_v26 = vld [vmem:[#allocation23 + $0x7a8] sm:$0xff]  ;;  %v13364_v7 = vcombine.low %v11655_v57, %v11657_v23 }
 0x5bf   : > { %v8775_v63 = vcombine.high %v2230_v16, %v2238_v11  ;;  %v8774_v17 = vcombine.low %v2230_v16, %v2238_v11  ;;  %v8776_v14 = vcombine.low %v2231_v26, %v2239_v15  ;;  %v6438_v16 = vld [vmem:[#allocation26] sm:$0xff]  ;;  %v11665_v11 = vld [vmem:[#allocation23 + $0xaa0] sm:$0xff] }
 0x5c0   : > { %5661 = vmatpush1.bf16.msra.mxu1 %v8678_v1  ;;  %v8777_v1 = vcombine.high %v2231_v26, %v2239_v15  ;;  %v11667_v26 = vld [vmem:[#allocation23 + $0xae0] sm:$0xff]  ;;  %v11761_v15 = vld [vmem:[#allocation23 + $0xca8] sm:$0xff] }
 0x5c1   : > { %5807 = vmatpush1.bf16.msra.mxu0 %v8680_v2  ;;  %5662 = vmatprep.subr.bf16.mxu1 %v8695_v9  ;;  %v2246_v2 = vld [vmem:[#allocation23 + $0x820] sm:$0xff] }
 0x5c2   : > { %5808 = vmatprep.subr.bf16.mxu0 %v8697_v10  ;;  %v2254_v9 = vld [vmem:[#allocation23 + $0x860] sm:$0xff]  ;;  %v2247_v10 = vld [vmem:[#allocation23 + $0x828] sm:$0xff] }
 0x5c3   : > { %v8791_v19 = vcombine.high %v2246_v2, %v2254_v9  ;;  %v8790_v32 = vcombine.low %v2246_v2, %v2254_v9  ;;  %v8792_v36 = vcombine.low %v2247_v10, %v2255_v12  ;;  %v11679_v2 = vld [vmem:[#allocation23 + $0xae8] sm:$0xff]  ;;  %v11750_v9 = vld [vmem:[#allocation23 + $0xca0] sm:$0xff] }
 0x5c4   : > { %5663 = vmatpush1.bf16.msra.mxu1 %v8694_v22  ;;  %v8793_v22 = vcombine.high %v2247_v10, %v2255_v12  ;;  %v11748_v12 = vld [vmem:[#allocation23 + $0xc68] sm:$0xff]  ;;  %v11803_v10 = vld [vmem:[#allocation23 + $0xe20] sm:$0xff] }
 0x5c5   : > { %5809 = vmatpush1.bf16.msra.mxu0 %v8696_v47  ;;  %5664 = vmatprep.subr.bf16.mxu1 %v8711_v25  ;;  %v2262_v47 = vld [vmem:[#allocation23 + $0x8a0] sm:$0xff] }
 0x5c6   : > { %5810 = vmatprep.subr.bf16.mxu0 %v8713_v28  ;;  %v2270_v25 = vld [vmem:[#allocation23 + $0x8e0] sm:$0xff]  ;;  %v2263_v28 = vld [vmem:[#allocation23 + $0x8a8] sm:$0xff] }
 0x5c7   : > { %v8809_v33 = vcombine.high %v2263_v28, %v2271_v27  ;;  %v8808_v54 = vcombine.low %v2263_v28, %v2271_v27  ;;  %v11704_v27 = vld [vmem:[#allocation23 + $0xb28] sm:$0xff]  ;;  %v11734_v28 = vld [vmem:[#allocation23 + $0xc60] sm:$0xff] }
 0x5c8   : > { %5665 = vmatpush1.bf16.msra.mxu1 %v8710_v31  ;;  %v8807_v31 = vcombine.high %v2262_v47, %v2270_v25 }
 0x5c9   : > { %5811 = vmatpush1.bf16.msra.mxu0 %v8712_v38  ;;  %5666 = vmatprep.subr.bf16.mxu1 %v8727_v50  ;;  %v11631_v38 = vld [vmem:[#allocation23 + $0x960] sm:$0xff]  ;;  %v11633_v50 = vld [vmem:[#allocation23 + $0x928] sm:$0xff] }
 0x5ca   : > { %5812 = vmatprep.subr.bf16.mxu0 %v8729_v39  ;;  %v11635_v39 = vld [vmem:[#allocation23 + $0x968] sm:$0xff]  ;;  %v8822_v56 = vcombine.low %v11629_v48, %v11631_v38 }
 0x5cc   : > { %5667 = vmatpush1.bf16.msra.mxu1 %v8726_v49  ;;  %v11646_v49 = vld [vmem:[#allocation23 + $0x9e8] sm:$0xff] }
 0x5cd   : > { %5813 = vmatpush1.bf16.msra.mxu0 %v8728_v51  ;;  %5668 = vmatprep.subr.bf16.mxu1 %v8743_v52  ;;  %v11648_v51 = vld [vmem:[#allocation23 + $0xa20] sm:$0xff] }
 0x5ce   : > { %5814 = vmatprep.subr.bf16.mxu0 %v8745_v53  ;;  %v11650_v52 = vld [vmem:[#allocation23 + $0xa60] sm:$0xff]  ;;  %v8806_v53 = vcombine.low %v2262_v47, %v2270_v25  ;;  %v11697_v47 = vrot.slane %v6438_v16, %v11315_v21 }
 0x5d0   : > { %5669 = vmatpush1.bf16.msra.mxu1 %v8742_v58  ;;  %v6226_v58 = vld [vmem:[#allocation25] sm:$0xff] }
 0x5d1   : > { %5815 = vmatpush1.bf16.msra.mxu0 %v8744_v59  ;;  %5670 = vmatprep.subr.bf16.mxu1 %v8759_v6  ;;  %v8823_v59 = vcombine.high %v11629_v48, %v11631_v38  ;;  %v8824_v6 = vcombine.low %v11633_v50, %v11635_v39  ;;  %v11700_v25 = vrot.slane %v6226_v58, %v11472_v44  ;;  %v11708_v48 = vld [vmem:[#allocation23 + $0xba0] sm:$0xff]  ;;  %v11736_v38 = vld [vmem:[#allocation23 + $0xc28] sm:$0xff] }
 0x5d2   : > { %5816 = vmatprep.subr.bf16.mxu0 %v8761_v29  ;;  %v8825_v29 = vcombine.high %v11633_v50, %v11635_v39  ;;  %v11716_v50 = vld [vmem:[#allocation23 + $0xbe0] sm:$0xff]  ;;  %v11718_v39 = vld [vmem:[#allocation23 + $0xba8] sm:$0xff] }
 0x5d4   : > { %5671 = vmatpush1.bf16.msra.mxu1 %v8758_v8  ;;  %v8839_v8 = vcombine.high %v11638_v40, %v11640_v41 }
 0x5d5   : > { %5817 = vmatpush1.bf16.msra.mxu0 %v8760_v61  ;;  %5672 = vmatprep.subr.bf16.mxu1 %v8775_v63  ;;  %v8841_v63 = vcombine.high %v11642_v35, %v11646_v49  ;;  %v11787_v61 = vld [vmem:[#allocation23 + $0xda0] sm:$0xff] }
 0x5d6   : > { %5818 = vmatprep.subr.bf16.mxu0 %v8777_v1  ;;  %v11677_v1 = vld [vmem:[#allocation23 + $0xaa8] sm:$0xff] }
 0x5d8   : > { %5673 = vmatpush1.bf16.msra.mxu1 %v8774_v17  ;;  %v11752_v17 = vld [vmem:[#allocation23 + $0xce0] sm:$0xff] }
 0x5d9   : > { %5819 = vmatpush1.bf16.msra.mxu0 %v8776_v14  ;;  %5715 = vmatprep.subr.bf16.mxu1 %v8791_v19  ;;  %v11689_v14 = vld [vmem:[#allocation23 + $0xb20] sm:$0xff] }
 0x5da   : > { %5861 = vmatprep.subr.bf16.mxu0 %v8793_v22  ;;  %v11691_v19 = vld [vmem:[#allocation23 + $0xb60] sm:$0xff]  ;;  %v11694_v22 = vrot.slane %v6226_v58, %v11315_v21 }
 0x5db   : > { %5675 = vmatmul.mubr.bf16.vlgmr.msra.gmra.mrb[56].mxu1 %v11349_v60  ;;  %v11789_v21 = vld [vmem:[#allocation23 + $0xde0] sm:$0xff] }
 0x5dc   : > { %5821 = vmatmul.mubr.bf16.vlgmr.msra.gmra.mrb[64].mxu0 %v11349_v60  ;;  %5684 = vmatprep.mubr.bf16.mxu1 %v11385_v4  ;;  %v13357_v60 = vcombine.low %v11638_v40, %v11640_v41  ;;  %v13359_v40 = vcombine.high %v11648_v51, %v11650_v52  ;;  %v11862_v41 = vld [vmem:[#allocation23 + $0xf60] sm:$0xff] }
 0x5dd   : > { %5716 = vmatpush1.bf16.msra.mxu1 %v8790_v32  ;;  %5830 = vmatprep.mubr.bf16.mxu0 %v11385_v4  ;;  %v11706_v32 = vld [vmem:[#allocation23 + $0xb68] sm:$0xff]  ;;  %v11805_v4 = vld [vmem:[#allocation23 + $0xe60] sm:$0xff]  ;;  %13362 = vst [vmem:[#allocation76_spill] sm:$0xff] %v11862_v41 }
 0x5de   : > { %5862 = vmatpush1.bf16.msra.mxu0 %v8792_v36  ;;  %5717 = vmatprep.subr.bf16.mxu1 %v8807_v31  ;;  %v11732_v31 = vld [vmem:[#allocation23 + $0xc20] sm:$0xff]  ;;  %v11744_v36 = vrot.slane %v6438_v16, %v11475_v46 }
 0x5df   : > { %5863 = vmatprep.subr.bf16.mxu0 %v8809_v33  ;;  %v11720_v33 = vld [vmem:[#allocation23 + $0xbe8] sm:$0xff] }
 0x5e1   : > { %5718 = vmatpush1.bf16.msra.mxu1 %v8806_v53  ;;  %v11724_v53 = vrot.slane %v6438_v16, %v11472_v44  ;;  %v11777_v44 = vld [vmem:[#allocation23 + $0xd68] sm:$0xff] }
 0x5e2   : > { %5864 = vmatpush1.bf16.msra.mxu0 %v8808_v54  ;;  %5719 = vmatprep.subr.bf16.mxu1 %v8823_v59  ;;  %v11727_v54 = vrot.slane %v6226_v58, %v11320_v24  ;;  %v11730_v59 = vrot.slane %v6226_v58, %v11475_v46  ;;  %v11763_v58 = vld [vmem:[#allocation23 + $0xce8] sm:$0xff]  ;;  %v11765_v46 = vld [vmem:[#allocation23 + $0xd20] sm:$0xff] }
 0x5e3   : > { %5685 = vmatmul.mubr.bf16.gmra.mrb[60].mxu1 %v11388_v34  ;;  %5865 = vmatprep.subr.bf16.mxu0 %v8825_v29  ;;  %v11741_v29 = vrot.slane %v6438_v16, %v11320_v24  ;;  %v11773_v24 = vld [vmem:[#allocation23 + $0xd60] sm:$0xff]  ;;  %v11775_v16 = vld [vmem:[#allocation23 + $0xd28] sm:$0xff] }
 0x5e4   : > { %5831 = vmatmul.mubr.bf16.gmra.mrb[68].mxu0 %v11388_v34  ;;  %5694 = vmatprep.mubr.bf16.mxu1 %v11422_v5  ;;  %v11801_v34 = vld [vmem:[#allocation23 + $0xde8] sm:$0xff] }
 0x5e5   : > { %5720 = vmatpush1.bf16.msra.mxu1 %v8822_v56  ;;  %5840 = vmatprep.mubr.bf16.mxu0 %v11422_v5  ;;  %v11791_v5 = vld [vmem:[#allocation23 + $0xda8] sm:$0xff] }
 0x5e6   : > { %5866 = vmatpush1.bf16.msra.mxu0 %v8824_v6  ;;  %5721 = vmatprep.subr.bf16.mxu1 %v8839_v8  ;;  %v11836_v8 = vld [vmem:[#allocation23 + $0xee0] sm:$0xff] }
 0x5e7   : > { %5867 = vmatprep.subr.bf16.mxu0 %v8841_v63  ;;  %v11838_v63 = vld [vmem:[#allocation23 + $0xea8] sm:$0xff] }
 0x5e9   : > { %5722 = vmatpush1.bf16.msra.mxu1 %v13357_v60  ;;  %v13358_v60 = vcombine.low %v11642_v35, %v11646_v49  ;;  %v13360_v35 = vcombine.high %v11655_v57, %v11657_v23  ;;  %v11860_v49 = vld [vmem:[#allocation23 + $0xf20] sm:$0xff] }
 0x5ea   : > { %5723 = vmatprep.subr.bf16.mxu1 %v13359_v40  ;;  %13361 = vst [vmem:[#allocation75_spill] sm:$0xff] %v11860_v49  ;;  %v13363_v40 = vcombine.low %v11648_v51, %v11650_v52  ;;  %v13368_v49 = vcombine.low %v11677_v1, %v11679_v2 }
 0x5eb   : > { %5868 = vmatpush1.bf16.msra.mxu0 %v13358_v60  ;;  %5695 = vmatmul.mubr.bf16.gmra.mrb[64].mxu1 %v11420_v3 }
 0x5ec   : > { %5869 = vmatprep.subr.bf16.mxu0 %v13360_v35  ;;  %5841 = vmatmul.mubr.bf16.gmra.mrb[72].mxu0 %v11420_v3  ;;  %v5165_v60 = vpop.f32.mrb[24].mxu1  ;;  %v5311_v3 = vpop.f32.mrb[32].mxu0  ;;  %v13366_v35 = vcombine.high %v11677_v1, %v11679_v2 }
 0x5ed   : > { %5704 = vmatprep.mubr.bf16.mxu1 %v11441_v45  ;;  %5724 = vmatpush1.bf16.msra.mxu1 %v13363_v40  ;;  %v6310_v51 = vmul.f32 %v11694_v22, %v5165_v60  ;;  %v6312_v52 = vmul.f32 %v11700_v25, %v5311_v3  ;;  %v13365_v40 = vcombine.high %v11665_v11, %v11667_v26  ;;  %v5313_v56 = vpop.f32.mrb[33].mxu0 }
 0x5ee   : > { %5850 = vmatprep.mubr.bf16.mxu0 %v11441_v45  ;;  %v5167_v45 = vpop.f32.mrb[25].mxu1  ;;  %v6313_v57 = vmul.f32 %v11730_v59, %v5313_v56  ;;  %v5315_v3 = vpop.f32.mrb[34].mxu0  ;;  %v13367_v60 = vcombine.low %v11665_v11, %v11667_v26  ;;  %v13369_v11 = vcombine.high %v11689_v14, %v11691_v19 }
 0x5ef   : > { %5870 = vmatpush1.bf16.msra.mxu0 %v13364_v7  ;;  %5725 = vmatprep.subr.bf16.mxu1 %v13365_v40  ;;  %v6311_v7 = vmul.f32 %v11727_v54, %v5167_v45  ;;  %v5169_v23 = vpop.f32.mrb[26].mxu1  ;;  %v6522_v30 = vadd.f32 %v11697_v47, %v6310_v51  ;;  %v6524_v6 = vadd.f32 %v11724_v53, %v6312_v52  ;;  %v5317_v45 = vpop.f32.mrb[35].mxu0  ;;  %v11905_v52 = vld [vmem:[#allocation23 + $0xf28] sm:$0xff] }
 0x5f0   : > { %5871 = vmatprep.subr.bf16.mxu0 %v13366_v35  ;;  %v6326_v18 = vmul.f32 %v11694_v22, %v5169_v23  ;;  %v6328_v35 = vmul.f32 %v11700_v25, %v5315_v3  ;;  %v5171_v62 = vpop.f32.mrb[27].mxu1  ;;  %v6525_v13 = vadd.f32 %v11744_v36, %v6313_v57  ;;  %v6329_v51 = vmul.f32 %v11730_v59, %v5317_v45  ;;  %v11907_v23 = vld [vmem:[#allocation23 + $0xf68] sm:$0xff] }
 0x5f1   : > { %v6523_v56 = vadd.f32 %v11741_v29, %v6311_v7  ;;  %5726 = vmatpush1.bf16.msra.mxu1 %v13367_v60  ;;  %v6327_v40 = vmul.f32 %v11727_v54, %v5171_v62  ;;  %v6650_v3 = vmax.f32 %v6522_v30, 0.0  ;;  %v6652_v41 = vmax.f32 %v6524_v6, 0.0 }
 0x5f2   : > { %v6538_v7 = vadd.f32 %v11697_v47, %v6326_v18  ;;  %v6540_v57 = vadd.f32 %v11724_v53, %v6328_v35  ;;  %5727 = vmatprep.subr.bf16.mxu1 %v13369_v11  ;;  %v6653_v26 = vmax.f32 %v6525_v13, 0.0  ;;  %v6541_v45 = vadd.f32 %v11744_v36, %v6329_v51 }
 0x5f3   : > { %5872 = vmatpush1.bf16.msra.mxu0 %v13368_v49  ;;  %v6651_v62 = vmax.f32 %v6523_v56, 0.0  ;;  %v6539_v60 = vadd.f32 %v11741_v29, %v6327_v40  ;;  %5705 = vmatmul.mubr.bf16.gmra.mrb[68].mxu1 %v11437_v42  ;;  %v13370_v30 = vcombine.high %v11704_v27, %v11706_v32  ;;  %v13371_v56 = vcombine.low %v11689_v14, %v11691_v19 }
 0x5f4   : > { %v6666_v1 = vmax.f32 %v6538_v7, 0.0  ;;  %v6668_v18 = vmax.f32 %v6540_v57, 0.0  ;;  %5851 = vmatmul.mubr.bf16.gmra.mrb[76].mxu0 %v11437_v42  ;;  %5747 = vmatprep.mubr.bf16.mxu1 %v11505_v20  ;;  %v9204_v49 = vpack.c.bf16 %v6653_v26, %v6652_v41  ;;  %v6669_v35 = vmax.f32 %v6541_v45, 0.0  ;;  %v5175_v51 = vpop.f32.mrb[28].mxu1 }
 0x5f5   : > { %5873 = vmatprep.subr.bf16.mxu0 %v13370_v30  ;;  %v9203_v6 = vpack.c.bf16 %v6651_v62, %v6650_v3  ;;  %v6667_v40 = vmax.f32 %v6539_v60, 0.0  ;;  %5728 = vmatpush1.bf16.msra.mxu1 %v13371_v56  ;;  %v5321_v7 = vpop.f32.mrb[36].mxu0  ;;  %v13372_v30 = vcombine.low %v11704_v27, %v11706_v32  ;;  %v6342_v2 = vmul.f32 %v11694_v22, %v5175_v51  ;;  %v5177_v60 = vpop.f32.mrb[29].mxu1 }
 0x5f6   : > { %5893 = vmatprep.mubr.bf16.mxu0 %v11505_v20  ;;  %v7434_v57 = vmax.f32 %v6650_v3, %v6666_v1  ;;  %v7460_v11 = vmax.f32 %v6652_v41, %v6668_v18  ;;  %v6344_v13 = vmul.f32 %v11700_v25, %v5321_v7  ;;  %v5323_v45 = vpop.f32.mrb[37].mxu0  ;;  %7371 = vst [vmem:[%s11940_s19 + $0x8] sm:$0xff] %v9204_v49  ;;  %v5179_v3 = vpop.f32.mrb[30].mxu1 }
 0x5f7   : > { %5874 = vmatpush1.bf16.msra.mxu0 %v13372_v30  ;;  %7370 = vst [vmem:[%s11940_s19] sm:$0xff] %v9203_v6  ;;  %v9211_v14 = vpack.c.bf16 %v6667_v40, %v6666_v1  ;;  %v7447_v19 = vmax.f32 %v6651_v62, %v6667_v40  ;;  %v9212_v41 = vpack.c.bf16 %v6669_v35, %v6668_v18  ;;  %v5325_v56 = vpop.f32.mrb[38].mxu0  ;;  %v5181_v1 = vpop.f32.mrb[31].mxu1 }
 0x5f8   : > { %v7473_v27 = vmax.f32 %v6653_v26, %v6669_v35  ;;  %v13373_v32 = vcombine.high %v11708_v48, %v11716_v50  ;;  %v6554_v51 = vadd.f32 %v11697_v47, %v6342_v2  ;;  %v6556_v7 = vadd.f32 %v11724_v53, %v6344_v13  ;;  %v5327_v26 = vpop.f32.mrb[39].mxu0 }
 0x5f9   : > { %v13374_v6 = vcombine.high %v11718_v39, %v11720_v33  ;;  %v6343_v49 = vmul.f32 %v11727_v54, %v5177_v60  ;;  %v6345_v62 = vmul.f32 %v11730_v59, %v5323_v45  ;;  %7378 = vst [vmem:[%s11940_s19 + $0x40] sm:$0xff] %v9211_v14  ;;  %7379 = vst [vmem:[%s11940_s19 + $0x48] sm:$0xff] %v9212_v41 }
 0x5fa   : > { %5729 = vmatprep.subr.bf16.mxu1 %v13373_v32  ;;  %v13375_v18 = vcombine.low %v11708_v48, %v11716_v50  ;;  %v6358_v2 = vmul.f32 %v11694_v22, %v5179_v3  ;;  %v6360_v13 = vmul.f32 %v11700_v25, %v5325_v56  ;;  %v6359_v40 = vmul.f32 %v11727_v54, %v5181_v1 }
 0x5fb   : > { %5875 = vmatprep.subr.bf16.mxu0 %v13374_v6  ;;  %v6361_v35 = vmul.f32 %v11730_v59, %v5327_v26  ;;  %v6682_v30 = vmax.f32 %v6554_v51, 0.0  ;;  %v6684_v60 = vmax.f32 %v6556_v7, 0.0  ;;  %v6555_v45 = vadd.f32 %v11741_v29, %v6343_v49 }
 0x5fc   : > { %5730 = vmatpush1.bf16.msra.mxu1 %v13375_v18  ;;  %v6557_v32 = vadd.f32 %v11744_v36, %v6345_v62  ;;  %v13376_v14 = vcombine.low %v11718_v39, %v11720_v33  ;;  %v13377_v48 = vcombine.high %v11732_v31, %v11734_v28  ;;  %v6570_v50 = vadd.f32 %v11697_v47, %v6358_v2  ;;  %v5185_v2 = vpop.f32.mrb[32].mxu1 }
 0x5fd   : > { %v6572_v41 = vadd.f32 %v11724_v53, %v6360_v13  ;;  %v6571_v3 = vadd.f32 %v11741_v29, %v6359_v40  ;;  %v6573_v56 = vadd.f32 %v11744_v36, %v6361_v35  ;;  %v13378_v51 = vcombine.high %v11736_v38, %v11748_v12  ;;  %v5331_v13 = vpop.f32.mrb[40].mxu0 }
 0x5fe   : > { %5876 = vmatpush1.bf16.msra.mxu0 %v13376_v14  ;;  %5731 = vmatprep.subr.bf16.mxu1 %v13377_v48  ;;  %v7435_v7 = vmax.f32 %v7434_v57, %v6682_v30  ;;  %v7461_v6 = vmax.f32 %v7460_v11, %v6684_v60  ;;  %v6683_v39 = vmax.f32 %v6555_v45, 0.0  ;;  %v6685_v33 = vmax.f32 %v6557_v32, 0.0  ;;  %v5187_v11 = vpop.f32.mrb[33].mxu1  ;;  %v5333_v45 = vpop.f32.mrb[41].mxu0 }
 0x5ff   : > { %5877 = vmatprep.subr.bf16.mxu0 %v13378_v51  ;;  %v6698_v49 = vmax.f32 %v6570_v50, 0.0  ;;  %v6700_v62 = vmax.f32 %v6572_v41, 0.0  ;;  %v6699_v1 = vmax.f32 %v6571_v3, 0.0  ;;  %v6701_v26 = vmax.f32 %v6573_v56, 0.0 }
 0x600   : > { %v13379_v18 = vcombine.low %v11732_v31, %v11734_v28  ;;  %v9219_v40 = vpack.c.bf16 %v6683_v39, %v6682_v30  ;;  %v7448_v35 = vmax.f32 %v7447_v19, %v6683_v39  ;;  %v9220_v14 = vpack.c.bf16 %v6685_v33, %v6684_v60  ;;  %v5189_v30 = vpop.f32.mrb[34].mxu1  ;;  %v5335_v19 = vpop.f32.mrb[42].mxu0 }
 0x601   : > { %v7474_v48 = vmax.f32 %v7473_v27, %v6685_v33  ;;  %v13380_v57 = vcombine.low %v11736_v38, %v11748_v12  ;;  %v7436_v32 = vmax.f32 %v7435_v7, %v6698_v49  ;;  %v7462_v50 = vmax.f32 %v7461_v6, %v6700_v62  ;;  %v5191_v56 = vpop.f32.mrb[35].mxu1  ;;  %v5337_v51 = vpop.f32.mrb[43].mxu0 }
 0x602   : > { %5732 = vmatpush1.bf16.msra.mxu1 %v13379_v18  ;;  %v9227_v28 = vpack.c.bf16 %v6699_v1, %v6698_v49  ;;  %v9228_v31 = vpack.c.bf16 %v6701_v26, %v6700_v62  ;;  %v13381_v41 = vcombine.high %v11750_v9, %v11752_v17  ;;  %7386 = vst [vmem:[%s11940_s19 + $0x80] sm:$0xff] %v9219_v40  ;;  %7387 = vst [vmem:[%s11940_s19 + $0x88] sm:$0xff] %v9220_v14 }
 0x603   : > { %5878 = vmatpush1.bf16.msra.mxu0 %v13380_v57  ;;  %v7449_v27 = vmax.f32 %v7448_v35, %v6699_v1  ;;  %v7475_v60 = vmax.f32 %v7474_v48, %v6701_v26  ;;  %v6374_v12 = vmul.f32 %v11694_v22, %v5185_v2  ;;  %v6376_v38 = vmul.f32 %v11700_v25, %v5331_v13 }
 0x604   : > { %5733 = vmatprep.subr.bf16.mxu1 %v13381_v41  ;;  %v13382_v3 = vcombine.high %v11761_v15, %v11763_v58  ;;  %7394 = vst [vmem:[%s11940_s19 + $0xc0] sm:$0xff] %v9227_v28  ;;  %7395 = vst [vmem:[%s11940_s19 + $0xc8] sm:$0xff] %v9228_v31  ;;  %v6375_v7 = vmul.f32 %v11727_v54, %v5187_v11  ;;  %v6377_v6 = vmul.f32 %v11730_v59, %v5333_v45 }
 0x605   : > { %v13383_v39 = vcombine.low %v11750_v9, %v11752_v17  ;;  %v6390_v33 = vmul.f32 %v11694_v22, %v5189_v30  ;;  %v6392_v49 = vmul.f32 %v11700_v25, %v5335_v19  ;;  %v6586_v62 = vadd.f32 %v11697_v47, %v6374_v12  ;;  %v5195_v30 = vpop.f32.mrb[36].mxu1  ;;  %v5341_v19 = vpop.f32.mrb[44].mxu0 }
 0x606   : > { %5879 = vmatprep.subr.bf16.mxu0 %v13382_v3  ;;  %v6588_v1 = vadd.f32 %v11724_v53, %v6376_v38  ;;  %v13384_v26 = vcombine.low %v11761_v15, %v11763_v58  ;;  %v6391_v18 = vmul.f32 %v11727_v54, %v5191_v56  ;;  %v6393_v2 = vmul.f32 %v11730_v59, %v5337_v51 }
 0x607   : > { %5734 = vmatpush1.bf16.msra.mxu1 %v13383_v39  ;;  %v6587_v13 = vadd.f32 %v11741_v29, %v6375_v7  ;;  %v6589_v9 = vadd.f32 %v11744_v36, %v6377_v6  ;;  %v6602_v17 = vadd.f32 %v11697_v47, %v6390_v33  ;;  %v6604_v40 = vadd.f32 %v11724_v53, %v6392_v49  ;;  %v5197_v6 = vpop.f32.mrb[37].mxu1  ;;  %v5343_v39 = vpop.f32.mrb[45].mxu0 }
 0x608   : > { %5880 = vmatpush1.bf16.msra.mxu0 %v13384_v26  ;;  %v13385_v35 = vcombine.high %v11765_v46, %v11773_v24  ;;  %v6714_v14 = vmax.f32 %v6586_v62, 0.0  ;;  %v6716_v48 = vmax.f32 %v6588_v1, 0.0  ;;  %v6603_v15 = vadd.f32 %v11741_v29, %v6391_v18 }
 0x609   : > { %v6605_v58 = vadd.f32 %v11744_v36, %v6393_v2  ;;  %v13386_v57 = vcombine.high %v11775_v16, %v11777_v44  ;;  %v6715_v11 = vmax.f32 %v6587_v13, 0.0  ;;  %v6717_v45 = vmax.f32 %v6589_v9, 0.0 }
 0x60a   : > { %5735 = vmatprep.subr.bf16.mxu1 %v13385_v35  ;;  %v6730_v28 = vmax.f32 %v6602_v17, 0.0  ;;  %v6732_v31 = vmax.f32 %v6604_v40, 0.0  ;;  %v13387_v41 = vcombine.low %v11765_v46, %v11773_v24  ;;  %v7437_v12 = vmax.f32 %v7436_v32, %v6714_v14 }
 0x60b   : > { %5881 = vmatprep.subr.bf16.mxu0 %v13386_v57  ;;  %v7463_v38 = vmax.f32 %v7462_v50, %v6716_v48  ;;  %v6731_v3 = vmax.f32 %v6603_v15, 0.0  ;;  %v6733_v56 = vmax.f32 %v6605_v58, 0.0  ;;  %v13388_v51 = vcombine.low %v11775_v16, %v11777_v44  ;;  %v5199_v50 = vpop.f32.mrb[38].mxu1  ;;  %v5345_v44 = vpop.f32.mrb[46].mxu0 }
 0x60c   : > { %5736 = vmatpush1.bf16.msra.mxu1 %v13387_v41  ;;  %v13389_v7 = vcombine.high %v11787_v61, %v11789_v21  ;;  %v9235_v24 = vpack.c.bf16 %v6715_v11, %v6714_v14  ;;  %v7450_v46 = vmax.f32 %v7449_v27, %v6715_v11  ;;  %v9236_v33 = vpack.c.bf16 %v6717_v45, %v6716_v48  ;;  %v5201_v18 = vpop.f32.mrb[39].mxu1  ;;  %v5347_v2 = vpop.f32.mrb[47].mxu0 }
 0x60d   : > { %5882 = vmatpush1.bf16.msra.mxu0 %v13388_v51  ;;  %v7476_v49 = vmax.f32 %v7475_v60, %v6717_v45  ;;  %v13390_v32 = vcombine.high %v11791_v5, %v11801_v34  ;;  %v7438_v16 = vmax.f32 %v7437_v12, %v6730_v28  ;;  %v7464_v62 = vmax.f32 %v7463_v38, %v6732_v31  ;;  %v2494_v51 = vld [vmem:[#allocation23 + $0xfe0] sm:$0xff] }
 0x60e   : > { %5737 = vmatprep.subr.bf16.mxu1 %v13389_v7  ;;  %v9243_v1 = vpack.c.bf16 %v6731_v3, %v6730_v28  ;;  %v9244_v26 = vpack.c.bf16 %v6733_v56, %v6732_v31  ;;  %7402 = vst [vmem:[%s11940_s19 + $0x100] sm:$0xff] %v9235_v24  ;;  %7403 = vst [vmem:[%s11940_s19 + $0x108] sm:$0xff] %v9236_v33  ;;  %v7451_v13 = vmax.f32 %v7450_v46, %v6731_v3  ;;  %v2495_v24 = vld [vmem:[#allocation23 + $0xfe8] sm:$0xff] }
 0x60f   : > { %5883 = vmatprep.subr.bf16.mxu0 %v13390_v32  ;;  %v7477_v27 = vmax.f32 %v7476_v49, %v6733_v56  ;;  %v6406_v60 = vmul.f32 %v11694_v22, %v5195_v30  ;;  %v6408_v9 = vmul.f32 %v11700_v25, %v5341_v19  ;;  %v13391_v17 = vcombine.low %v11787_v61, %v11789_v21 }
 0x610   : > { %7410 = vst [vmem:[%s11940_s19 + $0x140] sm:$0xff] %v9243_v1  ;;  %7411 = vst [vmem:[%s11940_s19 + $0x148] sm:$0xff] %v9244_v26  ;;  %v6407_v40 = vmul.f32 %v11727_v54, %v5197_v6  ;;  %v6409_v35 = vmul.f32 %v11730_v59, %v5343_v39  ;;  %v13392_v14 = vcombine.low %v11791_v5, %v11801_v34  ;;  %v2487_v39 = vld [vmem:[#allocation23 + $0xfa8] sm:$0xff]  ;;  %v13401_v1 = vld [vmem:[#allocation75_spill] sm:$0xff] }
 0x611   : > { %5738 = vmatpush1.bf16.msra.mxu1 %v13391_v17  ;;  %v6422_v48 = vmul.f32 %v11694_v22, %v5199_v50  ;;  %v6424_v15 = vmul.f32 %v11700_v25, %v5345_v44  ;;  %v6618_v58 = vadd.f32 %v11697_v47, %v6406_v60  ;;  %v6620_v57 = vadd.f32 %v11724_v53, %v6408_v9  ;;  %v13402_v26 = vld [vmem:[#allocation76_spill] sm:$0xff]  ;;  %v1992_v60 = vld [vmem:[#allocation23 + $0x30] sm:$0xff] }
 0x612   : > { %5884 = vmatpush1.bf16.msra.mxu0 %v13392_v14  ;;  %v6423_v21 = vmul.f32 %v11727_v54, %v5201_v18  ;;  %v6425_v61 = vmul.f32 %v11730_v59, %v5347_v2  ;;  %v13393_v11 = vcombine.high %v11803_v10, %v11805_v4  ;;  %v6619_v45 = vadd.f32 %v11741_v29, %v6407_v40  ;;  %v2000_v9 = vld [vmem:[#allocation23 + $0x70] sm:$0xff] }
 0x613   : > { %v6621_v34 = vadd.f32 %v11744_v36, %v6409_v35  ;;  %v6634_v5 = vadd.f32 %v11697_v47, %v6422_v48  ;;  %v6636_v22 = vadd.f32 %v11724_v53, %v6424_v15  ;;  %v13394_v25 = vcombine.high %v11818_v0, %v11820_v37 }
 0x614   : > { %5739 = vmatprep.subr.bf16.mxu1 %v13393_v11  ;;  %v6746_v28 = vmax.f32 %v6618_v58, 0.0  ;;  %v6748_v54 = vmax.f32 %v6620_v57, 0.0  ;;  %v6635_v59 = vadd.f32 %v11741_v29, %v6423_v21  ;;  %v6637_v31 = vadd.f32 %v11744_v36, %v6425_v61 }
 0x615   : > { %5885 = vmatprep.subr.bf16.mxu0 %v13394_v25  ;;  %v13395_v41 = vcombine.low %v11803_v10, %v11805_v4  ;;  %v6747_v30 = vmax.f32 %v6619_v45, 0.0  ;;  %v6749_v19 = vmax.f32 %v6621_v34, 0.0  ;;  %v6762_v12 = vmax.f32 %v6634_v5, 0.0  ;;  %v2486_v10 = vld [vmem:[#allocation23 + $0xfa0] sm:$0xff] }
 0x616   : > { %v6764_v47 = vmax.f32 %v6636_v22, 0.0  ;;  %v13396_v53 = vcombine.low %v11818_v0, %v11820_v37  ;;  %v13397_v38 = vcombine.high %v11822_v43, %v11836_v8  ;;  %v7439_v3 = vmax.f32 %v7438_v16, %v6746_v28 }
 0x617   : > { %5740 = vmatpush1.bf16.msra.mxu1 %v13395_v41  ;;  %v7465_v29 = vmax.f32 %v7464_v62, %v6748_v54  ;;  %v6763_v56 = vmax.f32 %v6635_v59, 0.0  ;;  %v6765_v36 = vmax.f32 %v6637_v31, 0.0  ;;  %v13398_v4 = vcombine.high %v11838_v63, %v11840_v55 }
 0x618   : > { %5886 = vmatpush1.bf16.msra.mxu0 %v13396_v53  ;;  %5741 = vmatprep.subr.bf16.mxu1 %v13397_v38  ;;  %v9251_v7 = vpack.c.bf16 %v6747_v30, %v6746_v28  ;;  %v7452_v6 = vmax.f32 %v7451_v13, %v6747_v30  ;;  %v9252_v0 = vpack.c.bf16 %v6749_v19, %v6748_v54  ;;  %v2008_v28 = vld [vmem:[#allocation23 + $0xb0] sm:$0xff]  ;;  %v10646_v41 = vmov 1966171168  }
 0x619   : > { %5887 = vmatprep.subr.bf16.mxu0 %v13398_v4  ;;  %v7478_v37 = vmax.f32 %v7477_v27, %v6749_v19  ;;  %v7440_v46 = vmax.f32 %v7439_v3, %v6762_v12  ;;  %v7466_v33 = vmax.f32 %v7465_v29, %v6764_v47  ;;  %v9259_v49 = vpack.c.bf16 %v6763_v56, %v6762_v12  ;;  %v2016_v54 = vld [vmem:[#allocation23 + $0xf0] sm:$0xff]  ;;  %v2009_v19 = vld [vmem:[#allocation23 + $0xb8] sm:$0xff]  ;;  %v13407_v4 = vld [vmem:[#allocation68_spill] sm:$0xff] }
 0x61a   : > { %v9260_v32 = vpack.c.bf16 %v6765_v36, %v6764_v47  ;;  %v13399_v50 = vcombine.low %v11822_v43, %v11836_v8  ;;  %7418 = vst [vmem:[%s11940_s19 + $0x180] sm:$0xff] %v9251_v7  ;;  %7419 = vst [vmem:[%s11940_s19 + $0x188] sm:$0xff] %v9252_v0  ;;  %v7453_v44 = vmax.f32 %v7452_v6, %v6763_v56  ;;  %v7667_v30 = vunpack.c.l.s4 %v10646_v41  ;;  %v2017_v12 = vld [vmem:[#allocation23 + $0xf8] sm:$0xff]  ;;  %v2032_v7 = vld [vmem:[#allocation23 + $0x170] sm:$0xff] }
 0x61b   : > { %v7479_v16 = vmax.f32 %v7478_v37, %v6765_v36  ;;  %v13400_v62 = vcombine.low %v11838_v63, %v11840_v55  ;;  %v13403_v18 = vcombine.high %v13401_v1, %v13402_v26  ;;  %v9031_v2 = vcombine.high %v2486_v10, %v2494_v51  ;;  %7426 = vst [vmem:[%s11940_s19 + $0x1c0] sm:$0xff] %v9259_v49  ;;  %v1993_v55 = vld [vmem:[#allocation23 + $0x38] sm:$0xff] }
 0x61c   : > { %5742 = vmatpush1.bf16.msra.mxu1 %v13399_v50  ;;  %v7441_v13 = vrot.slane %v7440_v46, 4  ;;  %v7467_v27 = vrot.slane %v7466_v33, 4  ;;  %7427 = vst [vmem:[%s11940_s19 + $0x1c8] sm:$0xff] %v9260_v32  ;;  %v13404_v43 = vcombine.high %v11905_v52, %v11907_v23  ;;  %v9033_v8 = vcombine.high %v2487_v39, %v2495_v24  ;;  %v2001_v63 = vld [vmem:[#allocation23 + $0x78] sm:$0xff] }
 0x61d   : > { %5888 = vmatpush1.bf16.msra.mxu0 %v13400_v62  ;;  %5743 = vmatprep.subr.bf16.mxu1 %v13403_v18  ;;  %v7454_v17 = vrot.slane %v7453_v44, 4  ;;  %v7480_v40 = vrot.slane %v7479_v16, 4  ;;  %v13405_v48 = vcombine.low %v13401_v1, %v13402_v26  ;;  %v9030_v15 = vcombine.low %v2486_v10, %v2494_v51  ;;  %v2024_v51 = vld [vmem:[#allocation23 + $0x130] sm:$0xff] }
 0x61e   : > { %5889 = vmatprep.subr.bf16.mxu0 %v13404_v43  ;;  %v7442_v35 = vmax.f32 %v7440_v46, %v7441_v13  ;;  %v7468_v14 = vmax.f32 %v7466_v33, %v7467_v27  ;;  %v9032_v58 = vcombine.low %v2487_v39, %v2495_v24  ;;  %v13406_v61 = vcombine.low %v11905_v52, %v11907_v23  ;;  %v13408_v39 = vld [vmem:[#allocation70_spill] sm:$0xff]  ;;  %v2025_v24 = vld [vmem:[#allocation23 + $0x138] sm:$0xff] }
 0x61f   : > { %v7455_v57 = vmax.f32 %v7453_v44, %v7454_v17  ;;  %v7481_v21 = vmax.f32 %v7479_v16, %v7480_v40  ;;  %v8539_v11 = vcombine.high %v1992_v60, %v2000_v9  ;;  %v8541_v5 = vcombine.high %v1993_v55, %v2001_v63  ;;  %v2033_v46 = vld [vmem:[#allocation23 + $0x178] sm:$0xff]  ;;  %v2040_v26 = vld [vmem:[#allocation23 + $0x1b0] sm:$0xff]  ;;  %v13411_v17 = vld [vmem:[#allocation69_spill] sm:$0xff] }
 0x620   : > { %5744 = vmatpush1.bf16.msra.mxu1 %v13405_v48  ;;  %v7443_v45 = vrot.slane %v7442_v35, 2  ;;  %v7469_v34 = vrot.slane %v7468_v14, 2  ;;  %v8538_v23 = vcombine.low %v1992_v60, %v2000_v9  ;;  %v8540_v3 = vcombine.low %v1993_v55, %v2001_v63  ;;  %v2048_v18 = vld [vmem:[#allocation23 + $0x1f0] sm:$0xff]  ;;  %v2041_v27 = vld [vmem:[#allocation23 + $0x1b8] sm:$0xff]  ;;  %v13414_v48 = vld [vmem:[#allocation72_spill] sm:$0xff] }
 0x621   : > { %5890 = vmatpush1.bf16.msra.mxu0 %v13406_v61  ;;  %5745 = vmatprep.subr.bf16.mxu1 %v9031_v2  ;;  %v7456_v22 = vrot.slane %v7455_v57, 2  ;;  %v7482_v25 = vrot.slane %v7481_v21, 2  ;;  %v8555_v29 = vcombine.high %v2008_v28, %v2016_v54  ;;  %v8557_v10 = vcombine.high %v2009_v19, %v2017_v12  ;;  %v13409_v2 = vld [vmem:[#allocation56_spill] sm:$0xff]  ;;  %v2049_v43 = vld [vmem:[#allocation23 + $0x1f8] sm:$0xff]  ;;  %v2056_v55 = vld [vmem:[#allocation23 + $0x230] sm:$0xff] }
 0x622   : > { %5891 = vmatprep.subr.bf16.mxu0 %v9033_v8  ;;  %v7444_v59 = vmax.f32 %v7442_v35, %v7443_v45  ;;  %v7470_v31 = vmax.f32 %v7468_v14, %v7469_v34  ;;  %v7668_v37 = vunpack.c.0.s8 %v7667_v30  ;;  %v8554_v32 = vcombine.low %v2008_v28, %v2016_v54  ;;  %v2064_v63 = vld [vmem:[#allocation23 + $0x270] sm:$0xff] }
 0x623   : > { %v7457_v47 = vmax.f32 %v7455_v57, %v7456_v22  ;;  %v7483_v52 = vmax.f32 %v7481_v21, %v7482_v25  ;;  %v8556_v50 = vcombine.low %v2009_v19, %v2017_v12  ;;  %v8571_v44 = vcombine.high %v2024_v51, %v2032_v7  ;;  %v2072_v45 = vld [vmem:[#allocation23 + $0x2b0] sm:$0xff]  ;;  %v2081_v22 = vld [vmem:[#allocation23 + $0x2f8] sm:$0xff] }
 0x624   : > { %5746 = vmatpush1.bf16.msra.mxu1 %v9030_v15  ;;  %v7445_v53 = vrot.slane %v7444_v59, 1  ;;  %v7471_v38 = vrot.slane %v7470_v31, 1  ;;  %v8573_v1 = vcombine.high %v2025_v24, %v2033_v46  ;;  %v12105_v13 = vsub.s32 %v7668_v37, %v13409_v2  ;;  %v2057_v15 = vld [vmem:[#allocation23 + $0x238] sm:$0xff]  ;;  %v2080_v34 = vld [vmem:[#allocation23 + $0x2f0] sm:$0xff] }
 0x625   : > { %5892 = vmatpush1.bf16.msra.mxu0 %v9032_v58  ;;  %5934 = vmatprep.subr.bf16.mxu1 %v8539_v11  ;;  %v7458_v56 = vrot.slane %v7457_v47, 1  ;;  %v7484_v36 = vrot.slane %v7483_v52, 1  ;;  %v8570_v8 = vcombine.low %v2024_v51, %v2032_v7  ;;  %v8572_v60 = vcombine.low %v2025_v24, %v2033_v46  ;;  %v2065_v58 = vld [vmem:[#allocation23 + $0x278] sm:$0xff]  ;;  %v2088_v30 = vld [vmem:[#allocation23 + $0x330] sm:$0xff] }
 0x626   : > { %6080 = vmatprep.subr.bf16.mxu0 %v8541_v5  ;;  %v7446_v6 = vmax.f32 %v7444_v59, %v7445_v53  ;;  %v7472_v0 = vmax.f32 %v7470_v31, %v7471_v38  ;;  %13410 = vst [vmem:[#allocation75_spill] sm:$0xff] %v12105_v13  ;;  %v8587_v9 = vcombine.high %v2040_v26, %v2048_v18  ;;  %v2073_v5 = vld [vmem:[#allocation23 + $0x2b8] sm:$0xff]  ;;  %v2096_v19 = vld [vmem:[#allocation23 + $0x370] sm:$0xff] }
 0x627   : > { %5748 = vmatmul.mubr.bf16.vlgmr.msra.gmra.mrb[56].mxu1 %v13407_v4  ;;  %v7459_v33 = vmax.f32 %v7457_v47, %v7458_v56  ;;  %v7485_v49 = vmax.f32 %v7483_v52, %v7484_v36  ;;  %v8589_v40 = vcombine.high %v2041_v27, %v2049_v43  ;;  %v8586_v57 = vcombine.low %v2040_v26, %v2048_v18  ;;  %v13415_v31 = vld [vmem:[#allocation71_spill] sm:$0xff]  ;;  %v13416_v12 = vld [vmem:[#allocation74_spill] sm:$0xff] }
 0x628   : > { %5894 = vmatmul.mubr.bf16.vlgmr.msra.gmra.mrb[64].mxu0 %v13407_v4  ;;  %5757 = vmatprep.mubr.bf16.mxu1 %v13408_v39  ;;  %v8588_v21 = vcombine.low %v2041_v27, %v2049_v43  ;;  %v8603_v61 = vcombine.high %v2056_v55, %v2064_v63  ;;  %v8605_v11 = vcombine.high %v2057_v15, %v2065_v58  ;;  %v2089_v47 = vld [vmem:[#allocation23 + $0x338] sm:$0xff]  ;;  %v2112_v56 = vld [vmem:[#allocation23 + $0x3f0] sm:$0xff] }
 0x629   : > { %5903 = vmatprep.mubr.bf16.mxu0 %v13408_v39  ;;  %5935 = vmatpush1.bf16.msra.mxu1 %v8538_v23  ;;  %v7662_v16 = vcombine.low %v7446_v6, %v7459_v33  ;;  %v7663_v62 = vcombine.low %v7472_v0, %v7485_v49  ;;  %v8602_v28 = vcombine.low %v2056_v55, %v2064_v63  ;;  %v2097_v52 = vld [vmem:[#allocation23 + $0x378] sm:$0xff]  ;;  %v13417_v0 = vld [vmem:[#allocation73_spill] sm:$0xff]  ;;  %v2120_v24 = vld [vmem:[#allocation23 + $0x430] sm:$0xff] }
 0x62a   : > { %6081 = vmatpush1.bf16.msra.mxu0 %v8540_v3  ;;  %5936 = vmatprep.subr.bf16.mxu1 %v8555_v29  ;;  %v8604_v54 = vcombine.low %v2057_v15, %v2065_v58  ;;  %v8619_v59 = vcombine.high %v2072_v45, %v2080_v34  ;;  %v8621_v41 = vcombine.high %v2073_v5, %v2081_v22  ;;  %v2104_v29 = vld [vmem:[#allocation23 + $0x3b0] sm:$0xff]  ;;  %v2105_v36 = vld [vmem:[#allocation23 + $0x3b8] sm:$0xff]  ;;  %v13418_v33 = vld [vmem:[#allocation60_spill] sm:$0xff] }
 0x62b   : > { %6082 = vmatprep.subr.bf16.mxu0 %v8557_v10  ;;  %v12109_v35 = vrot.slane %v7662_v16, %v12105_v13  ;;  %v12112_v14 = vrot.slane %v7663_v62, %v12105_v13  ;;  %v8618_v23 = vcombine.low %v2072_v45, %v2080_v34  ;;  %v8620_v53 = vcombine.low %v2073_v5, %v2081_v22  ;;  %v2113_v10 = vld [vmem:[#allocation23 + $0x3f8] sm:$0xff]  ;;  %v2128_v46 = vld [vmem:[#allocation23 + $0x470] sm:$0xff] }
 0x62c   : > { %v8635_v38 = vcombine.high %v2088_v30, %v2096_v19  ;;  %v8637_v3 = vcombine.high %v2089_v47, %v2097_v52  ;;  %v8634_v51 = vcombine.low %v2088_v30, %v2096_v19  ;;  %v8636_v7 = vcombine.low %v2089_v47, %v2097_v52  ;;  %v2121_v49 = vld [vmem:[#allocation23 + $0x438] sm:$0xff]  ;;  %v2144_v26 = vld [vmem:[#allocation23 + $0x4f0] sm:$0xff] }
 0x62d   : > { %5937 = vmatpush1.bf16.msra.mxu1 %v8554_v32  ;;  %13412 = vst [vmem:[#allocation76_spill] sm:$0xff] %v12109_v35  ;;  %13413 = vst [vmem:[#allocation56_spill] sm:$0xff] %v12112_v14  ;;  %v8651_v6 = vcombine.high %v2104_v29, %v2112_v56  ;;  %v8653_v37 = vcombine.high %v2105_v36, %v2113_v10  ;;  %v2129_v32 = vld [vmem:[#allocation23 + $0x478] sm:$0xff]  ;;  %v8667_v16 = vcombine.high %v2120_v24, %v2128_v46  ;;  %v2160_v55 = vld [vmem:[#allocation23 + $0x570] sm:$0xff] }
 0x62e   : > { %6083 = vmatpush1.bf16.msra.mxu0 %v8556_v50  ;;  %5938 = vmatprep.subr.bf16.mxu1 %v8571_v44  ;;  %v8650_v50 = vcombine.low %v2104_v29, %v2112_v56  ;;  %v8652_v44 = vcombine.low %v2105_v36, %v2113_v10  ;;  %v8669_v62 = vcombine.high %v2121_v49, %v2129_v32  ;;  %v2137_v18 = vld [vmem:[#allocation23 + $0x4b8] sm:$0xff]  ;;  %v2176_v45 = vld [vmem:[#allocation23 + $0x5f0] sm:$0xff] }
 0x62f   : > { %5758 = vmatmul.mubr.bf16.gmra.mrb[60].mxu1 %v13411_v17  ;;  %6084 = vmatprep.subr.bf16.mxu0 %v8573_v1  ;;  %v2136_v1 = vld [vmem:[#allocation23 + $0x4b0] sm:$0xff]  ;;  %v2145_v27 = vld [vmem:[#allocation23 + $0x4f8] sm:$0xff]  ;;  %v8666_v43 = vcombine.low %v2120_v24, %v2128_v46 }
 0x630   : > { %5904 = vmatmul.mubr.bf16.gmra.mrb[68].mxu0 %v13411_v17  ;;  %5767 = vmatprep.mubr.bf16.mxu1 %v13414_v48  ;;  %v2153_v63 = vld [vmem:[#allocation23 + $0x538] sm:$0xff]  ;;  %v8682_v58 = vcombine.low %v2136_v1, %v2144_v26  ;;  %v2192_v30 = vld [vmem:[#allocation23 + $0x670] sm:$0xff] }
 0x631   : > { %5913 = vmatprep.mubr.bf16.mxu0 %v13414_v48  ;;  %5939 = vmatpush1.bf16.msra.mxu1 %v8570_v8  ;;  %v8668_v8 = vcombine.low %v2121_v49, %v2129_v32  ;;  %v2161_v15 = vld [vmem:[#allocation23 + $0x578] sm:$0xff]  ;;  %v2208_v29 = vld [vmem:[#allocation23 + $0x6f0] sm:$0xff] }
 0x632   : > { %6085 = vmatpush1.bf16.msra.mxu0 %v8572_v60  ;;  %5940 = vmatprep.subr.bf16.mxu1 %v8587_v9  ;;  %v8683_v60 = vcombine.high %v2136_v1, %v2144_v26  ;;  %v8685_v9 = vcombine.high %v2137_v18, %v2145_v27  ;;  %v2169_v34 = vld [vmem:[#allocation23 + $0x5b8] sm:$0xff]  ;;  %v2224_v24 = vld [vmem:[#allocation23 + $0x770] sm:$0xff] }
 0x633   : > { %6086 = vmatprep.subr.bf16.mxu0 %v8589_v40  ;;  %v2152_v40 = vld [vmem:[#allocation23 + $0x530] sm:$0xff]  ;;  %v2177_v5 = vld [vmem:[#allocation23 + $0x5f8] sm:$0xff] }
 0x634   : > { %v8698_v22 = vcombine.low %v2152_v40, %v2160_v55  ;;  %v2185_v19 = vld [vmem:[#allocation23 + $0x638] sm:$0xff] }
 0x635   : > { %5941 = vmatpush1.bf16.msra.mxu1 %v8586_v57  ;;  %v8684_v57 = vcombine.low %v2137_v18, %v2145_v27  ;;  %v2193_v47 = vld [vmem:[#allocation23 + $0x678] sm:$0xff] }
 0x636   : > { %6087 = vmatpush1.bf16.msra.mxu0 %v8588_v21  ;;  %5942 = vmatprep.subr.bf16.mxu1 %v8603_v61  ;;  %v8699_v21 = vcombine.high %v2152_v40, %v2160_v55  ;;  %v8701_v61 = vcombine.high %v2153_v63, %v2161_v15  ;;  %v2201_v56 = vld [vmem:[#allocation23 + $0x6b8] sm:$0xff] }
 0x637   : > { %5768 = vmatmul.mubr.bf16.gmra.mrb[64].mxu1 %v13415_v31  ;;  %6088 = vmatprep.subr.bf16.mxu0 %v8605_v11  ;;  %v2168_v11 = vld [vmem:[#allocation23 + $0x5b0] sm:$0xff]  ;;  %v2209_v36 = vld [vmem:[#allocation23 + $0x6f8] sm:$0xff] }
 0x638   : > { %5914 = vmatmul.mubr.bf16.gmra.mrb[72].mxu0 %v13415_v31  ;;  %5777 = vmatprep.mubr.bf16.mxu1 %v13416_v12  ;;  %v8714_v52 = vcombine.low %v2168_v11, %v2176_v45  ;;  %v2217_v46 = vld [vmem:[#allocation23 + $0x738] sm:$0xff]  ;;  %v8748_v32 = vcombine.low %v2201_v56, %v2209_v36 }
 0x639   : > { %5923 = vmatprep.mubr.bf16.mxu0 %v13416_v12  ;;  %5943 = vmatpush1.bf16.msra.mxu1 %v8602_v28  ;;  %v8700_v28 = vcombine.low %v2153_v63, %v2161_v15  ;;  %v2233_v1 = vld [vmem:[#allocation23 + $0x7b8] sm:$0xff]  ;;  %v12356_v12 = vld [vmem:[#allocation23 + $0xef0] sm:$0xff] }
 0x63a   : > { %6089 = vmatpush1.bf16.msra.mxu0 %v8604_v54  ;;  %5944 = vmatprep.subr.bf16.mxu1 %v8619_v59  ;;  %v8715_v54 = vcombine.high %v2168_v11, %v2176_v45  ;;  %v8717_v59 = vcombine.high %v2169_v34, %v2177_v5  ;;  %v2241_v26 = vld [vmem:[#allocation23 + $0x7f8] sm:$0xff] }
 0x63b   : > { %6090 = vmatprep.subr.bf16.mxu0 %v8621_v41  ;;  %v2184_v41 = vld [vmem:[#allocation23 + $0x630] sm:$0xff]  ;;  %v2249_v40 = vld [vmem:[#allocation23 + $0x838] sm:$0xff]  ;;  %v8780_v15 = vcombine.low %v2233_v1, %v2241_v26 }
 0x63c   : > { %v8730_v10 = vcombine.low %v2184_v41, %v2192_v30  ;;  %v2257_v55 = vld [vmem:[#allocation23 + $0x878] sm:$0xff] }
 0x63d   : > { %5945 = vmatpush1.bf16.msra.mxu1 %v8618_v23  ;;  %v8716_v23 = vcombine.low %v2169_v34, %v2177_v5  ;;  %v12131_v11 = vld [vmem:[#allocation23 + $0x8b8] sm:$0xff]  ;;  %v12135_v34 = vld [vmem:[#allocation23 + $0x930] sm:$0xff] }
 0x63e   : > { %6091 = vmatpush1.bf16.msra.mxu0 %v8620_v53  ;;  %5946 = vmatprep.subr.bf16.mxu1 %v8635_v38  ;;  %v8731_v53 = vcombine.high %v2184_v41, %v2192_v30  ;;  %v8733_v38 = vcombine.high %v2185_v19, %v2193_v47  ;;  %v12133_v45 = vld [vmem:[#allocation23 + $0x8f8] sm:$0xff]  ;;  %v12137_v5 = vld [vmem:[#allocation23 + $0x970] sm:$0xff] }
 0x63f   : > { %5778 = vmatmul.mubr.bf16.gmra.mrb[68].mxu1 %v13417_v0  ;;  %6092 = vmatprep.subr.bf16.mxu0 %v8637_v3  ;;  %v2200_v3 = vld [vmem:[#allocation23 + $0x6b0] sm:$0xff]  ;;  %v12252_v25 = vld [vmem:[#allocation23 + $0xbf8] sm:$0xff] }
 0x640   : > { %5924 = vmatmul.mubr.bf16.gmra.mrb[76].mxu0 %v13417_v0  ;;  %5966 = vmatprep.mubr.bf16.mxu1 %v13418_v33  ;;  %v8746_v49 = vcombine.low %v2200_v3, %v2208_v29  ;;  %v12145_v30 = vld [vmem:[#allocation23 + $0x9b0] sm:$0xff]  ;;  %v12352_v0 = vld [vmem:[#allocation23 + $0xe78] sm:$0xff] }
 0x641   : > { %5947 = vmatpush1.bf16.msra.mxu1 %v8634_v51  ;;  %6112 = vmatprep.mubr.bf16.mxu0 %v13418_v33  ;;  %v8732_v51 = vcombine.low %v2185_v19, %v2193_v47  ;;  %v2225_v33 = vld [vmem:[#allocation23 + $0x778] sm:$0xff]  ;;  %v12147_v19 = vld [vmem:[#allocation23 + $0x9f0] sm:$0xff] }
 0x642   : > { %6093 = vmatpush1.bf16.msra.mxu0 %v8636_v7  ;;  %5948 = vmatprep.subr.bf16.mxu1 %v8651_v6  ;;  %v8747_v7 = vcombine.high %v2200_v3, %v2208_v29  ;;  %v8749_v6 = vcombine.high %v2201_v56, %v2209_v36  ;;  %v8764_v27 = vcombine.low %v2217_v46, %v2225_v33  ;;  %v13419_v47 = vld [vmem:[#allocation59_spill] sm:$0xff]  ;;  %v12162_v56 = vld [vmem:[#allocation23 + $0xa30] sm:$0xff]  ;;  %v13420_v36 = vld [vmem:[#allocation61_spill] sm:$0xff] }
 0x643   : > { %6094 = vmatprep.subr.bf16.mxu0 %v8653_v37  ;;  %v2216_v37 = vld [vmem:[#allocation23 + $0x730] sm:$0xff]  ;;  %v12158_v3 = vld [vmem:[#allocation23 + $0x9b8] sm:$0xff]  ;;  %v13431_v31 = vcombine.low %v12145_v30, %v12147_v19 }
 0x644   : > { %v8762_v18 = vcombine.low %v2216_v37, %v2224_v24  ;;  %v12160_v29 = vld [vmem:[#allocation23 + $0x9f8] sm:$0xff] }
 0x645   : > { %5949 = vmatpush1.bf16.msra.mxu1 %v8650_v50  ;;  %v8763_v50 = vcombine.high %v2216_v37, %v2224_v24  ;;  %v12174_v37 = vld [vmem:[#allocation23 + $0xa78] sm:$0xff]  ;;  %v12177_v24 = vsub.s32 4, %v13409_v2 }
 0x646   : > { %6095 = vmatpush1.bf16.msra.mxu0 %v8652_v44  ;;  %5950 = vmatprep.subr.bf16.mxu1 %v8667_v16  ;;  %v8765_v44 = vcombine.high %v2217_v46, %v2225_v33  ;;  %v2232_v16 = vld [vmem:[#allocation23 + $0x7b0] sm:$0xff]  ;;  %v12180_v46 = vsub.s32 6, %v13409_v2  ;;  %v12369_v14 = vld [vmem:[#allocation23 + $0xeb8] sm:$0xff] }
 0x647   : > { %6096 = vmatprep.subr.bf16.mxu0 %v8669_v62  ;;  %v2240_v62 = vld [vmem:[#allocation23 + $0x7f0] sm:$0xff]  ;;  %13421 = vst [vmem:[#allocation60_spill] sm:$0xff] %v12177_v24  ;;  %v12371_v35 = vld [vmem:[#allocation23 + $0xef8] sm:$0xff] }
 0x648   : > { %v8778_v63 = vcombine.low %v2232_v16, %v2240_v62  ;;  %13422 = vst [vmem:[#allocation59_spill] sm:$0xff] %v12180_v46  ;;  %13433 = vst [vmem:[#allocation78_spill] sm:$0xff] %v12371_v35  ;;  %v12433_v4 = vld [vmem:[#allocation23 + $0xf38] sm:$0xff] }
 0x649   : > { %5951 = vmatpush1.bf16.msra.mxu1 %v8666_v43  ;;  %v8779_v43 = vcombine.high %v2232_v16, %v2240_v62  ;;  %v12195_v16 = vld [vmem:[#allocation23 + $0xaf0] sm:$0xff]  ;;  %v8843_v62 = vcombine.high %v12145_v30, %v12147_v19  ;;  %v13434_v30 = vcombine.low %v12158_v3, %v12160_v29  ;;  %v12435_v35 = vld [vmem:[#allocation23 + $0xf78] sm:$0xff] }
 0x64a   : > { %6097 = vmatpush1.bf16.msra.mxu0 %v8668_v8  ;;  %5952 = vmatprep.subr.bf16.mxu1 %v8683_v60  ;;  %v8781_v8 = vcombine.high %v2233_v1, %v2241_v26  ;;  %v2248_v60 = vld [vmem:[#allocation23 + $0x830] sm:$0xff]  ;;  %v13426_v26 = vld [vmem:[#allocation64_spill] sm:$0xff] }
 0x64b   : > { %6098 = vmatprep.subr.bf16.mxu0 %v8685_v9  ;;  %v2256_v9 = vld [vmem:[#allocation23 + $0x870] sm:$0xff]  ;;  %13432 = vst [vmem:[#allocation64_spill] sm:$0xff] %v12369_v14 }
 0x64c   : > { %v13425_v1 = vld [vmem:[#allocation62_spill] sm:$0xff] }
 0x64d   : > { %5953 = vmatpush1.bf16.msra.mxu1 %v8682_v58  ;;  %v8795_v58 = vcombine.high %v2248_v60, %v2256_v9  ;;  %13430 = vst [vmem:[#allocation62_spill] sm:$0xff] %v12356_v12 }
 0x64e   : > { %6099 = vmatpush1.bf16.msra.mxu0 %v8684_v57  ;;  %5954 = vmatprep.subr.bf16.mxu1 %v8699_v21  ;;  %v8797_v57 = vcombine.high %v2249_v40, %v2257_v55  ;;  %v12127_v21 = vld [vmem:[#allocation23 + $0x8b0] sm:$0xff] }
 0x64f   : > { %6100 = vmatprep.subr.bf16.mxu0 %v8701_v61  ;;  %v12129_v61 = vld [vmem:[#allocation23 + $0x8f0] sm:$0xff] }
 0x650   : > { %v8811_v41 = vcombine.high %v12127_v21, %v12129_v61 }
 0x651   : > { %5955 = vmatpush1.bf16.msra.mxu1 %v8698_v22  ;;  %v8794_v22 = vcombine.low %v2248_v60, %v2256_v9  ;;  %v12215_v9 = vld [vmem:[#allocation23 + $0xb30] sm:$0xff] }
 0x652   : > { %6101 = vmatpush1.bf16.msra.mxu0 %v8700_v28  ;;  %5956 = vmatprep.subr.bf16.mxu1 %v8715_v54  ;;  %v12139_v28 = vld [vmem:[#allocation23 + $0x938] sm:$0xff]  ;;  %v12263_v60 = vld [vmem:[#allocation23 + $0xc70] sm:$0xff] }
 0x653   : > { %6102 = vmatprep.subr.bf16.mxu0 %v8717_v59  ;;  %v12141_v54 = vld [vmem:[#allocation23 + $0x978] sm:$0xff]  ;;  %v8796_v59 = vcombine.low %v2249_v40, %v2257_v55  ;;  %v12217_v40 = vld [vmem:[#allocation23 + $0xb70] sm:$0xff] }
 0x654   : > { %v8829_v33 = vcombine.high %v12139_v28, %v12141_v54  ;;  %v12219_v55 = vld [vmem:[#allocation23 + $0xb38] sm:$0xff] }
 0x655   : > { %5957 = vmatpush1.bf16.msra.mxu1 %v8714_v52  ;;  %v8810_v52 = vcombine.low %v12127_v21, %v12129_v61  ;;  %v12254_v61 = vld [vmem:[#allocation23 + $0xc30] sm:$0xff] }
 0x656   : > { %6103 = vmatpush1.bf16.msra.mxu0 %v8716_v23  ;;  %5958 = vmatprep.subr.bf16.mxu1 %v8731_v53  ;;  %v8812_v23 = vcombine.low %v12131_v11, %v12133_v45  ;;  %v8813_v53 = vcombine.high %v12131_v11, %v12133_v45  ;;  %v12232_v11 = vld [vmem:[#allocation23 + $0xb78] sm:$0xff]  ;;  %v12234_v45 = vld [vmem:[#allocation23 + $0xbb0] sm:$0xff] }
 0x657   : > { %6104 = vmatprep.subr.bf16.mxu0 %v8733_v38  ;;  %v12294_v38 = vld [vmem:[#allocation23 + $0xd70] sm:$0xff] }
 0x659   : > { %5959 = vmatpush1.bf16.msra.mxu1 %v8730_v10  ;;  %v8827_v10 = vcombine.high %v12135_v34, %v12137_v5 }
 0x65a   : > { %6105 = vmatpush1.bf16.msra.mxu0 %v8732_v51  ;;  %5960 = vmatprep.subr.bf16.mxu1 %v8747_v7  ;;  %v12170_v7 = vld [vmem:[#allocation23 + $0xa70] sm:$0xff] }
 0x65b   : > { %6106 = vmatprep.subr.bf16.mxu0 %v8749_v6  ;;  %v12172_v6 = vld [vmem:[#allocation23 + $0xa38] sm:$0xff]  ;;  %v12292_v51 = vld [vmem:[#allocation23 + $0xd30] sm:$0xff] }
 0x65d   : > { %5961 = vmatpush1.bf16.msra.mxu1 %v8746_v49  ;;  %v12280_v49 = vld [vmem:[#allocation23 + $0xcb8] sm:$0xff] }
 0x65e   : > { %6107 = vmatpush1.bf16.msra.mxu0 %v8748_v32  ;;  %5962 = vmatprep.subr.bf16.mxu1 %v8763_v50  ;;  %v12188_v32 = vsub.s32 5, %v13409_v2  ;;  %v12191_v50 = vsub.s32 7, %v13409_v2  ;;  %v12278_v2 = vld [vmem:[#allocation23 + $0xcf0] sm:$0xff] }
 0x65f   : > { %6108 = vmatprep.subr.bf16.mxu0 %v8765_v44  ;;  %v12193_v44 = vld [vmem:[#allocation23 + $0xab0] sm:$0xff] }
 0x660   : > { %13423 = vst [vmem:[#allocation61_spill] sm:$0xff] %v12188_v32  ;;  %13424 = vst [vmem:[#allocation77_spill] sm:$0xff] %v12191_v50  ;;  %v13443_v14 = vcombine.low %v12193_v44, %v12195_v16 }
 0x661   : > { %5963 = vmatpush1.bf16.msra.mxu1 %v8762_v18  ;;  %v12203_v18 = vld [vmem:[#allocation23 + $0xab8] sm:$0xff] }
 0x662   : > { %6109 = vmatpush1.bf16.msra.mxu0 %v8764_v27  ;;  %5964 = vmatprep.subr.bf16.mxu1 %v8779_v43  ;;  %v12205_v27 = vld [vmem:[#allocation23 + $0xaf8] sm:$0xff] }
 0x663   : > { %6110 = vmatprep.subr.bf16.mxu0 %v8781_v8  ;;  %v12267_v43 = vld [vmem:[#allocation23 + $0xc78] sm:$0xff]  ;;  %v12276_v8 = vld [vmem:[#allocation23 + $0xcb0] sm:$0xff] }
 0x665   : > { %5965 = vmatpush1.bf16.msra.mxu1 %v8778_v63  ;;  %v9904_v63 = vld [vmem:[#allocation25] sm:$0xff] }
 0x666   : > { %6111 = vmatpush1.bf16.msra.mxu0 %v8780_v15  ;;  %6007 = vmatprep.subr.bf16.mxu1 %v8795_v58  ;;  %v12222_v15 = vrot.slane %v9904_v63, %v12177_v24  ;;  %v9905_v58 = vld [vmem:[#allocation26] sm:$0xff]  ;;  %v12228_v21 = vrot.slane %v9904_v63, %v12180_v46 }
 0x667   : > { %6153 = vmatprep.subr.bf16.mxu0 %v8797_v57  ;;  %v12225_v57 = vrot.slane %v9905_v58, %v12177_v24  ;;  %v12342_v24 = vld [vmem:[#allocation23 + $0xe38] sm:$0xff] }
 0x668   : > { %5967 = vmatmul.mubr.bf16.vlgmr.msra.gmra.mrb[72].mxu1 %v13419_v47 }
 0x669   : > { %6113 = vmatmul.mubr.bf16.vlgmr.msra.gmra.mrb[80].mxu0 %v13419_v47  ;;  %5976 = vmatprep.mubr.bf16.mxu1 %v13420_v36  ;;  %v12245_v47 = vrot.slane %v9905_v58, %v12188_v32 }
 0x66a   : > { %6008 = vmatpush1.bf16.msra.mxu1 %v8794_v22  ;;  %6122 = vmatprep.mubr.bf16.mxu0 %v13420_v36  ;;  %v12236_v22 = vld [vmem:[#allocation23 + $0xbf0] sm:$0xff]  ;;  %v12250_v36 = vld [vmem:[#allocation23 + $0xbb8] sm:$0xff] }
 0x66b   : > { %6154 = vmatpush1.bf16.msra.mxu0 %v8796_v59  ;;  %6009 = vmatprep.subr.bf16.mxu1 %v8811_v41  ;;  %v12239_v59 = vrot.slane %v9905_v58, %v12180_v46  ;;  %v12242_v41 = vrot.slane %v9904_v63, %v12188_v32  ;;  %v12308_v32 = vld [vmem:[#allocation23 + $0xd78] sm:$0xff]  ;;  %v12310_v46 = vld [vmem:[#allocation23 + $0xdb0] sm:$0xff] }
 0x66c   : > { %6155 = vmatprep.subr.bf16.mxu0 %v8813_v53  ;;  %v12248_v53 = vrot.slane %v9904_v63, %v12191_v50  ;;  %v12265_v63 = vld [vmem:[#allocation23 + $0xc38] sm:$0xff] }
 0x66e   : > { %6010 = vmatpush1.bf16.msra.mxu1 %v8810_v52  ;;  %v12257_v52 = vrot.slane %v9905_v58, %v12191_v50  ;;  %v12290_v58 = vld [vmem:[#allocation23 + $0xcf8] sm:$0xff]  ;;  %v5603_v19 = vpop.f32.mrb[48].mxu0 }
 0x66f   : > { %6156 = vmatpush1.bf16.msra.mxu0 %v8812_v23  ;;  %6011 = vmatprep.subr.bf16.mxu1 %v8827_v10  ;;  %v12306_v50 = vld [vmem:[#allocation23 + $0xd38] sm:$0xff]  ;;  %v12321_v23 = vld [vmem:[#allocation23 + $0xdf0] sm:$0xff]  ;;  %v5605_v17 = vpop.f32.mrb[49].mxu0 }
 0x670   : > { %5977 = vmatmul.mubr.bf16.gmra.mrb[76].mxu1 %v13425_v1  ;;  %6157 = vmatprep.subr.bf16.mxu0 %v8829_v33  ;;  %v12323_v10 = vld [vmem:[#allocation23 + $0xdb8] sm:$0xff] }
 0x671   : > { %6123 = vmatmul.mubr.bf16.gmra.mrb[84].mxu0 %v13425_v1  ;;  %5986 = vmatprep.mubr.bf16.mxu1 %v13426_v26  ;;  %v13427_v1 = vcombine.low %v12135_v34, %v12137_v5  ;;  %v13428_v34 = vcombine.low %v12139_v28, %v12141_v54  ;;  %v12325_v33 = vld [vmem:[#allocation23 + $0xdf8] sm:$0xff]  ;;  %v13429_v28 = vcombine.high %v12158_v3, %v12160_v29  ;;  %v12338_v5 = vld [vmem:[#allocation23 + $0xe30] sm:$0xff]  ;;  %v5457_v3 = vpop.f32.mrb[40].mxu1  ;;  %v13438_v54 = vld [vmem:[#allocation65_spill] sm:$0xff] }
 0x672   : > { %6132 = vmatprep.mubr.bf16.mxu0 %v13426_v26  ;;  %v12340_v26 = vld [vmem:[#allocation23 + $0xe70] sm:$0xff]  ;;  %v5459_v48 = vpop.f32.mrb[41].mxu1 }
 0x673   : > { %6012 = vmatpush1.bf16.msra.mxu1 %v13427_v1  ;;  %6158 = vmatpush1.bf16.msra.mxu0 %v13428_v34  ;;  %v12354_v1 = vld [vmem:[#allocation23 + $0xeb0] sm:$0xff]  ;;  %v6314_v34 = vmul.f32 %v12222_v15, %v5457_v3  ;;  %v5461_v3 = vpop.f32.mrb[42].mxu1 }
 0x674   : > { %6013 = vmatprep.subr.bf16.mxu1 %v8843_v62  ;;  %6159 = vmatprep.subr.bf16.mxu0 %v13429_v28  ;;  %v13436_v62 = vld [vmem:[#allocation63_spill] sm:$0xff]  ;;  %v13437_v28 = vcombine.high %v12172_v6, %v12174_v37 }
 0x675   : > { %v6526_v29 = vadd.f32 %v12225_v57, %v6314_v34 }
 0x677   : > { %6014 = vmatpush1.bf16.msra.mxu1 %v13431_v31  ;;  %6160 = vmatpush1.bf16.msra.mxu0 %v13434_v30  ;;  %v13435_v31 = vcombine.high %v12162_v56, %v12170_v7  ;;  %v13439_v30 = vcombine.low %v12162_v56, %v12170_v7  ;;  %v6317_v56 = vmul.f32 %v12248_v53, %v5605_v17 }
 0x678   : > { %5987 = vmatmul.mubr.bf16.gmra.mrb[80].mxu1 %v13436_v62  ;;  %6161 = vmatprep.subr.bf16.mxu0 %v13437_v28  ;;  %v13440_v28 = vcombine.low %v12172_v6, %v12174_v37  ;;  %v13441_v7 = vcombine.high %v12193_v44, %v12195_v16  ;;  %v13442_v6 = vcombine.high %v12203_v18, %v12205_v27 }
 0x679   : > { %6015 = vmatprep.subr.bf16.mxu1 %v13435_v31  ;;  %6133 = vmatmul.mubr.bf16.gmra.mrb[88].mxu0 %v13436_v62  ;;  %v6316_v62 = vmul.f32 %v12228_v21, %v5603_v19  ;;  %v6315_v31 = vmul.f32 %v12242_v41, %v5459_v48  ;;  %v5607_v48 = vpop.f32.mrb[50].mxu0  ;;  %v5463_v19 = vpop.f32.mrb[43].mxu1  ;;  %v6529_v39 = vadd.f32 %v12257_v52, %v6317_v56 }
 0x67a   : > { %5996 = vmatprep.mubr.bf16.mxu1 %v13438_v54  ;;  %6142 = vmatprep.mubr.bf16.mxu0 %v13438_v54  ;;  %v6330_v54 = vmul.f32 %v12222_v15, %v5461_v3  ;;  %v6332_v37 = vmul.f32 %v12228_v21, %v5607_v48  ;;  %v6331_v17 = vmul.f32 %v12242_v41, %v5463_v19  ;;  %v5609_v34 = vpop.f32.mrb[51].mxu0  ;;  %v6654_v3 = vmax.f32 %v6526_v29, 0.0 }
 0x67b   : > { %6016 = vmatpush1.bf16.msra.mxu1 %v13439_v30  ;;  %6162 = vmatpush1.bf16.msra.mxu0 %v13440_v28  ;;  %v6528_v30 = vadd.f32 %v12239_v59, %v6316_v62  ;;  %v6527_v13 = vadd.f32 %v12245_v47, %v6315_v31  ;;  %v12426_v28 = vld [vmem:[#allocation23 + $0xf30] sm:$0xff]  ;;  %v6333_v31 = vmul.f32 %v12248_v53, %v5609_v34  ;;  %v6657_v12 = vmax.f32 %v6529_v39, 0.0 }
 0x67c   : > { %6017 = vmatprep.subr.bf16.mxu1 %v13441_v7  ;;  %6163 = vmatprep.subr.bf16.mxu0 %v13442_v6  ;;  %v12428_v7 = vld [vmem:[#allocation23 + $0xf70] sm:$0xff]  ;;  %v6542_v62 = vadd.f32 %v12225_v57, %v6330_v54  ;;  %v6544_v19 = vadd.f32 %v12239_v59, %v6332_v37  ;;  %v6543_v29 = vadd.f32 %v12245_v47, %v6331_v17 }
 0x67d   : > { %v6656_v6 = vmax.f32 %v6528_v30, 0.0  ;;  %v6655_v48 = vmax.f32 %v6527_v13, 0.0  ;;  %v13444_v54 = vcombine.low %v12203_v18, %v12205_v27  ;;  %v6545_v34 = vadd.f32 %v12257_v52, %v6333_v31  ;;  %v5467_v18 = vpop.f32.mrb[44].mxu1 }
 0x67e   : > { %v6670_v56 = vmax.f32 %v6542_v62, 0.0  ;;  %v13445_v30 = vcombine.high %v12215_v9, %v12217_v40  ;;  %v6671_v16 = vmax.f32 %v6543_v29, 0.0  ;;  %v13446_v39 = vcombine.high %v12219_v55, %v12232_v11  ;;  %v5469_v29 = vpop.f32.mrb[45].mxu1 }
 0x67f   : > { %6018 = vmatpush1.bf16.msra.mxu1 %v13443_v14  ;;  %6164 = vmatpush1.bf16.msra.mxu0 %v13444_v54  ;;  %v9205_v44 = vpack.c.bf16 %v6655_v48, %v6654_v3  ;;  %v6672_v14 = vmax.f32 %v6544_v19, 0.0  ;;  %v9206_v37 = vpack.c.bf16 %v6657_v12, %v6656_v6  ;;  %v6673_v62 = vmax.f32 %v6545_v34, 0.0  ;;  %v5613_v19 = vpop.f32.mrb[52].mxu0  ;;  %v5471_v34 = vpop.f32.mrb[46].mxu1 }
 0x680   : > { %6019 = vmatprep.subr.bf16.mxu1 %v13445_v30  ;;  %5997 = vmatmul.mubr.bf16.gmra.mrb[84].mxu1 %v11437_v42  ;;  %v7486_v17 = vmax.f32 %v6654_v3, %v6670_v56  ;;  %v6346_v31 = vmul.f32 %v12222_v15, %v5467_v18  ;;  %v9213_v30 = vpack.c.bf16 %v6671_v16, %v6670_v56  ;;  %v5615_v3 = vpop.f32.mrb[53].mxu0 }
 0x681   : > { %6165 = vmatprep.subr.bf16.mxu0 %v13446_v39  ;;  %6143 = vmatmul.mubr.bf16.gmra.mrb[92].mxu0 %v11437_v42  ;;  %7372 = vst [vmem:[%s11940_s19 + $0x10] sm:$0xff] %v9205_v44  ;;  %v7512_v54 = vmax.f32 %v6656_v6, %v6672_v14  ;;  %v7499_v39 = vmax.f32 %v6655_v48, %v6671_v16  ;;  %7373 = vst [vmem:[%s11940_s19 + $0x18] sm:$0xff] %v9206_v37  ;;  %v5617_v56 = vpop.f32.mrb[54].mxu0  ;;  %v5473_v44 = vpop.f32.mrb[47].mxu1 }
 0x682   : > { %6039 = vmatprep.mubr.bf16.mxu1 %v11505_v20  ;;  %v13447_v27 = vcombine.low %v12215_v9, %v12217_v40  ;;  %6185 = vmatprep.mubr.bf16.mxu0 %v11505_v20  ;;  %v9214_v42 = vpack.c.bf16 %v6673_v62, %v6672_v14  ;;  %v7525_v13 = vmax.f32 %v6657_v12, %v6673_v62 }
 0x683   : > { %v13448_v18 = vcombine.low %v12219_v55, %v12232_v11  ;;  %v6558_v6 = vadd.f32 %v12225_v57, %v6346_v31  ;;  %v6348_v48 = vmul.f32 %v12228_v21, %v5613_v19  ;;  %7380 = vst [vmem:[%s11940_s19 + $0x50] sm:$0xff] %v9213_v30  ;;  %v6347_v9 = vmul.f32 %v12242_v41, %v5469_v29  ;;  %v5619_v11 = vpop.f32.mrb[55].mxu0 }
 0x684   : > { %6020 = vmatpush1.bf16.msra.mxu1 %v13447_v27  ;;  %v6349_v20 = vmul.f32 %v12248_v53, %v5615_v3  ;;  %v13449_v40 = vcombine.high %v12234_v45, %v12236_v22  ;;  %v13450_v12 = vcombine.high %v12250_v36, %v12252_v25  ;;  %v6362_v55 = vmul.f32 %v12222_v15, %v5471_v34 }
 0x685   : > { %6166 = vmatpush1.bf16.msra.mxu0 %v13448_v18  ;;  %7381 = vst [vmem:[%s11940_s19 + $0x58] sm:$0xff] %v9214_v42  ;;  %v6686_v14 = vmax.f32 %v6558_v6, 0.0  ;;  %v6560_v16 = vadd.f32 %v12239_v59, %v6348_v48  ;;  %v6364_v27 = vmul.f32 %v12228_v21, %v5617_v56  ;;  %v6363_v37 = vmul.f32 %v12242_v41, %v5473_v44 }
 0x686   : > { %6021 = vmatprep.subr.bf16.mxu1 %v13449_v40  ;;  %6167 = vmatprep.subr.bf16.mxu0 %v13450_v12  ;;  %v6559_v62 = vadd.f32 %v12245_v47, %v6347_v9  ;;  %v6561_v31 = vadd.f32 %v12257_v52, %v6349_v20  ;;  %v6574_v19 = vadd.f32 %v12225_v57, %v6362_v55  ;;  %v5477_v9 = vpop.f32.mrb[48].mxu1  ;;  %v5623_v12 = vpop.f32.mrb[56].mxu0 }
 0x687   : > { %v13451_v29 = vcombine.low %v12234_v45, %v12236_v22  ;;  %v6365_v30 = vmul.f32 %v12248_v53, %v5619_v11  ;;  %v7487_v3 = vmax.f32 %v7486_v17, %v6686_v14  ;;  %v6688_v34 = vmax.f32 %v6560_v16, 0.0  ;;  %v5479_v55 = vpop.f32.mrb[49].mxu1 }
 0x688   : > { %v6576_v42 = vadd.f32 %v12239_v59, %v6364_v27  ;;  %v13452_v18 = vcombine.low %v12250_v36, %v12252_v25  ;;  %v6575_v6 = vadd.f32 %v12245_v47, %v6363_v37  ;;  %v13453_v48 = vcombine.high %v12254_v61, %v12263_v60 }
 0x689   : > { %6022 = vmatpush1.bf16.msra.mxu1 %v13451_v29  ;;  %v6687_v56 = vmax.f32 %v6559_v62, 0.0  ;;  %v6689_v44 = vmax.f32 %v6561_v31, 0.0  ;;  %v6702_v45 = vmax.f32 %v6574_v19, 0.0  ;;  %v6577_v22 = vadd.f32 %v12257_v52, %v6365_v30  ;;  %v5625_v31 = vpop.f32.mrb[57].mxu0  ;;  %v5481_v19 = vpop.f32.mrb[50].mxu1 }
 0x68a   : > { %6168 = vmatpush1.bf16.msra.mxu0 %v13452_v18  ;;  %6023 = vmatprep.subr.bf16.mxu1 %v13453_v48  ;;  %v13454_v17 = vcombine.high %v12265_v63, %v12267_v43  ;;  %v7513_v20 = vmax.f32 %v7512_v54, %v6688_v34  ;;  %v6704_v40 = vmax.f32 %v6576_v42, 0.0  ;;  %v6703_v25 = vmax.f32 %v6575_v6, 0.0 }
 0x68b   : > { %v6378_v36 = vmul.f32 %v12222_v15, %v5477_v9  ;;  %v9221_v11 = vpack.c.bf16 %v6687_v56, %v6686_v14  ;;  %v7500_v16 = vmax.f32 %v7499_v39, %v6687_v56  ;;  %v9222_v27 = vpack.c.bf16 %v6689_v44, %v6688_v34  ;;  %v5483_v14 = vpop.f32.mrb[51].mxu1 }
 0x68c   : > { %6169 = vmatprep.subr.bf16.mxu0 %v13454_v17  ;;  %v7526_v37 = vmax.f32 %v7525_v13, %v6689_v44  ;;  %v13455_v62 = vcombine.low %v12254_v61, %v12263_v60  ;;  %v7488_v29 = vmax.f32 %v7487_v3, %v6702_v45  ;;  %v7514_v54 = vmax.f32 %v7513_v20, %v6704_v40  ;;  %v5627_v13 = vpop.f32.mrb[58].mxu0 }
 0x68d   : > { %v9229_v30 = vpack.c.bf16 %v6703_v25, %v6702_v45  ;;  %v6705_v42 = vmax.f32 %v6577_v22, 0.0  ;;  %v13456_v18 = vcombine.low %v12265_v63, %v12267_v43  ;;  %v13457_v39 = vcombine.high %v12276_v8, %v12278_v2  ;;  %7388 = vst [vmem:[%s11940_s19 + $0x90] sm:$0xff] %v9221_v11  ;;  %7389 = vst [vmem:[%s11940_s19 + $0x98] sm:$0xff] %v9222_v27  ;;  %v5629_v63 = vpop.f32.mrb[59].mxu0 }
 0x68e   : > { %6024 = vmatpush1.bf16.msra.mxu1 %v13455_v62  ;;  %v7501_v60 = vmax.f32 %v7500_v16, %v6703_v25  ;;  %v6590_v61 = vadd.f32 %v12225_v57, %v6378_v36  ;;  %v6380_v3 = vmul.f32 %v12228_v21, %v5623_v12  ;;  %v6379_v34 = vmul.f32 %v12242_v41, %v5479_v55  ;;  %v5487_v62 = vpop.f32.mrb[52].mxu1 }
 0x68f   : > { %6170 = vmatpush1.bf16.msra.mxu0 %v13456_v18  ;;  %6025 = vmatprep.subr.bf16.mxu1 %v13457_v39  ;;  %v13458_v43 = vcombine.high %v12280_v49, %v12290_v58  ;;  %7396 = vst [vmem:[%s11940_s19 + $0xd0] sm:$0xff] %v9229_v30  ;;  %v9230_v6 = vpack.c.bf16 %v6705_v42, %v6704_v40  ;;  %v5489_v30 = vpop.f32.mrb[53].mxu1 }
 0x690   : > { %v7527_v48 = vmax.f32 %v7526_v37, %v6705_v42  ;;  %v6381_v56 = vmul.f32 %v12248_v53, %v5625_v31  ;;  %v6394_v44 = vmul.f32 %v12222_v15, %v5481_v19  ;;  %v6718_v45 = vmax.f32 %v6590_v61, 0.0 }
 0x691   : > { %6171 = vmatprep.subr.bf16.mxu0 %v13458_v43  ;;  %v6592_v22 = vadd.f32 %v12239_v59, %v6380_v3  ;;  %v6591_v17 = vadd.f32 %v12245_v47, %v6379_v34  ;;  %v6396_v9 = vmul.f32 %v12228_v21, %v5627_v13  ;;  %v13459_v20 = vcombine.low %v12276_v8, %v12278_v2  ;;  %v5491_v3 = vpop.f32.mrb[54].mxu1 }
 0x692   : > { %7397 = vst [vmem:[%s11940_s19 + $0xd8] sm:$0xff] %v9230_v6  ;;  %v6593_v25 = vadd.f32 %v12257_v52, %v6381_v56  ;;  %v6606_v40 = vadd.f32 %v12225_v57, %v6394_v44  ;;  %v13460_v36 = vcombine.low %v12280_v49, %v12290_v58  ;;  %v6395_v12 = vmul.f32 %v12242_v41, %v5483_v14  ;;  %v5493_v44 = vpop.f32.mrb[55].mxu1 }
 0x693   : > { %6026 = vmatpush1.bf16.msra.mxu1 %v13459_v20  ;;  %v6397_v55 = vmul.f32 %v12248_v53, %v5629_v63  ;;  %v7489_v11 = vmax.f32 %v7488_v29, %v6718_v45  ;;  %v6720_v16 = vmax.f32 %v6592_v22, 0.0  ;;  %v6719_v27 = vmax.f32 %v6591_v17, 0.0  ;;  %v5633_v29 = vpop.f32.mrb[60].mxu0 }
 0x694   : > { %6172 = vmatpush1.bf16.msra.mxu0 %v13460_v36  ;;  %v6608_v37 = vadd.f32 %v12239_v59, %v6396_v9  ;;  %v13461_v2 = vcombine.high %v12292_v51, %v12294_v38  ;;  %v13462_v8 = vcombine.high %v12306_v50, %v12308_v32  ;;  %v6721_v49 = vmax.f32 %v6593_v25, 0.0  ;;  %v5635_v61 = vpop.f32.mrb[61].mxu0 }
 0x695   : > { %v6734_v58 = vmax.f32 %v6606_v40, 0.0  ;;  %v6607_v31 = vadd.f32 %v12245_v47, %v6395_v12  ;;  %v6609_v19 = vadd.f32 %v12257_v52, %v6397_v55  ;;  %v7515_v42 = vmax.f32 %v7514_v54, %v6720_v16 }
 0x696   : > { %6027 = vmatprep.subr.bf16.mxu1 %v13461_v2  ;;  %6173 = vmatprep.subr.bf16.mxu0 %v13462_v8  ;;  %v9237_v18 = vpack.c.bf16 %v6719_v27, %v6718_v45  ;;  %v7502_v39 = vmax.f32 %v7501_v60, %v6719_v27  ;;  %v6736_v13 = vmax.f32 %v6608_v37, 0.0  ;;  %v13463_v14 = vcombine.low %v12292_v51, %v12294_v38  ;;  %v5637_v60 = vpop.f32.mrb[62].mxu0 }
 0x697   : > { %v9238_v34 = vpack.c.bf16 %v6721_v49, %v6720_v16  ;;  %v7528_v43 = vmax.f32 %v7527_v48, %v6721_v49  ;;  %v7490_v63 = vmax.f32 %v7489_v11, %v6734_v58  ;;  %v6735_v6 = vmax.f32 %v6607_v31, 0.0 }
 0x698   : > { %6028 = vmatpush1.bf16.msra.mxu1 %v13463_v14  ;;  %v13464_v56 = vcombine.low %v12306_v50, %v12308_v32  ;;  %v13465_v54 = vcombine.high %v12310_v46, %v12321_v23  ;;  %7404 = vst [vmem:[%s11940_s19 + $0x110] sm:$0xff] %v9237_v18  ;;  %v7516_v38 = vmax.f32 %v7515_v42, %v6736_v13  ;;  %v6737_v51 = vmax.f32 %v6609_v19, 0.0  ;;  %v5639_v32 = vpop.f32.mrb[63].mxu0 }
 0x699   : > { %v6410_v45 = vmul.f32 %v12222_v15, %v5487_v62  ;;  %v6412_v48 = vmul.f32 %v12228_v21, %v5633_v29  ;;  %v13466_v22 = vcombine.high %v12323_v10, %v12325_v33  ;;  %7405 = vst [vmem:[%s11940_s19 + $0x118] sm:$0xff] %v9238_v34  ;;  %v9245_v50 = vpack.c.bf16 %v6735_v6, %v6734_v58  ;;  %v2488_v34 = vld [vmem:[#allocation23 + $0xfb0] sm:$0xff] }
 0x69a   : > { %6174 = vmatpush1.bf16.msra.mxu0 %v13464_v56  ;;  %6029 = vmatprep.subr.bf16.mxu1 %v13465_v54  ;;  %v7503_v17 = vmax.f32 %v7502_v39, %v6735_v6  ;;  %v6411_v9 = vmul.f32 %v12242_v41, %v5489_v30  ;;  %v6413_v20 = vmul.f32 %v12248_v53, %v5635_v61  ;;  %v13473_v61 = vld [vmem:[#allocation62_spill] sm:$0xff]  ;;  %v2497_v6 = vld [vmem:[#allocation23 + $0xff8] sm:$0xff] }
 0x69b   : > { %6175 = vmatprep.subr.bf16.mxu0 %v13466_v22  ;;  %v9246_v25 = vpack.c.bf16 %v6737_v51, %v6736_v13  ;;  %v7529_v40 = vmax.f32 %v7528_v43, %v6737_v51  ;;  %v6622_v36 = vadd.f32 %v12225_v57, %v6410_v45  ;;  %v6624_v12 = vadd.f32 %v12239_v59, %v6412_v48  ;;  %v2496_v43 = vld [vmem:[#allocation23 + $0xff0] sm:$0xff] }
 0x69c   : > { %v13467_v55 = vcombine.low %v12310_v46, %v12321_v23  ;;  %7412 = vst [vmem:[%s11940_s19 + $0x150] sm:$0xff] %v9245_v50  ;;  %v6623_v11 = vadd.f32 %v12245_v47, %v6411_v9  ;;  %v6625_v16 = vadd.f32 %v12257_v52, %v6413_v20  ;;  %v6426_v27 = vmul.f32 %v12222_v15, %v5491_v3  ;;  %v13475_v3 = vld [vmem:[#allocation64_spill] sm:$0xff] }
 0x69d   : > { %v6428_v37 = vmul.f32 %v12228_v21, %v5637_v60  ;;  %v13468_v2 = vcombine.low %v12323_v10, %v12325_v33  ;;  %7413 = vst [vmem:[%s11940_s19 + $0x158] sm:$0xff] %v9246_v25  ;;  %v6750_v8 = vmax.f32 %v6622_v36, 0.0  ;;  %v6752_v62 = vmax.f32 %v6624_v12, 0.0 }
 0x69e   : > { %6030 = vmatpush1.bf16.msra.mxu1 %v13467_v55  ;;  %v6427_v49 = vmul.f32 %v12242_v41, %v5493_v44  ;;  %v6429_v46 = vmul.f32 %v12248_v53, %v5639_v32  ;;  %v13469_v23 = vcombine.high %v12338_v5, %v12340_v26  ;;  %v13470_v15 = vcombine.high %v12342_v24, %v12352_v0 }
 0x69f   : > { %6176 = vmatpush1.bf16.msra.mxu0 %v13468_v2  ;;  %v6751_v21 = vmax.f32 %v6623_v11, 0.0  ;;  %v6753_v58 = vmax.f32 %v6625_v16, 0.0  ;;  %v6638_v10 = vadd.f32 %v12225_v57, %v6426_v27  ;;  %v6640_v33 = vadd.f32 %v12239_v59, %v6428_v37 }
 0x6a0   : > { %6031 = vmatprep.subr.bf16.mxu1 %v13469_v23  ;;  %6177 = vmatprep.subr.bf16.mxu0 %v13470_v15  ;;  %v7491_v31 = vmax.f32 %v7490_v63, %v6750_v8  ;;  %v7517_v19 = vmax.f32 %v7516_v38, %v6752_v62  ;;  %v6639_v41 = vadd.f32 %v12245_v47, %v6427_v49  ;;  %v2489_v63 = vld [vmem:[#allocation23 + $0xfb8] sm:$0xff]  ;;  %v13482_v15 = vld [vmem:[#allocation68_spill] sm:$0xff] }
 0x6a1   : > { %v6641_v53 = vadd.f32 %v12257_v52, %v6429_v46  ;;  %v13471_v29 = vcombine.low %v12338_v5, %v12340_v26  ;;  %v9253_v30 = vpack.c.bf16 %v6751_v21, %v6750_v8  ;;  %v7504_v42 = vmax.f32 %v7503_v17, %v6751_v21  ;;  %v13476_v5 = vld [vmem:[#allocation78_spill] sm:$0xff] }
 0x6a2   : > { %v9254_v18 = vpack.c.bf16 %v6753_v58, %v6752_v62  ;;  %v7530_v39 = vmax.f32 %v7529_v40, %v6753_v58  ;;  %v13472_v57 = vcombine.low %v12342_v24, %v12352_v0  ;;  %v6766_v59 = vmax.f32 %v6638_v10, 0.0 }
 0x6a3   : > { %6032 = vmatpush1.bf16.msra.mxu1 %v13471_v29  ;;  %v6768_v13 = vmax.f32 %v6640_v33, 0.0  ;;  %v6767_v14 = vmax.f32 %v6639_v41, 0.0  ;;  %v6769_v47 = vmax.f32 %v6641_v53, 0.0  ;;  %v13474_v52 = vcombine.high %v12354_v1, %v13473_v61  ;;  %7420 = vst [vmem:[%s11940_s19 + $0x190] sm:$0xff] %v9253_v30  ;;  %v13483_v33 = vld [vmem:[#allocation70_spill] sm:$0xff]  ;;  %v13484_v53 = vld [vmem:[#allocation75_spill] sm:$0xff] }
 0x6a4   : > { %6178 = vmatpush1.bf16.msra.mxu0 %v13472_v57  ;;  %v13477_v26 = vcombine.high %v13475_v3, %v13476_v5  ;;  %7421 = vst [vmem:[%s11940_s19 + $0x198] sm:$0xff] %v9254_v18  ;;  %v9018_v0 = vcombine.low %v12426_v28, %v12428_v7  ;;  %v9020_v24 = vcombine.low %v12433_v4, %v12435_v35  ;;  %v13487_v57 = vld [vmem:[#allocation76_spill] sm:$0xff] }
 0x6a5   : > { %6033 = vmatprep.subr.bf16.mxu1 %v13474_v52  ;;  %v7492_v56 = vmax.f32 %v7491_v31, %v6766_v59  ;;  %v7518_v54 = vmax.f32 %v7517_v19, %v6768_v13  ;;  %v9261_v60 = vpack.c.bf16 %v6767_v14, %v6766_v59  ;;  %v7505_v44 = vmax.f32 %v7504_v42, %v6767_v14  ;;  %v13485_v42 = vld [vmem:[#allocation69_spill] sm:$0xff]  ;;  %v13488_v59 = vld [vmem:[#allocation56_spill] sm:$0xff]  ;;  %v13490_v52 = vld [vmem:[#allocation71_spill] sm:$0xff] }
 0x6a6   : > { %6179 = vmatprep.subr.bf16.mxu0 %v13477_v26  ;;  %v13478_v38 = vcombine.low %v12354_v1, %v13473_v61  ;;  %v9262_v51 = vpack.c.bf16 %v6769_v47, %v6768_v13  ;;  %v7531_v45 = vmax.f32 %v7530_v39, %v6769_v47  ;;  %v13479_v48 = vcombine.low %v13475_v3, %v13476_v5  ;;  %v13486_v39 = vld [vmem:[#allocation72_spill] sm:$0xff]  ;;  %v13491_v3 = vld [vmem:[#allocation74_spill] sm:$0xff]  ;;  %v13492_v5 = vld [vmem:[#allocation73_spill] sm:$0xff] }
 0x6a7   : > { %v13480_v22 = vcombine.high %v12426_v28, %v12428_v7  ;;  %v9035_v32 = vcombine.high %v2488_v34, %v2496_v43  ;;  %v7493_v50 = vrot.slane %v7492_v56, 4  ;;  %v7519_v17 = vrot.slane %v7518_v54, 4  ;;  %7428 = vst [vmem:[%s11940_s19 + $0x1d0] sm:$0xff] %v9261_v60  ;;  %v12649_v26 = vld [vmem:[#allocation25 + $0x8] sm:$0xff]  ;;  %v13496_v60 = vld [vmem:[#allocation67_spill] sm:$0xff] }
 0x6a8   : > { %6034 = vmatpush1.bf16.msra.mxu1 %v13478_v38  ;;  %6180 = vmatpush1.bf16.msra.mxu0 %v13479_v48  ;;  %v7506_v9 = vrot.slane %v7505_v44, 4  ;;  %v13481_v20 = vcombine.high %v12433_v4, %v12435_v35  ;;  %v9037_v1 = vcombine.high %v2489_v63, %v2497_v6  ;;  %7429 = vst [vmem:[%s11940_s19 + $0x1d8] sm:$0xff] %v9262_v51  ;;  %v7532_v25 = vrot.slane %v7531_v45, 4 }
 0x6a9   : > { %6035 = vmatprep.subr.bf16.mxu1 %v13480_v22  ;;  %v7494_v40 = vmax.f32 %v7492_v56, %v7493_v50  ;;  %v7520_v36 = vmax.f32 %v7518_v54, %v7519_v17  ;;  %v9034_v55 = vcombine.low %v2488_v34, %v2496_v43  ;;  %v9036_v28 = vcombine.low %v2489_v63, %v2497_v6  ;;  %v12651_v34 = vld [vmem:[#allocation26 + $0x8] sm:$0xff]  ;;  %v13493_v43 = vld [vmem:[#allocation57_spill] sm:$0xff]  ;;  %v13495_v6 = vld [vmem:[#allocation58_spill] sm:$0xff] }
 0x6aa   : > { %6181 = vmatprep.subr.bf16.mxu0 %v13481_v20  ;;  %v7507_v12 = vmax.f32 %v7505_v44, %v7506_v9  ;;  %v7533_v11 = vmax.f32 %v7531_v45, %v7532_v25  ;;  %v13489_v13 = vcombine.low %v13487_v57, %v13488_v59  ;;  %v12663_v56 = vrot.slane %v12649_v26, %v13495_v6 }
 0x6ab   : > { %v7495_v7 = vrot.slane %v7494_v40, 2  ;;  %v7521_v16 = vrot.slane %v7520_v36, 2  ;;  %v12667_v54 = vrot.slane %v12651_v34, %v13493_v43  ;;  %v12671_v44 = vrot.slane %v12649_v26, %v13496_v60 }
 0x6ac   : > { %6036 = vmatpush1.bf16.msra.mxu1 %v9018_v0  ;;  %6182 = vmatpush1.bf16.msra.mxu0 %v9020_v24  ;;  %v7508_v27 = vrot.slane %v7507_v12, 2  ;;  %v7534_v37 = vrot.slane %v7533_v11, 2  ;;  %v7702_v14 = vrot.slane %v13489_v13, %v13484_v53  ;;  %v12655_v0 = vrot.slane %v12649_v26, %v13493_v43  ;;  %v13494_v24 = vld [vmem:[#allocation66_spill] sm:$0xff] }
 0x6ad   : > { %6037 = vmatprep.subr.bf16.mxu1 %v9035_v32  ;;  %6183 = vmatprep.subr.bf16.mxu0 %v9037_v1  ;;  %v7496_v2 = vmax.f32 %v7494_v40, %v7495_v7  ;;  %v7522_v4 = vmax.f32 %v7520_v36, %v7521_v16  ;;  %v12659_v63 = vrot.slane %v12649_v26, %v13494_v24 }
 0x6ae   : > { %v7509_v35 = vmax.f32 %v7507_v12, %v7508_v27  ;;  %v7535_v8 = vmax.f32 %v7533_v11, %v7534_v37  ;;  %v12675_v51 = vrot.slane %v12651_v34, %v13494_v24  ;;  %v12679_v45 = vrot.slane %v12651_v34, %v13495_v6 }
 0x6af   : > { %v7497_v62 = vrot.slane %v7496_v2, 1  ;;  %v7523_v49 = vrot.slane %v7522_v4, 1  ;;  %v12684_v50 = vrot.slane %v12651_v34, %v13496_v60 }
 0x6b0   : > { %6038 = vmatpush1.bf16.msra.mxu1 %v9034_v55  ;;  %6184 = vmatpush1.bf16.msra.mxu0 %v9036_v28  ;;  %v7510_v46 = vrot.slane %v7509_v35, 1  ;;  %v7536_v23 = vrot.slane %v7535_v8, 1 }
 0x6b1   : > { %v7498_v21 = vmax.f32 %v7496_v2, %v7497_v62  ;;  %v7524_v58 = vmax.f32 %v7522_v4, %v7523_v49 }
 0x6b2   : > { %v7511_v10 = vmax.f32 %v7509_v35, %v7510_v46  ;;  %v7537_v31 = vmax.f32 %v7535_v8, %v7536_v23 }
 0x6b3   : > { %6040 = vmatmul.mubr.bf16.vlgmr.msra.gmra.mrb[72].mxu1 %v13482_v15  ;;  %6186 = vmatmul.mubr.bf16.vlgmr.msra.gmra.mrb[80].mxu0 %v13482_v15 }
 0x6b4   : > { %6049 = vmatprep.mubr.bf16.mxu1 %v13483_v33  ;;  %6195 = vmatprep.mubr.bf16.mxu0 %v13483_v33  ;;  %v7664_v19 = vcombine.low %v7498_v21, %v7511_v10  ;;  %v7665_v41 = vcombine.low %v7524_v58, %v7537_v31 }
 0x6b6   : > { %v7686_v29 = vrot.slane %v7664_v19, %v13484_v53  ;;  %v7693_v30 = vrot.slane %v7665_v41, %v13484_v53 }
 0x6b8   : > { %v7695_v18 = vcombine.low %v7686_v29, %v7693_v30 }
 0x6ba   : > { %v7709_v47 = vrot.slane %v7695_v18, %v13484_v53 }
 0x6bb   : > { %6050 = vmatmul.mubr.bf16.gmra.mrb[76].mxu1 %v13485_v42  ;;  %6196 = vmatmul.mubr.bf16.gmra.mrb[84].mxu0 %v13485_v42 }
 0x6bc   : > { %6059 = vmatprep.mubr.bf16.mxu1 %v13486_v39  ;;  %6205 = vmatprep.mubr.bf16.mxu0 %v13486_v39  ;;  %v7710_v61 = vcombine.low %v7702_v14, %v7709_v47 }
 0x6be   : > { %7762 = vst [vmem:[%s12640_s30] sm:$0xff] %v7710_v61 }
 0x6c3   : > { %6060 = vmatmul.mubr.bf16.gmra.mrb[80].mxu1 %v13490_v52  ;;  %6206 = vmatmul.mubr.bf16.gmra.mrb[88].mxu0 %v13490_v52 }
 0x6c4   : > { %6069 = vmatprep.mubr.bf16.mxu1 %v13491_v3  ;;  %6215 = vmatprep.mubr.bf16.mxu0 %v13491_v3 }
 0x6cb   : > { %6070 = vmatmul.mubr.bf16.gmra.mrb[84].mxu1 %v13492_v5  ;;  %6216 = vmatmul.mubr.bf16.gmra.mrb[92].mxu0 %v13492_v5 }
 0x6fa   : > { %v5749_v38 = vpop.f32.mrb[56].mxu1 }
 0x6fb   : > { %v6318_v48 = vmul.f32 %v12655_v0, %v5749_v38  ;;  %v5895_v22 = vpop.f32.mrb[64].mxu0  ;;  %v5751_v32 = vpop.f32.mrb[57].mxu1 }
 0x6fc   : > { %v6320_v17 = vmul.f32 %v12659_v63, %v5895_v22  ;;  %v6319_v9 = vmul.f32 %v12663_v56, %v5751_v32  ;;  %v5897_v20 = vpop.f32.mrb[65].mxu0  ;;  %v5753_v1 = vpop.f32.mrb[58].mxu1 }
 0x6fd   : > { %v6530_v25 = vadd.f32 %v12667_v54, %v6318_v48  ;;  %v6321_v40 = vmul.f32 %v12671_v44, %v5897_v20  ;;  %v6334_v36 = vmul.f32 %v12655_v0, %v5753_v1  ;;  %v5899_v12 = vpop.f32.mrb[66].mxu0  ;;  %v5755_v55 = vpop.f32.mrb[59].mxu1 }
 0x6fe   : > { %v6532_v11 = vadd.f32 %v12675_v51, %v6320_v17  ;;  %v6531_v28 = vadd.f32 %v12679_v45, %v6319_v9  ;;  %v6336_v7 = vmul.f32 %v12659_v63, %v5899_v12  ;;  %v6335_v16 = vmul.f32 %v12663_v56, %v5755_v55  ;;  %v5901_v27 = vpop.f32.mrb[67].mxu0 }
 0x6ff   : > { %v6658_v37 = vmax.f32 %v6530_v25, 0.0  ;;  %v6533_v2 = vadd.f32 %v12684_v50, %v6321_v40  ;;  %v6546_v4 = vadd.f32 %v12667_v54, %v6334_v36  ;;  %v6337_v35 = vmul.f32 %v12671_v44, %v5901_v27 }
 0x700   : > { %v6660_v8 = vmax.f32 %v6532_v11, 0.0  ;;  %v6659_v62 = vmax.f32 %v6531_v28, 0.0  ;;  %v6548_v49 = vadd.f32 %v12675_v51, %v6336_v7  ;;  %v6547_v46 = vadd.f32 %v12679_v45, %v6335_v16 }
 0x701   : > { %v6661_v23 = vmax.f32 %v6533_v2, 0.0  ;;  %v6674_v15 = vmax.f32 %v6546_v4, 0.0  ;;  %v6549_v21 = vadd.f32 %v12684_v50, %v6337_v35 }
 0x702   : > { %v9207_v58 = vpack.c.bf16 %v6659_v62, %v6658_v37  ;;  %v6676_v10 = vmax.f32 %v6548_v49, 0.0  ;;  %v6675_v33 = vmax.f32 %v6547_v46, 0.0  ;;  %v5759_v31 = vpop.f32.mrb[60].mxu1 }
 0x703   : > { %v9208_v19 = vpack.c.bf16 %v6661_v23, %v6660_v8  ;;  %v7538_v41 = vmax.f32 %v6658_v37, %v6674_v15  ;;  %v6677_v29 = vmax.f32 %v6549_v21, 0.0  ;;  %v6350_v30 = vmul.f32 %v12655_v0, %v5759_v31  ;;  %v5905_v42 = vpop.f32.mrb[68].mxu0  ;;  %v5761_v18 = vpop.f32.mrb[61].mxu1 }
 0x704   : > { %7374 = vst [vmem:[%s11940_s19 + $0x20] sm:$0xff] %v9207_v58  ;;  %v7564_v39 = vmax.f32 %v6660_v8, %v6676_v10  ;;  %v9215_v57 = vpack.c.bf16 %v6675_v33, %v6674_v15  ;;  %v7551_v59 = vmax.f32 %v6659_v62, %v6675_v33  ;;  %v6352_v13 = vmul.f32 %v12659_v63, %v5905_v42  ;;  %v5907_v14 = vpop.f32.mrb[69].mxu0  ;;  %v5763_v47 = vpop.f32.mrb[62].mxu1 }
 0x705   : > { %7375 = vst [vmem:[%s11940_s19 + $0x28] sm:$0xff] %v9208_v19  ;;  %v9216_v61 = vpack.c.bf16 %v6677_v29, %v6676_v10  ;;  %v7577_v52 = vmax.f32 %v6661_v23, %v6677_v29  ;;  %v6562_v3 = vadd.f32 %v12667_v54, %v6350_v30  ;;  %v6351_v5 = vmul.f32 %v12663_v56, %v5761_v18  ;;  %v5909_v43 = vpop.f32.mrb[70].mxu0  ;;  %v5765_v24 = vpop.f32.mrb[63].mxu1 }
 0x706   : > { %7382 = vst [vmem:[%s11940_s19 + $0x60] sm:$0xff] %v9215_v57  ;;  %v6564_v6 = vadd.f32 %v12675_v51, %v6352_v13  ;;  %v6353_v60 = vmul.f32 %v12671_v44, %v5907_v14  ;;  %v6366_v38 = vmul.f32 %v12655_v0, %v5763_v47  ;;  %v6368_v48 = vmul.f32 %v12659_v63, %v5909_v43  ;;  %v5911_v22 = vpop.f32.mrb[71].mxu0 }
 0x707   : > { %7383 = vst [vmem:[%s11940_s19 + $0x68] sm:$0xff] %v9216_v61  ;;  %v6690_v32 = vmax.f32 %v6562_v3, 0.0  ;;  %v6563_v17 = vadd.f32 %v12679_v45, %v6351_v5  ;;  %v6367_v9 = vmul.f32 %v12663_v56, %v5765_v24  ;;  %v6369_v20 = vmul.f32 %v12671_v44, %v5911_v22 }
 0x708   : > { %v6692_v1 = vmax.f32 %v6564_v6, 0.0  ;;  %v6565_v25 = vadd.f32 %v12684_v50, %v6353_v60  ;;  %v6578_v40 = vadd.f32 %v12667_v54, %v6366_v38  ;;  %v6580_v36 = vadd.f32 %v12675_v51, %v6368_v48 }
 0x709   : > { %v7539_v12 = vmax.f32 %v7538_v41, %v6690_v32  ;;  %v6691_v55 = vmax.f32 %v6563_v17, 0.0  ;;  %v6579_v11 = vadd.f32 %v12679_v45, %v6367_v9  ;;  %v6581_v28 = vadd.f32 %v12684_v50, %v6369_v20 }
 0x70a   : > { %v7565_v7 = vmax.f32 %v7564_v39, %v6692_v1  ;;  %v6693_v16 = vmax.f32 %v6565_v25, 0.0  ;;  %v6706_v27 = vmax.f32 %v6578_v40, 0.0  ;;  %v6708_v37 = vmax.f32 %v6580_v36, 0.0  ;;  %v5769_v2 = vpop.f32.mrb[64].mxu1 }
 0x70b   : > { %v9223_v4 = vpack.c.bf16 %v6691_v55, %v6690_v32  ;;  %v7552_v35 = vmax.f32 %v7551_v59, %v6691_v55  ;;  %v6707_v8 = vmax.f32 %v6579_v11, 0.0  ;;  %v6709_v62 = vmax.f32 %v6581_v28, 0.0  ;;  %v5915_v49 = vpop.f32.mrb[72].mxu0  ;;  %v5771_v46 = vpop.f32.mrb[65].mxu1 }
 0x70c   : > { %v9224_v23 = vpack.c.bf16 %v6693_v16, %v6692_v1  ;;  %v7578_v15 = vmax.f32 %v7577_v52, %v6693_v16  ;;  %v7540_v21 = vmax.f32 %v7539_v12, %v6706_v27  ;;  %v7566_v58 = vmax.f32 %v7565_v7, %v6708_v37  ;;  %v5917_v10 = vpop.f32.mrb[73].mxu0  ;;  %v5773_v33 = vpop.f32.mrb[66].mxu1 }
 0x70d   : > { %7390 = vst [vmem:[%s11940_s19 + $0xa0] sm:$0xff] %v9223_v4  ;;  %v9231_v31 = vpack.c.bf16 %v6707_v8, %v6706_v27  ;;  %v7553_v19 = vmax.f32 %v7552_v35, %v6707_v8  ;;  %v9232_v41 = vpack.c.bf16 %v6709_v62, %v6708_v37  ;;  %v6382_v29 = vmul.f32 %v12655_v0, %v5769_v2  ;;  %v5919_v30 = vpop.f32.mrb[74].mxu0  ;;  %v5775_v42 = vpop.f32.mrb[67].mxu1 }
 0x70e   : > { %7391 = vst [vmem:[%s11940_s19 + $0xa8] sm:$0xff] %v9224_v23  ;;  %v7579_v18 = vmax.f32 %v7578_v15, %v6709_v62  ;;  %v6384_v39 = vmul.f32 %v12659_v63, %v5915_v49  ;;  %v6383_v57 = vmul.f32 %v12663_v56, %v5771_v46  ;;  %v6385_v59 = vmul.f32 %v12671_v44, %v5917_v10  ;;  %v5921_v13 = vpop.f32.mrb[75].mxu0 }
 0x70f   : > { %7398 = vst [vmem:[%s11940_s19 + $0xe0] sm:$0xff] %v9231_v31  ;;  %7399 = vst [vmem:[%s11940_s19 + $0xe8] sm:$0xff] %v9232_v41  ;;  %v6594_v14 = vadd.f32 %v12667_v54, %v6382_v29  ;;  %v6398_v47 = vmul.f32 %v12655_v0, %v5773_v33  ;;  %v6400_v61 = vmul.f32 %v12659_v63, %v5919_v30 }
 0x710   : > { %v6399_v52 = vmul.f32 %v12663_v56, %v5775_v42  ;;  %v6596_v3 = vadd.f32 %v12675_v51, %v6384_v39  ;;  %v6595_v5 = vadd.f32 %v12679_v45, %v6383_v57  ;;  %v6597_v43 = vadd.f32 %v12684_v50, %v6385_v59 }
 0x711   : > { %v6401_v24 = vmul.f32 %v12671_v44, %v5921_v13  ;;  %v6722_v6 = vmax.f32 %v6594_v14, 0.0  ;;  %v6610_v60 = vadd.f32 %v12667_v54, %v6398_v47  ;;  %v6612_v38 = vadd.f32 %v12675_v51, %v6400_v61 }
 0x712   : > { %v6611_v48 = vadd.f32 %v12679_v45, %v6399_v52  ;;  %v6724_v22 = vmax.f32 %v6596_v3, 0.0  ;;  %v6723_v32 = vmax.f32 %v6595_v5, 0.0  ;;  %v6725_v17 = vmax.f32 %v6597_v43, 0.0  ;;  %v5779_v20 = vpop.f32.mrb[68].mxu1 }
 0x713   : > { %v6613_v9 = vadd.f32 %v12684_v50, %v6401_v24  ;;  %v7541_v1 = vmax.f32 %v7540_v21, %v6722_v6  ;;  %v6738_v25 = vmax.f32 %v6610_v60, 0.0  ;;  %v6740_v40 = vmax.f32 %v6612_v38, 0.0  ;;  %v5925_v12 = vpop.f32.mrb[76].mxu0  ;;  %v5781_v55 = vpop.f32.mrb[69].mxu1 }
 0x714   : > { %v6739_v36 = vmax.f32 %v6611_v48, 0.0  ;;  %v7567_v11 = vmax.f32 %v7566_v58, %v6724_v22  ;;  %v9239_v28 = vpack.c.bf16 %v6723_v32, %v6722_v6  ;;  %v7554_v7 = vmax.f32 %v7553_v19, %v6723_v32  ;;  %v5927_v27 = vpop.f32.mrb[77].mxu0  ;;  %v5783_v37 = vpop.f32.mrb[70].mxu1 }
 0x715   : > { %v9240_v16 = vpack.c.bf16 %v6725_v17, %v6724_v22  ;;  %v7580_v2 = vmax.f32 %v7579_v18, %v6725_v17  ;;  %v7542_v4 = vmax.f32 %v7541_v1, %v6738_v25  ;;  %v6741_v8 = vmax.f32 %v6613_v9, 0.0  ;;  %v5929_v62 = vpop.f32.mrb[78].mxu0  ;;  %v5785_v49 = vpop.f32.mrb[71].mxu1 }
 0x716   : > { %v9247_v35 = vpack.c.bf16 %v6739_v36, %v6738_v25  ;;  %7406 = vst [vmem:[%s11940_s19 + $0x120] sm:$0xff] %v9239_v28  ;;  %v7568_v46 = vmax.f32 %v7567_v11, %v6740_v40  ;;  %v7555_v23 = vmax.f32 %v7554_v7, %v6739_v36  ;;  %v6414_v15 = vmul.f32 %v12655_v0, %v5779_v20  ;;  %v5931_v58 = vpop.f32.mrb[79].mxu0 }
 0x717   : > { %7407 = vst [vmem:[%s11940_s19 + $0x128] sm:$0xff] %v9240_v16  ;;  %v6416_v21 = vmul.f32 %v12659_v63, %v5925_v12  ;;  %v9248_v10 = vpack.c.bf16 %v6741_v8, %v6740_v40  ;;  %v7581_v33 = vmax.f32 %v7580_v2, %v6741_v8  ;;  %v6415_v31 = vmul.f32 %v12663_v56, %v5781_v55 }
 0x718   : > { %7414 = vst [vmem:[%s11940_s19 + $0x160] sm:$0xff] %v9247_v35  ;;  %v6417_v19 = vmul.f32 %v12671_v44, %v5927_v27  ;;  %v6626_v41 = vadd.f32 %v12667_v54, %v6414_v15  ;;  %v6430_v30 = vmul.f32 %v12655_v0, %v5783_v37  ;;  %v6432_v42 = vmul.f32 %v12659_v63, %v5929_v62 }
 0x719   : > { %v6628_v29 = vadd.f32 %v12675_v51, %v6416_v21  ;;  %7415 = vst [vmem:[%s11940_s19 + $0x168] sm:$0xff] %v9248_v10  ;;  %v6627_v18 = vadd.f32 %v12679_v45, %v6415_v31  ;;  %v6431_v57 = vmul.f32 %v12663_v56, %v5785_v49  ;;  %v6433_v59 = vmul.f32 %v12671_v44, %v5931_v58 }
 0x71a   : > { %v6629_v39 = vadd.f32 %v12684_v50, %v6417_v19  ;;  %v6754_v13 = vmax.f32 %v6626_v41, 0.0  ;;  %v6642_v47 = vadd.f32 %v12667_v54, %v6430_v30  ;;  %v6644_v61 = vadd.f32 %v12675_v51, %v6432_v42 }
 0x71b   : > { %v6756_v14 = vmax.f32 %v6628_v29, 0.0  ;;  %v6755_v52 = vmax.f32 %v6627_v18, 0.0  ;;  %v6643_v63 = vadd.f32 %v12679_v45, %v6431_v57  ;;  %v6645_v3 = vadd.f32 %v12684_v50, %v6433_v59 }
 0x71c   : > { %v6757_v0 = vmax.f32 %v6629_v39, 0.0  ;;  %v7543_v5 = vmax.f32 %v7542_v4, %v6754_v13  ;;  %v6770_v24 = vmax.f32 %v6642_v47, 0.0  ;;  %v6772_v56 = vmax.f32 %v6644_v61, 0.0 }
 0x71d   : > { %v7569_v43 = vmax.f32 %v7568_v46, %v6756_v14  ;;  %v9255_v6 = vpack.c.bf16 %v6755_v52, %v6754_v13  ;;  %v7556_v44 = vmax.f32 %v7555_v23, %v6755_v52  ;;  %v6771_v48 = vmax.f32 %v6643_v63, 0.0 }
 0x71e   : > { %v9256_v60 = vpack.c.bf16 %v6757_v0, %v6756_v14  ;;  %v7582_v38 = vmax.f32 %v7581_v33, %v6757_v0  ;;  %v7544_v54 = vmax.f32 %v7543_v5, %v6770_v24  ;;  %v6773_v22 = vmax.f32 %v6645_v3, 0.0 }
 0x71f   : > { %v7570_v51 = vmax.f32 %v7569_v43, %v6772_v56  ;;  %7422 = vst [vmem:[%s11940_s19 + $0x1a0] sm:$0xff] %v9255_v6  ;;  %v9263_v17 = vpack.c.bf16 %v6771_v48, %v6770_v24  ;;  %v7557_v50 = vmax.f32 %v7556_v44, %v6771_v48 }
 0x720   : > { %7423 = vst [vmem:[%s11940_s19 + $0x1a8] sm:$0xff] %v9256_v60  ;;  %v7545_v32 = vrot.slane %v7544_v54, 4  ;;  %v9264_v9 = vpack.c.bf16 %v6773_v22, %v6772_v56  ;;  %v7583_v20 = vmax.f32 %v7582_v38, %v6773_v22 }
 0x721   : > { %v7571_v45 = vrot.slane %v7570_v51, 4  ;;  %7430 = vst [vmem:[%s11940_s19 + $0x1e0] sm:$0xff] %v9263_v17  ;;  %v7558_v40 = vrot.slane %v7557_v50, 4 }
 0x722   : > { %v7546_v1 = vmax.f32 %v7544_v54, %v7545_v32  ;;  %7431 = vst [vmem:[%s11940_s19 + $0x1e8] sm:$0xff] %v9264_v9  ;;  %v7584_v36 = vrot.slane %v7583_v20, 4 }
 0x723   : > { %v7572_v25 = vmax.f32 %v7570_v51, %v7571_v45  ;;  %v7559_v11 = vmax.f32 %v7557_v50, %v7558_v40 }
 0x724   : > { %v7547_v12 = vrot.slane %v7546_v1, 2  ;;  %v7585_v28 = vmax.f32 %v7583_v20, %v7584_v36 }
 0x725   : > { %v7573_v55 = vrot.slane %v7572_v25, 2  ;;  %v7560_v27 = vrot.slane %v7559_v11, 2 }
 0x726   : > { %v7548_v7 = vmax.f32 %v7546_v1, %v7547_v12  ;;  %v7586_v37 = vrot.slane %v7585_v28, 2 }
 0x727   : > { %v7574_v16 = vmax.f32 %v7572_v25, %v7573_v55  ;;  %v7561_v35 = vmax.f32 %v7559_v11, %v7560_v27 }
 0x728   : > { %v7549_v2 = vrot.slane %v7548_v7, 1  ;;  %v7587_v8 = vmax.f32 %v7585_v28, %v7586_v37 }
 0x729   : > { %v7575_v4 = vrot.slane %v7574_v16, 1  ;;  %v7562_v49 = vrot.slane %v7561_v35, 1 }
 0x72a   : > { %v7550_v62 = vmax.f32 %v7548_v7, %v7549_v2  ;;  %v7588_v23 = vrot.slane %v7587_v8, 1 }
 0x72b   : > { %v7576_v46 = vmax.f32 %v7574_v16, %v7575_v4  ;;  %v7563_v15 = vmax.f32 %v7561_v35, %v7562_v49 }
 0x72c   : > { %v7589_v21 = vmax.f32 %v7587_v8, %v7588_v23 }
 0x72d   : > { %v7711_v58 = vcombine.low %v7550_v62, %v7563_v15 }
 0x72e   : > { %v7712_v10 = vcombine.low %v7576_v46, %v7589_v21 }
 0x72f   : > { %v12769_v33 = vrot.slane %v7711_v58, %v13484_v53 }
 0x730   : > { %v12774_v31 = vrot.slane %v7712_v10, %v13484_v53 }
 0x732   : > { %v7743_v19 = vcombine.low %v12769_v33, %v12774_v31 }
 0x733   : > { %10369 = shalt.err (!%p10366_p3)
}
 0x734   : > { %s10370_s10 = scalar_lea.hbm %s12790_s1, 512  ;;  %s10374_s20 = scalar_lea.hbm %s13498_s22, 1024 }
 0x735   : > { %p10371_p11 = scmp.ne.s32.totalorder %s12790_s1, %s10370_s10  ;;  %p10375_p1 = scmp.lt.u32.totalorder %s12790_s1, %s13498_s22 }
 0x736   : > { %p10376_p4 = scmp.lt.u32.totalorder %s10374_s20, %s10370_s10  ;;  %p10378_p10 = scmp.lt.u32.totalorder %s10370_s10, %s12790_s1 }
 0x737   : > { %p10372_p6 = pnand %p10371_p11, %p13500_p12 }
 0x738   : > { %p10377_p9 = por %p10376_p4, %p10375_p1 }
 0x739   : > { %p10373_p13 = pneg %p10372_p6 }
 0x73a   : > { %p10379_p0 = por %p10378_p10, %p10377_p9 }
 0x73c   : > { %p10380_p7 = pnand %p10379_p0, %p10373_p13 }
 0x73e   : > { %10383 = shalt.err (!%p10380_p7)
}
 0x73f   : > { %s13251_s15 = smov 64   ;;  %s13253_s24 = smov 4  }
 0x740   : > { %9641 = dma.vmem_to_hbm [thread:$0]  (%p13500_p12), %s12776_s25, 512, %s12790_s1, %s12800_s14, %s13251_s15, %s13251_s15, %s13253_s24  }
 0x741   : > { %s9270_s4 = sshll.u32 %s13497_s18, 11  ;;  %s7986_s10 = sshll.u32 %s11351_s5, 4  ;;  %s12834_s10 = int_to_ptr.vmem [resolvable:$true] %s7986_s10 }
 0x742   : > { %s13501_s16 = sld [smem:[#allocation98_spill]]  ;;  %s12838_s22 = scalar_lea.sflag [#allocation33], %s7895_s0 }
 0x743   : > { %s10384_s29 = scalar_lea.vmem %s12834_s10, 2048  ;;  %s10650_s25 = smov [#allocation32]  }
 0x744   : > { %p10385_p2 = scmp.ne.s32.totalorder %s12834_s10, %s10384_s29  ;;  %s10388_s5 = sshll.u32 %s10650_s25, 4  ;;  %s10389_s5 = int_to_ptr.vmem [resolvable:$false] %s10388_s5 }
 0x745   : > { %s10390_s1 = scalar_lea.vmem %s10389_s5, 4096  ;;  %p10391_p3 = scmp.lt.s32.totalorder %s12834_s10, %s10389_s5 }
 0x746   : > { %p10386_p5 = pnand %p10385_p2, %p13500_p12  ;;  %p10392_p11 = scmp.lt.s32.totalorder %s10390_s1, %s10384_s29 }
 0x748   : > { %s12832_s21 = scalar_lea.hbm %s13501_s16, %s9270_s4  ;;  %p10387_p8 = pneg %p10386_p5 }
 0x749   : > { %p10393_p6 = por %p10392_p11, %p10391_p3 }
 0x74b   : > { %p10394_p13 = pnand %p10393_p6, %p10387_p8 }
 0x74d   : > { %10397 = shalt.err (!%p10394_p13)
}
 0x74e   : > { %s10398_s26 = scalar_lea.hbm %s12832_s21, 2048  ;;  %s10402_s17 = scalar_lea.hbm %s13501_s16, 4096 }
 0x74f   : > { %p10399_p1 = scmp.ne.s32.totalorder %s12832_s21, %s10398_s26  ;;  %p10403_p10 = scmp.lt.u32.totalorder %s12832_s21, %s13501_s16 }
 0x750   : > { %p10404_p0 = scmp.lt.u32.totalorder %s10402_s17, %s10398_s26  ;;  %p10406_p2 = scmp.lt.u32.totalorder %s10398_s26, %s12832_s21 }
 0x751   : > { %p10400_p4 = pnand %p10399_p1, %p13500_p12 }
 0x752   : > { %p10405_p7 = por %p10404_p0, %p10403_p10 }
 0x753   : > { %p10401_p9 = pneg %p10400_p4 }
 0x754   : > { %p10407_p5 = por %p10406_p2, %p10405_p7 }
 0x756   : > { %p10408_p8 = pnand %p10407_p5, %p10401_p9 }
 0x758   : > { %10411 = shalt.err (!%p10408_p8)
}
 0x759   : > { %s10651_s29 = smov 256   ;;  %s10652_s5 = smov 16  }
 0x75a   : > { %9643 = dma.vmem_to_hbm [thread:$0]  (%p13500_p12), %s12834_s10, 2048, %s12832_s21, %s12838_s22, %s10651_s29, %s10651_s29, %s10652_s5  }
 0x75b   : > { %s13502_s26 = sld [smem:[#allocation95_spill]]  ;;  %s7891_s20 = scalar_lea.sflag [#allocation4], %s11222_s27 }
 0x75c   : > { %s10412_s25 = scalar_lea.vmem %s12771_s2, 512  ;;  %s10653_s15 = smov [#allocation28]  }
 0x75d   : > { %p10413_p3 = scmp.ne.s32.totalorder %s12771_s2, %s10412_s25  ;;  %s10416_s24 = sshll.u32 %s10653_s15, 4  ;;  %s10417_s24 = int_to_ptr.vmem [resolvable:$false] %s10416_s24 }
 0x75e   : > { %s10418_s16 = scalar_lea.vmem %s10417_s24, 1024  ;;  %p10419_p13 = scmp.lt.s32.totalorder %s12771_s2, %s10417_s24 }
 0x75f   : > { %p10414_p11 = pnand %p10413_p3, %p13500_p12  ;;  %p10420_p1 = scmp.lt.s32.totalorder %s10418_s16, %s10412_s25 }
 0x761   : > { %s13503_s4 = smov %s13502_s26  ;;  %s12866_s17 = scalar_lea.hbm %s13502_s26, %s12782_s6 }
 0x762   : > { %p10415_p6 = pneg %p10414_p11  ;;  %p10421_p4 = por %p10420_p1, %p10419_p13 }
 0x764   : > { %p10422_p9 = pnand %p10421_p4, %p10415_p6 }
 0x766   : > { %10425 = shalt.err (!%p10422_p9)
}
 0x767   : > { %s10426_s6 = scalar_lea.hbm %s12866_s17, 512  ;;  %s10430_s15 = scalar_lea.hbm %s13503_s4, 1024 }
 0x768   : > { %p10427_p10 = scmp.ne.s32.totalorder %s12866_s17, %s10426_s6  ;;  %p10431_p2 = scmp.lt.u32.totalorder %s12866_s17, %s13503_s4 }
 0x769   : > { %p10432_p5 = scmp.lt.u32.totalorder %s10430_s15, %s10426_s6  ;;  %p10434_p3 = scmp.lt.u32.totalorder %s10426_s6, %s12866_s17 }
 0x76a   : > { %p10428_p0 = pnand %p10427_p10, %p13500_p12 }
 0x76b   : > { %p10433_p8 = por %p10432_p5, %p10431_p2 }
 0x76c   : > { %p10429_p7 = pneg %p10428_p0 }
 0x76d   : > { %p10435_p11 = por %p10434_p3, %p10433_p8 }
 0x76f   : > { %p10436_p6 = pnand %p10435_p11, %p10429_p7 }
 0x771   : > { %10439 = shalt.err (!%p10436_p6)
}
 0x772   : > { %s13504_s16 = smov 4   ;;  %s13505_s5 = smov 64  }
 0x773   : > { %9640 = dma.vmem_to_hbm [thread:$0]  (%p13500_p12), %s12771_s2, 512, %s12866_s17, %s7891_s20, %s13505_s5, %s13505_s5, %s13504_s16  }
 0x774   : > { %s10440_s1 = scalar_lea.vmem %s12778_s7, 512  ;;  %s10654_s0 = smov [#allocation31]  }
 0x775   : > { %p10441_p13 = scmp.ne.s32.totalorder %s12778_s7, %s10440_s1  ;;  %s10444_s26 = sshll.u32 %s10654_s0, 4  ;;  %s10445_s26 = int_to_ptr.vmem [resolvable:$false] %s10444_s26 }
 0x776   : > { %s10446_s25 = scalar_lea.vmem %s10445_s26, 1024  ;;  %p10447_p9 = scmp.lt.s32.totalorder %s12778_s7, %s10445_s26 }
 0x777   : > { %p10442_p1 = pnand %p10441_p13, %p13500_p12  ;;  %p10448_p10 = scmp.lt.s32.totalorder %s10446_s25, %s10440_s1 }
 0x779   : > { %p10443_p4 = pneg %p10442_p1  ;;  %p10449_p0 = por %p10448_p10, %p10447_p9 }
 0x77b   : > { %p10450_p7 = pnand %p10449_p0, %p10443_p4 }
 0x77d   : > { %10453 = shalt.err (!%p10450_p7)
}
 0x77e   : > { %s10454_s2 = scalar_lea.hbm %s12796_s13, 512  ;;  %s10458_s6 = scalar_lea.hbm %s13499_s12, 1024 }
 0x77f   : > { %p10455_p2 = scmp.ne.s32.totalorder %s12796_s13, %s10454_s2  ;;  %p10459_p3 = scmp.lt.u32.totalorder %s12796_s13, %s13499_s12 }
 0x780   : > { %p10460_p11 = scmp.lt.u32.totalorder %s10458_s6, %s10454_s2  ;;  %p10462_p13 = scmp.lt.u32.totalorder %s10454_s2, %s12796_s13 }
 0x781   : > { %p10456_p5 = pnand %p10455_p2, %p13500_p12 }
 0x782   : > { %p10461_p6 = por %p10460_p11, %p10459_p3 }
 0x783   : > { %p10457_p8 = pneg %p10456_p5 }
 0x784   : > { %p10463_p1 = por %p10462_p13, %p10461_p6 }
 0x786   : > { %p10464_p4 = pnand %p10463_p1, %p10457_p8 }
 0x788   : > { %10467 = shalt.err (!%p10464_p4)
}
 0x789   : > { %9642 = dma.vmem_to_hbm [thread:$0]  (%p13500_p12), %s12778_s7, 512, %s12796_s13, %s12800_s14, %s13505_s5, %s13505_s5, %s13504_s16   ;;  %v13506_v41 = vld [vmem:[#allocation60_spill] sm:$0xff]  ;;  %v13507_v30 = vld [vmem:[#allocation59_spill] sm:$0xff]  ;;  %v13508_v18 = vld [vmem:[#allocation61_spill] sm:$0xff]  ;;  %v6041_v14 = vpop.f32.mrb[72].mxu1  ;;  %v6187_v0 = vpop.f32.mrb[80].mxu0 }
 0x78a   : > { %v12922_v29 = vrot.slane %v12649_v26, %v13506_v41  ;;  %v12926_v42 = vrot.slane %v12649_v26, %v13507_v30  ;;  %v12930_v39 = vrot.slane %v12649_v26, %v13508_v18  ;;  %v12934_v57 = vrot.slane %v12651_v34, %v13506_v41  ;;  %v13509_v59 = vld [vmem:[#allocation77_spill] sm:$0xff]  ;;  %v6043_v63 = vpop.f32.mrb[73].mxu1  ;;  %v6189_v43 = vpop.f32.mrb[81].mxu0  ;;  %s9271_s13 = sshll.u32 %s13497_s18, 13  ;;  %s8005_s14 = sshll.u32 %s11940_s19, 4  ;;  %s13037_s14 = int_to_ptr.vmem [resolvable:$true] %s8005_s14 }
 0x78b   : > { %v12938_v13 = vrot.slane %v12649_v26, %v13509_v59  ;;  %v12942_v47 = vrot.slane %v12651_v34, %v13507_v30  ;;  %v12946_v61 = vrot.slane %v12651_v34, %v13508_v18  ;;  %v12951_v3 = vrot.slane %v12651_v34, %v13509_v59  ;;  %v6045_v24 = vpop.f32.mrb[74].mxu1  ;;  %v6191_v60 = vpop.f32.mrb[82].mxu0  ;;  %s13510_s29 = sld [smem:[#allocation99_spill]]  ;;  %s10468_s16 = scalar_lea.vmem %s13037_s14, 8192 }
 0x78c   : > { %v6322_v52 = vmul.f32 %v12922_v29, %v6041_v14  ;;  %v6324_v26 = vmul.f32 %v12926_v42, %v6187_v0  ;;  %v6323_v5 = vmul.f32 %v12930_v39, %v6043_v63  ;;  %v6338_v44 = vmul.f32 %v12922_v29, %v6045_v24  ;;  %v6047_v38 = vpop.f32.mrb[75].mxu1  ;;  %v6193_v22 = vpop.f32.mrb[83].mxu0  ;;  %p10469_p9 = scmp.ne.s32.totalorder %s13037_s14, %s10468_s16  ;;  %s10655_s1 = smov [#allocation34]  }
 0x78d   : > { %v6325_v6 = vmul.f32 %v12938_v13, %v6189_v43  ;;  %v6340_v34 = vmul.f32 %v12926_v42, %v6191_v60  ;;  %v6339_v48 = vmul.f32 %v12930_v39, %v6047_v38  ;;  %v6341_v50 = vmul.f32 %v12938_v13, %v6193_v22  ;;  %s10472_s0 = sshll.u32 %s10655_s1, 4  ;;  %s10473_s0 = int_to_ptr.vmem [resolvable:$false] %s10472_s0 }
 0x78e   : > { %v6534_v56 = vadd.f32 %v12934_v57, %v6322_v52  ;;  %v6536_v54 = vadd.f32 %v12942_v47, %v6324_v26  ;;  %v6535_v51 = vadd.f32 %v12946_v61, %v6323_v5  ;;  %v6550_v17 = vadd.f32 %v12934_v57, %v6338_v44  ;;  %v6051_v7 = vpop.f32.mrb[76].mxu1  ;;  %v6197_v4 = vpop.f32.mrb[84].mxu0  ;;  %p10470_p10 = pnand %p10469_p9, %p13500_p12  ;;  %s10474_s26 = scalar_lea.vmem %s10473_s0, 16384 }
 0x78f   : > { %v6537_v45 = vadd.f32 %v12951_v3, %v6325_v6  ;;  %v6552_v1 = vadd.f32 %v12942_v47, %v6340_v34  ;;  %v6551_v25 = vadd.f32 %v12946_v61, %v6339_v48  ;;  %v6553_v12 = vadd.f32 %v12951_v3, %v6341_v50  ;;  %v6053_v35 = vpop.f32.mrb[77].mxu1  ;;  %v6199_v23 = vpop.f32.mrb[85].mxu0  ;;  %p10475_p7 = scmp.lt.s32.totalorder %s13037_s14, %s10473_s0  ;;  %p10476_p2 = scmp.lt.s32.totalorder %s10474_s26, %s10468_s16 }
 0x790   : > { %v6662_v32 = vmax.f32 %v6534_v56, 0.0  ;;  %v6664_v9 = vmax.f32 %v6536_v54, 0.0  ;;  %v6663_v20 = vmax.f32 %v6535_v51, 0.0  ;;  %v6678_v36 = vmax.f32 %v6550_v17, 0.0  ;;  %v6055_v15 = vpop.f32.mrb[78].mxu1  ;;  %v6201_v30 = vpop.f32.mrb[86].mxu0  ;;  %p10471_p0 = pneg %p10470_p10 }
 0x791   : > { %v6665_v40 = vmax.f32 %v6537_v45, 0.0  ;;  %v6680_v11 = vmax.f32 %v6552_v1, 0.0  ;;  %v6679_v28 = vmax.f32 %v6551_v25, 0.0  ;;  %v6681_v37 = vmax.f32 %v6553_v12, 0.0  ;;  %v6057_v18 = vpop.f32.mrb[79].mxu1  ;;  %v6203_v63 = vpop.f32.mrb[87].mxu0  ;;  %s13035_s24 = scalar_lea.hbm %s13510_s29, %s9271_s13  ;;  %p10477_p5 = por %p10476_p2, %p10475_p7 }
 0x792   : > { %v9209_v55 = vpack.c.bf16 %v6663_v20, %v6662_v32  ;;  %v7590_v27 = vmax.f32 %v6662_v32, %v6678_v36  ;;  %v6354_v2 = vmul.f32 %v12922_v29, %v6051_v7  ;;  %v6356_v46 = vmul.f32 %v12926_v42, %v6197_v4 }
 0x793   : > { %v9210_v16 = vpack.c.bf16 %v6665_v40, %v6664_v9  ;;  %v7616_v8 = vmax.f32 %v6664_v9, %v6680_v11  ;;  %v9217_v62 = vpack.c.bf16 %v6679_v28, %v6678_v36  ;;  %v7603_v49 = vmax.f32 %v6663_v20, %v6679_v28  ;;  %p10478_p8 = pnand %p10477_p5, %p10471_p0 }
 0x794   : > { %7376 = vst [vmem:[%s11940_s19 + $0x30] sm:$0xff] %v9209_v55  ;;  %v9218_v21 = vpack.c.bf16 %v6681_v37, %v6680_v11  ;;  %v7629_v58 = vmax.f32 %v6665_v40, %v6681_v37  ;;  %v6566_v10 = vadd.f32 %v12934_v57, %v6354_v2  ;;  %v6355_v41 = vmul.f32 %v12930_v39, %v6053_v35 }
 0x795   : > { %7377 = vst [vmem:[%s11940_s19 + $0x38] sm:$0xff] %v9210_v16  ;;  %7384 = vst [vmem:[%s11940_s19 + $0x70] sm:$0xff] %v9217_v62  ;;  %v6568_v59 = vadd.f32 %v12942_v47, %v6356_v46  ;;  %v6357_v14 = vmul.f32 %v12938_v13, %v6199_v23  ;;  %v6370_v52 = vmul.f32 %v12922_v29, %v6055_v15 }
 0x796   : > { %v6372_v0 = vmul.f32 %v12926_v42, %v6201_v30  ;;  %7385 = vst [vmem:[%s11940_s19 + $0x78] sm:$0xff] %v9218_v21  ;;  %v6694_v26 = vmax.f32 %v6566_v10, 0.0  ;;  %v6567_v5 = vadd.f32 %v12946_v61, %v6355_v41  ;;  %v6371_v43 = vmul.f32 %v12930_v39, %v6057_v18  ;;  %v6061_v17 = vpop.f32.mrb[80].mxu1  ;;  %v6207_v25 = vpop.f32.mrb[88].mxu0 }
 0x797   : > { %v6373_v24 = vmul.f32 %v12938_v13, %v6203_v63  ;;  %v6696_v56 = vmax.f32 %v6568_v59, 0.0  ;;  %v6569_v6 = vadd.f32 %v12951_v3, %v6357_v14  ;;  %v6582_v44 = vadd.f32 %v12934_v57, %v6370_v52  ;;  %v6063_v40 = vpop.f32.mrb[81].mxu1  ;;  %v6209_v28 = vpop.f32.mrb[89].mxu0 }
 0x798   : > { %v6584_v60 = vadd.f32 %v12942_v47, %v6372_v0  ;;  %v7591_v38 = vmax.f32 %v7590_v27, %v6694_v26  ;;  %v6695_v54 = vmax.f32 %v6567_v5, 0.0  ;;  %v6583_v51 = vadd.f32 %v12946_v61, %v6371_v43  ;;  %v6065_v7 = vpop.f32.mrb[82].mxu1  ;;  %v6211_v4 = vpop.f32.mrb[90].mxu0 }
 0x799   : > { %v6585_v34 = vadd.f32 %v12951_v3, %v6373_v24  ;;  %v7617_v48 = vmax.f32 %v7616_v8, %v6696_v56  ;;  %v6697_v22 = vmax.f32 %v6569_v6, 0.0  ;;  %v6710_v32 = vmax.f32 %v6582_v44, 0.0  ;;  %v6067_v35 = vpop.f32.mrb[83].mxu1  ;;  %v6213_v23 = vpop.f32.mrb[91].mxu0 }
 0x79a   : > { %v6712_v45 = vmax.f32 %v6584_v60, 0.0  ;;  %v9225_v50 = vpack.c.bf16 %v6695_v54, %v6694_v26  ;;  %v7604_v9 = vmax.f32 %v7603_v49, %v6695_v54  ;;  %v6711_v20 = vmax.f32 %v6583_v51, 0.0 }
 0x79b   : > { %v6713_v1 = vmax.f32 %v6585_v34, 0.0  ;;  %v9226_v36 = vpack.c.bf16 %v6697_v22, %v6696_v56  ;;  %v7630_v12 = vmax.f32 %v7629_v58, %v6697_v22  ;;  %v7592_v55 = vmax.f32 %v7591_v38, %v6710_v32 }
 0x79c   : > { %v7618_v11 = vmax.f32 %v7617_v48, %v6712_v45  ;;  %7392 = vst [vmem:[%s11940_s19 + $0xb0] sm:$0xff] %v9225_v50  ;;  %v9233_v16 = vpack.c.bf16 %v6711_v20, %v6710_v32  ;;  %v7605_v27 = vmax.f32 %v7604_v9, %v6711_v20  ;;  %v6386_v2 = vmul.f32 %v12922_v29, %v6061_v17 }
 0x79d   : > { %v9234_v37 = vpack.c.bf16 %v6713_v1, %v6712_v45  ;;  %7393 = vst [vmem:[%s11940_s19 + $0xb8] sm:$0xff] %v9226_v36  ;;  %v7631_v8 = vmax.f32 %v7630_v12, %v6713_v1  ;;  %v6388_v62 = vmul.f32 %v12926_v42, %v6207_v25  ;;  %v6387_v49 = vmul.f32 %v12930_v39, %v6063_v40 }
 0x79e   : > { %v6389_v46 = vmul.f32 %v12938_v13, %v6209_v28  ;;  %7400 = vst [vmem:[%s11940_s19 + $0xf0] sm:$0xff] %v9233_v16  ;;  %v6598_v15 = vadd.f32 %v12934_v57, %v6386_v2  ;;  %v6402_v21 = vmul.f32 %v12922_v29, %v6065_v7  ;;  %v6404_v58 = vmul.f32 %v12926_v42, %v6211_v4  ;;  %v6071_v56 = vpop.f32.mrb[84].mxu1  ;;  %v6217_v54 = vpop.f32.mrb[92].mxu0 }
 0x79f   : > { %7401 = vst [vmem:[%s11940_s19 + $0xf8] sm:$0xff] %v9234_v37  ;;  %v6403_v10 = vmul.f32 %v12930_v39, %v6067_v35  ;;  %v6600_v41 = vadd.f32 %v12942_v47, %v6388_v62  ;;  %v6599_v30 = vadd.f32 %v12946_v61, %v6387_v49  ;;  %v6405_v59 = vmul.f32 %v12938_v13, %v6213_v23  ;;  %v6073_v51 = vpop.f32.mrb[85].mxu1  ;;  %v6219_v45 = vpop.f32.mrb[93].mxu0 }
 0x7a0   : > { %v6601_v18 = vadd.f32 %v12951_v3, %v6389_v46  ;;  %v6726_v14 = vmax.f32 %v6598_v15, 0.0  ;;  %v6614_v52 = vadd.f32 %v12934_v57, %v6402_v21  ;;  %v6616_v0 = vadd.f32 %v12942_v47, %v6404_v58  ;;  %v6075_v17 = vpop.f32.mrb[86].mxu1  ;;  %v6221_v25 = vpop.f32.mrb[94].mxu0 }
 0x7a1   : > { %v6615_v63 = vadd.f32 %v12946_v61, %v6403_v10  ;;  %v6728_v26 = vmax.f32 %v6600_v41, 0.0  ;;  %v6727_v5 = vmax.f32 %v6599_v30, 0.0  ;;  %v6617_v24 = vadd.f32 %v12951_v3, %v6405_v59  ;;  %v6077_v40 = vpop.f32.mrb[87].mxu1  ;;  %v6223_v28 = vpop.f32.mrb[95].mxu0 }
 0x7a2   : > { %v6729_v43 = vmax.f32 %v6601_v18, 0.0  ;;  %v7593_v6 = vmax.f32 %v7592_v55, %v6726_v14  ;;  %v6742_v44 = vmax.f32 %v6614_v52, 0.0  ;;  %v6744_v60 = vmax.f32 %v6616_v0, 0.0 }
 0x7a3   : > { %v6743_v38 = vmax.f32 %v6615_v63, 0.0  ;;  %v7619_v34 = vmax.f32 %v7618_v11, %v6728_v26  ;;  %v9241_v48 = vpack.c.bf16 %v6727_v5, %v6726_v14  ;;  %v7606_v22 = vmax.f32 %v7605_v27, %v6727_v5 }
 0x7a4   : > { %v9242_v32 = vpack.c.bf16 %v6729_v43, %v6728_v26  ;;  %v7632_v50 = vmax.f32 %v7631_v8, %v6729_v43  ;;  %v7594_v9 = vmax.f32 %v7593_v6, %v6742_v44  ;;  %v6745_v1 = vmax.f32 %v6617_v24, 0.0 }
 0x7a5   : > { %v9249_v20 = vpack.c.bf16 %v6743_v38, %v6742_v44  ;;  %7408 = vst [vmem:[%s11940_s19 + $0x130] sm:$0xff] %v9241_v48  ;;  %v7620_v36 = vmax.f32 %v7619_v34, %v6744_v60  ;;  %v7607_v12 = vmax.f32 %v7606_v22, %v6743_v38  ;;  %v6418_v55 = vmul.f32 %v12922_v29, %v6071_v56 }
 0x7a6   : > { %7409 = vst [vmem:[%s11940_s19 + $0x138] sm:$0xff] %v9242_v32  ;;  %v6420_v11 = vmul.f32 %v12926_v42, %v6217_v54  ;;  %v9250_v7 = vpack.c.bf16 %v6745_v1, %v6744_v60  ;;  %v7633_v16 = vmax.f32 %v7632_v50, %v6745_v1  ;;  %v6419_v27 = vmul.f32 %v12930_v39, %v6073_v51 }
 0x7a7   : > { %7416 = vst [vmem:[%s11940_s19 + $0x170] sm:$0xff] %v9249_v20  ;;  %v6421_v37 = vmul.f32 %v12938_v13, %v6219_v45  ;;  %v6630_v2 = vadd.f32 %v12934_v57, %v6418_v55  ;;  %v6434_v35 = vmul.f32 %v12922_v29, %v6075_v17  ;;  %v6436_v8 = vmul.f32 %v12926_v42, %v6221_v25 }
 0x7a8   : > { %v6632_v4 = vadd.f32 %v12942_v47, %v6420_v11  ;;  %7417 = vst [vmem:[%s11940_s19 + $0x178] sm:$0xff] %v9250_v7  ;;  %v6631_v62 = vadd.f32 %v12946_v61, %v6419_v27  ;;  %v6435_v46 = vmul.f32 %v12930_v39, %v6077_v40  ;;  %v6437_v23 = vmul.f32 %v12938_v13, %v6223_v28 }
 0x7a9   : > { %v6633_v49 = vadd.f32 %v12951_v3, %v6421_v37  ;;  %v6758_v15 = vmax.f32 %v6630_v2, 0.0  ;;  %v6646_v58 = vadd.f32 %v12934_v57, %v6434_v35  ;;  %v6648_v10 = vadd.f32 %v12942_v47, %v6436_v8 }
 0x7aa   : > { %v6760_v21 = vmax.f32 %v6632_v4, 0.0  ;;  %v6759_v41 = vmax.f32 %v6631_v62, 0.0  ;;  %v6647_v42 = vadd.f32 %v12946_v61, %v6435_v46  ;;  %v6649_v30 = vadd.f32 %v12951_v3, %v6437_v23 }
 0x7ab   : > { %v6761_v29 = vmax.f32 %v6633_v49, 0.0  ;;  %v7595_v18 = vmax.f32 %v7594_v9, %v6758_v15  ;;  %v6774_v59 = vmax.f32 %v6646_v58, 0.0  ;;  %v6776_v13 = vmax.f32 %v6648_v10, 0.0 }
 0x7ac   : > { %v7621_v39 = vmax.f32 %v7620_v36, %v6760_v21  ;;  %v9257_v14 = vpack.c.bf16 %v6759_v41, %v6758_v15  ;;  %v7608_v52 = vmax.f32 %v7607_v12, %v6759_v41  ;;  %v6775_v26 = vmax.f32 %v6647_v42, 0.0 }
 0x7ad   : > { %v9258_v0 = vpack.c.bf16 %v6761_v29, %v6760_v21  ;;  %v7634_v63 = vmax.f32 %v7633_v16, %v6761_v29  ;;  %v7596_v57 = vmax.f32 %v7595_v18, %v6774_v59  ;;  %v6777_v5 = vmax.f32 %v6649_v30, 0.0 }
 0x7ae   : > { %v7622_v47 = vmax.f32 %v7621_v39, %v6776_v13  ;;  %7424 = vst [vmem:[%s11940_s19 + $0x1b0] sm:$0xff] %v9257_v14  ;;  %v9265_v43 = vpack.c.bf16 %v6775_v26, %v6774_v59  ;;  %v7609_v24 = vmax.f32 %v7608_v52, %v6775_v26 }
 0x7af   : > { %7425 = vst [vmem:[%s11940_s19 + $0x1b8] sm:$0xff] %v9258_v0  ;;  %v7597_v61 = vrot.slane %v7596_v57, 4  ;;  %v9266_v56 = vpack.c.bf16 %v6777_v5, %v6776_v13  ;;  %v7635_v6 = vmax.f32 %v7634_v63, %v6777_v5 }
 0x7b0   : > { %v7623_v3 = vrot.slane %v7622_v47, 4  ;;  %7432 = vst [vmem:[%s11940_s19 + $0x1f0] sm:$0xff] %v9265_v43  ;;  %v7610_v38 = vrot.slane %v7609_v24, 4 }
 0x7b1   : > { %v7598_v44 = vmax.f32 %v7596_v57, %v7597_v61  ;;  %7433 = vst [vmem:[%s11940_s19 + $0x1f8] sm:$0xff] %v9266_v56  ;;  %v7636_v54 = vrot.slane %v7635_v6, 4 }
 0x7b2   : > { %v7624_v60 = vmax.f32 %v7622_v47, %v7623_v3  ;;  %v7611_v48 = vmax.f32 %v7609_v24, %v7610_v38 }
 0x7b3   : > { %v7599_v51 = vrot.slane %v7598_v44, 2 }
 0x7b4   : > { %v7625_v34 = vrot.slane %v7624_v60, 2 }
 0x7b5   : > { %10481 = shalt.err (!%p10478_p8)
}
 0x7b6   : > { %s10482_s19 = scalar_lea.hbm %s13035_s24, 8192  ;;  %s10486_s17 = scalar_lea.hbm %s13510_s29, 16384 }
 0x7b7   : > { %p10483_p3 = scmp.ne.s32.totalorder %s13035_s24, %s10482_s19  ;;  %p10487_p13 = scmp.lt.u32.totalorder %s13035_s24, %s13510_s29 }
 0x7b8   : > { %p10488_p1 = scmp.lt.u32.totalorder %s10486_s17, %s10482_s19  ;;  %p10490_p9 = scmp.lt.u32.totalorder %s10482_s19, %s13035_s24 }
 0x7b9   : > { %p10484_p11 = pnand %p10483_p3, %p13500_p12 }
 0x7ba   : > { %p10489_p4 = por %p10488_p1, %p10487_p13 }
 0x7bb   : > { %p10485_p6 = pneg %p10484_p11 }
 0x7bc   : > { %p10491_p10 = por %p10490_p9, %p10489_p4 }
 0x7be   : > { %p10492_p0 = pnand %p10491_p10, %p10485_p6 }
 0x7c0   : > { %10495 = shalt.err (!%p10492_p0)
}
 0x7c1   : > { %s10656_s10 = smov 1024   ;;  %v7637_v22 = vmax.f32 %v7635_v6, %v7636_v54  ;;  %v7600_v32 = vmax.f32 %v7598_v44, %v7599_v51  ;;  %v7626_v45 = vmax.f32 %v7624_v60, %v7625_v34  ;;  %v7612_v17 = vrot.slane %v7611_v48, 2 }
 0x7c2   : > { %9644 = dma.vmem_to_hbm [thread:$0]  (%p13500_p12), %s13037_s14, 8192, %s13035_s24, %s12838_s22, %s10656_s10, %s10656_s10, %s13505_s5   ;;  %v7751_v4 = vrot.slane %v7743_v19, %v13484_v53 }
 0x7c3   : > { %v7638_v50 = vrot.slane %v7637_v22, 2  ;;  %v7601_v9 = vrot.slane %v7600_v32, 1  ;;  %v7627_v20 = vrot.slane %v7626_v45, 1  ;;  %v7613_v1 = vmax.f32 %v7611_v48, %v7612_v17  ;;  %s9272_s22 = sshll.u32 %s13497_s18, 8  ;;  %s8022_s5 = sshll.u32 %s12640_s30, 4  ;;  %s13078_s5 = int_to_ptr.vmem [resolvable:$true] %s8022_s5 }
 0x7c4   : > { %s13511_s14 = sld [smem:[#allocation100_spill]]  ;;  %s7916_s18 = scalar_lea.sflag [#allocation36], %s11222_s27 }
 0x7c5   : > { %v7639_v25 = vmax.f32 %v7637_v22, %v7638_v50  ;;  %v7602_v40 = vmax.f32 %v7600_v32, %v7601_v9  ;;  %v7614_v36 = vrot.slane %v7613_v1, 1  ;;  %v7628_v12 = vmax.f32 %v7626_v45, %v7627_v20  ;;  %s10496_s15 = scalar_lea.vmem %s13078_s5, 256  ;;  %s10657_s24 = smov [#allocation35]  }
 0x7c6   : > { %p10497_p7 = scmp.ne.s32.totalorder %s13078_s5, %s10496_s15  ;;  %s10500_s16 = sshll.u32 %s10657_s24, 4  ;;  %s10501_s16 = int_to_ptr.vmem [resolvable:$false] %s10500_s16 }
 0x7c7   : > { %v7640_v55 = vrot.slane %v7639_v25, 1  ;;  %v7615_v11 = vmax.f32 %v7613_v1, %v7614_v36  ;;  %s10502_s1 = scalar_lea.vmem %s10501_s16, 512  ;;  %p10503_p8 = scmp.lt.s32.totalorder %s13078_s5, %s10501_s16 }
 0x7c8   : > { %p10498_p2 = pnand %p10497_p7, %p13500_p12  ;;  %p10504_p3 = scmp.lt.s32.totalorder %s10502_s1, %s10496_s15 }
 0x7c9   : > { %v7641_v28 = vmax.f32 %v7639_v25, %v7640_v55  ;;  %v7713_v7 = vcombine.low %v7602_v40, %v7615_v11 }
 0x7ca   : > { %s13076_s7 = scalar_lea.hbm %s13511_s14, %s9272_s22  ;;  %p10499_p5 = pneg %p10498_p2 }
 0x7cb   : > { %v7714_v16 = vcombine.low %v7628_v12, %v7641_v28  ;;  %v7735_v27 = vrot.slane %v7713_v7, %v13484_v53  ;;  %p10505_p11 = por %p10504_p3, %p10503_p8 }
 0x7cd   : > { %v7742_v37 = vrot.slane %v7714_v16, %v13484_v53  ;;  %p10506_p6 = pnand %p10505_p11, %p10499_p5 }
 0x7cf   : > { %v7744_v2 = vcombine.low %v7735_v27, %v7742_v37 }
 0x7d1   : > { %v7758_v35 = vrot.slane %v7744_v2, %v13484_v53 }
 0x7d3   : > { %v7759_v8 = vcombine.low %v7751_v4, %v7758_v35 }
 0x7d5   : > { %7763 = vst [vmem:[%s12640_s30 + $0x8] sm:$0xff] %v7759_v8 }
 0x7d6   : > { %10509 = shalt.err (!%p10506_p6)
}
 0x7d7   : > { %s10510_s27 = scalar_lea.hbm %s13076_s7, 256  ;;  %s10514_s26 = scalar_lea.hbm %s13511_s14, 512 }
 0x7d8   : > { %p10511_p13 = scmp.ne.s32.totalorder %s13076_s7, %s10510_s27  ;;  %p10515_p9 = scmp.lt.u32.totalorder %s13076_s7, %s13511_s14 }
 0x7d9   : > { %p10516_p10 = scmp.lt.u32.totalorder %s10514_s26, %s10510_s27  ;;  %p10518_p7 = scmp.lt.u32.totalorder %s10510_s27, %s13076_s7 }
 0x7da   : > { %p10512_p1 = pnand %p10511_p13, %p13500_p12 }
 0x7db   : > { %p10517_p0 = por %p10516_p10, %p10515_p9 }
 0x7dc   : > { %p10513_p4 = pneg %p10512_p1 }
 0x7dd   : > { %p10519_p2 = por %p10518_p7, %p10517_p0 }
 0x7df   : > { %p10520_p5 = pnand %p10519_p2, %p10513_p4 }
 0x7e1   : > { %10523 = shalt.err (!%p10520_p5)
}
 0x7e2   : > { %9645 = dma.vmem_to_hbm [thread:$0]  (%p13500_p12), %s13078_s5, 256, %s13076_s7, %s7916_s18  }
 0x7e3 PF: > { %s13512_s2 = sld [smem:[#allocation50_spill]]  ;;  %p13513_p8 = scmp.ne.s32.totalorder %s13314_s11, 0 }
 0x7e4   : > { %p13514_p3 = scmp.ge.s32.totalorder %s10622_s28, 2 }
 0x7e6   : > { %p9703_p11 = pnand %p13514_p3, %p13513_p8 }
 0x7e9   : > { %s8034_s17 = sand.u32 1, %s13512_s2  }
 0x7ea   : > { %s8035_s20 = scalar_lea.sflag [#allocation4], %s8034_s17 }
 0x7eb   : > { %10585 = dma.done.wait (!%p9703_p11), %s8035_s20, 512  }
 0x7ec   : > { %10587 = vsyncadd (!%p9703_p11), %s8035_s20, 4294966784  ;;  %s13515_s6 = sadd.s32 4294967294, %s10622_s28  }
 0x7ed   : > { %s8043_s10 = sand.u32 1, %s13515_s6  }
 0x7ee   : > { %s8044_s22 = scalar_lea.sflag [#allocation30], %s8043_s10 }
 0x7ef   : > { %10589 = dma.done.wait (!%p9703_p11), %s8044_s22, 1024  }
 0x7f0   : > { %10591 = vsyncadd (!%p9703_p11), %s8044_s22, 4294966272  ;;  %s8062_s8 = scalar_lea.sflag [#allocation33], %s8043_s10 }
 0x7f1   : > { %10593 = dma.done.wait (!%p9703_p11), %s8062_s8, 10240  }
 0x7f2   : > { %10595 = vsyncadd (!%p9703_p11), %s8062_s8, 4294957056  ;;  %s8080_s5 = scalar_lea.sflag [#allocation36], %s8034_s17 }
 0x7f3   : > { %10597 = dma.done.wait (!%p9703_p11), %s8080_s5, 256  }
 0x7f4   : > { %10599 = vsyncadd (!%p9703_p11), %s8080_s5, 4294967040  ;;  %s55_s28 = sadd.s32 1, %s10622_s28   ;;  %s13516_s2 = sld [smem:[#allocation51_spill]] }
 0x7f5   : > { %p52_p12 = scmp.ge.s32.totalorder %s55_s28, 4   ;;  %s13517_s25 = sld [smem:[#allocation52_spill]] }
 0x7f6   : > { %s13518_s26 = smov %s11166_s9  ;;  %s13519_s27 = smov %s10618_s3 }
 0x7f7   : > { %s13520_s3 = smov %s13522_s23  ;;  %54 = sbr.rel (!%p52_p12) target bundleno = 43 (0x2b), region = 278 }
 0x7fe   :  { %8085 = vsyncpa [#allocation3], 1 }
 0x7ff   :  { %8087 = vsyncpa [#allocation3 + $0x1], 1 }
 0x800   :  { %8088 = vsyncpa [#allocation6], 1 }
 0x801   :  { %8089 = vsyncpa [#allocation9], 1 }
 0x802   :  { %8090 = vsyncpa [#allocation12], 1 }
 0x803   :  { %8091 = vsyncpa [#allocation15], 1 }
 0x804   :  { %8092 = vsyncpa [#allocation18], 1 }
 0x805   :  { %8093 = vsyncpa [#allocation21], 1 }
 0x806   :  { %8094 = vsyncpa [#allocation24], 1 }
 0x807   :  { %8095 = vsyncpa [#allocation27], 1 }
 0x808   :  { %8096 = vsyncpa [#allocation4], 1 }
 0x809   :  { %8098 = vsyncpa [#allocation4 + $0x1], 1 }
 0x80a   :  { %8099 = vsyncpa [#allocation30], 1 }
 0x80b   :  { %8101 = vsyncpa [#allocation30 + $0x1], 1 }
 0x80c   :  { %8102 = vsyncpa [#allocation33], 1 }
 0x80d   :  { %8104 = vsyncpa [#allocation33 + $0x1], 1 }
 0x80e   :  { %8105 = vsyncpa [#allocation36], 1 }
 0x80f   :  { %8107 = vsyncpa [#allocation36 + $0x1], 1 }

</bundles_post_ra>
